<compile_context>
chip_gen: v5e
topology: v5e:2x2
jax: 0.10.0
libtpu: 0.0.40
codegen_flags: <defaults>
</compile_context>

<pallas_src>
import functools

import jax
import jax.numpy as jnp
from jax.experimental import pallas as pl
from jax.experimental.pallas import tpu as pltpu


# ----------------------------------------------------------------------------
# Small helpers
# ----------------------------------------------------------------------------
def _largest_divisor_leq(n, cap):
    cap = max(1, min(cap, n))
    for d in range(cap, 0, -1):
        if n % d == 0:
            return d
    return 1


def _vmem_limit_bytes():
    # Generation-gated VMEM budget: ~3/4 of physical VMEM, capped at 96 MiB
    # (=> ~96 MiB on v5e/v6e's 128 MiB, 48 MiB on v7x's 64 MiB).
    try:
        cap = int(pltpu.get_tpu_info().vmem_capacity_bytes)
    except Exception:
        cap = 64 * 1024 * 1024
    return min((cap * 3) // 4, 96 * 1024 * 1024)


# ----------------------------------------------------------------------------
# Pallas kernel 1: 3x3 stride-1 conv + bias + ReLU, row-tiled.
# grid = (N, H // TH).  The padded NHWC image is one block revisited along the
# row axis (single DMA per image); each grid step slices TH+2 input rows with
# pl.ds and accumulates the 9 taps as (TH*W, Cin) @ (Cin, Cout) matmuls into a
# local (vreg) f32 value -- no VMEM accumulator round trips.
# seq_out=True stores the tile directly in (H, N, W, C) sequence layout.
# ----------------------------------------------------------------------------
def _conv3x3_kernel(x_ref, w_ref, b_ref, o_ref, *, TH, W, seq_out):
    h = pl.program_id(1)
    cin = x_ref.shape[-1]
    cout = w_ref.shape[-1]
    row0 = h * TH
    if TH % 8 == 0:
        row0 = pl.multiple_of(row0, 8)

    acc = jnp.zeros((TH * W, cout), jnp.float32)
    for k in range(9):                       # statically unrolled 3x3 taps
        dy, dx = k // 3, k % 3
        win = x_ref[0, pl.ds(row0 + dy, TH), pl.ds(dx, W), :]
        acc = acc + jnp.dot(win.reshape(TH * W, cin), w_ref[k],
                            preferred_element_type=jnp.float32)
    out = jnp.maximum(acc + b_ref[...], 0.0).reshape(TH, W, cout)
    if seq_out:
        o_ref[:, 0, :, :] = out.astype(o_ref.dtype)      # (TH, 1, W, C) block
    else:
        o_ref[0] = out.astype(o_ref.dtype)               # (1, TH, W, C) block


def conv3x3_relu(x, w, b, *, seq_out=False, row_target=256):
    # x: (N, H, W, cin) bf16; w: (9, cin, cout) bf16; b: (1, cout) f32
    # seq_out=False -> (N, H, W, cout) bf16
    # seq_out=True  -> (H, N, W, cout) bf16   (pre-LSTM sequence layout)
    N, H, W, cin = x.shape
    cout = w.shape[-1]
    xp = jnp.pad(x, ((0, 0), (1, 1), (1, 1), (0, 0)))
    Hp, Wp = H + 2, W + 2
    # Row tile sized so the f32 accumulator stays ~<= 32 vregs (<= 256 rows).
    TH = _largest_divisor_leq(H, max(1, row_target // W))
    grid = (N, H // TH)

    if seq_out:
        out_shape = jax.ShapeDtypeStruct((H, N, W, cout), jnp.bfloat16)
        out_specs = pl.BlockSpec((TH, 1, W, cout), lambda n, h: (h, n, 0, 0))
    else:
        out_shape = jax.ShapeDtypeStruct((N, H, W, cout), jnp.bfloat16)
        out_specs = pl.BlockSpec((1, TH, W, cout), lambda n, h: (n, h, 0, 0))

    return pl.pallas_call(
        functools.partial(_conv3x3_kernel, TH=TH, W=W, seq_out=seq_out),
        out_shape=out_shape,
        grid_spec=pltpu.PrefetchScalarGridSpec(
            num_scalar_prefetch=0,
            grid=grid,
            in_specs=[
                # Whole padded image; block index is constant along the row
                # axis so it is DMA'd once per image and reused from VMEM.
                pl.BlockSpec((1, Hp, Wp, cin), lambda n, h: (n, 0, 0, 0)),
                pl.BlockSpec((9, cin, cout), lambda n, h: (0, 0, 0)),
                pl.BlockSpec((1, cout), lambda n, h: (0, 0)),
            ],
            out_specs=out_specs,
        ),
        compiler_params=pltpu.CompilerParams(
            dimension_semantics=("parallel", "arbitrary"),
            vmem_limit_bytes=_vmem_limit_bytes()),
    )(xp, w, b)


def avg_pool2(x):
    # 2x2 average pool.  Kept as a cheap XLA op: with the channel-padding fix
    # the pooled maps are small (16/32 channels).  TODO(synk): fuse into the
    # conv epilogue to remove this HBM round trip entirely.
    N, H, W, C = x.shape
    x = x.astype(jnp.float32).reshape(N, H // 2, 2, W // 2, 2, C)
    return x.mean(axis=(2, 4)).astype(jnp.bfloat16)


# ----------------------------------------------------------------------------
# Pallas kernel 2: fused 3-layer LSTM + Linear, TT time steps per grid step.
# grid = (batch_chunks, T // TT).  Per time step each layer does a single bf16
# matmul [x, h_prev] (bb,256) @ [W_ih; W_hh] (256,512), gate math in f32, and
# the last hidden state goes through the (128->128, zero-padded) FC, so the
# only HBM writeback is one lane-dense (TT, bb, 128) slab per grid step.
# Gate columns are pre-permuted to [i | f | o | g] => one sigmoid + one tanh.
# PyTorch semantics: gates i,f,g,o; bias = b_ih + b_hh; h/c carried in f32.
# ----------------------------------------------------------------------------
def _lstm3_fc_kernel(x_ref, w_ref, b_ref, wfc_ref, bfc_ref, o_ref,
                     h_scr, c_scr, *, TT):
    @pl.when(pl.program_id(1) == 0)
    def _():
        h_scr[...] = jnp.zeros_like(h_scr)
        c_scr[...] = jnp.zeros_like(c_scr)

    Hd = 128

    @pl.loop(0, TT)
    def _(t):
        x_l = x_ref[t]                                       # (bb, 128) bf16
        for layer in range(3):                               # unrolled layers
            h_prev = h_scr[layer]                            # (bb, 128) f32
            c_prev = c_scr[layer]
            # Single K=256 MXU matmul per layer per step.
            # TODO(synk): on v5e (4x128^2 MXU) two K=128 matmuls avoid the
            #             concat copy with no MXU-fill loss.
            xh = jnp.concatenate([x_l, h_prev.astype(x_l.dtype)], axis=-1)
            gates = jnp.dot(xh, w_ref[layer],
                            preferred_element_type=jnp.float32)
            gates = gates + b_ref[layer]
            sig = jax.nn.sigmoid(gates[:, :3 * Hd])          # i, f, o at once
            g = jnp.tanh(gates[:, 3 * Hd:])
            i = sig[:, 0 * Hd:1 * Hd]
            f = sig[:, 1 * Hd:2 * Hd]
            o = sig[:, 2 * Hd:3 * Hd]
            c = f * c_prev + i * g
            hh = o * jnp.tanh(c)
            h_scr[layer] = hh
            c_scr[layer] = c
            x_l = hh.astype(x_l.dtype)
        # Fused final Linear (out dim zero-padded to 128 lanes).
        y = jnp.dot(x_l, wfc_ref[...], preferred_element_type=jnp.float32)
        o_ref[t] = (y + bfc_ref[...]).astype(o_ref.dtype)


def lstm3_fc(seq, lstm_w, lstm_b, fc_w, fc_b):
    # seq: (T, B, 128) bf16; lstm_w: (3, 256, 512) bf16; lstm_b: (3, 1, 512) f32
    # fc_w: (128, 128) bf16; fc_b: (1, 128) f32  ->  out: (T, B, 128) f32
    T, B, D = seq.shape
    assert D == 128
    # Batch chunking: bb <= 128 keeps the f32 gate slab <= 64 vregs and only
    # splits the batch when each chunk still fills the MXU M dimension (so
    # small-B cases run with nb=1 on single-TC chips).
    bb = _largest_divisor_leq(B, 128)
    nb = B // bb
    # Time blocking: TT steps per grid iteration amortize per-step pipeline
    # overhead; h/c persist in VMEM scratch across time blocks.
    TT = _largest_divisor_leq(T, 32)
    # TODO(synk): pipeline_mode=pl.Buffered(1) on the invariant weight blocks
    #             would halve their VMEM reservation (~1.6 MiB total).
    return pl.pallas_call(
        functools.partial(_lstm3_fc_kernel, TT=TT),
        out_shape=jax.ShapeDtypeStruct((T, B, 128), jnp.float32),
        grid_spec=pltpu.PrefetchScalarGridSpec(
            num_scalar_prefetch=0,
            grid=(nb, T // TT),
            in_specs=[
                pl.BlockSpec((TT, bb, 128), lambda b, t: (t, b, 0)),
                pl.BlockSpec((3, 256, 512), lambda b, t: (0, 0, 0)),
                pl.BlockSpec((3, 1, 512), lambda b, t: (0, 0, 0)),
                pl.BlockSpec((128, 128), lambda b, t: (0, 0)),
                pl.BlockSpec((1, 128), lambda b, t: (0, 0)),
            ],
            out_specs=pl.BlockSpec((TT, bb, 128), lambda b, t: (t, b, 0)),
            scratch_shapes=[
                pltpu.VMEM((3, bb, 128), jnp.float32),   # h state, 3 layers
                pltpu.VMEM((3, bb, 128), jnp.float32),   # c state, 3 layers
            ],
        ),
        compiler_params=pltpu.CompilerParams(
            dimension_semantics=("parallel", "arbitrary"),
            vmem_limit_bytes=_vmem_limit_bytes()),
    )(seq, lstm_w, lstm_b, fc_w, fc_b)


# ----------------------------------------------------------------------------
# Parameters: raw PyTorch-layout init (deterministic), then packing/padding
# into the layouts the kernels consume.
# ----------------------------------------------------------------------------
def init_params(key, num_classes=16):
    def u(k, shape, fan_in):
        bound = 1.0 / jnp.sqrt(jnp.float32(fan_in))
        return jax.random.uniform(k, shape, jnp.float32, -bound, bound)

    ks = iter(jax.random.split(key, 32))
    hid = 128
    p = {}
    # CNN stand-in: 3 -> 16 -> 32 -> 64 channels (overall stride 4 via pooling).
    for idx, (cout, cin) in enumerate([(16, 3), (32, 16), (64, 32)], start=1):
        p[f"conv{idx}_w"] = u(next(ks), (cout, cin, 3, 3), cin * 9)
        p[f"conv{idx}_b"] = u(next(ks), (cout,), cin * 9)
    # LSTM(input=64, hidden=128, num_layers=3) — PyTorch parameter layout.
    for layer in range(3):
        d_in = 64 if layer == 0 else hid
        p[f"lstm_wih_{layer}"] = u(next(ks), (4 * hid, d_in), hid)
        p[f"lstm_whh_{layer}"] = u(next(ks), (4 * hid, hid), hid)
        p[f"lstm_bih_{layer}"] = u(next(ks), (4 * hid,), hid)
        p[f"lstm_bhh_{layer}"] = u(next(ks), (4 * hid,), hid)
    # Linear(128, num_classes*3) — PyTorch (out, in) layout.
    p["fc_w"] = u(next(ks), (num_classes * 3, hid), hid)
    p["fc_b"] = u(next(ks), (num_classes * 3,), hid)
    return p


def prepare_params(raw, num_classes=16):
    f32, bf16 = jnp.float32, jnp.bfloat16
    hid = 128
    p = {}
    # Convs: (cout,cin,3,3) -> (9, cin_p, cout_p) bf16.  Intermediate channels
    # stay unpadded (16/32); only conv3's output is padded to 128 lanes since
    # it feeds the LSTM.
    cin_pads = [8, 16, 32]
    cout_pads = [16, 32, 128]
    for idx in range(1, 4):
        w = raw[f"conv{idx}_w"]
        b = raw[f"conv{idx}_b"]
        cout, cin = w.shape[0], w.shape[1]
        cin_p, cout_p = cin_pads[idx - 1], cout_pads[idx - 1]
        wk = jnp.transpose(w, (2, 3, 1, 0)).reshape(9, cin, cout)
        wk = jnp.pad(wk, ((0, 0), (0, cin_p - cin), (0, cout_p - cout)))
        p[f"conv{idx}_w"] = wk.astype(bf16)
        p[f"conv{idx}_b"] = jnp.pad(b, (0, cout_p - cout)).reshape(1, cout_p).astype(f32)

    # LSTM: per layer W = [W_ih^T (padded to 128 rows); W_hh^T] -> (256, 512),
    # with gate columns permuted from PyTorch [i|f|g|o] to [i|f|o|g] so the
    # kernel can apply one fused sigmoid over the first 384 lanes.
    def permute_gates(m):
        return jnp.concatenate(
            [m[..., :2 * hid], m[..., 3 * hid:], m[..., 2 * hid:3 * hid]], axis=-1)

    ws, bs = [], []
    for layer in range(3):
        w_ih_t = raw[f"lstm_wih_{layer}"].T          # (d_in, 512)
        d_in = w_ih_t.shape[0]
        if d_in < hid:                               # layer 0: pad 64 -> 128
            w_ih_t = jnp.pad(w_ih_t, ((0, hid - d_in), (0, 0)))
        w_hh_t = raw[f"lstm_whh_{layer}"].T          # (128, 512)
        ws.append(permute_gates(jnp.concatenate([w_ih_t, w_hh_t], axis=0)))
        bs.append(permute_gates(
            (raw[f"lstm_bih_{layer}"] + raw[f"lstm_bhh_{layer}"]).reshape(1, 4 * hid)))
    p["lstm_w"] = jnp.stack(ws).astype(bf16)         # (3, 256, 512)
    p["lstm_b"] = jnp.stack(bs).astype(f32)          # (3, 1, 512)

    # FC: (out, in) -> (128, 128) bf16 with out padded 48 -> 128 (lane-dense).
    out_dim = num_classes * 3
    assert out_dim <= 128
    p["fc_w"] = jnp.pad(raw["fc_w"].T, ((0, 0), (0, 128 - out_dim))).astype(bf16)
    p["fc_b"] = jnp.pad(raw["fc_b"], (0, 128 - out_dim)).reshape(1, 128).astype(f32)
    return p


# ----------------------------------------------------------------------------
# Forward pass (mirrors Model.forward)
# ----------------------------------------------------------------------------
def model_forward(params, x_nchw, num_classes=16):
    # NCHW (PyTorch) -> NHWC bf16; first-conv input channels padded 3 -> 8.
    x = jnp.transpose(x_nchw, (0, 2, 3, 1)).astype(jnp.bfloat16)
    x = jnp.pad(x, ((0, 0), (0, 0), (0, 0), (0, (-x.shape[-1]) % 8)))
    x = conv3x3_relu(x, params["conv1_w"], params["conv1_b"])   # (N,H,W,16)
    x = avg_pool2(x)
    x = conv3x3_relu(x, params["conv2_w"], params["conv2_b"])   # (N,H/2,W/2,32)
    x = avg_pool2(x)
    # conv3 writes directly in (H, N, W, C) sequence layout, so PyTorch's
    # permute(2,0,3,1).reshape(H, N*W, C) is a free contiguous reshape.
    seq = conv3x3_relu(x, params["conv3_w"], params["conv3_b"],
                       seq_out=True)                            # (Hc,N,Wc,128)
    Hc, N, Wc, Cp = seq.shape
    seq = seq.reshape(Hc, N * Wc, Cp)
    y = lstm3_fc(seq, params["lstm_w"], params["lstm_b"],
                 params["fc_w"], params["fc_b"])                # (Hc,N*Wc,128)
    y = y[:, :, :num_classes * 3]
    # view(H, N, W, 3, num_classes).permute(1, 0, 2, 3, 4)
    y = y.reshape(Hc, N, Wc, 3, num_classes)
    return jnp.transpose(y, (1, 0, 2, 3, 4))


if __name__ == "__main__":
    num_classes = 16
    key = jax.random.PRNGKey(0)
    pkey, xkey = jax.random.split(key)
    params = prepare_params(init_params(pkey, num_classes=num_classes),
                            num_classes=num_classes)

    # Small deterministic input: batch=2, RGB, 32x32 spatial -> 8x8 features.
    x = jax.random.normal(xkey, (2, 3, 32, 32), jnp.float32)

    fwd = jax.jit(functools.partial(model_forward, num_classes=num_classes))
    out = fwd(params, x)
    out = jax.block_until_ready(out)

    expected = (2, 8, 8, 3, num_classes)   # (N, H, W, 3, num_classes), H=W=32/4
    assert out.shape == expected, (out.shape, expected)
    assert out.dtype == jnp.float32
    assert bool(jnp.all(jnp.isfinite(out)))
    print("KERNEL_OK")
</pallas_src>

<mosaic_0001>
module attributes {stable_mosaic.version = 11 : i64} {
  func.func @_conv3x3_kernel(%arg0: i32, %arg1: i32, %arg2: memref<1x34x34x8xbf16, #tpu.memory_space<vmem>>, %arg3: memref<9x8x16xbf16, #tpu.memory_space<vmem>>, %arg4: memref<1x16xf32, #tpu.memory_space<vmem>>, %arg5: memref<1x8x32x16xbf16, #tpu.memory_space<vmem>>) attributes {dimension_semantics = [#tpu.dimension_semantics<parallel>, #tpu.dimension_semantics<arbitrary>], iteration_bounds = array<i64: 2, 4>, scalar_prefetch = 0 : i64, scratch_operands = 0 : i64, tpu.core_type = #tpu.core_type<tc>, window_params = [{transform_indices = @transform_0, window_bounds = array<i64: 1, 34, 34, 8>}, {pipeline_mode = #tpu.pipeline_mode<synchronous>, transform_indices = @transform_1, window_bounds = array<i64: 9, 8, 16>}, {pipeline_mode = #tpu.pipeline_mode<synchronous>, transform_indices = @transform_2, window_bounds = array<i64: 1, 16>}, {transform_indices = @transform_3, window_bounds = array<i64: 1, 8, 32, 16>}]} {
    %c8_i32 = arith.constant 8 : i32
    %0 = arith.muli %arg1, %c8_i32 : i32
    %1 = tpu.assume_multiple %0, 8 : i32
    %cst = arith.constant 0.000000e+00 : f32
    %2 = vector.broadcast %cst : f32 to vector<256x16xf32>
    %c0_i32 = arith.constant 0 : i32
    %3 = arith.addi %1, %c0_i32 : i32
    %c0 = arith.constant 0 : index
    %4 = arith.index_cast %3 : i32 to index
    %c0_0 = arith.constant 0 : index
    %c0_1 = arith.constant 0 : index
    %5 = vector.load %arg2[%c0, %4, %c0_0, %c0_1] : memref<1x34x34x8xbf16, #tpu.memory_space<vmem>>, vector<1x8x32x8xbf16>
    %6 = vector.shape_cast %5 : vector<1x8x32x8xbf16> to vector<8x32x8xbf16>
    %7 = vector.shape_cast %6 : vector<8x32x8xbf16> to vector<256x8xbf16>
    %c0_2 = arith.constant 0 : index
    %c0_3 = arith.constant 0 : index
    %c0_4 = arith.constant 0 : index
    %8 = vector.load %arg3[%c0_2, %c0_3, %c0_4] : memref<9x8x16xbf16, #tpu.memory_space<vmem>>, vector<1x8x16xbf16>
    %9 = vector.shape_cast %8 : vector<1x8x16xbf16> to vector<8x16xbf16>
    %cst_5 = arith.constant dense<0.000000e+00> : vector<256x16xf32>
    %10 = tpu.matmul %7, %9, %cst_5 {dimension_numbers = #tpu.dot_dimension_numbers<[1], [0], [0], [1], [0, 0, 1, 1], [], []>} : vector<256x8xbf16>, vector<8x16xbf16>, vector<256x16xf32> -> vector<256x16xf32>
    %11 = arith.addf %2, %10 : vector<256x16xf32>
    %c0_i32_6 = arith.constant 0 : i32
    %12 = arith.addi %1, %c0_i32_6 : i32
    %c0_7 = arith.constant 0 : index
    %13 = arith.index_cast %12 : i32 to index
    %c1 = arith.constant 1 : index
    %c0_8 = arith.constant 0 : index
    %14 = vector.load %arg2[%c0_7, %13, %c1, %c0_8] : memref<1x34x34x8xbf16, #tpu.memory_space<vmem>>, vector<1x8x32x8xbf16>
    %15 = vector.shape_cast %14 : vector<1x8x32x8xbf16> to vector<8x32x8xbf16>
    %16 = vector.shape_cast %15 : vector<8x32x8xbf16> to vector<256x8xbf16>
    %c1_9 = arith.constant 1 : index
    %c0_10 = arith.constant 0 : index
    %c0_11 = arith.constant 0 : index
    %17 = vector.load %arg3[%c1_9, %c0_10, %c0_11] : memref<9x8x16xbf16, #tpu.memory_space<vmem>>, vector<1x8x16xbf16>
    %18 = vector.shape_cast %17 : vector<1x8x16xbf16> to vector<8x16xbf16>
    %cst_12 = arith.constant dense<0.000000e+00> : vector<256x16xf32>
    %19 = tpu.matmul %16, %18, %cst_12 {dimension_numbers = #tpu.dot_dimension_numbers<[1], [0], [0], [1], [0, 0, 1, 1], [], []>} : vector<256x8xbf16>, vector<8x16xbf16>, vector<256x16xf32> -> vector<256x16xf32>
    %20 = arith.addf %11, %19 : vector<256x16xf32>
    %c0_i32_13 = arith.constant 0 : i32
    %21 = arith.addi %1, %c0_i32_13 : i32
    %c0_14 = arith.constant 0 : index
    %22 = arith.index_cast %21 : i32 to index
    %c2 = arith.constant 2 : index
    %c0_15 = arith.constant 0 : index
    %23 = vector.load %arg2[%c0_14, %22, %c2, %c0_15] : memref<1x34x34x8xbf16, #tpu.memory_space<vmem>>, vector<1x8x32x8xbf16>
    %24 = vector.shape_cast %23 : vector<1x8x32x8xbf16> to vector<8x32x8xbf16>
    %25 = vector.shape_cast %24 : vector<8x32x8xbf16> to vector<256x8xbf16>
    %c2_16 = arith.constant 2 : index
    %c0_17 = arith.constant 0 : index
    %c0_18 = arith.constant 0 : index
    %26 = vector.load %arg3[%c2_16, %c0_17, %c0_18] : memref<9x8x16xbf16, #tpu.memory_space<vmem>>, vector<1x8x16xbf16>
    %27 = vector.shape_cast %26 : vector<1x8x16xbf16> to vector<8x16xbf16>
    %cst_19 = arith.constant dense<0.000000e+00> : vector<256x16xf32>
    %28 = tpu.matmul %25, %27, %cst_19 {dimension_numbers = #tpu.dot_dimension_numbers<[1], [0], [0], [1], [0, 0, 1, 1], [], []>} : vector<256x8xbf16>, vector<8x16xbf16>, vector<256x16xf32> -> vector<256x16xf32>
    %29 = arith.addf %20, %28 : vector<256x16xf32>
    %c1_i32 = arith.constant 1 : i32
    %30 = arith.addi %1, %c1_i32 : i32
    %c0_20 = arith.constant 0 : index
    %31 = arith.index_cast %30 : i32 to index
    %c0_21 = arith.constant 0 : index
    %c0_22 = arith.constant 0 : index
    %32 = vector.load %arg2[%c0_20, %31, %c0_21, %c0_22] : memref<1x34x34x8xbf16, #tpu.memory_space<vmem>>, vector<1x8x32x8xbf16>
    %33 = vector.shape_cast %32 : vector<1x8x32x8xbf16> to vector<8x32x8xbf16>
    %34 = vector.shape_cast %33 : vector<8x32x8xbf16> to vector<256x8xbf16>
    %c3 = arith.constant 3 : index
    %c0_23 = arith.constant 0 : index
    %c0_24 = arith.constant 0 : index
    %35 = vector.load %arg3[%c3, %c0_23, %c0_24] : memref<9x8x16xbf16, #tpu.memory_space<vmem>>, vector<1x8x16xbf16>
    %36 = vector.shape_cast %35 : vector<1x8x16xbf16> to vector<8x16xbf16>
    %cst_25 = arith.constant dense<0.000000e+00> : vector<256x16xf32>
    %37 = tpu.matmul %34, %36, %cst_25 {dimension_numbers = #tpu.dot_dimension_numbers<[1], [0], [0], [1], [0, 0, 1, 1], [], []>} : vector<256x8xbf16>, vector<8x16xbf16>, vector<256x16xf32> -> vector<256x16xf32>
    %38 = arith.addf %29, %37 : vector<256x16xf32>
    %c1_i32_26 = arith.constant 1 : i32
    %39 = arith.addi %1, %c1_i32_26 : i32
    %c0_27 = arith.constant 0 : index
    %40 = arith.index_cast %39 : i32 to index
    %c1_28 = arith.constant 1 : index
    %c0_29 = arith.constant 0 : index
    %41 = vector.load %arg2[%c0_27, %40, %c1_28, %c0_29] : memref<1x34x34x8xbf16, #tpu.memory_space<vmem>>, vector<1x8x32x8xbf16>
    %42 = vector.shape_cast %41 : vector<1x8x32x8xbf16> to vector<8x32x8xbf16>
    %43 = vector.shape_cast %42 : vector<8x32x8xbf16> to vector<256x8xbf16>
    %c4 = arith.constant 4 : index
    %c0_30 = arith.constant 0 : index
    %c0_31 = arith.constant 0 : index
    %44 = vector.load %arg3[%c4, %c0_30, %c0_31] : memref<9x8x16xbf16, #tpu.memory_space<vmem>>, vector<1x8x16xbf16>
    %45 = vector.shape_cast %44 : vector<1x8x16xbf16> to vector<8x16xbf16>
    %cst_32 = arith.constant dense<0.000000e+00> : vector<256x16xf32>
    %46 = tpu.matmul %43, %45, %cst_32 {dimension_numbers = #tpu.dot_dimension_numbers<[1], [0], [0], [1], [0, 0, 1, 1], [], []>} : vector<256x8xbf16>, vector<8x16xbf16>, vector<256x16xf32> -> vector<256x16xf32>
    %47 = arith.addf %38, %46 : vector<256x16xf32>
    %c1_i32_33 = arith.constant 1 : i32
    %48 = arith.addi %1, %c1_i32_33 : i32
    %c0_34 = arith.constant 0 : index
    %49 = arith.index_cast %48 : i32 to index
    %c2_35 = arith.constant 2 : index
    %c0_36 = arith.constant 0 : index
    %50 = vector.load %arg2[%c0_34, %49, %c2_35, %c0_36] : memref<1x34x34x8xbf16, #tpu.memory_space<vmem>>, vector<1x8x32x8xbf16>
    %51 = vector.shape_cast %50 : vector<1x8x32x8xbf16> to vector<8x32x8xbf16>
    %52 = vector.shape_cast %51 : vector<8x32x8xbf16> to vector<256x8xbf16>
    %c5 = arith.constant 5 : index
    %c0_37 = arith.constant 0 : index
    %c0_38 = arith.constant 0 : index
    %53 = vector.load %arg3[%c5, %c0_37, %c0_38] : memref<9x8x16xbf16, #tpu.memory_space<vmem>>, vector<1x8x16xbf16>
    %54 = vector.shape_cast %53 : vector<1x8x16xbf16> to vector<8x16xbf16>
    %cst_39 = arith.constant dense<0.000000e+00> : vector<256x16xf32>
    %55 = tpu.matmul %52, %54, %cst_39 {dimension_numbers = #tpu.dot_dimension_numbers<[1], [0], [0], [1], [0, 0, 1, 1], [], []>} : vector<256x8xbf16>, vector<8x16xbf16>, vector<256x16xf32> -> vector<256x16xf32>
    %56 = arith.addf %47, %55 : vector<256x16xf32>
    %c2_i32 = arith.constant 2 : i32
    %57 = arith.addi %1, %c2_i32 : i32
    %c0_40 = arith.constant 0 : index
    %58 = arith.index_cast %57 : i32 to index
    %c0_41 = arith.constant 0 : index
    %c0_42 = arith.constant 0 : index
    %59 = vector.load %arg2[%c0_40, %58, %c0_41, %c0_42] : memref<1x34x34x8xbf16, #tpu.memory_space<vmem>>, vector<1x8x32x8xbf16>
    %60 = vector.shape_cast %59 : vector<1x8x32x8xbf16> to vector<8x32x8xbf16>
    %61 = vector.shape_cast %60 : vector<8x32x8xbf16> to vector<256x8xbf16>
    %c6 = arith.constant 6 : index
    %c0_43 = arith.constant 0 : index
    %c0_44 = arith.constant 0 : index
    %62 = vector.load %arg3[%c6, %c0_43, %c0_44] : memref<9x8x16xbf16, #tpu.memory_space<vmem>>, vector<1x8x16xbf16>
    %63 = vector.shape_cast %62 : vector<1x8x16xbf16> to vector<8x16xbf16>
    %cst_45 = arith.constant dense<0.000000e+00> : vector<256x16xf32>
    %64 = tpu.matmul %61, %63, %cst_45 {dimension_numbers = #tpu.dot_dimension_numbers<[1], [0], [0], [1], [0, 0, 1, 1], [], []>} : vector<256x8xbf16>, vector<8x16xbf16>, vector<256x16xf32> -> vector<256x16xf32>
    %65 = arith.addf %56, %64 : vector<256x16xf32>
    %c2_i32_46 = arith.constant 2 : i32
    %66 = arith.addi %1, %c2_i32_46 : i32
    %c0_47 = arith.constant 0 : index
    %67 = arith.index_cast %66 : i32 to index
    %c1_48 = arith.constant 1 : index
    %c0_49 = arith.constant 0 : index
    %68 = vector.load %arg2[%c0_47, %67, %c1_48, %c0_49] : memref<1x34x34x8xbf16, #tpu.memory_space<vmem>>, vector<1x8x32x8xbf16>
    %69 = vector.shape_cast %68 : vector<1x8x32x8xbf16> to vector<8x32x8xbf16>
    %70 = vector.shape_cast %69 : vector<8x32x8xbf16> to vector<256x8xbf16>
    %c7 = arith.constant 7 : index
    %c0_50 = arith.constant 0 : index
    %c0_51 = arith.constant 0 : index
    %71 = vector.load %arg3[%c7, %c0_50, %c0_51] : memref<9x8x16xbf16, #tpu.memory_space<vmem>>, vector<1x8x16xbf16>
    %72 = vector.shape_cast %71 : vector<1x8x16xbf16> to vector<8x16xbf16>
    %cst_52 = arith.constant dense<0.000000e+00> : vector<256x16xf32>
    %73 = tpu.matmul %70, %72, %cst_52 {dimension_numbers = #tpu.dot_dimension_numbers<[1], [0], [0], [1], [0, 0, 1, 1], [], []>} : vector<256x8xbf16>, vector<8x16xbf16>, vector<256x16xf32> -> vector<256x16xf32>
    %74 = arith.addf %65, %73 : vector<256x16xf32>
    %c2_i32_53 = arith.constant 2 : i32
    %75 = arith.addi %1, %c2_i32_53 : i32
    %c0_54 = arith.constant 0 : index
    %76 = arith.index_cast %75 : i32 to index
    %c2_55 = arith.constant 2 : index
    %c0_56 = arith.constant 0 : index
    %77 = vector.load %arg2[%c0_54, %76, %c2_55, %c0_56] : memref<1x34x34x8xbf16, #tpu.memory_space<vmem>>, vector<1x8x32x8xbf16>
    %78 = vector.shape_cast %77 : vector<1x8x32x8xbf16> to vector<8x32x8xbf16>
    %79 = vector.shape_cast %78 : vector<8x32x8xbf16> to vector<256x8xbf16>
    %c8 = arith.constant 8 : index
    %c0_57 = arith.constant 0 : index
    %c0_58 = arith.constant 0 : index
    %80 = vector.load %arg3[%c8, %c0_57, %c0_58] : memref<9x8x16xbf16, #tpu.memory_space<vmem>>, vector<1x8x16xbf16>
    %81 = vector.shape_cast %80 : vector<1x8x16xbf16> to vector<8x16xbf16>
    %cst_59 = arith.constant dense<0.000000e+00> : vector<256x16xf32>
    %82 = tpu.matmul %79, %81, %cst_59 {dimension_numbers = #tpu.dot_dimension_numbers<[1], [0], [0], [1], [0, 0, 1, 1], [], []>} : vector<256x8xbf16>, vector<8x16xbf16>, vector<256x16xf32> -> vector<256x16xf32>
    %83 = arith.addf %74, %82 : vector<256x16xf32>
    %c0_60 = arith.constant 0 : index
    %c0_61 = arith.constant 0 : index
    %84 = vector.load %arg4[%c0_60, %c0_61] : memref<1x16xf32, #tpu.memory_space<vmem>>, vector<1x16xf32>
    %85 = vector.broadcast %84 : vector<1x16xf32> to vector<256x16xf32>
    %86 = arith.addf %83, %85 : vector<256x16xf32>
    %cst_62 = arith.constant 0.000000e+00 : f32
    %87 = vector.broadcast %cst_62 : f32 to vector<256x16xf32>
    %88 = arith.maximumf %86, %87 : vector<256x16xf32>
    %89 = vector.shape_cast %88 : vector<256x16xf32> to vector<8x32x16xf32>
    %90 = arith.truncf %89 : vector<8x32x16xf32> to vector<8x32x16xbf16>
    %c0_63 = arith.constant 0 : index
    %c0_64 = arith.constant 0 : index
    %c0_65 = arith.constant 0 : index
    %c0_66 = arith.constant 0 : index
    %91 = vector.load %arg5[%c0_63, %c0_64, %c0_65, %c0_66] : memref<1x8x32x16xbf16, #tpu.memory_space<vmem>>, vector<1x8x32x16xbf16>
    %92 = vector.shape_cast %91 : vector<1x8x32x16xbf16> to vector<8x32x16xbf16>
    %93 = vector.shape_cast %90 : vector<8x32x16xbf16> to vector<1x8x32x16xbf16>
    tpu.vector_store %arg5[%c0_63, %c0_64, %c0_65, %c0_66], %93 {strides = array<i32>} : memref<1x8x32x16xbf16, #tpu.memory_space<vmem>>, vector<1x8x32x16xbf16>,
    return
  }
  func.func @transform_0(%arg0: i32, %arg1: i32) -> (i32, i32, i32, i32) {
    %c0_i32 = arith.constant 0 : i32
    %c0_i32_0 = arith.constant 0 : i32
    %c0_i32_1 = arith.constant 0 : i32
    %c0_i32_2 = arith.constant 0 : i32
    return %arg0, %c0_i32, %c0_i32_0, %c0_i32_1 : i32, i32, i32, i32
  }
  func.func @transform_1(%arg0: i32, %arg1: i32) -> (i32, i32, i32) {
    %c0_i32 = arith.constant 0 : i32
    %c0_i32_0 = arith.constant 0 : i32
    %c0_i32_1 = arith.constant 0 : i32
    %c0_i32_2 = arith.constant 0 : i32
    return %c0_i32, %c0_i32_0, %c0_i32_1 : i32, i32, i32
  }
  func.func @transform_2(%arg0: i32, %arg1: i32) -> (i32, i32) {
    %c0_i32 = arith.constant 0 : i32
    %c0_i32_0 = arith.constant 0 : i32
    %c0_i32_1 = arith.constant 0 : i32
    return %c0_i32, %c0_i32_0 : i32, i32
  }
  func.func @transform_3(%arg0: i32, %arg1: i32) -> (i32, i32, i32, i32) {
    %c0_i32 = arith.constant 0 : i32
    %c0_i32_0 = arith.constant 0 : i32
    %c0_i32_1 = arith.constant 0 : i32
    return %arg0, %arg1, %c0_i32, %c0_i32_0 : i32, i32, i32, i32
  }
}

module attributes {stable_mosaic.version = 11 : i64} {
  func.func @_conv3x3_kernel(%arg0: i32, %arg1: i32, %arg2: memref<1x18x18x16xbf16, #tpu.memory_space<vmem>>, %arg3: memref<9x16x32xbf16, #tpu.memory_space<vmem>>, %arg4: memref<1x32xf32, #tpu.memory_space<vmem>>, %arg5: memref<1x16x16x32xbf16, #tpu.memory_space<vmem>>) attributes {dimension_semantics = [#tpu.dimension_semantics<parallel>, #tpu.dimension_semantics<arbitrary>], iteration_bounds = array<i64: 2, 1>, scalar_prefetch = 0 : i64, scratch_operands = 0 : i64, tpu.core_type = #tpu.core_type<tc>, window_params = [{transform_indices = @transform_0, window_bounds = array<i64: 1, 18, 18, 16>}, {pipeline_mode = #tpu.pipeline_mode<synchronous>, transform_indices = @transform_1, window_bounds = array<i64: 9, 16, 32>}, {pipeline_mode = #tpu.pipeline_mode<synchronous>, transform_indices = @transform_2, window_bounds = array<i64: 1, 32>}, {transform_indices = @transform_3, window_bounds = array<i64: 1, 16, 16, 32>}]} {
    %c16_i32 = arith.constant 16 : i32
    %0 = arith.muli %arg1, %c16_i32 : i32
    %1 = tpu.assume_multiple %0, 8 : i32
    %cst = arith.constant 0.000000e+00 : f32
    %2 = vector.broadcast %cst : f32 to vector<256x32xf32>
    %c0_i32 = arith.constant 0 : i32
    %3 = arith.addi %1, %c0_i32 : i32
    %c0 = arith.constant 0 : index
    %4 = arith.index_cast %3 : i32 to index
    %c0_0 = arith.constant 0 : index
    %c0_1 = arith.constant 0 : index
    %5 = vector.load %arg2[%c0, %4, %c0_0, %c0_1] : memref<1x18x18x16xbf16, #tpu.memory_space<vmem>>, vector<1x16x16x16xbf16>
    %6 = vector.shape_cast %5 : vector<1x16x16x16xbf16> to vector<16x16x16xbf16>
    %7 = vector.shape_cast %6 : vector<16x16x16xbf16> to vector<256x16xbf16>
    %c0_2 = arith.constant 0 : index
    %c0_3 = arith.constant 0 : index
    %c0_4 = arith.constant 0 : index
    %8 = vector.load %arg3[%c0_2, %c0_3, %c0_4] : memref<9x16x32xbf16, #tpu.memory_space<vmem>>, vector<1x16x32xbf16>
    %9 = vector.shape_cast %8 : vector<1x16x32xbf16> to vector<16x32xbf16>
    %cst_5 = arith.constant dense<0.000000e+00> : vector<256x32xf32>
    %10 = tpu.matmul %7, %9, %cst_5 {dimension_numbers = #tpu.dot_dimension_numbers<[1], [0], [0], [1], [0, 0, 1, 1], [], []>} : vector<256x16xbf16>, vector<16x32xbf16>, vector<256x32xf32> -> vector<256x32xf32>
    %11 = arith.addf %2, %10 : vector<256x32xf32>
    %c0_i32_6 = arith.constant 0 : i32
    %12 = arith.addi %1, %c0_i32_6 : i32
    %c0_7 = arith.constant 0 : index
    %13 = arith.index_cast %12 : i32 to index
    %c1 = arith.constant 1 : index
    %c0_8 = arith.constant 0 : index
    %14 = vector.load %arg2[%c0_7, %13, %c1, %c0_8] : memref<1x18x18x16xbf16, #tpu.memory_space<vmem>>, vector<1x16x16x16xbf16>
    %15 = vector.shape_cast %14 : vector<1x16x16x16xbf16> to vector<16x16x16xbf16>
    %16 = vector.shape_cast %15 : vector<16x16x16xbf16> to vector<256x16xbf16>
    %c1_9 = arith.constant 1 : index
    %c0_10 = arith.constant 0 : index
    %c0_11 = arith.constant 0 : index
    %17 = vector.load %arg3[%c1_9, %c0_10, %c0_11] : memref<9x16x32xbf16, #tpu.memory_space<vmem>>, vector<1x16x32xbf16>
    %18 = vector.shape_cast %17 : vector<1x16x32xbf16> to vector<16x32xbf16>
    %cst_12 = arith.constant dense<0.000000e+00> : vector<256x32xf32>
    %19 = tpu.matmul %16, %18, %cst_12 {dimension_numbers = #tpu.dot_dimension_numbers<[1], [0], [0], [1], [0, 0, 1, 1], [], []>} : vector<256x16xbf16>, vector<16x32xbf16>, vector<256x32xf32> -> vector<256x32xf32>
    %20 = arith.addf %11, %19 : vector<256x32xf32>
    %c0_i32_13 = arith.constant 0 : i32
    %21 = arith.addi %1, %c0_i32_13 : i32
    %c0_14 = arith.constant 0 : index
    %22 = arith.index_cast %21 : i32 to index
    %c2 = arith.constant 2 : index
    %c0_15 = arith.constant 0 : index
    %23 = vector.load %arg2[%c0_14, %22, %c2, %c0_15] : memref<1x18x18x16xbf16, #tpu.memory_space<vmem>>, vector<1x16x16x16xbf16>
    %24 = vector.shape_cast %23 : vector<1x16x16x16xbf16> to vector<16x16x16xbf16>
    %25 = vector.shape_cast %24 : vector<16x16x16xbf16> to vector<256x16xbf16>
    %c2_16 = arith.constant 2 : index
    %c0_17 = arith.constant 0 : index
    %c0_18 = arith.constant 0 : index
    %26 = vector.load %arg3[%c2_16, %c0_17, %c0_18] : memref<9x16x32xbf16, #tpu.memory_space<vmem>>, vector<1x16x32xbf16>
    %27 = vector.shape_cast %26 : vector<1x16x32xbf16> to vector<16x32xbf16>
    %cst_19 = arith.constant dense<0.000000e+00> : vector<256x32xf32>
    %28 = tpu.matmul %25, %27, %cst_19 {dimension_numbers = #tpu.dot_dimension_numbers<[1], [0], [0], [1], [0, 0, 1, 1], [], []>} : vector<256x16xbf16>, vector<16x32xbf16>, vector<256x32xf32> -> vector<256x32xf32>
    %29 = arith.addf %20, %28 : vector<256x32xf32>
    %c1_i32 = arith.constant 1 : i32
    %30 = arith.addi %1, %c1_i32 : i32
    %c0_20 = arith.constant 0 : index
    %31 = arith.index_cast %30 : i32 to index
    %c0_21 = arith.constant 0 : index
    %c0_22 = arith.constant 0 : index
    %32 = vector.load %arg2[%c0_20, %31, %c0_21, %c0_22] : memref<1x18x18x16xbf16, #tpu.memory_space<vmem>>, vector<1x16x16x16xbf16>
    %33 = vector.shape_cast %32 : vector<1x16x16x16xbf16> to vector<16x16x16xbf16>
    %34 = vector.shape_cast %33 : vector<16x16x16xbf16> to vector<256x16xbf16>
    %c3 = arith.constant 3 : index
    %c0_23 = arith.constant 0 : index
    %c0_24 = arith.constant 0 : index
    %35 = vector.load %arg3[%c3, %c0_23, %c0_24] : memref<9x16x32xbf16, #tpu.memory_space<vmem>>, vector<1x16x32xbf16>
    %36 = vector.shape_cast %35 : vector<1x16x32xbf16> to vector<16x32xbf16>
    %cst_25 = arith.constant dense<0.000000e+00> : vector<256x32xf32>
    %37 = tpu.matmul %34, %36, %cst_25 {dimension_numbers = #tpu.dot_dimension_numbers<[1], [0], [0], [1], [0, 0, 1, 1], [], []>} : vector<256x16xbf16>, vector<16x32xbf16>, vector<256x32xf32> -> vector<256x32xf32>
    %38 = arith.addf %29, %37 : vector<256x32xf32>
    %c1_i32_26 = arith.constant 1 : i32
    %39 = arith.addi %1, %c1_i32_26 : i32
    %c0_27 = arith.constant 0 : index
    %40 = arith.index_cast %39 : i32 to index
    %c1_28 = arith.constant 1 : index
    %c0_29 = arith.constant 0 : index
    %41 = vector.load %arg2[%c0_27, %40, %c1_28, %c0_29] : memref<1x18x18x16xbf16, #tpu.memory_space<vmem>>, vector<1x16x16x16xbf16>
    %42 = vector.shape_cast %41 : vector<1x16x16x16xbf16> to vector<16x16x16xbf16>
    %43 = vector.shape_cast %42 : vector<16x16x16xbf16> to vector<256x16xbf16>
    %c4 = arith.constant 4 : index
    %c0_30 = arith.constant 0 : index
    %c0_31 = arith.constant 0 : index
    %44 = vector.load %arg3[%c4, %c0_30, %c0_31] : memref<9x16x32xbf16, #tpu.memory_space<vmem>>, vector<1x16x32xbf16>
    %45 = vector.shape_cast %44 : vector<1x16x32xbf16> to vector<16x32xbf16>
    %cst_32 = arith.constant dense<0.000000e+00> : vector<256x32xf32>
    %46 = tpu.matmul %43, %45, %cst_32 {dimension_numbers = #tpu.dot_dimension_numbers<[1], [0], [0], [1], [0, 0, 1, 1], [], []>} : vector<256x16xbf16>, vector<16x32xbf16>, vector<256x32xf32> -> vector<256x32xf32>
    %47 = arith.addf %38, %46 : vector<256x32xf32>
    %c1_i32_33 = arith.constant 1 : i32
    %48 = arith.addi %1, %c1_i32_33 : i32
    %c0_34 = arith.constant 0 : index
    %49 = arith.index_cast %48 : i32 to index
    %c2_35 = arith.constant 2 : index
    %c0_36 = arith.constant 0 : index
    %50 = vector.load %arg2[%c0_34, %49, %c2_35, %c0_36] : memref<1x18x18x16xbf16, #tpu.memory_space<vmem>>, vector<1x16x16x16xbf16>
    %51 = vector.shape_cast %50 : vector<1x16x16x16xbf16> to vector<16x16x16xbf16>
    %52 = vector.shape_cast %51 : vector<16x16x16xbf16> to vector<256x16xbf16>
    %c5 = arith.constant 5 : index
    %c0_37 = arith.constant 0 : index
    %c0_38 = arith.constant 0 : index
    %53 = vector.load %arg3[%c5, %c0_37, %c0_38] : memref<9x16x32xbf16, #tpu.memory_space<vmem>>, vector<1x16x32xbf16>
    %54 = vector.shape_cast %53 : vector<1x16x32xbf16> to vector<16x32xbf16>
    %cst_39 = arith.constant dense<0.000000e+00> : vector<256x32xf32>
    %55 = tpu.matmul %52, %54, %cst_39 {dimension_numbers = #tpu.dot_dimension_numbers<[1], [0], [0], [1], [0, 0, 1, 1], [], []>} : vector<256x16xbf16>, vector<16x32xbf16>, vector<256x32xf32> -> vector<256x32xf32>
    %56 = arith.addf %47, %55 : vector<256x32xf32>
    %c2_i32 = arith.constant 2 : i32
    %57 = arith.addi %1, %c2_i32 : i32
    %c0_40 = arith.constant 0 : index
    %58 = arith.index_cast %57 : i32 to index
    %c0_41 = arith.constant 0 : index
    %c0_42 = arith.constant 0 : index
    %59 = vector.load %arg2[%c0_40, %58, %c0_41, %c0_42] : memref<1x18x18x16xbf16, #tpu.memory_space<vmem>>, vector<1x16x16x16xbf16>
    %60 = vector.shape_cast %59 : vector<1x16x16x16xbf16> to vector<16x16x16xbf16>
    %61 = vector.shape_cast %60 : vector<16x16x16xbf16> to vector<256x16xbf16>
    %c6 = arith.constant 6 : index
    %c0_43 = arith.constant 0 : index
    %c0_44 = arith.constant 0 : index
    %62 = vector.load %arg3[%c6, %c0_43, %c0_44] : memref<9x16x32xbf16, #tpu.memory_space<vmem>>, vector<1x16x32xbf16>
    %63 = vector.shape_cast %62 : vector<1x16x32xbf16> to vector<16x32xbf16>
    %cst_45 = arith.constant dense<0.000000e+00> : vector<256x32xf32>
    %64 = tpu.matmul %61, %63, %cst_45 {dimension_numbers = #tpu.dot_dimension_numbers<[1], [0], [0], [1], [0, 0, 1, 1], [], []>} : vector<256x16xbf16>, vector<16x32xbf16>, vector<256x32xf32> -> vector<256x32xf32>
    %65 = arith.addf %56, %64 : vector<256x32xf32>
    %c2_i32_46 = arith.constant 2 : i32
    %66 = arith.addi %1, %c2_i32_46 : i32
    %c0_47 = arith.constant 0 : index
    %67 = arith.index_cast %66 : i32 to index
    %c1_48 = arith.constant 1 : index
    %c0_49 = arith.constant 0 : index
    %68 = vector.load %arg2[%c0_47, %67, %c1_48, %c0_49] : memref<1x18x18x16xbf16, #tpu.memory_space<vmem>>, vector<1x16x16x16xbf16>
    %69 = vector.shape_cast %68 : vector<1x16x16x16xbf16> to vector<16x16x16xbf16>
    %70 = vector.shape_cast %69 : vector<16x16x16xbf16> to vector<256x16xbf16>
    %c7 = arith.constant 7 : index
    %c0_50 = arith.constant 0 : index
    %c0_51 = arith.constant 0 : index
    %71 = vector.load %arg3[%c7, %c0_50, %c0_51] : memref<9x16x32xbf16, #tpu.memory_space<vmem>>, vector<1x16x32xbf16>
    %72 = vector.shape_cast %71 : vector<1x16x32xbf16> to vector<16x32xbf16>
    %cst_52 = arith.constant dense<0.000000e+00> : vector<256x32xf32>
    %73 = tpu.matmul %70, %72, %cst_52 {dimension_numbers = #tpu.dot_dimension_numbers<[1], [0], [0], [1], [0, 0, 1, 1], [], []>} : vector<256x16xbf16>, vector<16x32xbf16>, vector<256x32xf32> -> vector<256x32xf32>
    %74 = arith.addf %65, %73 : vector<256x32xf32>
    %c2_i32_53 = arith.constant 2 : i32
    %75 = arith.addi %1, %c2_i32_53 : i32
    %c0_54 = arith.constant 0 : index
    %76 = arith.index_cast %75 : i32 to index
    %c2_55 = arith.constant 2 : index
    %c0_56 = arith.constant 0 : index
    %77 = vector.load %arg2[%c0_54, %76, %c2_55, %c0_56] : memref<1x18x18x16xbf16, #tpu.memory_space<vmem>>, vector<1x16x16x16xbf16>
    %78 = vector.shape_cast %77 : vector<1x16x16x16xbf16> to vector<16x16x16xbf16>
    %79 = vector.shape_cast %78 : vector<16x16x16xbf16> to vector<256x16xbf16>
    %c8 = arith.constant 8 : index
    %c0_57 = arith.constant 0 : index
    %c0_58 = arith.constant 0 : index
    %80 = vector.load %arg3[%c8, %c0_57, %c0_58] : memref<9x16x32xbf16, #tpu.memory_space<vmem>>, vector<1x16x32xbf16>
    %81 = vector.shape_cast %80 : vector<1x16x32xbf16> to vector<16x32xbf16>
    %cst_59 = arith.constant dense<0.000000e+00> : vector<256x32xf32>
    %82 = tpu.matmul %79, %81, %cst_59 {dimension_numbers = #tpu.dot_dimension_numbers<[1], [0], [0], [1], [0, 0, 1, 1], [], []>} : vector<256x16xbf16>, vector<16x32xbf16>, vector<256x32xf32> -> vector<256x32xf32>
    %83 = arith.addf %74, %82 : vector<256x32xf32>
    %c0_60 = arith.constant 0 : index
    %c0_61 = arith.constant 0 : index
    %84 = vector.load %arg4[%c0_60, %c0_61] : memref<1x32xf32, #tpu.memory_space<vmem>>, vector<1x32xf32>
    %85 = vector.broadcast %84 : vector<1x32xf32> to vector<256x32xf32>
    %86 = arith.addf %83, %85 : vector<256x32xf32>
    %cst_62 = arith.constant 0.000000e+00 : f32
    %87 = vector.broadcast %cst_62 : f32 to vector<256x32xf32>
    %88 = arith.maximumf %86, %87 : vector<256x32xf32>
    %89 = vector.shape_cast %88 : vector<256x32xf32> to vector<16x16x32xf32>
    %90 = arith.truncf %89 : vector<16x16x32xf32> to vector<16x16x32xbf16>
    %c0_63 = arith.constant 0 : index
    %c0_64 = arith.constant 0 : index
    %c0_65 = arith.constant 0 : index
    %c0_66 = arith.constant 0 : index
    %91 = vector.load %arg5[%c0_63, %c0_64, %c0_65, %c0_66] : memref<1x16x16x32xbf16, #tpu.memory_space<vmem>>, vector<1x16x16x32xbf16>
    %92 = vector.shape_cast %91 : vector<1x16x16x32xbf16> to vector<16x16x32xbf16>
    %93 = vector.shape_cast %90 : vector<16x16x32xbf16> to vector<1x16x16x32xbf16>
    tpu.vector_store %arg5[%c0_63, %c0_64, %c0_65, %c0_66], %93 {strides = array<i32>} : memref<1x16x16x32xbf16, #tpu.memory_space<vmem>>, vector<1x16x16x32xbf16>,
    return
  }
  func.func @transform_0(%arg0: i32, %arg1: i32) -> (i32, i32, i32, i32) {
    %c0_i32 = arith.constant 0 : i32
    %c0_i32_0 = arith.constant 0 : i32
    %c0_i32_1 = arith.constant 0 : i32
    %c0_i32_2 = arith.constant 0 : i32
    return %arg0, %c0_i32, %c0_i32_0, %c0_i32_1 : i32, i32, i32, i32
  }
  func.func @transform_1(%arg0: i32, %arg1: i32) -> (i32, i32, i32) {
    %c0_i32 = arith.constant 0 : i32
    %c0_i32_0 = arith.constant 0 : i32
    %c0_i32_1 = arith.constant 0 : i32
    %c0_i32_2 = arith.constant 0 : i32
    return %c0_i32, %c0_i32_0, %c0_i32_1 : i32, i32, i32
  }
  func.func @transform_2(%arg0: i32, %arg1: i32) -> (i32, i32) {
    %c0_i32 = arith.constant 0 : i32
    %c0_i32_0 = arith.constant 0 : i32
    %c0_i32_1 = arith.constant 0 : i32
    return %c0_i32, %c0_i32_0 : i32, i32
  }
  func.func @transform_3(%arg0: i32, %arg1: i32) -> (i32, i32, i32, i32) {
    %c0_i32 = arith.constant 0 : i32
    %c0_i32_0 = arith.constant 0 : i32
    %c0_i32_1 = arith.constant 0 : i32
    return %arg0, %arg1, %c0_i32, %c0_i32_0 : i32, i32, i32, i32
  }
}

module attributes {stable_mosaic.version = 11 : i64} {
  func.func @_conv3x3_kernel(%arg0: i32, %arg1: i32, %arg2: memref<1x10x10x32xbf16, #tpu.memory_space<vmem>>, %arg3: memref<9x32x128xbf16, #tpu.memory_space<vmem>>, %arg4: memref<1x128xf32, #tpu.memory_space<vmem>>, %arg5: memref<8x1x8x128xbf16, #tpu.memory_space<vmem>>) attributes {dimension_semantics = [#tpu.dimension_semantics<parallel>, #tpu.dimension_semantics<arbitrary>], iteration_bounds = array<i64: 2, 1>, scalar_prefetch = 0 : i64, scratch_operands = 0 : i64, tpu.core_type = #tpu.core_type<tc>, window_params = [{transform_indices = @transform_0, window_bounds = array<i64: 1, 10, 10, 32>}, {pipeline_mode = #tpu.pipeline_mode<synchronous>, transform_indices = @transform_1, window_bounds = array<i64: 9, 32, 128>}, {pipeline_mode = #tpu.pipeline_mode<synchronous>, transform_indices = @transform_2, window_bounds = array<i64: 1, 128>}, {transform_indices = @transform_3, window_bounds = array<i64: 8, 1, 8, 128>}]} {
    %c8_i32 = arith.constant 8 : i32
    %0 = arith.muli %arg1, %c8_i32 : i32
    %1 = tpu.assume_multiple %0, 8 : i32
    %cst = arith.constant 0.000000e+00 : f32
    %2 = vector.broadcast %cst : f32 to vector<64x128xf32>
    %c0_i32 = arith.constant 0 : i32
    %3 = arith.addi %1, %c0_i32 : i32
    %c0 = arith.constant 0 : index
    %4 = arith.index_cast %3 : i32 to index
    %c0_0 = arith.constant 0 : index
    %c0_1 = arith.constant 0 : index
    %5 = vector.load %arg2[%c0, %4, %c0_0, %c0_1] : memref<1x10x10x32xbf16, #tpu.memory_space<vmem>>, vector<1x8x8x32xbf16>
    %6 = vector.shape_cast %5 : vector<1x8x8x32xbf16> to vector<8x8x32xbf16>
    %7 = vector.shape_cast %6 : vector<8x8x32xbf16> to vector<64x32xbf16>
    %c0_2 = arith.constant 0 : index
    %c0_3 = arith.constant 0 : index
    %c0_4 = arith.constant 0 : index
    %8 = vector.load %arg3[%c0_2, %c0_3, %c0_4] : memref<9x32x128xbf16, #tpu.memory_space<vmem>>, vector<1x32x128xbf16>
    %9 = vector.shape_cast %8 : vector<1x32x128xbf16> to vector<32x128xbf16>
    %cst_5 = arith.constant dense<0.000000e+00> : vector<64x128xf32>
    %10 = tpu.matmul %7, %9, %cst_5 {dimension_numbers = #tpu.dot_dimension_numbers<[1], [0], [0], [1], [0, 0, 1, 1], [], []>} : vector<64x32xbf16>, vector<32x128xbf16>, vector<64x128xf32> -> vector<64x128xf32>
    %11 = arith.addf %2, %10 : vector<64x128xf32>
    %c0_i32_6 = arith.constant 0 : i32
    %12 = arith.addi %1, %c0_i32_6 : i32
    %c0_7 = arith.constant 0 : index
    %13 = arith.index_cast %12 : i32 to index
    %c1 = arith.constant 1 : index
    %c0_8 = arith.constant 0 : index
    %14 = vector.load %arg2[%c0_7, %13, %c1, %c0_8] : memref<1x10x10x32xbf16, #tpu.memory_space<vmem>>, vector<1x8x8x32xbf16>
    %15 = vector.shape_cast %14 : vector<1x8x8x32xbf16> to vector<8x8x32xbf16>
    %16 = vector.shape_cast %15 : vector<8x8x32xbf16> to vector<64x32xbf16>
    %c1_9 = arith.constant 1 : index
    %c0_10 = arith.constant 0 : index
    %c0_11 = arith.constant 0 : index
    %17 = vector.load %arg3[%c1_9, %c0_10, %c0_11] : memref<9x32x128xbf16, #tpu.memory_space<vmem>>, vector<1x32x128xbf16>
    %18 = vector.shape_cast %17 : vector<1x32x128xbf16> to vector<32x128xbf16>
    %cst_12 = arith.constant dense<0.000000e+00> : vector<64x128xf32>
    %19 = tpu.matmul %16, %18, %cst_12 {dimension_numbers = #tpu.dot_dimension_numbers<[1], [0], [0], [1], [0, 0, 1, 1], [], []>} : vector<64x32xbf16>, vector<32x128xbf16>, vector<64x128xf32> -> vector<64x128xf32>
    %20 = arith.addf %11, %19 : vector<64x128xf32>
    %c0_i32_13 = arith.constant 0 : i32
    %21 = arith.addi %1, %c0_i32_13 : i32
    %c0_14 = arith.constant 0 : index
    %22 = arith.index_cast %21 : i32 to index
    %c2 = arith.constant 2 : index
    %c0_15 = arith.constant 0 : index
    %23 = vector.load %arg2[%c0_14, %22, %c2, %c0_15] : memref<1x10x10x32xbf16, #tpu.memory_space<vmem>>, vector<1x8x8x32xbf16>
    %24 = vector.shape_cast %23 : vector<1x8x8x32xbf16> to vector<8x8x32xbf16>
    %25 = vector.shape_cast %24 : vector<8x8x32xbf16> to vector<64x32xbf16>
    %c2_16 = arith.constant 2 : index
    %c0_17 = arith.constant 0 : index
    %c0_18 = arith.constant 0 : index
    %26 = vector.load %arg3[%c2_16, %c0_17, %c0_18] : memref<9x32x128xbf16, #tpu.memory_space<vmem>>, vector<1x32x128xbf16>
    %27 = vector.shape_cast %26 : vector<1x32x128xbf16> to vector<32x128xbf16>
    %cst_19 = arith.constant dense<0.000000e+00> : vector<64x128xf32>
    %28 = tpu.matmul %25, %27, %cst_19 {dimension_numbers = #tpu.dot_dimension_numbers<[1], [0], [0], [1], [0, 0, 1, 1], [], []>} : vector<64x32xbf16>, vector<32x128xbf16>, vector<64x128xf32> -> vector<64x128xf32>
    %29 = arith.addf %20, %28 : vector<64x128xf32>
    %c1_i32 = arith.constant 1 : i32
    %30 = arith.addi %1, %c1_i32 : i32
    %c0_20 = arith.constant 0 : index
    %31 = arith.index_cast %30 : i32 to index
    %c0_21 = arith.constant 0 : index
    %c0_22 = arith.constant 0 : index
    %32 = vector.load %arg2[%c0_20, %31, %c0_21, %c0_22] : memref<1x10x10x32xbf16, #tpu.memory_space<vmem>>, vector<1x8x8x32xbf16>
    %33 = vector.shape_cast %32 : vector<1x8x8x32xbf16> to vector<8x8x32xbf16>
    %34 = vector.shape_cast %33 : vector<8x8x32xbf16> to vector<64x32xbf16>
    %c3 = arith.constant 3 : index
    %c0_23 = arith.constant 0 : index
    %c0_24 = arith.constant 0 : index
    %35 = vector.load %arg3[%c3, %c0_23, %c0_24] : memref<9x32x128xbf16, #tpu.memory_space<vmem>>, vector<1x32x128xbf16>
    %36 = vector.shape_cast %35 : vector<1x32x128xbf16> to vector<32x128xbf16>
    %cst_25 = arith.constant dense<0.000000e+00> : vector<64x128xf32>
    %37 = tpu.matmul %34, %36, %cst_25 {dimension_numbers = #tpu.dot_dimension_numbers<[1], [0], [0], [1], [0, 0, 1, 1], [], []>} : vector<64x32xbf16>, vector<32x128xbf16>, vector<64x128xf32> -> vector<64x128xf32>
    %38 = arith.addf %29, %37 : vector<64x128xf32>
    %c1_i32_26 = arith.constant 1 : i32
    %39 = arith.addi %1, %c1_i32_26 : i32
    %c0_27 = arith.constant 0 : index
    %40 = arith.index_cast %39 : i32 to index
    %c1_28 = arith.constant 1 : index
    %c0_29 = arith.constant 0 : index
    %41 = vector.load %arg2[%c0_27, %40, %c1_28, %c0_29] : memref<1x10x10x32xbf16, #tpu.memory_space<vmem>>, vector<1x8x8x32xbf16>
    %42 = vector.shape_cast %41 : vector<1x8x8x32xbf16> to vector<8x8x32xbf16>
    %43 = vector.shape_cast %42 : vector<8x8x32xbf16> to vector<64x32xbf16>
    %c4 = arith.constant 4 : index
    %c0_30 = arith.constant 0 : index
    %c0_31 = arith.constant 0 : index
    %44 = vector.load %arg3[%c4, %c0_30, %c0_31] : memref<9x32x128xbf16, #tpu.memory_space<vmem>>, vector<1x32x128xbf16>
    %45 = vector.shape_cast %44 : vector<1x32x128xbf16> to vector<32x128xbf16>
    %cst_32 = arith.constant dense<0.000000e+00> : vector<64x128xf32>
    %46 = tpu.matmul %43, %45, %cst_32 {dimension_numbers = #tpu.dot_dimension_numbers<[1], [0], [0], [1], [0, 0, 1, 1], [], []>} : vector<64x32xbf16>, vector<32x128xbf16>, vector<64x128xf32> -> vector<64x128xf32>
    %47 = arith.addf %38, %46 : vector<64x128xf32>
    %c1_i32_33 = arith.constant 1 : i32
    %48 = arith.addi %1, %c1_i32_33 : i32
    %c0_34 = arith.constant 0 : index
    %49 = arith.index_cast %48 : i32 to index
    %c2_35 = arith.constant 2 : index
    %c0_36 = arith.constant 0 : index
    %50 = vector.load %arg2[%c0_34, %49, %c2_35, %c0_36] : memref<1x10x10x32xbf16, #tpu.memory_space<vmem>>, vector<1x8x8x32xbf16>
    %51 = vector.shape_cast %50 : vector<1x8x8x32xbf16> to vector<8x8x32xbf16>
    %52 = vector.shape_cast %51 : vector<8x8x32xbf16> to vector<64x32xbf16>
    %c5 = arith.constant 5 : index
    %c0_37 = arith.constant 0 : index
    %c0_38 = arith.constant 0 : index
    %53 = vector.load %arg3[%c5, %c0_37, %c0_38] : memref<9x32x128xbf16, #tpu.memory_space<vmem>>, vector<1x32x128xbf16>
    %54 = vector.shape_cast %53 : vector<1x32x128xbf16> to vector<32x128xbf16>
    %cst_39 = arith.constant dense<0.000000e+00> : vector<64x128xf32>
    %55 = tpu.matmul %52, %54, %cst_39 {dimension_numbers = #tpu.dot_dimension_numbers<[1], [0], [0], [1], [0, 0, 1, 1], [], []>} : vector<64x32xbf16>, vector<32x128xbf16>, vector<64x128xf32> -> vector<64x128xf32>
    %56 = arith.addf %47, %55 : vector<64x128xf32>
    %c2_i32 = arith.constant 2 : i32
    %57 = arith.addi %1, %c2_i32 : i32
    %c0_40 = arith.constant 0 : index
    %58 = arith.index_cast %57 : i32 to index
    %c0_41 = arith.constant 0 : index
    %c0_42 = arith.constant 0 : index
    %59 = vector.load %arg2[%c0_40, %58, %c0_41, %c0_42] : memref<1x10x10x32xbf16, #tpu.memory_space<vmem>>, vector<1x8x8x32xbf16>
    %60 = vector.shape_cast %59 : vector<1x8x8x32xbf16> to vector<8x8x32xbf16>
    %61 = vector.shape_cast %60 : vector<8x8x32xbf16> to vector<64x32xbf16>
    %c6 = arith.constant 6 : index
    %c0_43 = arith.constant 0 : index
    %c0_44 = arith.constant 0 : index
    %62 = vector.load %arg3[%c6, %c0_43, %c0_44] : memref<9x32x128xbf16, #tpu.memory_space<vmem>>, vector<1x32x128xbf16>
    %63 = vector.shape_cast %62 : vector<1x32x128xbf16> to vector<32x128xbf16>
    %cst_45 = arith.constant dense<0.000000e+00> : vector<64x128xf32>
    %64 = tpu.matmul %61, %63, %cst_45 {dimension_numbers = #tpu.dot_dimension_numbers<[1], [0], [0], [1], [0, 0, 1, 1], [], []>} : vector<64x32xbf16>, vector<32x128xbf16>, vector<64x128xf32> -> vector<64x128xf32>
    %65 = arith.addf %56, %64 : vector<64x128xf32>
    %c2_i32_46 = arith.constant 2 : i32
    %66 = arith.addi %1, %c2_i32_46 : i32
    %c0_47 = arith.constant 0 : index
    %67 = arith.index_cast %66 : i32 to index
    %c1_48 = arith.constant 1 : index
    %c0_49 = arith.constant 0 : index
    %68 = vector.load %arg2[%c0_47, %67, %c1_48, %c0_49] : memref<1x10x10x32xbf16, #tpu.memory_space<vmem>>, vector<1x8x8x32xbf16>
    %69 = vector.shape_cast %68 : vector<1x8x8x32xbf16> to vector<8x8x32xbf16>
    %70 = vector.shape_cast %69 : vector<8x8x32xbf16> to vector<64x32xbf16>
    %c7 = arith.constant 7 : index
    %c0_50 = arith.constant 0 : index
    %c0_51 = arith.constant 0 : index
    %71 = vector.load %arg3[%c7, %c0_50, %c0_51] : memref<9x32x128xbf16, #tpu.memory_space<vmem>>, vector<1x32x128xbf16>
    %72 = vector.shape_cast %71 : vector<1x32x128xbf16> to vector<32x128xbf16>
    %cst_52 = arith.constant dense<0.000000e+00> : vector<64x128xf32>
    %73 = tpu.matmul %70, %72, %cst_52 {dimension_numbers = #tpu.dot_dimension_numbers<[1], [0], [0], [1], [0, 0, 1, 1], [], []>} : vector<64x32xbf16>, vector<32x128xbf16>, vector<64x128xf32> -> vector<64x128xf32>
    %74 = arith.addf %65, %73 : vector<64x128xf32>
    %c2_i32_53 = arith.constant 2 : i32
    %75 = arith.addi %1, %c2_i32_53 : i32
    %c0_54 = arith.constant 0 : index
    %76 = arith.index_cast %75 : i32 to index
    %c2_55 = arith.constant 2 : index
    %c0_56 = arith.constant 0 : index
    %77 = vector.load %arg2[%c0_54, %76, %c2_55, %c0_56] : memref<1x10x10x32xbf16, #tpu.memory_space<vmem>>, vector<1x8x8x32xbf16>
    %78 = vector.shape_cast %77 : vector<1x8x8x32xbf16> to vector<8x8x32xbf16>
    %79 = vector.shape_cast %78 : vector<8x8x32xbf16> to vector<64x32xbf16>
    %c8 = arith.constant 8 : index
    %c0_57 = arith.constant 0 : index
    %c0_58 = arith.constant 0 : index
    %80 = vector.load %arg3[%c8, %c0_57, %c0_58] : memref<9x32x128xbf16, #tpu.memory_space<vmem>>, vector<1x32x128xbf16>
    %81 = vector.shape_cast %80 : vector<1x32x128xbf16> to vector<32x128xbf16>
    %cst_59 = arith.constant dense<0.000000e+00> : vector<64x128xf32>
    %82 = tpu.matmul %79, %81, %cst_59 {dimension_numbers = #tpu.dot_dimension_numbers<[1], [0], [0], [1], [0, 0, 1, 1], [], []>} : vector<64x32xbf16>, vector<32x128xbf16>, vector<64x128xf32> -> vector<64x128xf32>
    %83 = arith.addf %74, %82 : vector<64x128xf32>
    %c0_60 = arith.constant 0 : index
    %c0_61 = arith.constant 0 : index
    %84 = vector.load %arg4[%c0_60, %c0_61] : memref<1x128xf32, #tpu.memory_space<vmem>>, vector<1x128xf32>
    %85 = vector.broadcast %84 : vector<1x128xf32> to vector<64x128xf32>
    %86 = arith.addf %83, %85 : vector<64x128xf32>
    %cst_62 = arith.constant 0.000000e+00 : f32
    %87 = vector.broadcast %cst_62 : f32 to vector<64x128xf32>
    %88 = arith.maximumf %86, %87 : vector<64x128xf32>
    %89 = vector.shape_cast %88 : vector<64x128xf32> to vector<8x8x128xf32>
    %90 = arith.truncf %89 : vector<8x8x128xf32> to vector<8x8x128xbf16>
    %c0_63 = arith.constant 0 : index
    %c0_64 = arith.constant 0 : index
    %c0_65 = arith.constant 0 : index
    %c0_66 = arith.constant 0 : index
    %91 = vector.load %arg5[%c0_63, %c0_64, %c0_65, %c0_66] : memref<8x1x8x128xbf16, #tpu.memory_space<vmem>>, vector<8x1x8x128xbf16>
    %92 = vector.shape_cast %91 : vector<8x1x8x128xbf16> to vector<8x8x128xbf16>
    %93 = vector.shape_cast %90 : vector<8x8x128xbf16> to vector<8x1x8x128xbf16>
    tpu.vector_store %arg5[%c0_63, %c0_64, %c0_65, %c0_66], %93 {strides = array<i32>} : memref<8x1x8x128xbf16, #tpu.memory_space<vmem>>, vector<8x1x8x128xbf16>,
    return
  }
  func.func @transform_0(%arg0: i32, %arg1: i32) -> (i32, i32, i32, i32) {
    %c0_i32 = arith.constant 0 : i32
    %c0_i32_0 = arith.constant 0 : i32
    %c0_i32_1 = arith.constant 0 : i32
    %c0_i32_2 = arith.constant 0 : i32
    return %arg0, %c0_i32, %c0_i32_0, %c0_i32_1 : i32, i32, i32, i32
  }
  func.func @transform_1(%arg0: i32, %arg1: i32) -> (i32, i32, i32) {
    %c0_i32 = arith.constant 0 : i32
    %c0_i32_0 = arith.constant 0 : i32
    %c0_i32_1 = arith.constant 0 : i32
    %c0_i32_2 = arith.constant 0 : i32
    return %c0_i32, %c0_i32_0, %c0_i32_1 : i32, i32, i32
  }
  func.func @transform_2(%arg0: i32, %arg1: i32) -> (i32, i32) {
    %c0_i32 = arith.constant 0 : i32
    %c0_i32_0 = arith.constant 0 : i32
    %c0_i32_1 = arith.constant 0 : i32
    return %c0_i32, %c0_i32_0 : i32, i32
  }
  func.func @transform_3(%arg0: i32, %arg1: i32) -> (i32, i32, i32, i32) {
    %c0_i32 = arith.constant 0 : i32
    %c0_i32_0 = arith.constant 0 : i32
    %c0_i32_1 = arith.constant 0 : i32
    return %arg1, %arg0, %c0_i32, %c0_i32_0 : i32, i32, i32, i32
  }
}

module attributes {stable_mosaic.version = 11 : i64} {
  func.func @_lstm3_fc_kernel(%arg0: i32, %arg1: i32, %arg2: memref<8x16x128xbf16, #tpu.memory_space<vmem>>, %arg3: memref<3x256x512xbf16, #tpu.memory_space<vmem>>, %arg4: memref<3x1x512xf32, #tpu.memory_space<vmem>>, %arg5: memref<128x128xbf16, #tpu.memory_space<vmem>>, %arg6: memref<1x128xf32, #tpu.memory_space<vmem>>, %arg7: memref<8x16x128xf32, #tpu.memory_space<vmem>>, %arg8: memref<3x16x128xf32, #tpu.memory_space<vmem>>, %arg9: memref<3x16x128xf32, #tpu.memory_space<vmem>>) attributes {dimension_semantics = [#tpu.dimension_semantics<parallel>, #tpu.dimension_semantics<arbitrary>], iteration_bounds = array<i64: 1, 1>, scalar_prefetch = 0 : i64, scratch_operands = 2 : i64, tpu.core_type = #tpu.core_type<tc>, window_params = [{transform_indices = @transform_0, window_bounds = array<i64: 8, 16, 128>}, {pipeline_mode = #tpu.pipeline_mode<synchronous>, transform_indices = @transform_1, window_bounds = array<i64: 3, 256, 512>}, {pipeline_mode = #tpu.pipeline_mode<synchronous>, transform_indices = @transform_2, window_bounds = array<i64: 3, 1, 512>}, {pipeline_mode = #tpu.pipeline_mode<synchronous>, transform_indices = @transform_3, window_bounds = array<i64: 128, 128>}, {pipeline_mode = #tpu.pipeline_mode<synchronous>, transform_indices = @transform_4, window_bounds = array<i64: 1, 128>}, {transform_indices = @transform_5, window_bounds = array<i64: 8, 16, 128>}]} {
    %c0_i32 = arith.constant 0 : i32
    %0 = arith.cmpi eq, %arg1, %c0_i32 : i32
    %1 = arith.extui %0 : i1 to i32
    %c0_i32_0 = arith.constant 0 : i32
    %2 = arith.cmpi ne, %1, %c0_i32_0 : i32
    scf.if %2 {
      %cst = arith.constant 0.000000e+00 : f32
      %4 = vector.broadcast %cst : f32 to vector<3x16x128xf32>
      %c0 = arith.constant 0 : index
      %c0_3 = arith.constant 0 : index
      %c0_4 = arith.constant 0 : index
      %5 = vector.load %arg8[%c0, %c0_3, %c0_4] : memref<3x16x128xf32, #tpu.memory_space<vmem>>, vector<3x16x128xf32>
      tpu.vector_store %arg8[%c0, %c0_3, %c0_4], %4 {strides = array<i32>} : memref<3x16x128xf32, #tpu.memory_space<vmem>>, vector<3x16x128xf32>,
      %cst_5 = arith.constant 0.000000e+00 : f32
      %6 = vector.broadcast %cst_5 : f32 to vector<3x16x128xf32>
      %c0_6 = arith.constant 0 : index
      %c0_7 = arith.constant 0 : index
      %c0_8 = arith.constant 0 : index
      %7 = vector.load %arg9[%c0_6, %c0_7, %c0_8] : memref<3x16x128xf32, #tpu.memory_space<vmem>>, vector<3x16x128xf32>
      tpu.vector_store %arg9[%c0_6, %c0_7, %c0_8], %6 {strides = array<i32>} : memref<3x16x128xf32, #tpu.memory_space<vmem>>, vector<3x16x128xf32>,
    } else {
    }
    %c0_i32_1 = arith.constant 0 : i32
    %c8_i32 = arith.constant 8 : i32
    %3 = arith.addi %c0_i32_1, %c8_i32 : i32
    %c1_i32 = arith.constant 1 : i32
    scf.for %arg10 = %c0_i32_1 to %3 step %c1_i32  : i32 {
      %c1_i32_3 = arith.constant 1 : i32
      %4 = arith.muli %arg10, %c1_i32_3 : i32
      %c0_i32_4 = arith.constant 0 : i32
      %5 = arith.addi %c0_i32_4, %4 : i32
      %6 = arith.index_cast %5 : i32 to index
      %c0 = arith.constant 0 : index
      %c0_5 = arith.constant 0 : index
      %7 = vector.load %arg2[%6, %c0, %c0_5] : memref<8x16x128xbf16, #tpu.memory_space<vmem>>, vector<1x16x128xbf16>
      %8 = vector.shape_cast %7 : vector<1x16x128xbf16> to vector<16x128xbf16>
      %c0_6 = arith.constant 0 : index
      %c0_7 = arith.constant 0 : index
      %c0_8 = arith.constant 0 : index
      %9 = vector.load %arg8[%c0_6, %c0_7, %c0_8] : memref<3x16x128xf32, #tpu.memory_space<vmem>>, vector<1x16x128xf32>
      %10 = vector.shape_cast %9 : vector<1x16x128xf32> to vector<16x128xf32>
      %c0_9 = arith.constant 0 : index
      %c0_10 = arith.constant 0 : index
      %c0_11 = arith.constant 0 : index
      %11 = vector.load %arg9[%c0_9, %c0_10, %c0_11] : memref<3x16x128xf32, #tpu.memory_space<vmem>>, vector<1x16x128xf32>
      %12 = vector.shape_cast %11 : vector<1x16x128xf32> to vector<16x128xf32>
      %13 = arith.truncf %10 : vector<16x128xf32> to vector<16x128xbf16>
      %14 = tpu.concatenate %8, %13 in 1 : vector<16x128xbf16>, vector<16x128xbf16> -> vector<16x256xbf16>
      %c0_12 = arith.constant 0 : index
      %c0_13 = arith.constant 0 : index
      %c0_14 = arith.constant 0 : index
      %15 = vector.load %arg3[%c0_12, %c0_13, %c0_14] : memref<3x256x512xbf16, #tpu.memory_space<vmem>>, vector<1x256x512xbf16>
      %16 = vector.shape_cast %15 : vector<1x256x512xbf16> to vector<256x512xbf16>
      %cst = arith.constant dense<0.000000e+00> : vector<16x512xf32>
      %17 = tpu.matmul %14, %16, %cst {dimension_numbers = #tpu.dot_dimension_numbers<[1], [0], [0], [1], [0, 0, 1, 1], [], []>} : vector<16x256xbf16>, vector<256x512xbf16>, vector<16x512xf32> -> vector<16x512xf32>
      %c0_15 = arith.constant 0 : index
      %c0_16 = arith.constant 0 : index
      %c0_17 = arith.constant 0 : index
      %18 = vector.load %arg4[%c0_15, %c0_16, %c0_17] : memref<3x1x512xf32, #tpu.memory_space<vmem>>, vector<1x1x512xf32>
      %19 = vector.shape_cast %18 : vector<1x1x512xf32> to vector<1x512xf32>
      %20 = vector.broadcast %19 : vector<1x512xf32> to vector<16x512xf32>
      %21 = arith.addf %17, %20 : vector<16x512xf32>
      %22 = vector.extract_strided_slice %21 {offsets = [0, 0], sizes = [16, 384], strides = [1, 1]} : vector<16x512xf32> to vector<16x384xf32>
      %23 = arith.negf %22 : vector<16x384xf32>
      %24 = math.exp %23 : vector<16x384xf32>
      %cst_18 = arith.constant 1.000000e+00 : f32
      %25 = vector.broadcast %cst_18 : f32 to vector<16x384xf32>
      %26 = arith.addf %25, %24 : vector<16x384xf32>
      %27 = arith.divf %25, %26 : vector<16x384xf32>
      %28 = vector.extract_strided_slice %21 {offsets = [0, 384], sizes = [16, 128], strides = [1, 1]} : vector<16x512xf32> to vector<16x128xf32>
      %29 = math.tanh %28 : vector<16x128xf32>
      %30 = vector.extract_strided_slice %27 {offsets = [0, 0], sizes = [16, 128], strides = [1, 1]} : vector<16x384xf32> to vector<16x128xf32>
      %31 = vector.extract_strided_slice %27 {offsets = [0, 128], sizes = [16, 128], strides = [1, 1]} : vector<16x384xf32> to vector<16x128xf32>
      %32 = vector.extract_strided_slice %27 {offsets = [0, 256], sizes = [16, 128], strides = [1, 1]} : vector<16x384xf32> to vector<16x128xf32>
      %33 = arith.mulf %31, %12 : vector<16x128xf32>
      %34 = arith.mulf %30, %29 : vector<16x128xf32>
      %35 = arith.addf %33, %34 : vector<16x128xf32>
      %36 = math.tanh %35 : vector<16x128xf32>
      %37 = arith.mulf %32, %36 : vector<16x128xf32>
      %c0_19 = arith.constant 0 : index
      %c0_20 = arith.constant 0 : index
      %c0_21 = arith.constant 0 : index
      %38 = vector.load %arg8[%c0_19, %c0_20, %c0_21] : memref<3x16x128xf32, #tpu.memory_space<vmem>>, vector<1x16x128xf32>
      %39 = vector.shape_cast %38 : vector<1x16x128xf32> to vector<16x128xf32>
      %40 = vector.shape_cast %37 : vector<16x128xf32> to vector<1x16x128xf32>
      tpu.vector_store %arg8[%c0_19, %c0_20, %c0_21], %40 {strides = array<i32>} : memref<3x16x128xf32, #tpu.memory_space<vmem>>, vector<1x16x128xf32>,
      %c0_22 = arith.constant 0 : index
      %c0_23 = arith.constant 0 : index
      %c0_24 = arith.constant 0 : index
      %41 = vector.load %arg9[%c0_22, %c0_23, %c0_24] : memref<3x16x128xf32, #tpu.memory_space<vmem>>, vector<1x16x128xf32>
      %42 = vector.shape_cast %41 : vector<1x16x128xf32> to vector<16x128xf32>
      %43 = vector.shape_cast %35 : vector<16x128xf32> to vector<1x16x128xf32>
      tpu.vector_store %arg9[%c0_22, %c0_23, %c0_24], %43 {strides = array<i32>} : memref<3x16x128xf32, #tpu.memory_space<vmem>>, vector<1x16x128xf32>,
      %44 = arith.truncf %37 : vector<16x128xf32> to vector<16x128xbf16>
      %c1 = arith.constant 1 : index
      %c0_25 = arith.constant 0 : index
      %c0_26 = arith.constant 0 : index
      %45 = vector.load %arg8[%c1, %c0_25, %c0_26] : memref<3x16x128xf32, #tpu.memory_space<vmem>>, vector<1x16x128xf32>
      %46 = vector.shape_cast %45 : vector<1x16x128xf32> to vector<16x128xf32>
      %c1_27 = arith.constant 1 : index
      %c0_28 = arith.constant 0 : index
      %c0_29 = arith.constant 0 : index
      %47 = vector.load %arg9[%c1_27, %c0_28, %c0_29] : memref<3x16x128xf32, #tpu.memory_space<vmem>>, vector<1x16x128xf32>
      %48 = vector.shape_cast %47 : vector<1x16x128xf32> to vector<16x128xf32>
      %49 = arith.truncf %46 : vector<16x128xf32> to vector<16x128xbf16>
      %50 = tpu.concatenate %44, %49 in 1 : vector<16x128xbf16>, vector<16x128xbf16> -> vector<16x256xbf16>
      %c1_30 = arith.constant 1 : index
      %c0_31 = arith.constant 0 : index
      %c0_32 = arith.constant 0 : index
      %51 = vector.load %arg3[%c1_30, %c0_31, %c0_32] : memref<3x256x512xbf16, #tpu.memory_space<vmem>>, vector<1x256x512xbf16>
      %52 = vector.shape_cast %51 : vector<1x256x512xbf16> to vector<256x512xbf16>
      %cst_33 = arith.constant dense<0.000000e+00> : vector<16x512xf32>
      %53 = tpu.matmul %50, %52, %cst_33 {dimension_numbers = #tpu.dot_dimension_numbers<[1], [0], [0], [1], [0, 0, 1, 1], [], []>} : vector<16x256xbf16>, vector<256x512xbf16>, vector<16x512xf32> -> vector<16x512xf32>
      %c1_34 = arith.constant 1 : index
      %c0_35 = arith.constant 0 : index
      %c0_36 = arith.constant 0 : index
      %54 = vector.load %arg4[%c1_34, %c0_35, %c0_36] : memref<3x1x512xf32, #tpu.memory_space<vmem>>, vector<1x1x512xf32>
      %55 = vector.shape_cast %54 : vector<1x1x512xf32> to vector<1x512xf32>
      %56 = vector.broadcast %55 : vector<1x512xf32> to vector<16x512xf32>
      %57 = arith.addf %53, %56 : vector<16x512xf32>
      %58 = vector.extract_strided_slice %57 {offsets = [0, 0], sizes = [16, 384], strides = [1, 1]} : vector<16x512xf32> to vector<16x384xf32>
      %59 = arith.negf %58 : vector<16x384xf32>
      %60 = math.exp %59 : vector<16x384xf32>
      %cst_37 = arith.constant 1.000000e+00 : f32
      %61 = vector.broadcast %cst_37 : f32 to vector<16x384xf32>
      %62 = arith.addf %61, %60 : vector<16x384xf32>
      %63 = arith.divf %61, %62 : vector<16x384xf32>
      %64 = vector.extract_strided_slice %57 {offsets = [0, 384], sizes = [16, 128], strides = [1, 1]} : vector<16x512xf32> to vector<16x128xf32>
      %65 = math.tanh %64 : vector<16x128xf32>
      %66 = vector.extract_strided_slice %63 {offsets = [0, 0], sizes = [16, 128], strides = [1, 1]} : vector<16x384xf32> to vector<16x128xf32>
      %67 = vector.extract_strided_slice %63 {offsets = [0, 128], sizes = [16, 128], strides = [1, 1]} : vector<16x384xf32> to vector<16x128xf32>
      %68 = vector.extract_strided_slice %63 {offsets = [0, 256], sizes = [16, 128], strides = [1, 1]} : vector<16x384xf32> to vector<16x128xf32>
      %69 = arith.mulf %67, %48 : vector<16x128xf32>
      %70 = arith.mulf %66, %65 : vector<16x128xf32>
      %71 = arith.addf %69, %70 : vector<16x128xf32>
      %72 = math.tanh %71 : vector<16x128xf32>
      %73 = arith.mulf %68, %72 : vector<16x128xf32>
      %c1_38 = arith.constant 1 : index
      %c0_39 = arith.constant 0 : index
      %c0_40 = arith.constant 0 : index
      %74 = vector.load %arg8[%c1_38, %c0_39, %c0_40] : memref<3x16x128xf32, #tpu.memory_space<vmem>>, vector<1x16x128xf32>
      %75 = vector.shape_cast %74 : vector<1x16x128xf32> to vector<16x128xf32>
      %76 = vector.shape_cast %73 : vector<16x128xf32> to vector<1x16x128xf32>
      tpu.vector_store %arg8[%c1_38, %c0_39, %c0_40], %76 {strides = array<i32>} : memref<3x16x128xf32, #tpu.memory_space<vmem>>, vector<1x16x128xf32>,
      %c1_41 = arith.constant 1 : index
      %c0_42 = arith.constant 0 : index
      %c0_43 = arith.constant 0 : index
      %77 = vector.load %arg9[%c1_41, %c0_42, %c0_43] : memref<3x16x128xf32, #tpu.memory_space<vmem>>, vector<1x16x128xf32>
      %78 = vector.shape_cast %77 : vector<1x16x128xf32> to vector<16x128xf32>
      %79 = vector.shape_cast %71 : vector<16x128xf32> to vector<1x16x128xf32>
      tpu.vector_store %arg9[%c1_41, %c0_42, %c0_43], %79 {strides = array<i32>} : memref<3x16x128xf32, #tpu.memory_space<vmem>>, vector<1x16x128xf32>,
      %80 = arith.truncf %73 : vector<16x128xf32> to vector<16x128xbf16>
      %c2 = arith.constant 2 : index
      %c0_44 = arith.constant 0 : index
      %c0_45 = arith.constant 0 : index
      %81 = vector.load %arg8[%c2, %c0_44, %c0_45] : memref<3x16x128xf32, #tpu.memory_space<vmem>>, vector<1x16x128xf32>
      %82 = vector.shape_cast %81 : vector<1x16x128xf32> to vector<16x128xf32>
      %c2_46 = arith.constant 2 : index
      %c0_47 = arith.constant 0 : index
      %c0_48 = arith.constant 0 : index
      %83 = vector.load %arg9[%c2_46, %c0_47, %c0_48] : memref<3x16x128xf32, #tpu.memory_space<vmem>>, vector<1x16x128xf32>
      %84 = vector.shape_cast %83 : vector<1x16x128xf32> to vector<16x128xf32>
      %85 = arith.truncf %82 : vector<16x128xf32> to vector<16x128xbf16>
      %86 = tpu.concatenate %80, %85 in 1 : vector<16x128xbf16>, vector<16x128xbf16> -> vector<16x256xbf16>
      %c2_49 = arith.constant 2 : index
      %c0_50 = arith.constant 0 : index
      %c0_51 = arith.constant 0 : index
      %87 = vector.load %arg3[%c2_49, %c0_50, %c0_51] : memref<3x256x512xbf16, #tpu.memory_space<vmem>>, vector<1x256x512xbf16>
      %88 = vector.shape_cast %87 : vector<1x256x512xbf16> to vector<256x512xbf16>
      %cst_52 = arith.constant dense<0.000000e+00> : vector<16x512xf32>
      %89 = tpu.matmul %86, %88, %cst_52 {dimension_numbers = #tpu.dot_dimension_numbers<[1], [0], [0], [1], [0, 0, 1, 1], [], []>} : vector<16x256xbf16>, vector<256x512xbf16>, vector<16x512xf32> -> vector<16x512xf32>
      %c2_53 = arith.constant 2 : index
      %c0_54 = arith.constant 0 : index
      %c0_55 = arith.constant 0 : index
      %90 = vector.load %arg4[%c2_53, %c0_54, %c0_55] : memref<3x1x512xf32, #tpu.memory_space<vmem>>, vector<1x1x512xf32>
      %91 = vector.shape_cast %90 : vector<1x1x512xf32> to vector<1x512xf32>
      %92 = vector.broadcast %91 : vector<1x512xf32> to vector<16x512xf32>
      %93 = arith.addf %89, %92 : vector<16x512xf32>
      %94 = vector.extract_strided_slice %93 {offsets = [0, 0], sizes = [16, 384], strides = [1, 1]} : vector<16x512xf32> to vector<16x384xf32>
      %95 = arith.negf %94 : vector<16x384xf32>
      %96 = math.exp %95 : vector<16x384xf32>
      %cst_56 = arith.constant 1.000000e+00 : f32
      %97 = vector.broadcast %cst_56 : f32 to vector<16x384xf32>
      %98 = arith.addf %97, %96 : vector<16x384xf32>
      %99 = arith.divf %97, %98 : vector<16x384xf32>
      %100 = vector.extract_strided_slice %93 {offsets = [0, 384], sizes = [16, 128], strides = [1, 1]} : vector<16x512xf32> to vector<16x128xf32>
      %101 = math.tanh %100 : vector<16x128xf32>
      %102 = vector.extract_strided_slice %99 {offsets = [0, 0], sizes = [16, 128], strides = [1, 1]} : vector<16x384xf32> to vector<16x128xf32>
      %103 = vector.extract_strided_slice %99 {offsets = [0, 128], sizes = [16, 128], strides = [1, 1]} : vector<16x384xf32> to vector<16x128xf32>
      %104 = vector.extract_strided_slice %99 {offsets = [0, 256], sizes = [16, 128], strides = [1, 1]} : vector<16x384xf32> to vector<16x128xf32>
      %105 = arith.mulf %103, %84 : vector<16x128xf32>
      %106 = arith.mulf %102, %101 : vector<16x128xf32>
      %107 = arith.addf %105, %106 : vector<16x128xf32>
      %108 = math.tanh %107 : vector<16x128xf32>
      %109 = arith.mulf %104, %108 : vector<16x128xf32>
      %c2_57 = arith.constant 2 : index
      %c0_58 = arith.constant 0 : index
      %c0_59 = arith.constant 0 : index
      %110 = vector.load %arg8[%c2_57, %c0_58, %c0_59] : memref<3x16x128xf32, #tpu.memory_space<vmem>>, vector<1x16x128xf32>
      %111 = vector.shape_cast %110 : vector<1x16x128xf32> to vector<16x128xf32>
      %112 = vector.shape_cast %109 : vector<16x128xf32> to vector<1x16x128xf32>
      tpu.vector_store %arg8[%c2_57, %c0_58, %c0_59], %112 {strides = array<i32>} : memref<3x16x128xf32, #tpu.memory_space<vmem>>, vector<1x16x128xf32>,
      %c2_60 = arith.constant 2 : index
      %c0_61 = arith.constant 0 : index
      %c0_62 = arith.constant 0 : index
      %113 = vector.load %arg9[%c2_60, %c0_61, %c0_62] : memref<3x16x128xf32, #tpu.memory_space<vmem>>, vector<1x16x128xf32>
      %114 = vector.shape_cast %113 : vector<1x16x128xf32> to vector<16x128xf32>
      %115 = vector.shape_cast %107 : vector<16x128xf32> to vector<1x16x128xf32>
      tpu.vector_store %arg9[%c2_60, %c0_61, %c0_62], %115 {strides = array<i32>} : memref<3x16x128xf32, #tpu.memory_space<vmem>>, vector<1x16x128xf32>,
      %116 = arith.truncf %109 : vector<16x128xf32> to vector<16x128xbf16>
      %c0_63 = arith.constant 0 : index
      %c0_64 = arith.constant 0 : index
      %117 = vector.load %arg5[%c0_63, %c0_64] : memref<128x128xbf16, #tpu.memory_space<vmem>>, vector<128x128xbf16>
      %cst_65 = arith.constant dense<0.000000e+00> : vector<16x128xf32>
      %118 = tpu.matmul %116, %117, %cst_65 {dimension_numbers = #tpu.dot_dimension_numbers<[1], [0], [0], [1], [0, 0, 1, 1], [], []>} : vector<16x128xbf16>, vector<128x128xbf16>, vector<16x128xf32> -> vector<16x128xf32>
      %c0_66 = arith.constant 0 : index
      %c0_67 = arith.constant 0 : index
      %119 = vector.load %arg6[%c0_66, %c0_67] : memref<1x128xf32, #tpu.memory_space<vmem>>, vector<1x128xf32>
      %120 = vector.broadcast %119 : vector<1x128xf32> to vector<16x128xf32>
      %121 = arith.addf %118, %120 : vector<16x128xf32>
      %122 = arith.index_cast %5 : i32 to index
      %c0_68 = arith.constant 0 : index
      %c0_69 = arith.constant 0 : index
      %123 = vector.load %arg7[%122, %c0_68, %c0_69] : memref<8x16x128xf32, #tpu.memory_space<vmem>>, vector<1x16x128xf32>
      %124 = vector.shape_cast %123 : vector<1x16x128xf32> to vector<16x128xf32>
      %125 = vector.shape_cast %121 : vector<16x128xf32> to vector<1x16x128xf32>
      tpu.vector_store %arg7[%122, %c0_68, %c0_69], %125 {strides = array<i32>} : memref<8x16x128xf32, #tpu.memory_space<vmem>>, vector<1x16x128xf32>,
    }
    %c8_i32_2 = arith.constant 8 : i32
    return
  }
  func.func @transform_0(%arg0: i32, %arg1: i32) -> (i32, i32, i32) {
    %c0_i32 = arith.constant 0 : i32
    %c0_i32_0 = arith.constant 0 : i32
    return %arg1, %arg0, %c0_i32 : i32, i32, i32
  }
  func.func @transform_1(%arg0: i32, %arg1: i32) -> (i32, i32, i32) {
    %c0_i32 = arith.constant 0 : i32
    %c0_i32_0 = arith.constant 0 : i32
    %c0_i32_1 = arith.constant 0 : i32
    %c0_i32_2 = arith.constant 0 : i32
    return %c0_i32, %c0_i32_0, %c0_i32_1 : i32, i32, i32
  }
  func.func @transform_2(%arg0: i32, %arg1: i32) -> (i32, i32, i32) {
    %c0_i32 = arith.constant 0 : i32
    %c0_i32_0 = arith.constant 0 : i32
    %c0_i32_1 = arith.constant 0 : i32
    %c0_i32_2 = arith.constant 0 : i32
    return %c0_i32, %c0_i32_0, %c0_i32_1 : i32, i32, i32
  }
  func.func @transform_3(%arg0: i32, %arg1: i32) -> (i32, i32) {
    %c0_i32 = arith.constant 0 : i32
    %c0_i32_0 = arith.constant 0 : i32
    %c0_i32_1 = arith.constant 0 : i32
    return %c0_i32, %c0_i32_0 : i32, i32
  }
  func.func @transform_4(%arg0: i32, %arg1: i32) -> (i32, i32) {
    %c0_i32 = arith.constant 0 : i32
    %c0_i32_0 = arith.constant 0 : i32
    %c0_i32_1 = arith.constant 0 : i32
    return %c0_i32, %c0_i32_0 : i32, i32
  }
  func.func @transform_5(%arg0: i32, %arg1: i32) -> (i32, i32, i32) {
    %c0_i32 = arith.constant 0 : i32
    %c0_i32_0 = arith.constant 0 : i32
    return %arg1, %arg0, %c0_i32 : i32, i32, i32
  }
}

</mosaic_0001>

<bundles_post_ra>
// kernel: model_forward.4
= control target key start
LH: loop header
LB: loop body
LE: loop exit
PB: predicated region body
PF: predicated region fallthrough
CT: control target
= control target key end

     0   :  { %s4902_s12 = smov 0   ;;  %s4904_s13 = smov 0   ;;  %s6453_s0 = inlined_call_operand.vmem [shape: bf16[2,34,34,8], index: 0, kind: input, shape index: {}]   ;;  %s6454_s1 = inlined_call_operand.vmem [shape: bf16[9,8,16], index: 1, kind: input, shape index: {}]   ;;  %s6455_s2 = inlined_call_operand.vmem [shape: f32[1,16], index: 2, kind: input, shape index: {}]   ;;  %s6456_s3 = inlined_call_operand.vmem [shape: bf16[2,32,32,16], index: 3, kind: output, shape index: {}]  }
   0x1   :  { %s4906_s14 = smov 0   ;;  %s4908_s15 = smov 0  }
   0x2   :  { %s4910_s16 = smov 0  }
   0x3 LB: > { %s22_s17 = sadd.s32 1, %s4872_s14  ;;  %s25_s18 = sadd.s32 1, %s4876_s15  ;;  %s4880_s16 = sphi %s4910_s16, %s13_s16   ;;  %s4876_s15 = sphi %s4908_s15, %s6469_s15   ;;  %s4872_s14 = sphi %s4906_s14, %s6468_s14   ;;  %s4868_s13 = sphi %s4904_s13, %s6467_s13   ;;  %s4864_s12 = sphi %s4902_s12, %s6466_s12  }
   0x4   : > { %p23_p0 = scmp.ge.s32.totalorder %s22_s17, 4  ;;  %p4155_p1 = scmp.ge.s32.totalorder %s4880_s16, 1 }
   0x5   : > { %p151_p2 = scmp.lt.s32.totalorder %s4880_s16, 9 }
   0x6   : > { %s6471_s17 = smov (%p23_p0, %s22_s17), 0  ;;  %s6473_s18 = smov (!%p23_p0, %s25_s18), %s4876_s15 }
   0x7   : > { %p152_p3 = pnand %p4155_p1, %p151_p2  ;;  %p27_p4 = scmp.ge.s32.totalorder %s6473_s18, 2 }
   0x9   : > { %s6475_s18 = smov (%p27_p4, %s6473_s18), 0  ;;  %155 = sbr.rel (%p152_p3) target bundleno = 760 (0x2f8), region = 32 }
   0xe   : > { %v4164_v0 = vld [vmem:[%s6454_s1 + $0x4] sm:$0xf]  ;;  %vm696_vm0 = vcmask 1043456   ;;  %p180_p5 = scmp.lt.s32.totalorder %s4868_s13, 1  ;;  %v4269_v2 = vld [vmem:[%s6454_s1 + $0x8] sm:$0xf] }
   0xf   : > { %v698_v1 = vsel %vm696_vm0, %v4164_v0, 0  ;;  %s4698_s23 = smul.u32 160, %s4864_s12  ;;  %v1239_v3 = vsel %vm696_vm0, %v4269_v2, 0  ;;  %v4320_v4 = vld [vmem:[%s6454_s1 + $0xc] sm:$0xf]  ;;  %vm647_vm3 = vcmask 64512  }
  0x10   : > { %4747 = vmatpush.bf16.msra.mxu1 %v698_v1  ;;  %4748 = vmatpush.bf16.msra.mxu2 %v698_v1  ;;  %s6477_s13 = smov (!%p180_p5, %s4868_s13), 1  ;;  %v233_v5 = vld [vmem:[%s6454_s1] sm:$0xf]  ;;  %v1529_v6 = vsel %vm696_vm0, %v4320_v4, 0  ;;  %v4441_v8 = vld [vmem:[%s6454_s1 + $0x10] sm:$0xf] }
  0x11   : > { %4749 = vmatpush.bf16.msra.mxu3 %v698_v1  ;;  %707 = vmatpush.bf16.msra.mxu0 %v698_v1  ;;  %s4750_s24 = smul.u32 680, %s6477_s13  ;;  %v918_v7 = vsel %vm696_vm0, %v233_v5, 0  ;;  %v2143_v9 = vsel %vm696_vm0, %v4441_v8, 0  ;;  %vm242_vm1 = vsmask.f32 3328  ;;  %vm1033_vm5 = vcmask 1042432  }
  0x12   : > { %vm243_vm2 = vsmask.f32 7440  ;;  %vm1034_vm6 = vcmask 1046532   ;;  %s4159_s25 = sshll.u32 %s6477_s13, 7  ;;  %vm4018_vm8 = vcmask 125952  }
  0x13   : > { %s184_s6 = scalar_lea.vmem %s6453_s0, %s4750_s24  ;;  %vm4985_vm4 = vmor %vm242_vm1, %vm243_vm2 }
  0x14   : > { %1248 = vmatpush.bf16.msrb.mxu2 %v1239_v3  ;;  %927 = vmatpush.bf16.msrb.mxu1 %v918_v7  ;;  %s4961_s7 = scalar_lea.vmem %s184_s6, %s4698_s23  ;;  %vm5196_vm7 = vmor %vm1033_vm5, %vm1034_vm6  ;;  %s4157_s23 = sshll.u32 %s4864_s12, 3 }
  0x15   : > { %1538 = vmatpush.bf16.msrb.mxu3 %v1529_v6  ;;  %2152 = vmatpush.bf16.msrb.mxu0 %v2143_v9  ;;  %v209_v10 = vld [vmem:[%s4961_s7 + $0x28] sm:$0xf]  ;;  %v4965_v11 = vld [vmem:[%s4961_s7 + $0x2c] sm:$0xf]  ;;  %v4968_v12 = vld [vmem:[%s4961_s7 + $0x30] sm:$0xf] }
  0x16   : > { %v334_v13 = vshrl.u32 %v209_v10, 16  ;;  %v337_v14 = vshll.u32 %v209_v10, 16  ;;  %v343_v15 = vshll.u32 %v4965_v11, 16  ;;  %v347_v16 = vshrl.u32 %v4965_v11, 16  ;;  %v217_v17 = vld [vmem:[%s4961_s7 + $0x50] sm:$0xf] }
  0x17   : > { %v353_v18 = vshll.u32 %v4968_v12, 16  ;;  %v218_v19 = vld [vmem:[%s4961_s7 + $0x54] sm:$0xf]  ;;  %v4976_v20 = vld [vmem:[%s4961_s7 + $0x58] sm:$0xf]  ;;  %v422_v21 = vshrl.u32 %v217_v17, 16 }
  0x18   : > { %v336_v22 = vrot.slane %v334_v13, 4  ;;  %v339_v23 = vrot.slane %v337_v14, 5  ;;  %v345_v24 = vrot.slane %v343_v15, 5  ;;  %v349_v25 = vrot.slane %v347_v16, 4  ;;  %v225_v26 = vld [vmem:[%s4961_s7 + $0x78] sm:$0xf] }
  0x19   : > { %v4979_v27 = vrot.slane %v353_v18, 5  ;;  %v424_v28 = vrot.slane %v422_v21, 4  ;;  %v425_v29 = vshll.u32 %v217_v17, 16  ;;  %v431_v30 = vshll.u32 %v218_v19, 16  ;;  %v226_v35 = vld [vmem:[%s4961_s7 + $0x7c] sm:$0xf] }
  0x1a   : > { %v340_v31 = vor.u32 %v339_v23, %v336_v22  ;;  %v350_v32 = vor.u32 %v349_v25, %v345_v24  ;;  %v435_v33 = vshrl.u32 %v218_v19, 16  ;;  %v441_v34 = vshll.u32 %v4976_v20, 16  ;;  %v4992_v46 = vld [vmem:[%s4961_s7 + $0x80] sm:$0xf]  ;;  %v5004_v2 = vld [vmem:[%s4961_s7 + $0x4] sm:$0xf] }
  0x1b   : > { %v427_v37 = vrot.slane %v425_v29, 5  ;;  %v433_v38 = vrot.slane %v431_v30, 5  ;;  %v510_v39 = vshrl.u32 %v225_v26, 16  ;;  %v513_v40 = vshll.u32 %v225_v26, 16  ;;  %v201_v54 = vld [vmem:[%s4961_s7] sm:$0xf] }
  0x1c   : > { %v341_v41 = vrot.slane %v340_v31, 4  ;;  %v351_v42 = vrot.slane %v350_v32, 4  ;;  %v437_v43 = vrot.slane %v435_v33, 4  ;;  %v4989_v44 = vrot.slane %v441_v34, 5  ;;  %v5012_v8 = vld [vmem:[%s4961_s7 + $0x8] sm:$0xf] }
  0x1d   : > { %v428_v45 = vor.u32 %v427_v37, %v424_v28  ;;  %v512_v47 = vrot.slane %v510_v39, 4  ;;  %v515_v48 = vrot.slane %v513_v40, 5  ;;  %v519_v49 = vshll.u32 %v226_v35, 16  ;;  %v5018_v15 = vld [vmem:[%s4961_s7 + $0x34] sm:$0xf]  ;;  %p6010_p6 = scmp.lt.s32.totalorder %s4157_s23, 31 }
  0x1e   : > { %v346_v50 = vsel %vm4985_vm4, %v341_v41, %v345_v24  ;;  %v356_v51 = vsel %vm4985_vm4, %v351_v42, %v4979_v27  ;;  %v438_v52 = vor.u32 %v437_v43, %v433_v38  ;;  %v523_v53 = vshrl.u32 %v226_v35, 16  ;;  %v5024_v24 = vld [vmem:[%s4961_s7 + $0x38] sm:$0x1]  ;;  %v220_v35 = vld [vmem:[%s4961_s7 + $0x5c] sm:$0xf] }
  0x1f   : > { %v607_v55 = vunpack.c.l.b16 %v346_v50  ;;  %v608_v56 = vunpack.c.l.b16 %v356_v51  ;;  %v429_v57 = vrot.slane %v428_v45, 4  ;;  %v516_v58 = vor.u32 %v515_v48, %v512_v47  ;;  %s6479_s23 = smov (!%p6010_p6, %s4157_s23), 31 }
  0x20   : > { %v439_v59 = vrot.slane %v438_v52, 4  ;;  %v521_v60 = vrot.slane %v519_v49, 5  ;;  %v525_v61 = vrot.slane %v523_v53, 4  ;;  %v529_v62 = vshll.u32 %v4992_v46, 16  ;;  %v238_v52 = vld [vmem:[%s4961_s7 + $0x60] sm:$0x1] }
  0x21   : > { %v635_v63 = vpack.c.b16 %v608_v56, %v607_v55  ;;  %v434_v0 = vsel %vm4985_vm4, %v429_v57, %v433_v38  ;;  %v517_v1 = vrot.slane %v516_v58, 4  ;;  %v246_v3 = vshrl.u32 %v201_v54, 16  ;;  %s4158_s12 = sshll.u32 %s6479_s23, 2 }
  0x22   : > { %v444_v4 = vsel %vm4985_vm4, %v439_v59, %v4989_v44  ;;  %v615_v5 = vunpack.c.l.b16 %v434_v0  ;;  %v526_v6 = vor.u32 %v525_v61, %v521_v60  ;;  %v5009_v7 = vrot.slane %v529_v62, 5  ;;  %v228_v61 = vld [vmem:[%s4961_s7 + $0x84] sm:$0xf]  ;;  %s192_s13 = sadd.s32 %s4159_s25, %s4158_s12 }
  0x23   : > { %4169 = vmatmul.msk.bf16.vlgmr.msra.gmra.mxu1 %vm647_vm3, %v635_v63  ;;  %v616_v9 = vunpack.c.l.b16 %v444_v4  ;;  %v522_v10 = vsel %vm4985_vm4, %v517_v1, %v521_v60  ;;  %v248_v13 = vrot.slane %v246_v3, 4  ;;  %v249_v14 = vshll.u32 %v201_v54, 16  ;;  %s4160_s28 = sshll.u32 %s192_s13, 2 }
  0x24   : > { %v527_v16 = vrot.slane %v526_v6, 4  ;;  %v623_v17 = vunpack.c.l.b16 %v522_v10  ;;  %v255_v18 = vshll.u32 %v5004_v2, 16  ;;  %v259_v19 = vshrl.u32 %v5004_v2, 16  ;;  %s6076_s4 = scalar_lea.vmem %s6456_s3, %s4160_s28 }
  0x25   : > { %v639_v21 = vpack.c.b16 %v616_v9, %v615_v5  ;;  %v251_v22 = vrot.slane %v249_v14, 5  ;;  %v265_v23 = vshll.u32 %v5012_v8, 16  ;;  %v357_v25 = vshrl.u32 %v4968_v12, 16  ;;  %v240_v5 = vld [vmem:[%s4961_s7 + $0x88] sm:$0x1] }
  0x26   : > { %v532_v26 = vsel %vm4985_vm4, %v527_v16, %v5009_v7  ;;  %v257_v28 = vrot.slane %v255_v18, 5  ;;  %v261_v29 = vrot.slane %v259_v19, 4  ;;  %v363_v30 = vshll.u32 %v5018_v15, 16  ;;  %v5058_v19 = vld [vmem:[%s4961_s7 + $0xc] sm:$0xf] }
  0x27   : > { %4173 = vmatmul.msk.bf16.vlgmr.msra.gmra.mxu2 %vm647_vm3, %v639_v21  ;;  %v624_v31 = vunpack.c.l.b16 %v532_v26  ;;  %v252_v32 = vor.u32 %v251_v22, %v248_v13  ;;  %v5032_v33 = vrot.slane %v265_v23, 5  ;;  %v359_v34 = vrot.slane %v357_v25, 4  ;;  %v5061_v25 = vld [vmem:[%s4961_s7 + $0x10] sm:$0x1] }
  0x28   : > { %v262_v37 = vor.u32 %v261_v29, %v257_v28  ;;  %v365_v38 = vrot.slane %v363_v30, 5  ;;  %v367_v12 = vshrl.u32 %v5018_v15, 16  ;;  %v373_v39 = vshll.u32 %v5024_v24, 16  ;;  %v213_v30 = vld [vmem:[%s4961_s7 + $0x3c] sm:$0xf] }
  0x29   : > { %v643_v40 = vpack.c.b16 %v624_v31, %v623_v17  ;;  %v253_v41 = vrot.slane %v252_v32, 4  ;;  %v360_v42 = vor.u32 %v359_v34, %v4979_v27  ;;  %v445_v43 = vshrl.u32 %v4976_v20, 16 }
  0x2a   : > { %v263_v45 = vrot.slane %v262_v37, 4  ;;  %v369_v47 = vrot.slane %v367_v12, 4  ;;  %v375_v48 = vrot.slane %v373_v39, 5  ;;  %v451_v49 = vshll.u32 %v220_v35, 16 }
  0x2b   : > { %4177 = vmatmul.msk.bf16.vlgmr.msra.gmra.mxu3 %vm647_vm3, %v643_v40  ;;  %v258_v50 = vsel %vm4985_vm4, %v253_v41, %v257_v28  ;;  %v361_v51 = vrot.slane %v360_v42, 4  ;;  %v447_v53 = vrot.slane %v445_v43, 4  ;;  %v455_v54 = vshrl.u32 %v220_v35, 16  ;;  %v5073_v40 = vld [vmem:[%s4961_s7 + $0x40] sm:$0xf] }
  0x2c   : > { %v268_v27 = vsel %vm4985_vm4, %v263_v45, %v5032_v33  ;;  %v599_v20 = vunpack.c.l.b16 %v258_v50  ;;  %v370_v55 = vor.u32 %v369_v47, %v365_v38  ;;  %v453_v56 = vrot.slane %v451_v49, 5  ;;  %v5076_v43 = vld [vmem:[%s4961_s7 + $0x44] sm:$0xf] }
  0x2d   : > { %v600_v57 = vunpack.c.l.b16 %v268_v27  ;;  %v366_v58 = vsel %vm4985_vm4, %v361_v51, %v365_v38  ;;  %v448_v59 = vor.u32 %v447_v53, %v4989_v44  ;;  %v457_v60 = vrot.slane %v455_v54, 4  ;;  %v221_v51 = vld [vmem:[%s4961_s7 + $0x64] sm:$0xf] }
  0x2e   : > { %v371_v62 = vrot.slane %v370_v55, 4  ;;  %v609_v63 = vunpack.c.l.b16 %v366_v58  ;;  %v461_v0 = vshll.u32 %v238_v52, 16  ;;  %v533_v6 = vshrl.u32 %v4992_v46, 16 }
  0x2f   : > { %v631_v1 = vpack.c.b16 %v600_v57, %v599_v20  ;;  %v449_v3 = vrot.slane %v448_v59, 4  ;;  %v458_v4 = vor.u32 %v457_v60, %v453_v56  ;;  %v539_v13 = vshll.u32 %v228_v61, 16 }
  0x30   : > { %v376_v9 = vsel %vm4985_vm4, %v371_v62, %v375_v48  ;;  %v463_v10 = vrot.slane %v461_v0, 5  ;;  %v543_v44 = vshrl.u32 %v228_v61, 16  ;;  %v535_v18 = vrot.slane %v533_v6, 4  ;;  %v222_v61 = vld [vmem:[%s4961_s7 + $0x68] sm:$0xf] }
  0x31   : > { %4165 = vmatmul.msk.bf16.vlgmr.msra.gmra.mxu0 %vm647_vm3, %v631_v1  ;;  %v610_v14 = vunpack.c.l.b16 %v376_v9  ;;  %v454_v16 = vsel %vm4985_vm4, %v449_v3, %v453_v56  ;;  %v459_v17 = vrot.slane %v458_v4, 4  ;;  %v541_v22 = vrot.slane %v539_v13, 5  ;;  %v229_v4 = vld [vmem:[%s4961_s7 + $0x8c] sm:$0xf] }
  0x32   : > { %v617_v21 = vunpack.c.l.b16 %v454_v16  ;;  %v545_v46 = vrot.slane %v543_v44, 4  ;;  %v549_v23 = vshll.u32 %v240_v5, 16  ;;  %v536_v29 = vor.u32 %v535_v18, %v5009_v7  ;;  %v5095_v9 = vld [vmem:[%s4961_s7 + $0x6c] sm:$0xf] }
  0x33   : > { %v636_v26 = vpack.c.b16 %v610_v14, %v609_v63  ;;  %v464_v28 = vsel %vm4985_vm4, %v459_v17, %v463_v10  ;;  %v269_v35 = vshrl.u32 %v5012_v8, 16  ;;  %v275_v38 = vshll.u32 %v5058_v19, 16 }
  0x34   : > { %v618_v31 = vunpack.c.l.b16 %v464_v28  ;;  %v546_v32 = vor.u32 %v545_v46, %v541_v22  ;;  %v551_v34 = vrot.slane %v549_v23, 5  ;;  %v537_v37 = vrot.slane %v536_v29, 4 }
  0x35   : > { %4170 = vmatmul.msk.bf16.gmra.mxu1 %vm647_vm3, %v636_v26  ;;  %v279_v12 = vshrl.u32 %v5058_v19, 16  ;;  %v285_v39 = vshll.u32 %v5061_v25, 16  ;;  %v271_v42 = vrot.slane %v269_v35, 4  ;;  %v378_v45 = vshrl.u32 %v213_v30, 16 }
  0x36   : > { %v640_v41 = vpack.c.b16 %v618_v31, %v617_v21  ;;  %v547_v7 = vrot.slane %v546_v32, 4  ;;  %v542_v47 = vsel %vm4985_vm4, %v537_v37, %v541_v22  ;;  %v277_v48 = vrot.slane %v275_v38, 5 }
  0x37   : > { %v281_v49 = vrot.slane %v279_v12, 4  ;;  %v287_v50 = vrot.slane %v285_v39, 5  ;;  %v625_v53 = vunpack.c.l.b16 %v542_v47  ;;  %v272_v54 = vor.u32 %v271_v42, %v5032_v33  ;;  %v5107_v12 = vld [vmem:[%s4961_s7 + $0x94] sm:$0xf] }
  0x38   : > { %4174 = vmatmul.msk.bf16.gmra.mxu2 %vm647_vm3, %v640_v41  ;;  %v552_v52 = vsel %vm4985_vm4, %v547_v7, %v551_v34  ;;  %v380_v27 = vrot.slane %v378_v45, 4  ;;  %v381_v56 = vshll.u32 %v213_v30, 16  ;;  %v387_v57 = vshll.u32 %v5073_v40, 16  ;;  %v230_v34 = vld [vmem:[%s4961_s7 + $0x90] sm:$0xf] }
  0x39   : > { %v626_v20 = vunpack.c.l.b16 %v552_v52  ;;  %v282_v55 = vor.u32 %v281_v49, %v277_v48  ;;  %v273_v58 = vrot.slane %v272_v54, 4  ;;  %v391_v59 = vshrl.u32 %v5073_v40, 16  ;;  %v205_v41 = vld [vmem:[%s4961_s7 + $0x14] sm:$0xf] }
  0x3a   : > { %v397_v60 = vshll.u32 %v5076_v43, 16  ;;  %v466_v62 = vshrl.u32 %v221_v51, 16  ;;  %v383_v1 = vrot.slane %v381_v56, 5  ;;  %v389_v3 = vrot.slane %v387_v57, 5 }
  0x3b   : > { %v644_v63 = vpack.c.b16 %v626_v20, %v625_v53  ;;  %v283_v0 = vrot.slane %v282_v55, 4  ;;  %v278_v33 = vsel %vm4985_vm4, %v273_v58, %v277_v48  ;;  %v393_v5 = vrot.slane %v391_v59, 4  ;;  %v5118_v58 = vld [vmem:[%s4961_s7 + $0x18] sm:$0xf]  ;;  %v5121_v59 = vld [vmem:[%s4961_s7 + $0x1c] sm:$0xf] }
  0x3c   : > { %v5092_v6 = vrot.slane %v397_v60, 5  ;;  %v468_v10 = vrot.slane %v466_v62, 4  ;;  %v601_v44 = vunpack.c.l.b16 %v278_v33  ;;  %v384_v14 = vor.u32 %v383_v1, %v380_v27 }
  0x3d   : > { %4178 = vmatmul.msk.bf16.gmra.mxu3 %vm647_vm3, %v644_v63  ;;  %v288_v13 = vsel %vm4985_vm4, %v283_v0, %v287_v50  ;;  %v469_v16 = vshll.u32 %v221_v51, 16  ;;  %v394_v18 = vor.u32 %v393_v5, %v389_v3  ;;  %v475_v21 = vshll.u32 %v222_v61, 16 }
  0x3e   : > { %v602_v17 = vunpack.c.l.b16 %v288_v13  ;;  %v479_v22 = vshrl.u32 %v222_v61, 16  ;;  %v385_v46 = vrot.slane %v384_v14, 4  ;;  %v485_v26 = vshll.u32 %v5095_v9, 16 }
  0x3f   : > { %v471_v23 = vrot.slane %v469_v16, 5  ;;  %v554_v28 = vshrl.u32 %v229_v4, 16  ;;  %v395_v30 = vrot.slane %v394_v18, 4  ;;  %v477_v31 = vrot.slane %v475_v21, 5 }
  0x40   : > { %v632_v29 = vpack.c.b16 %v602_v17, %v601_v44  ;;  %v481_v32 = vrot.slane %v479_v22, 4  ;;  %v390_v35 = vsel %vm4985_vm4, %v385_v46, %v389_v3  ;;  %v5104_v38 = vrot.slane %v485_v26, 5  ;;  %v5133_v17 = vld [vmem:[%s4961_s7 + $0x48] sm:$0xf]  ;;  %v5141_v26 = vld [vmem:[%s4961_s7 + $0x4c] sm:$0x1] }
  0x41   : > { %v472_v37 = vor.u32 %v471_v23, %v468_v10  ;;  %v556_v39 = vrot.slane %v554_v28, 4  ;;  %v400_v7 = vsel %vm4985_vm4, %v395_v30, %v5092_v6  ;;  %v611_v42 = vunpack.c.l.b16 %v390_v35 }
  0x42   : > { %4166 = vmatmul.msk.bf16.gmra.mxu0 %vm647_vm3, %v632_v29  ;;  %v482_v45 = vor.u32 %v481_v32, %v477_v31  ;;  %v557_v47 = vshll.u32 %v229_v4, 16  ;;  %v612_v48 = vunpack.c.l.b16 %v400_v7  ;;  %v563_v50 = vshll.u32 %v230_v34, 16 }
  0x43   : > { %v473_v49 = vrot.slane %v472_v37, 4  ;;  %v567_v51 = vshrl.u32 %v230_v34, 16  ;;  %v573_v54 = vshll.u32 %v5107_v12, 16  ;;  %v290_v27 = vshrl.u32 %v205_v41, 16 }
  0x44   : > { %v483_v52 = vrot.slane %v482_v45, 4  ;;  %v559_v53 = vrot.slane %v557_v47, 5  ;;  %v637_v20 = vpack.c.b16 %v612_v48, %v611_v42  ;;  %v565_v56 = vrot.slane %v563_v50, 5  ;;  %v224_v42 = vld [vmem:[%s4961_s7 + $0x70] sm:$0xf] }
  0x45   : > { %v478_v55 = vsel %vm4985_vm4, %v473_v49, %v477_v31  ;;  %v569_v57 = vrot.slane %v567_v51, 4  ;;  %v5126_v63 = vrot.slane %v573_v54, 5  ;;  %v292_v3 = vrot.slane %v290_v27, 4  ;;  %v239_v54 = vld [vmem:[%s4961_s7 + $0x74] sm:$0x1] }
  0x46   : > { %v488_v60 = vsel %vm4985_vm4, %v483_v52, %v5104_v38  ;;  %v619_v61 = vunpack.c.l.b16 %v478_v55  ;;  %v560_v62 = vor.u32 %v559_v53, %v556_v39  ;;  %4171 = vmatmul.msk.bf16.gmra.mxu1 %vm647_vm3, %v637_v20  ;;  %v293_v4 = vshll.u32 %v205_v41, 16 }
  0x47   : > { %v620_v0 = vunpack.c.l.b16 %v488_v60  ;;  %v570_v1 = vor.u32 %v569_v57, %v565_v56  ;;  %v299_v5 = vshll.u32 %v5118_v58, 16  ;;  %v303_v10 = vshrl.u32 %v5118_v58, 16 }
  0x48   : > { %v561_v33 = vrot.slane %v560_v62, 4  ;;  %v309_v13 = vshll.u32 %v5121_v59, 16  ;;  %v295_v16 = vrot.slane %v293_v4, 5  ;;  %v401_v18 = vshrl.u32 %v5076_v43, 16  ;;  %v232_v62 = vld [vmem:[%s4961_s7 + $0x98] sm:$0xf] }
  0x49   : > { %v641_v44 = vpack.c.b16 %v620_v0, %v619_v61  ;;  %v571_v14 = vrot.slane %v570_v1, 4  ;;  %v301_v22 = vrot.slane %v299_v5, 5  ;;  %v305_v46 = vrot.slane %v303_v10, 4 }
  0x4a   : > { %v566_v21 = vsel %vm4985_vm4, %v561_v33, %v565_v56  ;;  %v5138_v23 = vrot.slane %v309_v13, 5  ;;  %v296_v30 = vor.u32 %v295_v16, %v292_v3  ;;  %v403_v31 = vrot.slane %v401_v18, 4  ;;  %v241_v13 = vld [vmem:[%s4961_s7 + $0x9c] sm:$0x1] }
  0x4b   : > { %4175 = vmatmul.msk.bf16.gmra.mxu2 %vm647_vm3, %v641_v44  ;;  %v576_v28 = vsel %vm4985_vm4, %v571_v14, %v5126_v63  ;;  %v627_v29 = vunpack.c.l.b16 %v566_v21  ;;  %v306_v34 = vor.u32 %v305_v46, %v301_v22  ;;  %v407_v35 = vshll.u32 %v5133_v17, 16 }
  0x4c   : > { %v628_v32 = vunpack.c.l.b16 %v576_v28  ;;  %v411_v37 = vshrl.u32 %v5133_v17, 16  ;;  %v297_v39 = vrot.slane %v296_v30, 4  ;;  %v404_v41 = vor.u32 %v403_v31, %v5092_v6  ;;  %v5172_v28 = vld [vmem:[%s4961_s7 + $0x20] sm:$0xf] }
  0x4d   : > { %v417_v7 = vshll.u32 %v5141_v26, 16  ;;  %v489_v45 = vshrl.u32 %v5095_v9, 16  ;;  %v307_v48 = vrot.slane %v306_v34, 4  ;;  %v409_v49 = vrot.slane %v407_v35, 5 }
  0x4e   : > { %v645_v47 = vpack.c.b16 %v628_v32, %v627_v29  ;;  %v413_v50 = vrot.slane %v411_v37, 4  ;;  %v302_v51 = vsel %vm4985_vm4, %v297_v39, %v301_v22  ;;  %v405_v52 = vrot.slane %v404_v41, 4  ;;  %v5175_v32 = vld [vmem:[%s4961_s7 + $0x24] sm:$0x1] }
  0x4f   : > { %v419_v53 = vrot.slane %v417_v7, 5  ;;  %v491_v27 = vrot.slane %v489_v45, 4  ;;  %v312_v6 = vsel %vm4985_vm4, %v307_v48, %v5138_v23  ;;  %v603_v9 = vunpack.c.l.b16 %v302_v51 }
  0x50   : > { %4179 = vmatmul.msk.bf16.gmra.mxu3 %vm647_vm3, %v645_v47  ;;  %v414_v20 = vor.u32 %v413_v50, %v409_v49  ;;  %v495_v55 = vshll.u32 %v224_v42, 16  ;;  %v604_v56 = vunpack.c.l.b16 %v312_v6  ;;  %v410_v57 = vsel %vm4985_vm4, %v405_v52, %v409_v49 }
  0x51   : > { %v492_v60 = vor.u32 %v491_v27, %v5104_v38  ;;  %v499_v61 = vshrl.u32 %v224_v42, 16  ;;  %v505_v3 = vshll.u32 %v239_v54, 16  ;;  %v613_v33 = vunpack.c.l.b16 %v410_v57  ;;  %v4401_v57 = vld [vmem:[%s4961_s7 + $0x14] sm:$0xf] }
  0x52   : > { %v415_v0 = vrot.slane %v414_v20, 4  ;;  %v497_v1 = vrot.slane %v495_v55, 5  ;;  %v633_v4 = vpack.c.b16 %v604_v56, %v603_v9  ;;  %v577_v16 = vshrl.u32 %v5107_v12, 16  ;;  %v4525_v56 = vld [vmem:[%s6454_s1 + $0x18] sm:$0xf] }
  0x53   : > { %v493_v5 = vrot.slane %v492_v60, 4  ;;  %v501_v10 = vrot.slane %v499_v61, 4  ;;  %v507_v14 = vrot.slane %v505_v3, 5  ;;  %v583_v18 = vshll.u32 %v232_v62, 16 }
  0x54   : > { %v420_v44 = vsel %vm4985_vm4, %v415_v0, %v419_v53  ;;  %4167 = vmatmul.msk.bf16.gmra.mxu0 %vm647_vm3, %v633_v4  ;;  %v587_v46 = vshrl.u32 %v232_v62, 16  ;;  %v579_v29 = vrot.slane %v577_v16, 4  ;;  %v593_v31 = vshll.u32 %v241_v13, 16  ;;  %v1009_v53 = vld [vmem:[%s4961_s7] sm:$0xe] }
  0x55   : > { %v614_v38 = vunpack.c.l.b16 %v420_v44  ;;  %v498_v21 = vsel %vm4985_vm4, %v493_v5, %v497_v1  ;;  %v502_v22 = vor.u32 %v501_v10, %v497_v1  ;;  %v585_v30 = vrot.slane %v583_v18, 5  ;;  %v4402_v13 = vld [vmem:[%s4961_s7 + $0x18] sm:$0xf] }
  0x56   : > { %v621_v12 = vunpack.c.l.b16 %v498_v21  ;;  %v589_v37 = vrot.slane %v587_v46, 4  ;;  %v580_v39 = vor.u32 %v579_v29, %v5126_v63  ;;  %v595_v41 = vrot.slane %v593_v31, 5  ;;  %v4403_v21 = vld [vmem:[%s4961_s7 + $0x1c] sm:$0xf] }
  0x57   : > { %v638_v34 = vpack.c.b16 %v614_v38, %v613_v33  ;;  %v503_v35 = vrot.slane %v502_v22, 4  ;;  %v313_v7 = vshrl.u32 %v5121_v59, 16  ;;  %v319_v42 = vshll.u32 %v5172_v28, 16 }
  0x58   : > { %v590_v47 = vor.u32 %v589_v37, %v585_v30  ;;  %v323_v48 = vshrl.u32 %v5172_v28, 16  ;;  %v329_v49 = vshll.u32 %v5175_v32, 16  ;;  %v581_v51 = vrot.slane %v580_v39, 4  ;;  %v4474_v39 = vld [vmem:[%s6454_s1 + $0x14] sm:$0xf] }
  0x59   : > { %4172 = vmatmul.msk.bf16.gmra.mxu1 %vm647_vm3, %v638_v34  ;;  %v508_v45 = vsel %vm4985_vm4, %v503_v35, %v507_v14  ;;  %v315_v52 = vrot.slane %v313_v7, 4  ;;  %v321_v63 = vrot.slane %v319_v42, 5  ;;  %v4261_v0 = vrot.slane %v1009_v53, 9  ;;  %v4646_v35 = vld [vmem:[%s6454_s1 + $0x1c] sm:$0xf] }
  0x5a   : > { %v622_v50 = vunpack.c.l.b16 %v508_v45  ;;  %v591_v54 = vrot.slane %v590_v47, 4  ;;  %v325_v27 = vrot.slane %v323_v48, 4  ;;  %v331_v6 = vrot.slane %v329_v49, 5  ;;  %v4699_v47 = vld [vmem:[%s4961_s7] sm:$0xff] }
  0x5b   : > { %v586_v20 = vsel %vm4985_vm4, %v581_v51, %v585_v30  ;;  %v316_v55 = vor.u32 %v315_v52, %v5138_v23  ;;  %v1038_v4 = vrot.slane %v5004_v2, 5  ;;  %v1041_v33 = vrot.slane %v5012_v8, 5 }
  0x5c   : > { %v642_v9 = vpack.c.b16 %v622_v50, %v621_v12  ;;  %v596_v60 = vsel %vm4985_vm4, %v591_v54, %v595_v41  ;;  %v629_v61 = vunpack.c.l.b16 %v586_v20  ;;  %v326_v62 = vor.u32 %v325_v27, %v321_v63  ;;  %v4679_v41 = vld [vmem:[%s6454_s1 + $0x20] sm:$0xf] }
  0x5d   : > { %v630_v1 = vunpack.c.l.b16 %v596_v60  ;;  %v317_v3 = vrot.slane %v316_v55, 4  ;;  %v2807_v10 = vsel %vm696_vm0, %v4525_v56, 0  ;;  %v1693_v44 = vshrl.u32 %v4401_v57, 16 }
  0x5e   : > { %4176 = vmatmul.msk.bf16.gmra.mxu2 %vm647_vm3, %v642_v9  ;;  %v327_v5 = vrot.slane %v326_v62, 4  ;;  %v1696_v14 = vshll.u32 %v4401_v57, 16  ;;  %v1040_v38 = vrot.slane %v1038_v4, 4  ;;  %v1039_v2 = vsel %vm5196_vm7, %v4261_v0, %v1038_v4  ;;  %v4715_v0 = vld [vmem:[%s4961_s7 + $0x14] sm:$0xff] }
  0x5f   : > { %v646_v16 = vpack.c.b16 %v630_v1, %v629_v61  ;;  %v322_v18 = vsel %vm4985_vm4, %v317_v3, %v321_v63  ;;  %2816 = vmatpush.bf16.msra.mxu2 %v2807_v10  ;;  %v1695_v8 = vrot.slane %v1693_v44, 4  ;;  %v1702_v34 = vshll.u32 %v4402_v13, 16 }
  0x60   : > { %v332_v22 = vsel %vm4985_vm4, %v327_v5, %v331_v6  ;;  %v605_v46 = vunpack.c.l.b16 %v322_v18  ;;  %v1042_v30 = vsel %vm5196_vm7, %v1040_v38, %v1041_v33  ;;  %v1698_v31 = vrot.slane %v1696_v14, 5  ;;  %v4404_v6 = vld [vmem:[%s4961_s7 + $0x20] sm:$0xf] }
  0x61   : > { %4180 = vmatmul.msk.bf16.gmra.mxu3 %vm647_vm3, %v646_v16  ;;  %v606_v29 = vunpack.c.l.b16 %v332_v22  ;;  %v1706_v12 = vshrl.u32 %v4402_v13, 16  ;;  %v1712_v37 = vshll.u32 %v4403_v21, 16  ;;  %v1704_v45 = vrot.slane %v1702_v34, 5  ;;  %v4700_v22 = vld [vmem:[%s4961_s7 + $0x8] sm:$0xff] }
  0x62   : > { %v1699_v42 = vor.u32 %v1698_v31, %v1695_v8  ;;  %v1142_v48 = vunpack.c.l.b16 %v1039_v2  ;;  %v1143_v49 = vunpack.c.l.b16 %v1042_v30  ;;  %v3421_v52 = vsel %vm696_vm0, %v4646_v35, 0  ;;  %v4406_v31 = vld [vmem:[%s4961_s7 + $0x28] sm:$0xf]  ;;  %v4407_v34 = vld [vmem:[%s4961_s7 + $0x2c] sm:$0xf] }
  0x63   : > { %v634_v7 = vpack.c.b16 %v606_v29, %v605_v46  ;;  %v1708_v50 = vrot.slane %v1706_v12, 4  ;;  %v2517_v63 = vsel %vm696_vm0, %v4474_v39, 0  ;;  %v3795_v53 = vsel %vm696_vm0, %v4679_v41, 0  ;;  %3430 = vmatpush.bf16.msra.mxu3 %v3421_v52  ;;  %v1010_v12 = vld [vmem:[%s4961_s7 + $0x14] sm:$0xe] }
  0x64   : > { %v1700_v51 = vrot.slane %v1699_v42, 4  ;;  %v1714_v27 = vrot.slane %v1712_v37, 5  ;;  %2526 = vmatpush.bf16.msra.mxu1 %v2517_v63  ;;  %3804 = vmatpush.bf16.msra.mxu0 %v3795_v53  ;;  %v1174_v20 = vpack.c.b16 %v1143_v49, %v1142_v48  ;;  %v1044_v56 = vrot.slane %v5058_v19, 5  ;;  %v4405_v19 = vld [vmem:[%s4961_s7 + $0x24] sm:$0x1]  ;;  %v4716_v49 = vld [vmem:[%s4961_s7 + $0x1c] sm:$0xff] }
  0x65   : > { %4168 = vmatmul.msk.bf16.gmra.mxu0 %vm647_vm3, %v634_v7  ;;  %v1709_v54 = vor.u32 %v1708_v50, %v1704_v45  ;;  %v1716_v60 = vshrl.u32 %v4403_v21, 16  ;;  %v1722_v61 = vshll.u32 %v4404_v6, 16  ;;  %v1726_v62 = vshrl.u32 %v4404_v6, 16  ;;  %v4408_v6 = vld [vmem:[%s4961_s7 + $0x30] sm:$0xf] }
  0x66   : > { %v1705_v55 = vsel %vm4985_vm4, %v1700_v51, %v1704_v45  ;;  %v1043_v4 = vrot.slane %v1041_v33, 4  ;;  %v1047_v5 = vrot.slane %v5061_v25, 5  ;;  %v1046_v10 = vrot.slane %v1044_v56, 4 }
  0x67   : > { %v1710_v9 = vrot.slane %v1709_v54, 4  ;;  %v2046_v1 = vunpack.c.l.b16 %v1705_v55  ;;  %v1718_v13 = vrot.slane %v1716_v60, 4  ;;  %v1724_v44 = vrot.slane %v1722_v61, 5  ;;  %v4701_v61 = vld [vmem:[%s4961_s7 + $0x14] sm:$0xff] }
  0x68   : > { %v1728_v14 = vrot.slane %v1726_v62, 4  ;;  %v1045_v18 = vsel %vm5196_vm7, %v1043_v4, %v1044_v56  ;;  %v1048_v38 = vsel %vm5196_vm7, %v1046_v10, %v1047_v5  ;;  %v1732_v25 = vshll.u32 %v4405_v19, 16  ;;  %v4409_v4 = vld [vmem:[%s4961_s7 + $0x34] sm:$0xf] }
  0x69   : > { %4245 = vmatmul.msk.bf16.vlgmr.msrb.gmra.mxu1 %vm647_vm3, %v4699_v47  ;;  %v1715_v57 = vsel %vm4985_vm4, %v1710_v9, %v1714_v27  ;;  %v1719_v33 = vor.u32 %v1718_v13, %v1714_v27  ;;  %v1144_v46 = vunpack.c.l.b16 %v1045_v18  ;;  %v1145_v2 = vunpack.c.l.b16 %v1048_v38 }
  0x6a   : > { %v2047_v3 = vunpack.c.l.b16 %v1715_v57  ;;  %v1729_v21 = vor.u32 %v1728_v14, %v1724_v44  ;;  %v1734_v30 = vrot.slane %v1732_v25, 5  ;;  %v1051_v37 = vrot.slane %v5118_v58, 5 }
  0x6b   : > { %v1720_v8 = vrot.slane %v1719_v33, 4  ;;  %v1175_v35 = vpack.c.b16 %v1145_v2, %v1144_v46  ;;  %v1737_v39 = vshrl.u32 %v4406_v31, 16  ;;  %v1740_v41 = vshll.u32 %v4406_v31, 16  ;;  %v4717_v33 = vld [vmem:[%s4961_s7 + $0x28] sm:$0xff] }
  0x6c   : > { %v2078_v16 = vpack.c.b16 %v2047_v3, %v2046_v1  ;;  %v1730_v29 = vrot.slane %v1729_v21, 4  ;;  %v1746_v45 = vshll.u32 %v4407_v34, 16  ;;  %v1750_v47 = vshrl.u32 %v4407_v34, 16 }
  0x6d   : > { %v1725_v7 = vsel %vm4985_vm4, %v1720_v8, %v1724_v44  ;;  %v4262_v48 = vrot.slane %v1010_v12, 9  ;;  %v1739_v52 = vrot.slane %v1737_v39, 4  ;;  %v1742_v58 = vrot.slane %v1740_v41, 5 }
  0x6e   : > { %4270 = vmatmul.msk.bf16.vlgmr.msrb.gmra.mxu2 %vm647_vm3, %v1174_v20  ;;  %v1735_v42 = vsel %vm4985_vm4, %v1730_v29, %v1734_v30  ;;  %v2048_v50 = vunpack.c.l.b16 %v1725_v7  ;;  %v1053_v63 = vrot.slane %v1051_v37, 4  ;;  %v1054_v53 = vrot.slane %v5121_v59, 5 }
  0x6f   : > { %v2049_v51 = vunpack.c.l.b16 %v1735_v42  ;;  %v1748_v54 = vrot.slane %v1746_v45, 5  ;;  %v1752_v27 = vrot.slane %v1750_v47, 4  ;;  %v1743_v20 = vor.u32 %v1742_v58, %v1739_v52  ;;  %v4411_v45 = vld [vmem:[%s4961_s7 + $0x3c] sm:$0xf]  ;;  %v4412_v47 = vld [vmem:[%s4961_s7 + $0x40] sm:$0xf] }
  0x70   : > { %v1052_v55 = vsel %vm5196_vm7, %v4262_v48, %v1051_v37  ;;  %v1055_v56 = vsel %vm5196_vm7, %v1053_v63, %v1054_v53  ;;  %v1756_v60 = vshll.u32 %v4408_v6, 16  ;;  %v1057_v13 = vrot.slane %v5172_v28, 5  ;;  %v4410_v28 = vld [vmem:[%s4961_s7 + $0x38] sm:$0x1]  ;;  %v4702_v37 = vld [vmem:[%s4961_s7 + $0x1c] sm:$0xff] }
  0x71   : > { %4385 = vmatmul.msk.bf16.vlgmr.msrb.gmra.mxu3 %vm647_vm3, %v4715_v0  ;;  %v2079_v9 = vpack.c.b16 %v2049_v51, %v2048_v50  ;;  %v1753_v57 = vor.u32 %v1752_v27, %v1748_v54  ;;  %v1146_v59 = vunpack.c.l.b16 %v1052_v55  ;;  %v1147_v62 = vunpack.c.l.b16 %v1055_v56 }
  0x72   : > { %v1744_v0 = vrot.slane %v1743_v20, 4  ;;  %v1758_v3 = vrot.slane %v1756_v60, 5  ;;  %v1760_v44 = vshrl.u32 %v4408_v6, 16  ;;  %v1766_v19 = vshll.u32 %v4409_v4, 16  ;;  %v4718_v6 = vld [vmem:[%s4961_s7 + $0x30] sm:$0xff] }
  0x73   : > { %v1754_v1 = vrot.slane %v1753_v57, 4  ;;  %v1176_v5 = vpack.c.b16 %v1147_v62, %v1146_v59  ;;  %v1056_v38 = vrot.slane %v1054_v53, 4  ;;  %v1059_v25 = vrot.slane %v1057_v13, 4 }
  0x74   : > { %v1749_v10 = vsel %vm4985_vm4, %v1744_v0, %v1748_v54  ;;  %v1762_v46 = vrot.slane %v1760_v44, 4  ;;  %v1768_v2 = vrot.slane %v1766_v19, 5  ;;  %v1776_v12 = vshll.u32 %v4410_v28, 16  ;;  %v1011_v54 = vld [vmem:[%s4961_s7 + $0x28] sm:$0xe] }
  0x75   : > { %4442 = vmatmul.msk.bf16.vlgmr.msrb.gmra.mxu0 %vm647_vm3, %v2078_v16  ;;  %v1759_v14 = vsel %vm4985_vm4, %v1754_v1, %v1758_v3  ;;  %v1770_v16 = vshrl.u32 %v4409_v4, 16  ;;  %v2050_v18 = vunpack.c.l.b16 %v1749_v10  ;;  %v1058_v30 = vsel %vm5196_vm7, %v1056_v38, %v1057_v13  ;;  %v4703_v44 = vld [vmem:[%s4961_s7 + $0x28] sm:$0xff] }
  0x76   : > { %v2051_v21 = vunpack.c.l.b16 %v1759_v14  ;;  %v1763_v34 = vor.u32 %v1762_v46, %v1758_v3  ;;  %v1778_v42 = vrot.slane %v1776_v12, 5  ;;  %v1781_v50 = vshrl.u32 %v4411_v45, 16 }
  0x77   : > { %v1772_v8 = vrot.slane %v1770_v16, 4  ;;  %v1784_v51 = vshll.u32 %v4411_v45, 16  ;;  %v1790_v52 = vshll.u32 %v4412_v47, 16  ;;  %v1064_v63 = vrot.slane %v4965_v11, 5  ;;  %v4413_v11 = vld [vmem:[%s4961_s7 + $0x44] sm:$0xf] }
  0x78   : > { %v2080_v29 = vpack.c.b16 %v2051_v21, %v2050_v18  ;;  %v1764_v41 = vrot.slane %v1763_v34, 4  ;;  %v1794_v53 = vshrl.u32 %v4412_v47, 16  ;;  %v1783_v20 = vrot.slane %v1781_v50, 4  ;;  %v4415_v47 = vld [vmem:[%s4961_s7 + $0x4c] sm:$0x1] }
  0x79   : > { %4246 = vmatmul.msk.bf16.gmra.mxu1 %vm647_vm3, %v4700_v22  ;;  %v1060_v22 = vrot.slane %v5175_v32, 5  ;;  %v1148_v32 = vunpack.c.l.b16 %v1058_v30  ;;  %v1786_v55 = vrot.slane %v1784_v51, 5  ;;  %v1792_v56 = vrot.slane %v1790_v52, 5 }
  0x7a   : > { %v4263_v57 = vrot.slane %v1011_v54, 9  ;;  %v1066_v60 = vrot.slane %v1064_v63, 4  ;;  %v1796_v62 = vrot.slane %v1794_v53, 4  ;;  %v1800_v13 = vshll.u32 %v4413_v11, 16 }
  0x7b   : > { %v1061_v31 = vsel %vm5196_vm7, %v1059_v25, %v1060_v22  ;;  %v1787_v3 = vor.u32 %v1786_v55, %v1783_v20  ;;  %v1804_v25 = vshrl.u32 %v4413_v11, 16 }
  0x7c   : > { %v1149_v39 = vunpack.c.l.b16 %v1061_v31  ;;  %v1065_v4 = vsel %vm5196_vm7, %v4263_v57, %v1064_v63  ;;  %v1797_v10 = vor.u32 %v1796_v62, %v1792_v56  ;;  %v1802_v38 = vrot.slane %v1800_v13, 5  ;;  %v4704_v63 = vld [vmem:[%s4961_s7 + $0x30] sm:$0xff]  ;;  %v1012_v13 = vld [vmem:[%s4961_s7 + $0x3c] sm:$0xe] }
  0x7d   : > { %v1150_v14 = vunpack.c.l.b16 %v1065_v4  ;;  %v1788_v16 = vrot.slane %v1787_v3, 4  ;;  %v1806_v31 = vrot.slane %v1804_v25, 4  ;;  %v4417_v57 = vld [vmem:[%s4961_s7 + $0x54] sm:$0xf]  ;;  %v4264_v25 = vrot.slane %v1012_v13, 9 }
  0x7e   : > { %4271 = vmatmul.msk.bf16.gmra.mxu2 %vm647_vm3, %v1175_v35  ;;  %v1773_v35 = vor.u32 %v1772_v8, %v1768_v2  ;;  %v1177_v48 = vpack.c.b16 %v1149_v39, %v1148_v32  ;;  %v1798_v18 = vrot.slane %v1797_v10, 4  ;;  %v1838_v10 = vshrl.u32 %v4417_v57, 16  ;;  %v4420_v13 = vld [vmem:[%s4961_s7 + $0x60] sm:$0x1] }
  0x7f   : > { %v1793_v8 = vsel %vm4985_vm4, %v1788_v16, %v1792_v56  ;;  %v4416_v56 = vld [vmem:[%s4961_s7 + $0x50] sm:$0xf] }
  0x80   : > { %v1774_v7 = vrot.slane %v1773_v35, 4  ;;  %v1803_v28 = vsel %vm4985_vm4, %v1798_v18, %v1802_v38  ;;  %v4719_v35 = vld [vmem:[%s4961_s7 + $0x3c] sm:$0xff]  ;;  %v2054_v12 = vunpack.c.l.b16 %v1793_v8  ;;  %v1825_v62 = vshrl.u32 %v4416_v56, 16 }
  0x81   : > { %4386 = vmatmul.msk.bf16.gmra.mxu3 %vm647_vm3, %v4716_v49  ;;  %v1769_v49 = vsel %vm4985_vm4, %v1764_v41, %v1768_v2  ;;  %v1828_v11 = vshll.u32 %v4416_v56, 16  ;;  %v1840_v8 = vrot.slane %v1838_v10, 4 }
  0x82   : > { %v1779_v58 = vsel %vm4985_vm4, %v1774_v7, %v1778_v42  ;;  %v2052_v27 = vunpack.c.l.b16 %v1769_v49  ;;  %v1073_v42 = vrot.slane %v5024_v24, 5  ;;  %v1820_v24 = vshll.u32 %v4415_v47, 16 }
  0x83   : > { %v1827_v16 = vrot.slane %v1825_v62, 4  ;;  %v1830_v18 = vrot.slane %v1828_v11, 5 }
  0x84   : > { %v1822_v55 = vrot.slane %v1820_v24, 5 }
  0x85   : > { %4443 = vmatmul.msk.bf16.gmra.mxu0 %vm647_vm3, %v2079_v9  ;;  %v2053_v9 = vunpack.c.l.b16 %v1779_v58 }
  0x87   : > { %v2081_v1 = vpack.c.b16 %v2053_v9, %v2052_v27 }
  0x89   : > { %4247 = vmatmul.msk.bf16.gmra.mxu1 %vm647_vm3, %v4701_v61  ;;  %v4792_v61 = vld [vmem:[%s4961_s7 + $0x30] sm:$0xf] }
  0x8a   : > { %v1067_v59 = vrot.slane %v4792_v61, 5 }
  0x8c   : > { %v1069_v41 = vrot.slane %v1067_v59, 4 }
  0x8e   : > { %4272 = vmatmul.msk.bf16.gmra.mxu2 %vm647_vm3, %v1176_v5  ;;  %v1068_v5 = vsel %vm5196_vm7, %v1066_v60, %v1067_v59 }
  0x8f   : > { %v1151_v19 = vunpack.c.l.b16 %v1068_v5  ;;  %v1077_v5 = vrot.slane %v5073_v40, 5 }
  0x91   : > { %4387 = vmatmul.msk.bf16.gmra.mxu3 %vm647_vm3, %v4717_v33  ;;  %v4414_v33 = vld [vmem:[%s4961_s7 + $0x48] sm:$0xf]  ;;  %v1178_v22 = vpack.c.b16 %v1151_v19, %v1150_v14 }
  0x92   : > { %v1810_v2 = vshll.u32 %v4414_v33, 16  ;;  %v1814_v30 = vshrl.u32 %v4414_v33, 16  ;;  %v4720_v14 = vld [vmem:[%s4961_s7 + $0x44] sm:$0xff] }
  0x94   : > { %v1812_v39 = vrot.slane %v1810_v2, 5  ;;  %v1816_v45 = vrot.slane %v1814_v30, 4  ;;  %v1080_v2 = vrot.slane %v5076_v43, 5  ;;  %v1831_v30 = vor.u32 %v1830_v18, %v1827_v16 }
  0x95   : > { %4444 = vmatmul.msk.bf16.gmra.mxu0 %vm647_vm3, %v2080_v29  ;;  %v1070_v29 = vrot.slane %v5018_v15, 5  ;;  %v1807_v15 = vor.u32 %v1806_v31, %v1802_v38  ;;  %v1078_v31 = vsel %vm5196_vm7, %v4264_v25, %v1077_v5  ;;  %v4706_v25 = vld [vmem:[%s4961_s7 + $0x44] sm:$0xff] }
  0x96   : > { %v1817_v58 = vor.u32 %v1816_v45, %v1812_v39  ;;  %v1832_v45 = vrot.slane %v1831_v30, 4 }
  0x97   : > { %v1072_v7 = vrot.slane %v1070_v29, 4  ;;  %v1071_v51 = vsel %vm5196_vm7, %v1069_v41, %v1070_v29  ;;  %v1808_v53 = vrot.slane %v1807_v15, 4  ;;  %v4705_v41 = vld [vmem:[%s4961_s7 + $0x3c] sm:$0xff] }
  0x98   : > { %v1818_v20 = vrot.slane %v1817_v58, 4 }
  0x99   : > { %4248 = vmatmul.msk.bf16.gmra.mxu1 %vm647_vm3, %v4702_v37  ;;  %v2055_v37 = vunpack.c.l.b16 %v1803_v28  ;;  %v1074_v52 = vsel %vm5196_vm7, %v1072_v7, %v1073_v42  ;;  %v1813_v60 = vsel %vm4985_vm4, %v1808_v53, %v1812_v39  ;;  %v4418_v28 = vld [vmem:[%s4961_s7 + $0x58] sm:$0xf]  ;;  %v1154_v7 = vunpack.c.l.b16 %v1078_v31 }
  0x9a   : > { %v1153_v9 = vunpack.c.l.b16 %v1074_v52  ;;  %v1823_v3 = vsel %vm4985_vm4, %v1818_v20, %v1822_v55  ;;  %v1848_v58 = vshrl.u32 %v4418_v28, 16 }
  0x9b   : > { %v2057_v19 = vunpack.c.l.b16 %v1823_v3 }
  0x9c   : > { %v1850_v56 = vrot.slane %v1848_v58, 4  ;;  %v4793_v58 = vld [vmem:[%s4961_s7 + $0x54] sm:$0xf] }
  0x9e   : > { %4273 = vmatmul.msk.bf16.gmra.mxu2 %vm647_vm3, %v1177_v48  ;;  %v2082_v48 = vpack.c.b16 %v2055_v37, %v2054_v12  ;;  %v1844_v37 = vshll.u32 %v4418_v28, 16 }
  0xa0   : > { %v5296_v0 = vpop.f32.mrf.mxu1  ;;  %v1846_v15 = vrot.slane %v1844_v37, 5 }
  0xa1   : > { %4388 = vmatmul.msk.bf16.gmra.mxu3 %vm647_vm3, %v4718_v6  ;;  %v1152_v6 = vunpack.c.l.b16 %v1071_v51 }
  0xa3   : > { %v1179_v61 = vpack.c.b16 %v1153_v9, %v1152_v6  ;;  %v1083_v9 = vrot.slane %v5133_v17, 5  ;;  %v1851_v17 = vor.u32 %v1850_v56, %v1846_v15 }
  0xa5   : > { %4445 = vmatmul.msk.bf16.gmra.mxu0 %vm647_vm3, %v2081_v1  ;;  %v1834_v1 = vshll.u32 %v4417_v57, 16  ;;  %v4721_v57 = vld [vmem:[%s4961_s7 + $0x50] sm:$0xff]  ;;  %v1085_v3 = vrot.slane %v1083_v9, 4 }
  0xa7   : > { %v1836_v38 = vrot.slane %v1834_v1, 5  ;;  %v1082_v1 = vrot.slane %v1080_v2, 4 }
  0xa8   : > { %v5307_v21 = vpop.f32.mrf.mxu1 }
  0xa9   : > { %4249 = vmatmul.msk.bf16.gmra.mxu1 %vm647_vm3, %v4703_v44  ;;  %v2056_v44 = vunpack.c.l.b16 %v1813_v60  ;;  %v1841_v12 = vor.u32 %v1840_v8, %v1836_v38  ;;  %v1837_v53 = vsel %vm4985_vm4, %v1832_v45, %v1836_v38  ;;  %v1084_v16 = vsel %vm5196_vm7, %v1082_v1, %v1083_v9  ;;  %v4722_v9 = vld [vmem:[%s4961_s7 + $0x58] sm:$0xff] }
  0xaa   : > { %v5310_v46 = vpop.f32.mrf.mxu2  ;;  %v2058_v60 = vunpack.c.l.b16 %v1837_v53  ;;  %v1156_v8 = vunpack.c.l.b16 %v1084_v16  ;;  %v1013_v53 = vld [vmem:[%s4961_s7 + $0x50] sm:$0xe] }
  0xab   : > { %v2083_v29 = vpack.c.b16 %v2057_v19, %v2056_v44  ;;  %v1842_v47 = vrot.slane %v1841_v12, 4  ;;  %v4422_v12 = vld [vmem:[%s4961_s7 + $0x68] sm:$0xf] }
  0xad   : > { %v1847_v6 = vsel %vm4985_vm4, %v1842_v47, %v1846_v15  ;;  %v1878_v47 = vshll.u32 %v4422_v12, 16 }
  0xae   : > { %v5317_v34 = vpop.f32.mrf.mxu0  ;;  %4274 = vmatmul.msk.bf16.gmra.mxu2 %vm647_vm3, %v1178_v22  ;;  %v5321_v32 = vpop.f32.mrf.mxu3  ;;  %v1079_v22 = vrot.slane %v1077_v5, 4  ;;  %v1086_v5 = vrot.slane %v5141_v26, 5  ;;  %v1864_v26 = vshll.u32 %v4420_v13, 16  ;;  %v4423_v13 = vld [vmem:[%s4961_s7 + $0x6c] sm:$0xf] }
  0xb0   : > { %v1087_v18 = vsel %vm5196_vm7, %v1085_v3, %v1086_v5  ;;  %v1866_v31 = vrot.slane %v1864_v26, 5  ;;  %v4794_v3 = vld [vmem:[%s4961_s7 + $0x58] sm:$0xf] }
  0xb1   : > { %4389 = vmatmul.msk.bf16.gmra.mxu3 %vm647_vm3, %v4719_v35  ;;  %v1081_v35 = vsel %vm5196_vm7, %v1079_v22, %v1080_v2  ;;  %v1852_v22 = vrot.slane %v1851_v17, 4  ;;  %v1157_v28 = vunpack.c.l.b16 %v1087_v18  ;;  %v1093_v5 = vrot.slane %v4794_v3, 5 }
  0xb2   : > { %v5326_v49 = vpop.f32.mrf.mxu2  ;;  %v5328_v50 = vpop.f32.mrf.mxu1  ;;  %v1155_v42 = vunpack.c.l.b16 %v1081_v35  ;;  %v4421_v35 = vld [vmem:[%s4961_s7 + $0x64] sm:$0xf] }
  0xb3   : > { %v1872_v45 = vshll.u32 %v4421_v35, 16 }
  0xb4   : > { %v1180_v24 = vpack.c.b16 %v1155_v42, %v1154_v7  ;;  %v1181_v7 = vpack.c.b16 %v1157_v28, %v1156_v8  ;;  %v1869_v42 = vshrl.u32 %v4421_v35, 16  ;;  %v4707_v28 = vld [vmem:[%s4961_s7 + $0x50] sm:$0xff] }
  0xb5   : > { %4446 = vmatmul.msk.bf16.gmra.mxu0 %vm647_vm3, %v2082_v48  ;;  %v4419_v48 = vld [vmem:[%s4961_s7 + $0x5c] sm:$0xf] }
  0xb6   : > { %v5336_v54 = vpop.f32.mrf.mxu0  ;;  %v5338_v27 = vpop.f32.mrf.mxu3  ;;  %v1858_v20 = vshrl.u32 %v4419_v48, 16 }
  0xb8   : > { %v1860_v10 = vrot.slane %v1858_v20, 4 }
  0xb9   : > { %4250 = vmatmul.msk.bf16.gmra.mxu1 %vm647_vm3, %v4704_v63  ;;  %v1854_v63 = vshll.u32 %v4419_v48, 16 }
  0xba   : > { %v5345_v59 = vpop.f32.mrf.mxu1 }
  0xbb   : > { %v5349_v4 = vpop.f32.mrf.mxu2  ;;  %v1856_v11 = vrot.slane %v1854_v63, 5  ;;  %v1882_v63 = vshrl.u32 %v4422_v12, 16  ;;  %v4424_v12 = vld [vmem:[%s4961_s7 + $0x70] sm:$0xf] }
  0xbd   : > { %v1861_v38 = vor.u32 %v1860_v10, %v1856_v11  ;;  %v1857_v37 = vsel %vm4985_vm4, %v1852_v22, %v1856_v11  ;;  %v4265_v11 = vrot.slane %v1013_v53, 9  ;;  %v1884_v10 = vrot.slane %v1882_v63, 4  ;;  %v4795_v53 = vld [vmem:[%s4961_s7 + $0x5c] sm:$0xf] }
  0xbe   : > { %4275 = vmatmul.msk.bf16.gmra.mxu2 %vm647_vm3, %v1179_v61  ;;  %v2059_v61 = vunpack.c.l.b16 %v1847_v6  ;;  %v2060_v6 = vunpack.c.l.b16 %v1857_v37  ;;  %v1888_v22 = vshll.u32 %v4423_v13, 16 }
  0xbf   : > { %v5355_v33 = vpop.f32.mrf.mxu0  ;;  %v1862_v30 = vrot.slane %v1861_v38, 4 }
  0xc0   : > { %v5358_v40 = vpop.f32.mrf.mxu3 }
  0xc1   : > { %4390 = vmatmul.msk.bf16.gmra.mxu3 %vm647_vm3, %v4720_v14  ;;  %v2084_v14 = vpack.c.b16 %v2059_v61, %v2058_v60  ;;  %v1867_v48 = vsel %vm4985_vm4, %v1862_v30, %v1866_v31  ;;  %v1874_v60 = vrot.slane %v1872_v45, 5  ;;  %v1880_v61 = vrot.slane %v1878_v47, 5 }
  0xc2   : > { %v2061_v20 = vunpack.c.l.b16 %v1867_v48  ;;  %v1890_v45 = vrot.slane %v1888_v22, 5  ;;  %v1892_v47 = vshrl.u32 %v4423_v13, 16  ;;  %v4723_v13 = vld [vmem:[%s4961_s7 + $0x64] sm:$0xff] }
  0xc3   : > { %v5366_v39 = vpop.f32.mrf.mxu2  ;;  %v5368_v43 = vpop.f32.mrf.mxu1 }
  0xc5   : > { %4447 = vmatmul.msk.bf16.gmra.mxu0 %vm647_vm3, %v2083_v29 }
  0xc7   : > { %v5373_v51 = vpop.f32.mrf.mxu0 }
  0xc8   : > { %v5375_v52 = vpop.f32.mrf.mxu3 }
  0xc9   : > { %4251 = vmatmul.msk.bf16.gmra.mxu1 %vm647_vm3, %v4705_v41 }
  0xcb   : > { %v5383_v55 = vpop.f32.mrf.mxu1 }
  0xce   : > { %4276 = vmatmul.msk.bf16.gmra.mxu2 %vm647_vm3, %v1180_v24  ;;  %v5387_v62 = vpop.f32.mrf.mxu2  ;;  %v1090_v24 = vrot.slane %v4793_v58, 5  ;;  %v1898_v58 = vshll.u32 %v4424_v12, 16 }
  0xd0   : > { %v1092_v1 = vrot.slane %v1090_v24, 4  ;;  %v1091_v38 = vsel %vm5196_vm7, %v4265_v11, %v1090_v24  ;;  %v1902_v24 = vshrl.u32 %v4424_v12, 16  ;;  %v1900_v3 = vrot.slane %v1898_v58, 5 }
  0xd1   : > { %v5391_v44 = vpop.f32.mrf.mxu0  ;;  %4391 = vmatmul.msk.bf16.gmra.mxu3 %vm647_vm3, %v4721_v57  ;;  %v1871_v57 = vrot.slane %v1869_v42, 4  ;;  %v1158_v31 = vunpack.c.l.b16 %v1091_v38 }
  0xd2   : > { %v1094_v26 = vsel %vm5196_vm7, %v1092_v1, %v1093_v5 }
  0xd3   : > { %v5394_v19 = vpop.f32.mrf.mxu3  ;;  %v1875_v16 = vor.u32 %v1874_v60, %v1871_v57  ;;  %v1159_v35 = vunpack.c.l.b16 %v1094_v26  ;;  %v1894_v57 = vrot.slane %v1892_v47, 4  ;;  %v4796_v60 = vld [vmem:[%s4961_s7 + $0x60] sm:$0x1]  ;;  %v1095_v26 = vrot.slane %v1093_v5, 4 }
  0xd4   : > { %v1099_v11 = vrot.slane %v4796_v60, 5 }
  0xd5   : > { %4448 = vmatmul.msk.bf16.gmra.mxu0 %vm647_vm3, %v2084_v14  ;;  %v2085_v14 = vpack.c.b16 %v2061_v20, %v2060_v6  ;;  %v1182_v63 = vpack.c.b16 %v1159_v35, %v1158_v31  ;;  %v1096_v6 = vrot.slane %v4795_v53, 5 }
  0xd6   : > { %v5402_v2 = vpop.f32.mrf.mxu1  ;;  %v5404_v29 = vpop.f32.mrf.mxu2 }
  0xd9   : > { %4252 = vmatmul.msk.bf16.gmra.mxu1 %vm647_vm3, %v4706_v25  ;;  %v5411_v41 = vpop.f32.mrf.mxu0  ;;  %v1885_v25 = vor.u32 %v1884_v10, %v1880_v61  ;;  %v1904_v10 = vrot.slane %v1902_v24, 4 }
  0xdb   : > { %v5413_v15 = vpop.f32.mrf.mxu3  ;;  %v1886_v42 = vrot.slane %v1885_v25, 4  ;;  %v1098_v25 = vrot.slane %v1096_v6, 4  ;;  %v1905_v31 = vor.u32 %v1904_v10, %v1900_v3 }
  0xdd   : > { %v1891_v20 = vsel %vm4985_vm4, %v1886_v42, %v1890_v45  ;;  %v1097_v42 = vsel %vm5196_vm7, %v1095_v26, %v1096_v6  ;;  %v1100_v5 = vsel %vm5196_vm7, %v1098_v25, %v1099_v11  ;;  %v1906_v53 = vrot.slane %v1905_v31, 4  ;;  %v4427_v6 = vld [vmem:[%s4961_s7 + $0x7c] sm:$0xf] }
  0xde   : > { %4277 = vmatmul.msk.bf16.gmra.mxu2 %vm647_vm3, %v1181_v7  ;;  %v5421_v56 = vpop.f32.mrf.mxu1  ;;  %v1876_v7 = vrot.slane %v1875_v16, 4  ;;  %v2063_v16 = vunpack.c.l.b16 %v1891_v20 }
  0xe1   : > { %v5425_v17 = vpop.f32.mrf.mxu2  ;;  %4392 = vmatmul.msk.bf16.gmra.mxu3 %vm647_vm3, %v4722_v9 }
  0xe2   : > { %v5428_v18 = vpop.f32.mrf.mxu0 }
  0xe4   : > { %v5434_v8 = vpop.f32.mrf.mxu3 }
  0xe5   : > { %4449 = vmatmul.msk.bf16.gmra.mxu0 %vm647_vm3, %v2085_v14 }
  0xe6   : > { %v929_v30 = vpop.f32.mrf.mxu1 }
  0xe7   : > { %v930_v37 = vadd.f32 %v929_v30, %v5317_v34  ;;  %v1881_v34 = vsel %vm4985_vm4, %v1876_v7, %v1880_v61  ;;  %v4425_v61 = vld [vmem:[%s4961_s7 + $0x74] sm:$0x1] }
  0xe8   : > { %v2062_v14 = vunpack.c.l.b16 %v1881_v34  ;;  %v1908_v35 = vshll.u32 %v4425_v61, 16  ;;  %v1922_v61 = vshll.u32 %v4427_v6, 16 }
  0xe9   : > { %v5440_v48 = vpop.f32.mrf.mxu2  ;;  %4253 = vmatmul.msk.bf16.gmra.mxu1 %vm647_vm3, %v4707_v28  ;;  %v1895_v28 = vor.u32 %v1894_v57, %v1890_v45  ;;  %v1160_v45 = vunpack.c.l.b16 %v1097_v42 }
  0xea   : > { %v5444_v9 = vpop.f32.mrf.mxu0  ;;  %v2086_v12 = vpack.c.b16 %v2063_v16, %v2062_v14  ;;  %v1910_v34 = vrot.slane %v1908_v35, 5  ;;  %v1014_v35 = vld [vmem:[%s4961_s7 + $0x64] sm:$0xe] }
  0xeb   : > { %v1896_v58 = vrot.slane %v1895_v28, 4 }
  0xec   : > { %v5451_v1 = vpop.f32.mrf.mxu3  ;;  %v1911_v16 = vsel %vm4985_vm4, %v1906_v53, %v1910_v34  ;;  %v4798_v34 = vld [vmem:[%s4961_s7 + $0x6c] sm:$0xf] }
  0xed   : > { %v1901_v14 = vsel %vm4985_vm4, %v1896_v58, %v1900_v3  ;;  %v2065_v42 = vunpack.c.l.b16 %v1911_v16 }
  0xee   : > { %4278 = vmatmul.msk.bf16.gmra.mxu2 %vm647_vm3, %v1182_v63  ;;  %v931_v38 = vpop.f32.mrf.mxu1  ;;  %v1161_v63 = vunpack.c.l.b16 %v1100_v5 }
  0xef   : > { %v932_v22 = vadd.f32 %v931_v38, %v5336_v54  ;;  %v4708_v54 = vld [vmem:[%s4961_s7 + $0x58] sm:$0xff] }
  0xf1   : > { %v1250_v30 = vpop.f32.mrf.mxu2  ;;  %4393 = vmatmul.msk.bf16.gmra.mxu3 %vm647_vm3, %v4723_v13  ;;  %v1183_v13 = vpack.c.b16 %v1161_v63, %v1160_v45  ;;  %v4266_v63 = vrot.slane %v1014_v35, 9 }
  0xf2   : > { %v1330_v7 = vadd.f32 %v1250_v30, %v930_v37  ;;  %v2154_v47 = vpop.f32.mrf.mxu0  ;;  %v4426_v37 = vld [vmem:[%s4961_s7 + $0x78] sm:$0xf]  ;;  %v4797_v30 = vld [vmem:[%s4961_s7 + $0x68] sm:$0xf] }
  0xf3   : > { %v1913_v38 = vshrl.u32 %v4426_v37, 16  ;;  %v1916_v25 = vshll.u32 %v4426_v37, 16  ;;  %v1103_v31 = vrot.slane %v4797_v30, 5  ;;  %v4429_v30 = vld [vmem:[%s4961_s7 + $0x84] sm:$0xf] }
  0xf4   : > { %v1540_v24 = vpop.f32.mrf.mxu3 }
  0xf5   : > { %4450 = vmatmul.msk.bf16.gmra.mxu0 %vm647_vm3, %v2086_v12  ;;  %v1620_v20 = vadd.f32 %v1540_v24, %v1330_v7  ;;  %v2064_v7 = vunpack.c.l.b16 %v1901_v14  ;;  %v1915_v5 = vrot.slane %v1913_v38, 4  ;;  %v1918_v24 = vrot.slane %v1916_v25, 5 }
  0xf6   : > { %v934_v57 = vpop.f32.mrf.mxu1  ;;  %v1105_v53 = vrot.slane %v1103_v31, 4  ;;  %v1104_v38 = vsel %vm5196_vm7, %v4266_v63, %v1103_v31 }
  0xf7   : > { %v935_v60 = vadd.f32 %v934_v57, %v5355_v33  ;;  %v5467_v10 = vadd.f32 %v2154_v47, %v1620_v20  ;;  %v1926_v33 = vshrl.u32 %v4427_v6, 16  ;;  %v4724_v47 = vld [vmem:[%s4961_s7 + $0x6c] sm:$0xff]  ;;  %v1106_v20 = vrot.slane %v4798_v34, 5  ;;  %v4428_v57 = vld [vmem:[%s4961_s7 + $0x80] sm:$0xf] }
  0xf8   : > { %v1919_v14 = vor.u32 %v1918_v24, %v1915_v5  ;;  %v1932_v25 = vshll.u32 %v4428_v57, 16 }
  0xf9   : > { %v1252_v11 = vpop.f32.mrf.mxu2  ;;  %4254 = vmatmul.msk.bf16.gmra.mxu1 %vm647_vm3, %v4708_v54  ;;  %v1928_v54 = vrot.slane %v1926_v33, 4  ;;  %v4709_v33 = vld [vmem:[%s4961_s7 + $0x64] sm:$0xff] }
  0xfa   : > { %v1331_v26 = vadd.f32 %v1252_v11, %v932_v22  ;;  %v2156_v28 = vpop.f32.mrf.mxu0  ;;  %v1924_v22 = vrot.slane %v1922_v61, 5  ;;  %v2087_v11 = vpack.c.b16 %v2065_v42, %v2064_v7  ;;  %v1920_v42 = vrot.slane %v1919_v14, 4 }
  0xfb   : > { %v1934_v31 = vrot.slane %v1932_v25, 5 }
  0xfc   : > { %v1542_v12 = vpop.f32.mrf.mxu3 }
  0xfd   : > { %v1621_v3 = vadd.f32 %v1542_v12, %v1331_v26  ;;  %v1929_v26 = vor.u32 %v1928_v54, %v1924_v22  ;;  %v1162_v12 = vunpack.c.l.b16 %v1104_v38 }
  0xfe   : > { %4279 = vmatmul.msk.bf16.gmra.mxu2 %vm647_vm3, %v1183_v13  ;;  %v936_v58 = vpop.f32.mrf.mxu1 }
  0xff   : > { %v937_v45 = vadd.f32 %v936_v58, %v5373_v51  ;;  %v5481_v6 = vadd.f32 %v2156_v28, %v1621_v3  ;;  %v1107_v51 = vsel %vm5196_vm7, %v1105_v53, %v1106_v20  ;;  %v1930_v5 = vrot.slane %v1929_v26, 4 }
 0x100   : > { %v1163_v7 = vunpack.c.l.b16 %v1107_v51  ;;  %v1936_v3 = vshrl.u32 %v4428_v57, 16  ;;  %v1946_v58 = vshrl.u32 %v4429_v30, 16  ;;  %v4799_v57 = vld [vmem:[%s4961_s7 + $0x70] sm:$0xf]  ;;  %v4430_v51 = vld [vmem:[%s4961_s7 + $0x88] sm:$0x1] }
 0x101   : > { %v1255_v37 = vpop.f32.mrf.mxu2  ;;  %4394 = vmatmul.msk.bf16.gmra.mxu3 %vm647_vm3, %v4724_v47  ;;  %v1942_v47 = vshll.u32 %v4429_v30, 16  ;;  %v4800_v30 = vld [vmem:[%s4961_s7 + $0x74] sm:$0x1] }
 0x102   : > { %v1332_v13 = vadd.f32 %v1255_v37, %v935_v60  ;;  %v2159_v16 = vpop.f32.mrf.mxu0  ;;  %v1184_v53 = vpack.c.b16 %v1163_v7, %v1162_v12  ;;  %v1935_v37 = vsel %vm4985_vm4, %v1930_v5, %v1934_v31  ;;  %v1952_v5 = vshll.u32 %v4430_v51, 16  ;;  %v4432_v51 = vld [vmem:[%s4961_s7 + $0x90] sm:$0xf] }
 0x103   : > { %v1944_v14 = vrot.slane %v1942_v47, 5 }
 0x104   : > { %v1545_v61 = vpop.f32.mrf.mxu3 }
 0x105   : > { %4451 = vmatmul.msk.bf16.gmra.mxu0 %vm647_vm3, %v2087_v11  ;;  %v1622_v28 = vadd.f32 %v1545_v61, %v1332_v13  ;;  %v1109_v11 = vrot.slane %v4799_v57, 5  ;;  %v1938_v13 = vrot.slane %v1936_v3, 4  ;;  %v2067_v61 = vunpack.c.l.b16 %v1935_v37  ;;  %v4710_v57 = vld [vmem:[%s4961_s7 + $0x6c] sm:$0xff] }
 0x106   : > { %v939_v35 = vpop.f32.mrf.mxu1 }
 0x107   : > { %v940_v60 = vadd.f32 %v939_v35, %v5391_v44  ;;  %v5492_v24 = vadd.f32 %v2159_v16, %v1622_v28  ;;  %v1925_v44 = vsel %vm4985_vm4, %v1920_v42, %v1924_v22  ;;  %v1948_v16 = vrot.slane %v1946_v58, 4 }
 0x108   : > { %v2066_v25 = vunpack.c.l.b16 %v1925_v44  ;;  %v1112_v28 = vrot.slane %v4800_v30, 5  ;;  %v1108_v35 = vrot.slane %v1106_v20, 4  ;;  %v1111_v12 = vrot.slane %v1109_v11, 4 }
 0x109   : > { %v1257_v54 = vpop.f32.mrf.mxu2  ;;  %4255 = vmatmul.msk.bf16.gmra.mxu1 %vm647_vm3, %v4709_v33  ;;  %v1939_v7 = vor.u32 %v1938_v13, %v1934_v31  ;;  %v1949_v42 = vor.u32 %v1948_v16, %v1944_v14  ;;  %v1954_v44 = vrot.slane %v1952_v5, 5 }
 0x10a   : > { %v1333_v63 = vadd.f32 %v1257_v54, %v937_v45  ;;  %v2161_v34 = vpop.f32.mrf.mxu0  ;;  %v4725_v45 = vld [vmem:[%s4961_s7 + $0x78] sm:$0xff]  ;;  %v2088_v58 = vpack.c.b16 %v2067_v61, %v2066_v25 }
 0x10b   : > { %v1940_v20 = vrot.slane %v1939_v7, 4  ;;  %v1950_v31 = vrot.slane %v1949_v42, 4  ;;  %v4801_v42 = vld [vmem:[%s4961_s7 + $0x7c] sm:$0xf] }
 0x10c   : > { %v1547_v38 = vpop.f32.mrf.mxu3 }
 0x10d   : > { %v1623_v26 = vadd.f32 %v1547_v38, %v1333_v63 }
 0x10e   : > { %4280 = vmatmul.msk.bf16.gmra.mxu2 %vm647_vm3, %v1184_v53  ;;  %v941_v33 = vpop.f32.mrf.mxu1  ;;  %v1110_v53 = vsel %vm5196_vm7, %v1108_v35, %v1109_v11  ;;  %v1970_v35 = vshrl.u32 %v4432_v51, 16 }
 0x10f   : > { %v942_v22 = vadd.f32 %v941_v33, %v5411_v41  ;;  %v5505_v47 = vadd.f32 %v2161_v34, %v1623_v26  ;;  %v1113_v41 = vsel %vm5196_vm7, %v1111_v12, %v1112_v28  ;;  %v1164_v16 = vunpack.c.l.b16 %v1110_v53 }
 0x110   : > { %v1165_v38 = vunpack.c.l.b16 %v1113_v41  ;;  %v1945_v26 = vsel %vm4985_vm4, %v1940_v20, %v1944_v14  ;;  %v1966_v28 = vshll.u32 %v4432_v51, 16  ;;  %v1015_v14 = vld [vmem:[%s4961_s7 + $0x78] sm:$0xe]  ;;  %v1972_v20 = vrot.slane %v1970_v35, 4 }
 0x111   : > { %v1260_v3 = vpop.f32.mrf.mxu2  ;;  %4395 = vmatmul.msk.bf16.gmra.mxu3 %vm647_vm3, %v4725_v45  ;;  %v1955_v45 = vsel %vm4985_vm4, %v1950_v31, %v1954_v44  ;;  %v4726_v44 = vld [vmem:[%s4961_s7 + $0x80] sm:$0xff] }
 0x112   : > { %v1334_v54 = vadd.f32 %v1260_v3, %v940_v60  ;;  %v2164_v63 = vpop.f32.mrf.mxu0  ;;  %v4431_v60 = vld [vmem:[%s4961_s7 + $0x8c] sm:$0xf]  ;;  %v1185_v7 = vpack.c.b16 %v1165_v38, %v1164_v16  ;;  %v2068_v3 = vunpack.c.l.b16 %v1945_v26  ;;  %v1968_v41 = vrot.slane %v1966_v28, 5  ;;  %v4433_v38 = vld [vmem:[%s4961_s7 + $0x94] sm:$0xf] }
 0x113   : > { %v1957_v33 = vshrl.u32 %v4431_v60, 16  ;;  %v1960_v30 = vshll.u32 %v4431_v60, 16  ;;  %v1976_v35 = vshll.u32 %v4433_v38, 16 }
 0x114   : > { %v1550_v37 = vpop.f32.mrf.mxu3 }
 0x115   : > { %4452 = vmatmul.msk.bf16.gmra.mxu0 %vm647_vm3, %v2088_v58  ;;  %v1624_v34 = vadd.f32 %v1550_v37, %v1334_v54  ;;  %v2069_v58 = vunpack.c.l.b16 %v1955_v45  ;;  %v1962_v53 = vrot.slane %v1960_v30, 5  ;;  %v1973_v45 = vor.u32 %v1972_v20, %v1968_v41 }
 0x116   : > { %v944_v13 = vpop.f32.mrf.mxu1 }
 0x117   : > { %v945_v11 = vadd.f32 %v944_v13, %v5428_v18  ;;  %v5521_v25 = vadd.f32 %v2164_v63, %v1624_v34  ;;  %v1116_v18 = vrot.slane %v4801_v42, 5  ;;  %v1959_v63 = vrot.slane %v1957_v33, 4  ;;  %v4802_v34 = vld [vmem:[%s4961_s7 + $0x80] sm:$0xf] }
 0x118   : > { %v1119_v13 = vrot.slane %v4802_v34, 5  ;;  %v2089_v60 = vpack.c.b16 %v2069_v58, %v2068_v3 }
 0x119   : > { %v1262_v61 = vpop.f32.mrf.mxu2  ;;  %4256 = vmatmul.msk.bf16.gmra.mxu1 %vm647_vm3, %v4710_v57  ;;  %v1118_v57 = vrot.slane %v1116_v18, 4  ;;  %v1963_v26 = vor.u32 %v1962_v53, %v1959_v63  ;;  %v4434_v63 = vld [vmem:[%s4961_s7 + $0x98] sm:$0xf] }
 0x11a   : > { %v1335_v12 = vadd.f32 %v1262_v61, %v942_v22  ;;  %v2166_v5 = vpop.f32.mrf.mxu0  ;;  %v4267_v22 = vrot.slane %v1015_v14, 9  ;;  %v1990_v34 = vshrl.u32 %v4434_v63, 16 }
 0x11b   : > { %v1120_v28 = vsel %vm5196_vm7, %v1118_v57, %v1119_v13  ;;  %v1964_v3 = vrot.slane %v1963_v26, 4  ;;  %v1986_v57 = vshll.u32 %v4434_v63, 16 }
 0x11c   : > { %v1552_v54 = vpop.f32.mrf.mxu3  ;;  %v1117_v30 = vsel %vm5196_vm7, %v4267_v22, %v1116_v18  ;;  %v1167_v14 = vunpack.c.l.b16 %v1120_v28 }
 0x11d   : > { %v1625_v31 = vadd.f32 %v1552_v54, %v1335_v12  ;;  %v1166_v42 = vunpack.c.l.b16 %v1117_v30  ;;  %v1974_v54 = vrot.slane %v1973_v45, 4 }
 0x11e   : > { %4281 = vmatmul.msk.bf16.gmra.mxu2 %vm647_vm3, %v1185_v7  ;;  %v946_v37 = vpop.f32.mrf.mxu1  ;;  %v4711_v7 = vld [vmem:[%s4961_s7 + $0x78] sm:$0xff] }
 0x11f   : > { %v947_v16 = vadd.f32 %v946_v37, %v5444_v9  ;;  %v5531_v61 = vadd.f32 %v2166_v5, %v1625_v31  ;;  %v1186_v20 = vpack.c.b16 %v1167_v14, %v1166_v42  ;;  %v1969_v31 = vsel %vm4985_vm4, %v1964_v3, %v1968_v41  ;;  %v4727_v41 = vld [vmem:[%s4961_s7 + $0x8c] sm:$0xff]  ;;  %v4435_v3 = vld [vmem:[%s4961_s7 + $0x9c] sm:$0x1] }
 0x121   : > { %v1265_v51 = vpop.f32.mrf.mxu2  ;;  %4396 = vmatmul.msk.bf16.gmra.mxu3 %vm647_vm3, %v4726_v44  ;;  %v1980_v44 = vshrl.u32 %v4433_v38, 16 }
 0x122   : > { %v1336_v33 = vadd.f32 %v1265_v51, %v945_v11  ;;  %v2169_v12 = vpop.f32.mrf.mxu0  ;;  %v1978_v11 = vrot.slane %v1976_v35, 5  ;;  %v4803_v51 = vld [vmem:[%s4961_s7 + $0x84] sm:$0xf] }
 0x123   : > { %v1122_v26 = vrot.slane %v4803_v51, 5  ;;  %v1982_v28 = vrot.slane %v1980_v44, 4 }
 0x124   : > { %v1555_v9 = vpop.f32.mrf.mxu3  ;;  %v1979_v22 = vsel %vm4985_vm4, %v1974_v54, %v1978_v11 }
 0x125   : > { %4453 = vmatmul.msk.bf16.gmra.mxu0 %vm647_vm3, %v2089_v60  ;;  %v1626_v5 = vadd.f32 %v1555_v9, %v1336_v33  ;;  %v2070_v33 = vunpack.c.l.b16 %v1969_v31  ;;  %v2071_v30 = vunpack.c.l.b16 %v1979_v22  ;;  %v1992_v9 = vrot.slane %v1990_v34, 4 }
 0x126   : > { %v949_v58 = vpop.f32.mrf.mxu1  ;;  %v1124_v14 = vrot.slane %v1122_v26, 4 }
 0x127   : > { %v5541_v53 = vadd.f32 %v2169_v12, %v1626_v5  ;;  %v1988_v12 = vrot.slane %v1986_v57, 5  ;;  %v950_v5 = vadd.f32 %v949_v58, %v5296_v0  ;;  %v2090_v54 = vpack.c.b16 %v2071_v30, %v2070_v33  ;;  %v4712_v58 = vld [vmem:[%s4961_s7 + $0x80] sm:$0xff] }
 0x129   : > { %v1267_v18 = vpop.f32.mrf.mxu2  ;;  %4257 = vmatmul.msk.bf16.gmra.mxu1 %vm647_vm3, %v4711_v7  ;;  %v4804_v7 = vld [vmem:[%s4961_s7 + $0x88] sm:$0x1]  ;;  %v1993_v44 = vor.u32 %v1992_v9, %v1988_v12 }
 0x12a   : > { %v1337_v37 = vadd.f32 %v1267_v18, %v947_v16  ;;  %v2171_v60 = vpop.f32.mrf.mxu0  ;;  %v1121_v16 = vrot.slane %v1119_v13, 4  ;;  %v1125_v42 = vrot.slane %v4804_v7, 5  ;;  %v1983_v18 = vor.u32 %v1982_v28, %v1978_v11  ;;  %v4436_v11 = vld [vmem:[%s4961_s7 + $0xa0] sm:$0xf]  ;;  %v4437_v28 = vld [vmem:[%s4961_s7 + $0xa4] sm:$0xf] }
 0x12b   : > { %v1994_v30 = vrot.slane %v1993_v44, 4 }
 0x12c   : > { %v1557_v45 = vpop.f32.mrf.mxu3  ;;  %v1123_v13 = vsel %vm5196_vm7, %v1121_v16, %v1122_v26  ;;  %v1126_v57 = vsel %vm5196_vm7, %v1124_v14, %v1125_v42  ;;  %v1984_v51 = vrot.slane %v1983_v18, 4  ;;  %v2004_v16 = vshll.u32 %v4436_v11, 16  ;;  %v4805_v18 = vld [vmem:[%s4961_s7 + $0x90] sm:$0xf] }
 0x12d   : > { %v1627_v35 = vadd.f32 %v1557_v45, %v1337_v37  ;;  %v1996_v37 = vshll.u32 %v4435_v3, 16  ;;  %v1168_v34 = vunpack.c.l.b16 %v1123_v13  ;;  %v1169_v33 = vunpack.c.l.b16 %v1126_v57 }
 0x12e   : > { %4282 = vmatmul.msk.bf16.gmra.mxu2 %vm647_vm3, %v1186_v20  ;;  %v951_v38 = vpop.f32.mrf.mxu1  ;;  %v1989_v42 = vsel %vm4985_vm4, %v1984_v51, %v1988_v12  ;;  %v2010_v14 = vshll.u32 %v4437_v28, 16  ;;  %v2014_v3 = vshrl.u32 %v4437_v28, 16  ;;  %v2006_v44 = vrot.slane %v2004_v16, 5 }
 0x12f   : > { %v5554_v31 = vadd.f32 %v2171_v60, %v1627_v35  ;;  %v1998_v26 = vrot.slane %v1996_v37, 5  ;;  %v952_v35 = vadd.f32 %v951_v38, %v5307_v21  ;;  %v1129_v21 = vrot.slane %v4805_v18, 5  ;;  %v4713_v18 = vld [vmem:[%s4961_s7 + $0x8c] sm:$0xff] }
 0x130   : > { %v2012_v12 = vrot.slane %v2010_v14, 5 }
 0x131   : > { %v1270_v63 = vpop.f32.mrf.mxu2  ;;  %4397 = vmatmul.msk.bf16.gmra.mxu3 %vm647_vm3, %v4727_v41  ;;  %v2001_v41 = vshrl.u32 %v4436_v11, 16 }
 0x132   : > { %v1338_v20 = vadd.f32 %v1270_v63, %v950_v5  ;;  %v2174_v22 = vpop.f32.mrf.mxu0  ;;  %v1999_v63 = vsel %vm4985_vm4, %v1994_v30, %v1998_v26  ;;  %v4438_v26 = vld [vmem:[%s4961_s7 + $0xa8] sm:$0xf] }
 0x133   : > { %v2003_v13 = vrot.slane %v2001_v41, 4  ;;  %v2073_v57 = vunpack.c.l.b16 %v1999_v63 }
 0x134   : > { %v1560_v0 = vpop.f32.mrf.mxu3 }
 0x135   : > { %4454 = vmatmul.msk.bf16.gmra.mxu0 %vm647_vm3, %v2090_v54  ;;  %v1628_v60 = vadd.f32 %v1560_v0, %v1338_v20  ;;  %v1187_v54 = vpack.c.b16 %v1169_v33, %v1168_v34  ;;  %v1016_v20 = vld [vmem:[%s4961_s7 + $0x8c] sm:$0xe]  ;;  %v2016_v0 = vrot.slane %v2014_v3, 4  ;;  %v4728_v34 = vld [vmem:[%s4961_s7 + $0x94] sm:$0xff] }
 0x136   : > { %v954_v45 = vpop.f32.mrf.mxu1  ;;  %v4268_v11 = vrot.slane %v1016_v20, 9  ;;  %v4806_v33 = vld [vmem:[%s4961_s7 + $0x94] sm:$0xf] }
 0x137   : > { %v5566_v9 = vadd.f32 %v2174_v22, %v1628_v60  ;;  %v2072_v22 = vunpack.c.l.b16 %v1989_v42  ;;  %v1131_v60 = vrot.slane %v1129_v21, 4  ;;  %v1132_v30 = vrot.slane %v4806_v33, 5 }
 0x138   : > { %v955_v28 = vadd.f32 %v954_v45, %v5328_v50  ;;  %v2017_v16 = vor.u32 %v2016_v0, %v2012_v12 }
 0x139   : > { %v1272_v7 = vpop.f32.mrf.mxu2  ;;  %4258 = vmatmul.msk.bf16.gmra.mxu1 %vm647_vm3, %v4712_v58  ;;  %v2091_v14 = vpack.c.b16 %v2073_v57, %v2072_v22  ;;  %v4807_v57 = vld [vmem:[%s4961_s7 + $0x18] sm:$0xf] }
 0x13a   : > { %v1339_v5 = vadd.f32 %v1272_v7, %v952_v35  ;;  %v2176_v38 = vpop.f32.mrf.mxu0  ;;  %v2007_v35 = vor.u32 %v2006_v44, %v2003_v13  ;;  %v2020_v7 = vshll.u32 %v4438_v26, 16  ;;  %v2316_v0 = vrot.slane %v4807_v57, 5 }
 0x13c   : > { %v1562_v37 = vpop.f32.mrf.mxu3  ;;  %v2008_v50 = vrot.slane %v2007_v35, 4  ;;  %v5588_v44 = vrot.slane %v2020_v7, 5 }
 0x13d   : > { %v1629_v58 = vadd.f32 %v1562_v37, %v1339_v5  ;;  %v1130_v5 = vsel %vm5196_vm7, %v4268_v11, %v1129_v21  ;;  %v4439_v21 = vld [vmem:[%s4961_s7 + $0xac] sm:$0xf] }
 0x13e   : > { %4283 = vmatmul.msk.bf16.gmra.mxu2 %vm647_vm3, %v1187_v54  ;;  %v956_v51 = vpop.f32.mrf.mxu1  ;;  %v1133_v54 = vsel %vm5196_vm7, %v1131_v60, %v1132_v30  ;;  %v1170_v20 = vunpack.c.l.b16 %v1130_v5  ;;  %v2013_v33 = vsel %vm4985_vm4, %v2008_v50, %v2012_v12  ;;  %v2034_v7 = vshrl.u32 %v4439_v21, 16  ;;  %v4809_v5 = vld [vmem:[%s4961_s7 + $0x98] sm:$0xf] }
 0x13f   : > { %v5580_v42 = vadd.f32 %v2176_v38, %v1629_v58  ;;  %v1171_v13 = vunpack.c.l.b16 %v1133_v54  ;;  %v2018_v38 = vrot.slane %v2017_v16, 4  ;;  %v957_v58 = vadd.f32 %v956_v51, %v5345_v59  ;;  %v5603_v51 = vld [vmem:[%s4961_s7 + $0x1c] sm:$0xf] }
 0x140   : > { %v2030_v16 = vshll.u32 %v4439_v21, 16  ;;  %v2318_v59 = vrot.slane %v2316_v0, 4  ;;  %v1135_v54 = vrot.slane %v4809_v5, 5 }
 0x141   : > { %v1275_v41 = vpop.f32.mrf.mxu2  ;;  %4398 = vmatmul.msk.bf16.gmra.mxu3 %vm647_vm3, %v4728_v34  ;;  %v1188_v60 = vpack.c.b16 %v1171_v13, %v1170_v20 }
 0x142   : > { %v1340_v3 = vadd.f32 %v1275_v41, %v955_v28  ;;  %v2179_v63 = vpop.f32.mrf.mxu0  ;;  %v2023_v28 = vsel %vm4985_vm4, %v2018_v38, %v5588_v44  ;;  %v2024_v41 = vshrl.u32 %v4438_v26, 16  ;;  %v4729_v38 = vld [vmem:[%s4961_s7 + $0xa0] sm:$0xff]  ;;  %v5611_v21 = vrot.slane %v2030_v16, 5 }
 0x143   : > { %v2075_v20 = vunpack.c.l.b16 %v2023_v28  ;;  %v1137_v5 = vrot.slane %v1135_v54, 4  ;;  %v4440_v28 = vld [vmem:[%s4961_s7 + $0xb0] sm:$0x1] }
 0x144   : > { %v1565_v45 = vpop.f32.mrf.mxu3  ;;  %v2026_v57 = vrot.slane %v2024_v41, 4 }
 0x145   : > { %4455 = vmatmul.msk.bf16.gmra.mxu0 %vm647_vm3, %v2091_v14  ;;  %v1630_v37 = vadd.f32 %v1565_v45, %v1340_v3  ;;  %v6457_v14 = vrot.slane %v5603_v51, 5  ;;  %v4810_v45 = vld [vmem:[%s4961_s7 + $0x9c] sm:$0x1] }
 0x146   : > { %v959_v22 = vpop.f32.mrf.mxu1  ;;  %v1138_v12 = vrot.slane %v4810_v45, 5 }
 0x147   : > { %v5594_v34 = vadd.f32 %v2179_v63, %v1630_v37  ;;  %v4458_v63 = vld [vmem:[%s4961_s7 + $0x14] sm:$0xe] }
 0x148   : > { %v4466_v13 = vrot.slane %v4458_v63, 9 }
 0x149   : > { %6462 = vst [vmem:[#allocation2_spill] sm:$0xff] %v5594_v34  ;;  %v1277_v11 = vpop.f32.mrf.mxu2  ;;  %4259 = vmatmul.msk.bf16.gmra.mxu1 %vm647_vm3, %v4713_v18  ;;  %v2074_v18 = vunpack.c.l.b16 %v2013_v33  ;;  %v2320_v33 = vsel %vm5196_vm7, %v2318_v59, %v6457_v14 }
 0x14a   : > { %v1341_v35 = vadd.f32 %v1277_v11, %v957_v58  ;;  %v2181_v3 = vpop.f32.mrf.mxu0  ;;  %v2036_v58 = vrot.slane %v2034_v7, 4  ;;  %v1134_v11 = vrot.slane %v1132_v30, 4  ;;  %v2317_v45 = vsel %vm5196_vm7, %v4466_v13, %v2316_v0  ;;  %v4606_v7 = vld [vmem:[%s4961_s7 + $0x28] sm:$0xf]  ;;  %v5627_v13 = vld [vmem:[%s4961_s7 + $0x2c] sm:$0xf] }
 0x14b   : > { %v2421_v63 = vunpack.c.l.b16 %v2320_v33  ;;  %v2092_v41 = vpack.c.b16 %v2075_v20, %v2074_v18  ;;  %v2040_v20 = vshll.u32 %v4440_v28, 16 }
 0x14c   : > { %v1567_v50 = vpop.f32.mrf.mxu3  ;;  %v2037_v18 = vor.u32 %v2036_v58, %v5611_v21 }
 0x14d   : > { %v1631_v26 = vadd.f32 %v1567_v50, %v1341_v35  ;;  %v2420_v35 = vunpack.c.l.b16 %v2317_v45  ;;  %v2027_v50 = vor.u32 %v2026_v57, %v5588_v44  ;;  %v2974_v45 = vshll.u32 %v4606_v7, 16  ;;  %v4714_v44 = vld [vmem:[%s4961_s7 + $0x94] sm:$0xff] }
 0x14e   : > { %4284 = vmatmul.msk.bf16.gmra.mxu2 %vm647_vm3, %v1188_v60  ;;  %v961_v37 = vpop.f32.mrf.mxu1  ;;  %v960_v60 = vadd.f32 %v959_v22, %v5368_v43  ;;  %v1136_v43 = vsel %vm5196_vm7, %v1134_v11, %v1135_v54  ;;  %v1139_v22 = vsel %vm5196_vm7, %v1137_v5, %v1138_v12  ;;  %v2980_v57 = vshll.u32 %v5627_v13, 16 }
 0x14f   : > { %v5624_v0 = vpack.c.b16 %v2421_v63, %v2420_v35  ;;  %v5629_v34 = vadd.f32 %v2181_v3, %v1631_v26  ;;  %v1172_v54 = vunpack.c.l.b16 %v1136_v43  ;;  %v1173_v11 = vunpack.c.l.b16 %v1139_v22  ;;  %v5645_v43 = vld [vmem:[%s4961_s7 + $0x30] sm:$0xf] }
 0x150   : > { %v2028_v12 = vrot.slane %v2027_v50, 4  ;;  %v2038_v5 = vrot.slane %v2037_v18, 4  ;;  %v2042_v58 = vrot.slane %v2040_v20, 5  ;;  %v962_v28 = vadd.f32 %v961_v37, %v5383_v55  ;;  %v4811_v50 = vld [vmem:[%s4961_s7 + $0x24] sm:$0x1] }
 0x151   : > { %v1280_v16 = vpop.f32.mrf.mxu2  ;;  %4399 = vmatmul.msk.bf16.gmra.mxu3 %vm647_vm3, %v4729_v38  ;;  %v2971_v38 = vshrl.u32 %v4606_v7, 16  ;;  %v2976_v63 = vrot.slane %v2974_v45, 5  ;;  %v1189_v14 = vpack.c.b16 %v1173_v11, %v1172_v54  ;;  %v2325_v22 = vrot.slane %v4811_v50, 5 }
 0x152   : > { %v1342_v30 = vadd.f32 %v1280_v16, %v960_v60  ;;  %v2184_v59 = vpop.f32.mrf.mxu0  ;;  %v2984_v60 = vshrl.u32 %v5627_v13, 16  ;;  %v2033_v55 = vsel %vm4985_vm4, %v2028_v12, %v5611_v21  ;;  %v2043_v37 = vsel %vm4985_vm4, %v2038_v5, %v2042_v58 }
 0x153   : > { %v2973_v35 = vrot.slane %v2971_v38, 4  ;;  %v2077_v21 = vunpack.c.l.b16 %v2043_v37 }
 0x154   : > { %v1570_v33 = vpop.f32.mrf.mxu3 }
 0x155   : > { %4456 = vmatmul.msk.bf16.gmra.mxu0 %vm647_vm3, %v2092_v41  ;;  %v1632_v3 = vadd.f32 %v1570_v33, %v1342_v30  ;;  %v2982_v41 = vrot.slane %v2980_v57, 5  ;;  %v2986_v30 = vrot.slane %v2984_v60, 4  ;;  %v2977_v38 = vor.u32 %v2976_v63, %v2973_v35 }
 0x156   : > { %v964_v26 = vpop.f32.mrf.mxu1  ;;  %v2990_v57 = vshll.u32 %v5645_v43, 16  ;;  %v6463_v60 = vrot.slane %v5603_v51, 5 }
 0x157   : > { %v5641_v16 = vadd.f32 %v2184_v59, %v1632_v3  ;;  %v4812_v59 = vld [vmem:[%s4961_s7 + $0x20] sm:$0xf]  ;;  %v965_v35 = vadd.f32 %v964_v26, %v5402_v2  ;;  %v2978_v51 = vrot.slane %v2977_v38, 4 }
 0x158   : > { %v2322_v20 = vrot.slane %v4812_v59, 5  ;;  %v2321_v3 = vrot.slane %v6463_v60, 4 }
 0x159   : > { %v1282_v7 = vpop.f32.mrf.mxu2  ;;  %4260 = vmatmul.msk.bf16.gmra.mxu1 %vm647_vm3, %v4714_v44  ;;  %v2987_v44 = vor.u32 %v2986_v30, %v2982_v41  ;;  %v2983_v2 = vsel %vm4985_vm4, %v2978_v51, %v2982_v41 }
 0x15a   : > { %v1343_v33 = vadd.f32 %v1282_v7, %v962_v28  ;;  %v2186_v18 = vpop.f32.mrf.mxu0  ;;  %v2324_v54 = vrot.slane %v2322_v20, 4  ;;  %v4730_v28 = vld [vmem:[%s4961_s7 + $0xa8] sm:$0xff]  ;;  %v2076_v7 = vunpack.c.l.b16 %v2033_v55  ;;  %v2323_v5 = vsel %vm5196_vm7, %v2321_v3, %v2322_v20  ;;  %v5672_v3 = vld [vmem:[%s4961_s7 + $0x34] sm:$0xf] }
 0x15b   : > { %v2422_v63 = vunpack.c.l.b16 %v2323_v5  ;;  %v2988_v50 = vrot.slane %v2987_v44, 4  ;;  %v3594_v55 = vrot.slane %v5627_v13, 5  ;;  %v3004_v41 = vshrl.u32 %v5672_v3, 16 }
 0x15c   : > { %v1572_v45 = vpop.f32.mrf.mxu3  ;;  %v2326_v58 = vsel %vm5196_vm7, %v2324_v54, %v2325_v22  ;;  %v2093_v37 = vpack.c.b16 %v2077_v21, %v2076_v7 }
 0x15d   : > { %v1633_v11 = vadd.f32 %v1572_v45, %v1343_v33  ;;  %v2423_v30 = vunpack.c.l.b16 %v2326_v58  ;;  %v4663_v45 = vld [vmem:[%s4961_s7 + $0x28] sm:$0xe]  ;;  %v3596_v44 = vrot.slane %v3594_v55, 4  ;;  %v3324_v58 = vunpack.c.l.b16 %v2983_v2 }
 0x15e   : > { %4285 = vmatmul.msk.bf16.gmra.mxu2 %vm647_vm3, %v1189_v14  ;;  %v966_v12 = vpop.f32.mrf.mxu1  ;;  %v2992_v14 = vrot.slane %v2990_v57, 5  ;;  %v4671_v13 = vrot.slane %v4663_v45, 9  ;;  %v2994_v57 = vshrl.u32 %v5645_v43, 16 }
 0x15f   : > { %v5667_v20 = vpack.c.b16 %v2423_v30, %v2422_v63  ;;  %v5669_v60 = vadd.f32 %v2186_v18, %v1633_v11  ;;  %v3597_v11 = vrot.slane %v5645_v43, 5  ;;  %v967_v7 = vadd.f32 %v966_v12, %v5421_v56  ;;  %v4731_v30 = vld [vmem:[%s4961_s7 + $0x28] sm:$0xff] }
 0x160   : > { %v2993_v38 = vsel %vm4985_vm4, %v2988_v50, %v2992_v14  ;;  %v3595_v51 = vsel %vm5196_vm7, %v4671_v13, %v3594_v55  ;;  %v2996_v63 = vrot.slane %v2994_v57, 4  ;;  %v3006_v56 = vrot.slane %v3004_v41, 4 }
 0x161   : > { %v1285_v33 = vpop.f32.mrf.mxu2  ;;  %4400 = vmatmul.msk.bf16.gmra.mxu3 %vm647_vm3, %v4730_v28  ;;  %v3000_v28 = vshll.u32 %v5672_v3, 16  ;;  %v3698_v45 = vunpack.c.l.b16 %v3595_v51 }
 0x162   : > { %v1344_v59 = vadd.f32 %v1285_v33, %v965_v35  ;;  %v2189_v22 = vpop.f32.mrf.mxu0  ;;  %v3325_v35 = vunpack.c.l.b16 %v2993_v38  ;;  %v3598_v33 = vsel %vm5196_vm7, %v3596_v44, %v3597_v11  ;;  %v4611_v44 = vld [vmem:[%s4961_s7 + $0x3c] sm:$0xf] }
 0x163   : > { %v3002_v50 = vrot.slane %v3000_v28, 5 }
 0x164   : > { %v1575_v26 = vpop.f32.mrf.mxu3  ;;  %v3356_v55 = vpack.c.b16 %v3325_v35, %v3324_v58  ;;  %v3600_v35 = vrot.slane %v5672_v3, 5  ;;  %v4813_v3 = vld [vmem:[%s4961_s7 + $0x2c] sm:$0xf] }
 0x165   : > { %4457 = vmatmul.msk.bf16.gmra.mxu0 %vm647_vm3, %v2093_v37  ;;  %v1634_v54 = vadd.f32 %v1575_v26, %v1344_v59  ;;  %v4610_v37 = vld [vmem:[%s4961_s7 + $0x38] sm:$0x1]  ;;  %v3007_v38 = vor.u32 %v3006_v56, %v3002_v50  ;;  %v3599_v56 = vrot.slane %v3597_v11, 4 }
 0x166   : > { %v969_v18 = vpop.f32.mrf.mxu1  ;;  %v3010_v13 = vshll.u32 %v4610_v37, 16 }
 0x167   : > { %v5684_v21 = vadd.f32 %v2189_v22, %v1634_v54  ;;  %v2997_v22 = vor.u32 %v2996_v63, %v2992_v14  ;;  %v970_v57 = vadd.f32 %v969_v18, %v5310_v46  ;;  %v3008_v51 = vrot.slane %v3007_v38, 4  ;;  %v4459_v38 = vld [vmem:[%s4961_s7 + $0x28] sm:$0xe] }
 0x168   : > { %v3012_v14 = vrot.slane %v3010_v13, 5  ;;  %v3018_v46 = vshll.u32 %v4611_v44, 16 }
 0x169   : > { %v1287_v5 = vpop.f32.mrf.mxu2  ;;  %4475 = vmatmul.msk.bf16.vlgmr.msra.gmra.mxu1 %vm647_vm3, %v5624_v0  ;;  %v3699_v0 = vunpack.c.l.b16 %v3598_v33  ;;  %v2998_v41 = vrot.slane %v2997_v22, 4  ;;  %v2329_v22 = vrot.slane %v4813_v3, 5 }
 0x16a   : > { %v1345_v43 = vadd.f32 %v1287_v5, %v967_v7  ;;  %v2191_v12 = vpop.f32.mrf.mxu0  ;;  %v5698_v7 = vld [vmem:[%s4961_s7 + $0x40] sm:$0xf]  ;;  %v3020_v11 = vrot.slane %v3018_v46, 5  ;;  %v4467_v46 = vrot.slane %v4459_v38, 9 }
 0x16b   : > { %v3730_v54 = vpack.c.b16 %v3699_v0, %v3698_v45  ;;  %v3024_v18 = vshll.u32 %v5698_v7, 16  ;;  %v3013_v0 = vsel %vm4985_vm4, %v3008_v51, %v3012_v14  ;;  %v3601_v51 = vsel %vm5196_vm7, %v3599_v56, %v3600_v35 }
 0x16c   : > { %v1577_v59 = vpop.f32.mrf.mxu3 }
 0x16d   : > { %v1635_v2 = vadd.f32 %v1577_v59, %v1345_v43  ;;  %v3015_v43 = vshrl.u32 %v4611_v44, 16  ;;  %v3026_v44 = vrot.slane %v3024_v18, 5 }
 0x16e   : > { %4590 = vmatmul.msk.bf16.vlgmr.msra.gmra.mxu2 %vm647_vm3, %v4731_v30  ;;  %v971_v26 = vpop.f32.mrf.mxu1  ;;  %v3028_v30 = vshrl.u32 %v5698_v7, 16 }
 0x16f   : > { %v5701_v63 = vadd.f32 %v2191_v12, %v1635_v2  ;;  %v3003_v12 = vsel %vm4985_vm4, %v2998_v41, %v3002_v50  ;;  %v3602_v2 = vrot.slane %v3600_v35, 4  ;;  %v3017_v13 = vrot.slane %v3015_v43, 4  ;;  %v4732_v43 = vld [vmem:[%s4961_s7 + $0x30] sm:$0xff] }
 0x170   : > { %v3326_v41 = vunpack.c.l.b16 %v3003_v12  ;;  %v3700_v35 = vunpack.c.l.b16 %v3601_v51  ;;  %v4664_v51 = vld [vmem:[%s4961_s7 + $0x3c] sm:$0xe] }
 0x171   : > { %v1290_v28 = vpop.f32.mrf.mxu2  ;;  %4647 = vmatmul.msk.bf16.vlgmr.msra.gmra.mxu3 %vm647_vm3, %v3356_v55  ;;  %v3603_v55 = vrot.slane %v4610_v37, 5  ;;  %v5721_v37 = vld [vmem:[%s4961_s7 + $0x44] sm:$0xf] }
 0x172   : > { %v1346_v5 = vadd.f32 %v1290_v28, %v970_v57  ;;  %v2194_v58 = vpop.f32.mrf.mxu0  ;;  %v972_v57 = vadd.f32 %v971_v26, %v5326_v49  ;;  %v4814_v49 = vld [vmem:[%s4961_s7 + $0x30] sm:$0xf] }
 0x173   : > { %v2332_v26 = vrot.slane %v4814_v49, 5  ;;  %v3607_v49 = vrot.slane %v5698_v7, 5 }
 0x174   : > { %v1580_v33 = vpop.f32.mrf.mxu3 }
 0x175   : > { %4680 = vmatmul.msk.bf16.vlgmr.msra.gmra.mxu0 %vm647_vm3, %v3730_v54  ;;  %v1636_v59 = vadd.f32 %v1580_v33, %v1346_v5  ;;  %v3030_v54 = vrot.slane %v3028_v30, 4  ;;  %v3327_v5 = vunpack.c.l.b16 %v3013_v0  ;;  %v2331_v33 = vrot.slane %v2329_v22, 4 }
 0x176   : > { %v974_v45 = vpop.f32.mrf.mxu1  ;;  %v3021_v30 = vor.u32 %v3020_v11, %v3017_v13 }
 0x177   : > { %v5714_v28 = vadd.f32 %v2194_v58, %v1636_v59  ;;  %v3604_v58 = vsel %vm5196_vm7, %v3602_v2, %v3603_v55  ;;  %v3031_v59 = vor.u32 %v3030_v54, %v3026_v44  ;;  %v3357_v0 = vpack.c.b16 %v3327_v5, %v3326_v41 }
 0x178   : > { %v3701_v3 = vunpack.c.l.b16 %v3604_v58  ;;  %v2333_v2 = vsel %vm5196_vm7, %v2331_v33, %v2332_v26  ;;  %v975_v55 = vadd.f32 %v974_v45, %v5349_v4  ;;  %v3022_v13 = vrot.slane %v3021_v30, 4 }
 0x179   : > { %v1292_v50 = vpop.f32.mrf.mxu2  ;;  %4476 = vmatmul.msk.bf16.gmra.mxu1 %vm647_vm3, %v5667_v20  ;;  %v3034_v20 = vshll.u32 %v5721_v37, 16  ;;  %v3032_v11 = vrot.slane %v3031_v59, 4  ;;  %v2425_v5 = vunpack.c.l.b16 %v2333_v2  ;;  %v4672_v58 = vrot.slane %v4664_v51, 9 }
 0x17a   : > { %v1347_v14 = vadd.f32 %v1292_v50, %v972_v57  ;;  %v2196_v18 = vpop.f32.mrf.mxu0  ;;  %v2330_v57 = vsel %vm5196_vm7, %v4467_v46, %v2329_v22  ;;  %v5740_v22 = vld [vmem:[%s4961_s7 + $0x48] sm:$0xf]  ;;  %v3027_v45 = vsel %vm4985_vm4, %v3022_v13, %v3026_v44  ;;  %v3610_v44 = vrot.slane %v5721_v37, 5 }
 0x17b   : > { %v5734_v54 = vrot.slane %v3034_v20, 5  ;;  %v2424_v41 = vunpack.c.l.b16 %v2330_v57  ;;  %v3038_v20 = vshrl.u32 %v5721_v37, 16  ;;  %v3044_v7 = vshll.u32 %v5740_v22, 16  ;;  %v4816_v57 = vld [vmem:[%s4961_s7 + $0x38] sm:$0x1] }
 0x17c   : > { %v1582_v12 = vpop.f32.mrf.mxu3  ;;  %v2338_v2 = vrot.slane %v4816_v57, 5  ;;  %v3328_v13 = vunpack.c.l.b16 %v3027_v45 }
 0x17d   : > { %v1637_v56 = vadd.f32 %v1582_v12, %v1347_v14  ;;  %v3731_v14 = vpack.c.b16 %v3701_v3, %v3700_v35  ;;  %v3037_v33 = vsel %vm4985_vm4, %v3032_v11, %v5734_v54  ;;  %v2454_v59 = vpack.c.b16 %v2425_v5, %v2424_v41 }
 0x17e   : > { %4591 = vmatmul.msk.bf16.gmra.mxu2 %vm647_vm3, %v4732_v43  ;;  %v976_v38 = vpop.f32.mrf.mxu1  ;;  %v3048_v12 = vshrl.u32 %v5740_v22, 16  ;;  %v3609_v35 = vrot.slane %v3607_v49, 4  ;;  %v3329_v11 = vunpack.c.l.b16 %v3037_v33  ;;  %v3608_v5 = vsel %vm5196_vm7, %v4672_v58, %v3607_v49 }
 0x17f   : > { %v5742_v46 = vadd.f32 %v2196_v18, %v1637_v56  ;;  %v4815_v56 = vld [vmem:[%s4961_s7 + $0x34] sm:$0xf]  ;;  %v3040_v51 = vrot.slane %v3038_v20, 4  ;;  %v3046_v37 = vrot.slane %v3044_v7, 5 }
 0x180   : > { %v2335_v3 = vrot.slane %v4815_v56, 5  ;;  %v3611_v56 = vsel %vm5196_vm7, %v3609_v35, %v3610_v44  ;;  %v3358_v33 = vpack.c.b16 %v3329_v11, %v3328_v13  ;;  %v4616_v13 = vld [vmem:[%s4961_s7 + $0x50] sm:$0xf] }
 0x181   : > { %v1295_v50 = vpop.f32.mrf.mxu2  ;;  %4648 = vmatmul.msk.bf16.gmra.mxu3 %vm647_vm3, %v3357_v0  ;;  %v3703_v57 = vunpack.c.l.b16 %v3611_v56  ;;  %v3041_v49 = vor.u32 %v3040_v51, %v5734_v54 }
 0x182   : > { %v1348_v43 = vadd.f32 %v1295_v50, %v975_v55  ;;  %v2199_v4 = vpop.f32.mrf.mxu0  ;;  %v977_v55 = vadd.f32 %v976_v38, %v5366_v39  ;;  %v2334_v39 = vrot.slane %v2332_v26, 4  ;;  %v2337_v38 = vrot.slane %v2335_v3, 4 }
 0x183   : > { %v3042_v51 = vrot.slane %v3041_v49, 4  ;;  %v3612_v49 = vrot.slane %v3610_v44, 4 }
 0x184   : > { %v1585_v30 = vpop.f32.mrf.mxu3  ;;  %v2336_v26 = vsel %vm5196_vm7, %v2334_v39, %v2335_v3  ;;  %v3613_v39 = vrot.slane %v5740_v22, 5 }
 0x185   : > { %4681 = vmatmul.msk.bf16.gmra.mxu0 %vm647_vm3, %v3731_v14  ;;  %v1638_v18 = vadd.f32 %v1585_v30, %v1348_v43  ;;  %v3050_v14 = vrot.slane %v3048_v12, 4  ;;  %v4733_v30 = vld [vmem:[%s4961_s7 + $0x3c] sm:$0xff]  ;;  %v2339_v12 = vsel %vm5196_vm7, %v2337_v38, %v2338_v2 }
 0x186   : > { %v979_v0 = vpop.f32.mrf.mxu1  ;;  %v2427_v54 = vunpack.c.l.b16 %v2339_v12  ;;  %v3615_v12 = vrot.slane %v3613_v39, 4 }
 0x187   : > { %v5757_v50 = vadd.f32 %v2199_v4, %v1638_v18  ;;  %v5766_v4 = vld [vmem:[%s4961_s7 + $0x4c] sm:$0x1]  ;;  %v3051_v58 = vor.u32 %v3050_v14, %v3046_v37  ;;  %v5778_v14 = vld [vmem:[%s4961_s7 + $0x54] sm:$0xf] }
 0x188   : > { %v3054_v35 = vshll.u32 %v5766_v4, 16  ;;  %v3068_v38 = vshll.u32 %v5778_v14, 16 }
 0x189   : > { %v1297_v41 = vpop.f32.mrf.mxu2  ;;  %4477 = vmatmul.msk.bf16.gmra.mxu1 %vm647_vm3, %v2454_v59  ;;  %v3702_v59 = vunpack.c.l.b16 %v3608_v5  ;;  %v2426_v5 = vunpack.c.l.b16 %v2336_v26 }
 0x18a   : > { %v1349_v43 = vadd.f32 %v1297_v41, %v977_v55  ;;  %v2201_v45 = vpop.f32.mrf.mxu0  ;;  %v980_v55 = vadd.f32 %v979_v0, %v5387_v62  ;;  %v3056_v3 = vrot.slane %v3054_v35, 5  ;;  %v3059_v62 = vshrl.u32 %v4616_v13, 16 }
 0x18b   : > { %v3732_v11 = vpack.c.b16 %v3703_v57, %v3702_v59  ;;  %v3062_v0 = vshll.u32 %v4616_v13, 16  ;;  %v2455_v57 = vpack.c.b16 %v2427_v54, %v2426_v5  ;;  %v3616_v35 = vrot.slane %v5766_v4, 5 }
 0x18c   : > { %v1587_v18 = vpop.f32.mrf.mxu3  ;;  %v3061_v13 = vrot.slane %v3059_v62, 4  ;;  %v4734_v62 = vld [vmem:[%s4961_s7 + $0x44] sm:$0xff] }
 0x18d   : > { %v1639_v20 = vadd.f32 %v1587_v18, %v1349_v43  ;;  %v3072_v18 = vshrl.u32 %v5778_v14, 16  ;;  %v3064_v44 = vrot.slane %v3062_v0, 5 }
 0x18e   : > { %4592 = vmatmul.msk.bf16.gmra.mxu2 %vm647_vm3, %v4733_v30  ;;  %v981_v7 = vpop.f32.mrf.mxu1  ;;  %v3052_v30 = vrot.slane %v3051_v58, 4 }
 0x18f   : > { %v5781_v56 = vadd.f32 %v2201_v45, %v1639_v20  ;;  %v3047_v45 = vsel %vm4985_vm4, %v3042_v51, %v3046_v37  ;;  %v4817_v20 = vld [vmem:[%s4961_s7 + $0x40] sm:$0xf]  ;;  %v3074_v5 = vrot.slane %v3072_v18, 4 }
 0x190   : > { %v3057_v22 = vsel %vm4985_vm4, %v3052_v30, %v3056_v3  ;;  %v2342_v26 = vrot.slane %v4817_v20, 5  ;;  %v3330_v51 = vunpack.c.l.b16 %v3047_v45  ;;  %v3614_v30 = vsel %vm5196_vm7, %v3612_v49, %v3613_v39  ;;  %v5801_v3 = vld [vmem:[%s4961_s7 + $0x58] sm:$0xf]  ;;  %v4818_v20 = vld [vmem:[%s4961_s7 + $0x44] sm:$0xf] }
 0x191   : > { %v1300_v41 = vpop.f32.mrf.mxu2  ;;  %4649 = vmatmul.msk.bf16.gmra.mxu3 %vm647_vm3, %v3358_v33  ;;  %v3704_v39 = vunpack.c.l.b16 %v3614_v30  ;;  %v4665_v30 = vld [vmem:[%s4961_s7 + $0x50] sm:$0xe] }
 0x192   : > { %v1350_v43 = vadd.f32 %v1300_v41, %v980_v55  ;;  %v2204_v2 = vpop.f32.mrf.mxu0  ;;  %v4460_v55 = vld [vmem:[%s4961_s7 + $0x3c] sm:$0xe]  ;;  %v3070_v41 = vrot.slane %v3068_v38, 5  ;;  %v2344_v0 = vrot.slane %v2342_v26, 4  ;;  %v3065_v38 = vor.u32 %v3064_v44, %v3061_v13 }
 0x194   : > { %v1590_v59 = vpop.f32.mrf.mxu3  ;;  %v3075_v18 = vor.u32 %v3074_v5, %v3070_v41  ;;  %v3066_v13 = vrot.slane %v3065_v38, 4 }
 0x195   : > { %4682 = vmatmul.msk.bf16.gmra.mxu0 %vm647_vm3, %v3732_v11  ;;  %v1640_v33 = vadd.f32 %v1590_v59, %v1350_v43  ;;  %v982_v11 = vadd.f32 %v981_v7, %v5404_v29  ;;  %v3331_v43 = vunpack.c.l.b16 %v3057_v22  ;;  %v4468_v59 = vrot.slane %v4460_v55, 9 }
 0x196   : > { %v984_v58 = vpop.f32.mrf.mxu1  ;;  %v2345_v29 = vrot.slane %v4818_v20, 5  ;;  %v3076_v44 = vrot.slane %v3075_v18, 4  ;;  %v3620_v20 = vrot.slane %v5778_v14, 5 }
 0x197   : > { %v5795_v54 = vadd.f32 %v2204_v2, %v1640_v33  ;;  %v3617_v2 = vsel %vm5196_vm7, %v3615_v12, %v3616_v35  ;;  %v3359_v45 = vpack.c.b16 %v3331_v43, %v3330_v51  ;;  %v985_v35 = vadd.f32 %v984_v58, %v5425_v17 }
 0x198   : > { %v3705_v22 = vunpack.c.l.b16 %v3617_v2  ;;  %v2346_v12 = vsel %vm5196_vm7, %v2344_v0, %v2345_v29  ;;  %v3071_v58 = vsel %vm4985_vm4, %v3066_v13, %v3070_v41  ;;  %v4673_v2 = vrot.slane %v4665_v30, 9 }
 0x199   : > { %v1302_v37 = vpop.f32.mrf.mxu2  ;;  %4478 = vmatmul.msk.bf16.gmra.mxu1 %vm647_vm3, %v2455_v57  ;;  %v3078_v57 = vshll.u32 %v5801_v3, 16  ;;  %v2429_v43 = vunpack.c.l.b16 %v2346_v12  ;;  %v3623_v41 = vrot.slane %v5801_v3, 5  ;;  %v3332_v13 = vunpack.c.l.b16 %v3071_v58 }
 0x19a   : > { %v1351_v4 = vadd.f32 %v1302_v37, %v982_v11  ;;  %v2206_v7 = vpop.f32.mrf.mxu0  ;;  %v2343_v11 = vsel %vm5196_vm7, %v4468_v59, %v2342_v26  ;;  %v5820_v26 = vld [vmem:[%s4961_s7 + $0x5c] sm:$0xf] }
 0x19b   : > { %v5814_v5 = vrot.slane %v3078_v57, 5  ;;  %v2428_v51 = vunpack.c.l.b16 %v2343_v11  ;;  %v3082_v57 = vshrl.u32 %v5801_v3, 16  ;;  %v3088_v14 = vshll.u32 %v5820_v26, 16  ;;  %v4820_v11 = vld [vmem:[%s4961_s7 + $0x4c] sm:$0x1] }
 0x19c   : > { %v1592_v33 = vpop.f32.mrf.mxu3  ;;  %v2351_v12 = vrot.slane %v4820_v11, 5 }
 0x19d   : > { %v1641_v49 = vadd.f32 %v1592_v33, %v1351_v4  ;;  %v3733_v4 = vpack.c.b16 %v3705_v22, %v3704_v39  ;;  %v3081_v0 = vsel %vm4985_vm4, %v3076_v44, %v5814_v5  ;;  %v2456_v18 = vpack.c.b16 %v2429_v43, %v2428_v51 }
 0x19e   : > { %4593 = vmatmul.msk.bf16.gmra.mxu2 %vm647_vm3, %v4734_v62  ;;  %v986_v55 = vpop.f32.mrf.mxu1  ;;  %v3092_v33 = vshrl.u32 %v5820_v26, 16  ;;  %v3622_v39 = vrot.slane %v3620_v20, 4  ;;  %v3333_v44 = vunpack.c.l.b16 %v3081_v0  ;;  %v3621_v43 = vsel %vm5196_vm7, %v4673_v2, %v3620_v20 }
 0x19f   : > { %v5822_v59 = vadd.f32 %v2206_v7, %v1641_v49  ;;  %v4819_v49 = vld [vmem:[%s4961_s7 + $0x48] sm:$0xf]  ;;  %v3084_v30 = vrot.slane %v3082_v57, 4  ;;  %v3090_v3 = vrot.slane %v3088_v14, 5 }
 0x1a0   : > { %v2348_v22 = vrot.slane %v4819_v49, 5  ;;  %v3624_v49 = vsel %vm5196_vm7, %v3622_v39, %v3623_v41  ;;  %v3360_v0 = vpack.c.b16 %v3333_v44, %v3332_v13  ;;  %v4621_v13 = vld [vmem:[%s4961_s7 + $0x64] sm:$0xf] }
 0x1a1   : > { %v1305_v37 = vpop.f32.mrf.mxu2  ;;  %4650 = vmatmul.msk.bf16.gmra.mxu3 %vm647_vm3, %v3359_v45  ;;  %v3707_v11 = vunpack.c.l.b16 %v3624_v49  ;;  %v3085_v20 = vor.u32 %v3084_v30, %v5814_v5 }
 0x1a2   : > { %v1352_v62 = vadd.f32 %v1305_v37, %v985_v35  ;;  %v2209_v17 = vpop.f32.mrf.mxu0  ;;  %v987_v35 = vadd.f32 %v986_v55, %v5440_v48  ;;  %v2347_v48 = vrot.slane %v2345_v29, 4  ;;  %v2350_v55 = vrot.slane %v2348_v22, 4 }
 0x1a3   : > { %v3086_v30 = vrot.slane %v3085_v20, 4  ;;  %v3625_v20 = vrot.slane %v3623_v41, 4 }
 0x1a4   : > { %v1595_v38 = vpop.f32.mrf.mxu3  ;;  %v2349_v29 = vsel %vm5196_vm7, %v2347_v48, %v2348_v22  ;;  %v3626_v48 = vrot.slane %v5820_v26, 5 }
 0x1a5   : > { %4683 = vmatmul.msk.bf16.gmra.mxu0 %vm647_vm3, %v3733_v4  ;;  %v1642_v7 = vadd.f32 %v1595_v38, %v1352_v62  ;;  %v3094_v4 = vrot.slane %v3092_v33, 4  ;;  %v4735_v38 = vld [vmem:[%s4961_s7 + $0x50] sm:$0xff]  ;;  %v2352_v33 = vsel %vm5196_vm7, %v2350_v55, %v2351_v12 }
 0x1a6   : > { %v989_v45 = vpop.f32.mrf.mxu1  ;;  %v2431_v5 = vunpack.c.l.b16 %v2352_v33  ;;  %v3628_v33 = vrot.slane %v3626_v48, 4 }
 0x1a7   : > { %v5837_v37 = vadd.f32 %v2209_v17, %v1642_v7  ;;  %v5846_v17 = vld [vmem:[%s4961_s7 + $0x60] sm:$0x1]  ;;  %v3095_v2 = vor.u32 %v3094_v4, %v3090_v3  ;;  %v5858_v4 = vld [vmem:[%s4961_s7 + $0x68] sm:$0xf] }
 0x1a8   : > { %v3098_v39 = vshll.u32 %v5846_v17, 16  ;;  %v3112_v55 = vshll.u32 %v5858_v4, 16 }
 0x1a9   : > { %v1307_v51 = vpop.f32.mrf.mxu2  ;;  %4479 = vmatmul.msk.bf16.gmra.mxu1 %vm647_vm3, %v2456_v18  ;;  %v3706_v18 = vunpack.c.l.b16 %v3621_v43  ;;  %v2430_v43 = vunpack.c.l.b16 %v2349_v29 }
 0x1aa   : > { %v1353_v62 = vadd.f32 %v1307_v51, %v987_v35  ;;  %v2211_v58 = vpop.f32.mrf.mxu0  ;;  %v990_v35 = vadd.f32 %v989_v45, %v5321_v32  ;;  %v3100_v22 = vrot.slane %v3098_v39, 5  ;;  %v3103_v32 = vshrl.u32 %v4621_v13, 16 }
 0x1ab   : > { %v3734_v44 = vpack.c.b16 %v3707_v11, %v3706_v18  ;;  %v3106_v45 = vshll.u32 %v4621_v13, 16  ;;  %v2457_v11 = vpack.c.b16 %v2431_v5, %v2430_v43  ;;  %v3629_v39 = vrot.slane %v5846_v17, 5 }
 0x1ac   : > { %v1597_v7 = vpop.f32.mrf.mxu3  ;;  %v3105_v13 = vrot.slane %v3103_v32, 4  ;;  %v4736_v32 = vld [vmem:[%s4961_s7 + $0x58] sm:$0xff] }
 0x1ad   : > { %v1643_v57 = vadd.f32 %v1597_v7, %v1353_v62  ;;  %v3116_v7 = vshrl.u32 %v5858_v4, 16  ;;  %v3108_v41 = vrot.slane %v3106_v45, 5 }
 0x1ae   : > { %4594 = vmatmul.msk.bf16.gmra.mxu2 %vm647_vm3, %v4735_v38  ;;  %v991_v14 = vpop.f32.mrf.mxu1  ;;  %v3096_v38 = vrot.slane %v3095_v2, 4 }
 0x1af   : > { %v5861_v49 = vadd.f32 %v2211_v58, %v1643_v57  ;;  %v3091_v58 = vsel %vm4985_vm4, %v3086_v30, %v3090_v3  ;;  %v4821_v57 = vld [vmem:[%s4961_s7 + $0x54] sm:$0xf]  ;;  %v3118_v43 = vrot.slane %v3116_v7, 4 }
 0x1b0   : > { %v3101_v26 = vsel %vm4985_vm4, %v3096_v38, %v3100_v22  ;;  %v2355_v29 = vrot.slane %v4821_v57, 5  ;;  %v3334_v30 = vunpack.c.l.b16 %v3091_v58  ;;  %v3627_v38 = vsel %vm5196_vm7, %v3625_v20, %v3626_v48  ;;  %v5881_v22 = vld [vmem:[%s4961_s7 + $0x6c] sm:$0xf]  ;;  %v4822_v57 = vld [vmem:[%s4961_s7 + $0x58] sm:$0xf] }
 0x1b1   : > { %v1310_v51 = vpop.f32.mrf.mxu2  ;;  %4651 = vmatmul.msk.bf16.gmra.mxu3 %vm647_vm3, %v3360_v0  ;;  %v3708_v48 = vunpack.c.l.b16 %v3627_v38  ;;  %v4666_v38 = vld [vmem:[%s4961_s7 + $0x64] sm:$0xe] }
 0x1b2   : > { %v1354_v62 = vadd.f32 %v1310_v51, %v990_v35  ;;  %v2214_v12 = vpop.f32.mrf.mxu0  ;;  %v4461_v35 = vld [vmem:[%s4961_s7 + $0x50] sm:$0xe]  ;;  %v3114_v51 = vrot.slane %v3112_v55, 5  ;;  %v2357_v45 = vrot.slane %v2355_v29, 4  ;;  %v3109_v55 = vor.u32 %v3108_v41, %v3105_v13 }
 0x1b4   : > { %v1600_v18 = vpop.f32.mrf.mxu3  ;;  %v3119_v7 = vor.u32 %v3118_v43, %v3114_v51  ;;  %v3110_v13 = vrot.slane %v3109_v55, 4 }
 0x1b5   : > { %4684 = vmatmul.msk.bf16.gmra.mxu0 %vm647_vm3, %v3734_v44  ;;  %v1644_v0 = vadd.f32 %v1600_v18, %v1354_v62  ;;  %v992_v44 = vadd.f32 %v991_v14, %v5338_v27  ;;  %v3335_v62 = vunpack.c.l.b16 %v3101_v26  ;;  %v4469_v18 = vrot.slane %v4461_v35, 9 }
 0x1b6   : > { %v994_v2 = vpop.f32.mrf.mxu1  ;;  %v2358_v27 = vrot.slane %v4822_v57, 5  ;;  %v3120_v41 = vrot.slane %v3119_v7, 4  ;;  %v3633_v57 = vrot.slane %v5858_v4, 5 }
 0x1b7   : > { %v5875_v5 = vadd.f32 %v2214_v12, %v1644_v0  ;;  %v3630_v12 = vsel %vm5196_vm7, %v3628_v33, %v3629_v39  ;;  %v3361_v58 = vpack.c.b16 %v3335_v62, %v3334_v30  ;;  %v995_v39 = vadd.f32 %v994_v2, %v5358_v40 }
 0x1b8   : > { %v3709_v26 = vunpack.c.l.b16 %v3630_v12  ;;  %v2359_v33 = vsel %vm5196_vm7, %v2357_v45, %v2358_v27  ;;  %v3115_v2 = vsel %vm4985_vm4, %v3110_v13, %v3114_v51  ;;  %v4674_v12 = vrot.slane %v4666_v38, 9 }
 0x1b9   : > { %v1312_v3 = vpop.f32.mrf.mxu2  ;;  %4480 = vmatmul.msk.bf16.gmra.mxu1 %vm647_vm3, %v2457_v11  ;;  %v3122_v11 = vshll.u32 %v5881_v22, 16  ;;  %v2433_v62 = vunpack.c.l.b16 %v2359_v33  ;;  %v3636_v51 = vrot.slane %v5881_v22, 5  ;;  %v3336_v13 = vunpack.c.l.b16 %v3115_v2 }
 0x1ba   : > { %v1355_v17 = vadd.f32 %v1312_v3, %v992_v44  ;;  %v2216_v14 = vpop.f32.mrf.mxu0  ;;  %v2356_v44 = vsel %vm5196_vm7, %v4469_v18, %v2355_v29  ;;  %v5900_v29 = vld [vmem:[%s4961_s7 + $0x70] sm:$0xf] }
 0x1bb   : > { %v5894_v43 = vrot.slane %v3122_v11, 5  ;;  %v2432_v30 = vunpack.c.l.b16 %v2356_v44  ;;  %v3126_v11 = vshrl.u32 %v5881_v22, 16  ;;  %v3132_v4 = vshll.u32 %v5900_v29, 16  ;;  %v4824_v44 = vld [vmem:[%s4961_s7 + $0x60] sm:$0x1] }
 0x1bc   : > { %v1602_v0 = vpop.f32.mrf.mxu3  ;;  %v2364_v33 = vrot.slane %v4824_v44, 5 }
 0x1bd   : > { %v1645_v20 = vadd.f32 %v1602_v0, %v1355_v17  ;;  %v3735_v17 = vpack.c.b16 %v3709_v26, %v3708_v48  ;;  %v3125_v45 = vsel %vm4985_vm4, %v3120_v41, %v5894_v43  ;;  %v2458_v7 = vpack.c.b16 %v2433_v62, %v2432_v30 }
 0x1be   : > { %4595 = vmatmul.msk.bf16.gmra.mxu2 %vm647_vm3, %v4736_v32  ;;  %v996_v35 = vpop.f32.mrf.mxu1  ;;  %v3136_v0 = vshrl.u32 %v5900_v29, 16  ;;  %v3635_v48 = vrot.slane %v3633_v57, 4  ;;  %v3337_v41 = vunpack.c.l.b16 %v3125_v45  ;;  %v3634_v62 = vsel %vm5196_vm7, %v4674_v12, %v3633_v57 }
 0x1bf   : > { %v5902_v18 = vadd.f32 %v2216_v14, %v1645_v20  ;;  %v4823_v20 = vld [vmem:[%s4961_s7 + $0x5c] sm:$0xf]  ;;  %v3128_v38 = vrot.slane %v3126_v11, 4  ;;  %v3134_v22 = vrot.slane %v3132_v4, 5 }
 0x1c0   : > { %v2361_v26 = vrot.slane %v4823_v20, 5  ;;  %v3637_v20 = vsel %vm5196_vm7, %v3635_v48, %v3636_v51  ;;  %v3362_v45 = vpack.c.b16 %v3337_v41, %v3336_v13  ;;  %v4626_v13 = vld [vmem:[%s4961_s7 + $0x78] sm:$0xf] }
 0x1c1   : > { %v1315_v3 = vpop.f32.mrf.mxu2  ;;  %4652 = vmatmul.msk.bf16.gmra.mxu3 %vm647_vm3, %v3361_v58  ;;  %v3711_v44 = vunpack.c.l.b16 %v3637_v20  ;;  %v3129_v57 = vor.u32 %v3128_v38, %v5894_v43 }
 0x1c2   : > { %v1356_v32 = vadd.f32 %v1315_v3, %v995_v39  ;;  %v2219_v40 = vpop.f32.mrf.mxu0  ;;  %v997_v39 = vadd.f32 %v996_v35, %v5375_v52  ;;  %v2360_v52 = vrot.slane %v2358_v27, 4  ;;  %v2363_v35 = vrot.slane %v2361_v26, 4 }
 0x1c3   : > { %v3130_v38 = vrot.slane %v3129_v57, 4  ;;  %v3638_v57 = vrot.slane %v3636_v51, 4 }
 0x1c4   : > { %v1605_v55 = vpop.f32.mrf.mxu3  ;;  %v2362_v27 = vsel %vm5196_vm7, %v2360_v52, %v2361_v26  ;;  %v3639_v52 = vrot.slane %v5900_v29, 5 }
 0x1c5   : > { %4685 = vmatmul.msk.bf16.gmra.mxu0 %vm647_vm3, %v3735_v17  ;;  %v1646_v14 = vadd.f32 %v1605_v55, %v1356_v32  ;;  %v3138_v17 = vrot.slane %v3136_v0, 4  ;;  %v4737_v55 = vld [vmem:[%s4961_s7 + $0x64] sm:$0xff]  ;;  %v2365_v0 = vsel %vm5196_vm7, %v2363_v35, %v2364_v33 }
 0x1c6   : > { %v999_v58 = vpop.f32.mrf.mxu1  ;;  %v2435_v43 = vunpack.c.l.b16 %v2365_v0  ;;  %v3641_v0 = vrot.slane %v3639_v52, 4 }
 0x1c7   : > { %v5917_v3 = vadd.f32 %v2219_v40, %v1646_v14  ;;  %v5926_v40 = vld [vmem:[%s4961_s7 + $0x74] sm:$0x1]  ;;  %v3139_v12 = vor.u32 %v3138_v17, %v3134_v22  ;;  %v5938_v17 = vld [vmem:[%s4961_s7 + $0x7c] sm:$0xf] }
 0x1c8   : > { %v3142_v48 = vshll.u32 %v5926_v40, 16  ;;  %v3156_v35 = vshll.u32 %v5938_v17, 16 }
 0x1c9   : > { %v1317_v30 = vpop.f32.mrf.mxu2  ;;  %4481 = vmatmul.msk.bf16.gmra.mxu1 %vm647_vm3, %v2458_v7  ;;  %v3710_v7 = vunpack.c.l.b16 %v3634_v62  ;;  %v2434_v62 = vunpack.c.l.b16 %v2362_v27 }
 0x1ca   : > { %v1357_v32 = vadd.f32 %v1317_v30, %v997_v39  ;;  %v2221_v2 = vpop.f32.mrf.mxu0  ;;  %v1000_v39 = vadd.f32 %v999_v58, %v5394_v19  ;;  %v3144_v26 = vrot.slane %v3142_v48, 5  ;;  %v3147_v19 = vshrl.u32 %v4626_v13, 16 }
 0x1cb   : > { %v3736_v41 = vpack.c.b16 %v3711_v44, %v3710_v7  ;;  %v3150_v58 = vshll.u32 %v4626_v13, 16  ;;  %v2459_v44 = vpack.c.b16 %v2435_v43, %v2434_v62  ;;  %v3642_v48 = vrot.slane %v5926_v40, 5 }
 0x1cc   : > { %v1607_v14 = vpop.f32.mrf.mxu3  ;;  %v3149_v13 = vrot.slane %v3147_v19, 4  ;;  %v4738_v19 = vld [vmem:[%s4961_s7 + $0x6c] sm:$0xff] }
 0x1cd   : > { %v1647_v11 = vadd.f32 %v1607_v14, %v1357_v32  ;;  %v3160_v14 = vshrl.u32 %v5938_v17, 16  ;;  %v3152_v51 = vrot.slane %v3150_v58, 5 }
 0x1ce   : > { %4596 = vmatmul.msk.bf16.gmra.mxu2 %vm647_vm3, %v4737_v55  ;;  %v1001_v4 = vpop.f32.mrf.mxu1  ;;  %v3140_v55 = vrot.slane %v3139_v12, 4 }
 0x1cf   : > { %v5941_v20 = vadd.f32 %v2221_v2, %v1647_v11  ;;  %v3135_v2 = vsel %vm4985_vm4, %v3130_v38, %v3134_v22  ;;  %v4825_v11 = vld [vmem:[%s4961_s7 + $0x68] sm:$0xf]  ;;  %v3162_v62 = vrot.slane %v3160_v14, 4 }
 0x1d0   : > { %v3145_v29 = vsel %vm4985_vm4, %v3140_v55, %v3144_v26  ;;  %v2368_v27 = vrot.slane %v4825_v11, 5  ;;  %v3338_v38 = vunpack.c.l.b16 %v3135_v2  ;;  %v3640_v55 = vsel %vm5196_vm7, %v3638_v57, %v3639_v52  ;;  %v5961_v26 = vld [vmem:[%s4961_s7 + $0x80] sm:$0xf]  ;;  %v4826_v11 = vld [vmem:[%s4961_s7 + $0x6c] sm:$0xf] }
 0x1d1   : > { %v1320_v30 = vpop.f32.mrf.mxu2  ;;  %4653 = vmatmul.msk.bf16.gmra.mxu3 %vm647_vm3, %v3362_v45  ;;  %v3712_v52 = vunpack.c.l.b16 %v3640_v55 }
 0x1d2   : > { %v1358_v32 = vadd.f32 %v1320_v30, %v1000_v39  ;;  %v2224_v33 = vpop.f32.mrf.mxu0  ;;  %v4462_v39 = vld [vmem:[%s4961_s7 + $0x64] sm:$0xe]  ;;  %v3158_v30 = vrot.slane %v3156_v35, 5  ;;  %v2370_v58 = vrot.slane %v2368_v27, 4  ;;  %v3153_v35 = vor.u32 %v3152_v51, %v3149_v13 }
 0x1d4   : > { %v1610_v7 = vpop.f32.mrf.mxu3  ;;  %v3163_v14 = vor.u32 %v3162_v62, %v3158_v30 }
 0x1d5   : > { %4686 = vmatmul.msk.bf16.gmra.mxu0 %vm647_vm3, %v3736_v41  ;;  %v1648_v45 = vadd.f32 %v1610_v7, %v1358_v32  ;;  %v1002_v41 = vadd.f32 %v1001_v4, %v5413_v15  ;;  %v3339_v32 = vunpack.c.l.b16 %v3145_v29  ;;  %v4470_v7 = vrot.slane %v4462_v39, 9 }
 0x1d6   : > { %v1004_v12 = vpop.f32.mrf.mxu1  ;;  %v2371_v15 = vrot.slane %v4826_v11, 5  ;;  %v3164_v51 = vrot.slane %v3163_v14, 4 }
 0x1d7   : > { %v5955_v43 = vadd.f32 %v2224_v33, %v1648_v45  ;;  %v3643_v33 = vsel %vm5196_vm7, %v3641_v0, %v3642_v48  ;;  %v3363_v2 = vpack.c.b16 %v3339_v32, %v3338_v38  ;;  %v3154_v48 = vrot.slane %v3153_v35, 4 }
 0x1d8   : > { %v3713_v29 = vunpack.c.l.b16 %v3643_v33  ;;  %v2372_v0 = vsel %vm5196_vm7, %v2370_v58, %v2371_v15  ;;  %v1005_v13 = vadd.f32 %v1004_v12, %v5434_v8  ;;  %v5978_v33 = vld [vmem:[%s4961_s7 + $0x84] sm:$0xf]  ;;  %v3170_v35 = vshrl.u32 %v5961_v26, 16 }
 0x1d9   : > { %v1322_v22 = vpop.f32.mrf.mxu2  ;;  %4482 = vmatmul.msk.bf16.gmra.mxu1 %vm647_vm3, %v2459_v44  ;;  %v3166_v44 = vshll.u32 %v5961_v26, 16  ;;  %v2437_v55 = vunpack.c.l.b16 %v2372_v0  ;;  %v3159_v8 = vsel %vm4985_vm4, %v3154_v48, %v3158_v30 }
 0x1da   : > { %v1359_v40 = vadd.f32 %v1322_v22, %v1002_v41  ;;  %v2226_v4 = vpop.f32.mrf.mxu0  ;;  %v2369_v41 = vsel %vm5196_vm7, %v4470_v7, %v2368_v27  ;;  %v3646_v22 = vrot.slane %v5938_v17, 5 }
 0x1db   : > { %v3168_v62 = vrot.slane %v3166_v44, 5  ;;  %v2436_v32 = vunpack.c.l.b16 %v2369_v41  ;;  %v3340_v41 = vunpack.c.l.b16 %v3159_v8  ;;  %v4828_v8 = vld [vmem:[%s4961_s7 + $0x74] sm:$0x1] }
 0x1dc   : > { %v1612_v45 = vpop.f32.mrf.mxu3  ;;  %v3648_v58 = vrot.slane %v3646_v22, 4 }
 0x1dd   : > { %v1649_v57 = vadd.f32 %v1612_v45, %v1359_v40  ;;  %v4667_v40 = vld [vmem:[%s4961_s7 + $0x78] sm:$0xe]  ;;  %v3169_v17 = vsel %vm4985_vm4, %v3164_v51, %v3168_v62  ;;  %v2460_v44 = vpack.c.b16 %v2437_v55, %v2436_v32  ;;  %v3649_v45 = vrot.slane %v5961_v26, 5 }
 0x1de   : > { %4597 = vmatmul.msk.bf16.gmra.mxu2 %vm647_vm3, %v4738_v19  ;;  %v1006_v39 = vpop.f32.mrf.mxu1  ;;  %v3737_v19 = vpack.c.b16 %v3713_v29, %v3712_v52  ;;  %v4675_v12 = vrot.slane %v4667_v40, 9  ;;  %v3341_v48 = vunpack.c.l.b16 %v3169_v17  ;;  %v2377_v17 = vrot.slane %v4828_v8, 5 }
 0x1df   : > { %v5980_v27 = vadd.f32 %v2226_v4, %v1649_v57  ;;  %v3180_v4 = vshrl.u32 %v5978_v33, 16  ;;  %v4827_v57 = vld [vmem:[%s4961_s7 + $0x70] sm:$0xf]  ;;  %v1007_v0 = vadd.f32 %v1006_v39, %v5451_v1  ;;  %v3650_v55 = vsel %vm5196_vm7, %v3648_v58, %v3649_v45 }
 0x1e0   : > { %v2374_v29 = vrot.slane %v4827_v57, 5  ;;  %v3647_v32 = vsel %vm5196_vm7, %v4675_v12, %v3646_v22  ;;  %v3364_v58 = vpack.c.b16 %v3341_v48, %v3340_v41  ;;  %v4631_v48 = vld [vmem:[%s4961_s7 + $0x8c] sm:$0xf] }
 0x1e1   : > { %v1325_v38 = vpop.f32.mrf.mxu2  ;;  %4654 = vmatmul.msk.bf16.gmra.mxu3 %vm647_vm3, %v3363_v2  ;;  %v3176_v2 = vshll.u32 %v5978_v33, 16  ;;  %v3182_v1 = vrot.slane %v3180_v4, 4  ;;  %v3191_v8 = vshrl.u32 %v4631_v48, 16 }
 0x1e2   : > { %v1360_v11 = vadd.f32 %v1325_v38, %v1005_v13  ;;  %v2229_v7 = vpop.f32.mrf.mxu0  ;;  %v3172_v13 = vrot.slane %v3170_v35, 4 }
 0x1e3   : > { %v6003_v40 = vrot.slane %v3176_v2, 5  ;;  %v3715_v2 = vunpack.c.l.b16 %v3650_v55 }
 0x1e4   : > { %v1615_v14 = vpop.f32.mrf.mxu3  ;;  %v3173_v22 = vor.u32 %v3172_v13, %v3168_v62  ;;  %v6028_v13 = vld [vmem:[%s4961_s7 + $0x90] sm:$0xf] }
 0x1e5   : > { %4687 = vmatmul.msk.bf16.gmra.mxu0 %vm647_vm3, %v3737_v19  ;;  %v1650_v52 = vadd.f32 %v1615_v14, %v1360_v11  ;;  %v4739_v19 = vld [vmem:[%s4961_s7 + $0x78] sm:$0xff]  ;;  %v2373_v11 = vrot.slane %v2371_v15, 4  ;;  %v6008_v14 = vld [vmem:[%s4961_s7 + $0x88] sm:$0x1]  ;;  %v3183_v15 = vor.u32 %v3182_v1, %v6003_v40 }
 0x1e6   : > { %v2528_v30 = vpop.f32.mrf.mxu1  ;;  %v3174_v41 = vrot.slane %v3173_v22, 4  ;;  %v3200_v22 = vshll.u32 %v6028_v13, 16 }
 0x1e7   : > { %v5993_v51 = vadd.f32 %v2229_v7, %v1650_v52  ;;  %v2376_v7 = vrot.slane %v2374_v29, 4  ;;  %v2375_v57 = vsel %vm5196_vm7, %v2373_v11, %v2374_v29  ;;  %v2608_v62 = vadd.f32 %v2528_v30, %v5467_v10 }
 0x1e8   : > { %v2438_v1 = vunpack.c.l.b16 %v2375_v57  ;;  %v3184_v11 = vrot.slane %v3183_v15, 4  ;;  %v3655_v15 = vrot.slane %v6008_v14, 5  ;;  %v6048_v57 = vld [vmem:[%s6455_s2] ss:$0 sm:$0xff] }
 0x1e9   : > { %v1327_v38 = vpop.f32.mrf.mxu2  ;;  %4483 = vmatmul.msk.bf16.gmra.mxu1 %vm647_vm3, %v2460_v44  ;;  %v3714_v44 = vunpack.c.l.b16 %v3647_v32 }
 0x1ea   : > { %v1361_v39 = vadd.f32 %v1327_v38, %v1007_v0  ;;  %v2231_v35 = vpop.f32.mrf.mxu0  ;;  %v2378_v0 = vsel %vm5196_vm7, %v2376_v7, %v2377_v17  ;;  %v3186_v38 = vshll.u32 %v6008_v14, 16  ;;  %v3194_v17 = vshll.u32 %v4631_v48, 16 }
 0x1eb   : > { %v3738_v32 = vpack.c.b16 %v3715_v2, %v3714_v44  ;;  %v2439_v29 = vunpack.c.l.b16 %v2378_v0  ;;  %v6054_v14 = vrot.slane %v3200_v22, 5 }
 0x1ec   : > { %v1617_v12 = vpop.f32.mrf.mxu3  ;;  %v3188_v10 = vrot.slane %v3186_v38, 5  ;;  %v4463_v38 = vld [vmem:[%s4961_s7 + $0x78] sm:$0xe] }
 0x1ed   : > { %v1651_v4 = vadd.f32 %v1617_v12, %v1361_v39  ;;  %v3652_v39 = vrot.slane %v5978_v33, 5  ;;  %v3204_v12 = vshrl.u32 %v6028_v13, 16  ;;  %v3179_v33 = vsel %vm4985_vm4, %v3174_v41, %v6003_v40 }
 0x1ee   : > { %4598 = vmatmul.msk.bf16.gmra.mxu2 %vm647_vm3, %v4739_v19  ;;  %v2530_v52 = vpop.f32.mrf.mxu1  ;;  %v2461_v44 = vpack.c.b16 %v2439_v29, %v2438_v1  ;;  %v3189_v40 = vsel %vm4985_vm4, %v3184_v11, %v3188_v10  ;;  %v3196_v41 = vrot.slane %v3194_v17, 5  ;;  %v3342_v1 = vunpack.c.l.b16 %v3179_v33  ;;  %v6063_v17 = vld [vmem:[%s4961_s7 + $0x94] sm:$0xf] }
 0x1ef   : > { %v6032_v30 = vadd.f32 %v2231_v35, %v1651_v4  ;;  %v3651_v35 = vrot.slane %v3649_v45, 4  ;;  %v3654_v2 = vrot.slane %v3652_v39, 4  ;;  %v3193_v45 = vrot.slane %v3191_v8, 4 }
 0x1f0   : > { %v3206_v48 = vrot.slane %v3204_v12, 4  ;;  %v4471_v8 = vrot.slane %v4463_v38, 9  ;;  %v4740_v12 = vld [vmem:[%s4961_s7 + $0x80] sm:$0xff] }
 0x1f1   : > { %v2818_v55 = vpop.f32.mrf.mxu2  ;;  %4655 = vmatmul.msk.bf16.gmra.mxu3 %vm647_vm3, %v3364_v58  ;;  %v3653_v11 = vsel %vm5196_vm7, %v3651_v35, %v3652_v39  ;;  %v3656_v10 = vsel %vm5196_vm7, %v3654_v2, %v3655_v15  ;;  %v3210_v2 = vshll.u32 %v6063_v17, 16 }
 0x1f2   : > { %v2898_v19 = vadd.f32 %v2818_v55, %v2608_v62  ;;  %v3806_v7 = vpop.f32.mrf.mxu0  ;;  %v4829_v62 = vld [vmem:[%s4961_s7 + $0x7c] sm:$0xf]  ;;  %v2609_v55 = vadd.f32 %v2530_v52, %v5481_v6  ;;  %v6068_v52 = vld [vmem:[%s4961_s7 + $0x80] sm:$0xf]  ;;  %v3207_v39 = vor.u32 %v3206_v48, %v6054_v14  ;;  %v3717_v38 = vunpack.c.l.b16 %v3656_v10 }
 0x1f3   : > { %v2381_v26 = vrot.slane %v4829_v62, 5  ;;  %v2384_v33 = vrot.slane %v6068_v52, 5  ;;  %v3659_v10 = vrot.slane %v6028_v13, 5  ;;  %v3214_v13 = vshrl.u32 %v6063_v17, 16 }
 0x1f4   : > { %v3432_v58 = vpop.f32.mrf.mxu3 }
 0x1f5   : > { %4688 = vmatmul.msk.bf16.gmra.mxu0 %vm647_vm3, %v3738_v32  ;;  %v3512_v4 = vadd.f32 %v3432_v58, %v2898_v19  ;;  %v3343_v19 = vunpack.c.l.b16 %v3189_v40  ;;  %v2383_v6 = vrot.slane %v2381_v26, 4  ;;  %v3716_v40 = vunpack.c.l.b16 %v3653_v11 }
 0x1f6   : > { %v2533_v0 = vpop.f32.mrf.mxu1  ;;  %v6088_v11 = vrot.slane %v3210_v2, 5 }
 0x1f7   : > { %v3886_v32 = vadd.f32 %v3806_v7, %v3512_v4  ;;  %v3365_v4 = vpack.c.b16 %v3343_v19, %v3342_v1  ;;  %v2385_v48 = vsel %vm5196_vm7, %v2383_v6, %v2384_v33  ;;  %v2610_v19 = vadd.f32 %v2533_v0, %v5492_v24 }
 0x1f8   : > { %v3739_v6 = vpack.c.b16 %v3717_v38, %v3716_v40  ;;  %v3662_v38 = vrot.slane %v6063_v17, 5 }
 0x1f9   : > { %v2820_v29 = vpop.f32.mrf.mxu2  ;;  %4484 = vmatmul.msk.bf16.gmra.mxu1 %vm647_vm3, %v2461_v44  ;;  %v3922_v22 = vadd.f32 %v6048_v57, %v3886_v32  ;;  %v3197_v44 = vor.u32 %v3196_v41, %v3193_v45  ;;  %v2382_v41 = vsel %vm5196_vm7, %v4471_v8, %v2381_v26  ;;  %v2441_v26 = vunpack.c.l.b16 %v2385_v48  ;;  %v4668_v8 = vld [vmem:[%s4961_s7 + $0x8c] sm:$0xe] }
 0x1fa   : > { %v2899_v7 = vadd.f32 %v2820_v29, %v2609_v55  ;;  %v3808_v58 = vpop.f32.mrf.mxu0  ;;  %v3208_v29 = vrot.slane %v3207_v39, 4  ;;  %v6095_v39 = vld [vmem:[%s4961_s7 + $0x98] sm:$0xf]  ;;  %v4676_v2 = vrot.slane %v4668_v8, 9 }
 0x1fb   : > { %v3954_v35 = vmax.f32 %v3922_v22, 0.0  ;;  %v3198_v55 = vrot.slane %v3197_v44, 4 }
 0x1fc   : > { %v3434_v15 = vpop.f32.mrf.mxu3  ;;  %v3660_v8 = vsel %vm5196_vm7, %v4676_v2, %v3659_v10  ;;  %v6127_v2 = vld [vmem:[%s4961_s7 + $0x9c] sm:$0x1] }
 0x1fd   : > { %v3986_v62 = vpack.c.bf16 %v3954_v35, %v3954_v35  ;;  %v3513_v32 = vadd.f32 %v3434_v15, %v2899_v7  ;;  %v2440_v7 = vunpack.c.l.b16 %v2382_v41  ;;  %v3203_v24 = vsel %vm4985_vm4, %v3198_v55, %v6054_v14  ;;  %v4831_v55 = vld [vmem:[%s4961_s7 + $0x84] sm:$0xf] }
 0x1fe   : > { %4599 = vmatmul.msk.bf16.gmra.mxu2 %vm647_vm3, %v4740_v12  ;;  %v2535_v45 = vpop.f32.mrf.mxu1  ;;  %v3661_v15 = vrot.slane %v3659_v10, 4  ;;  %v4832_v10 = vld [vmem:[%s4961_s7 + $0x88] sm:$0x1] }
 0x1ff   : > { %4019 = vst.msk [vmem:[%s6076_s4] sm:$0xf] %vm4018_vm8, %v3986_v62  ;;  %v3887_v1 = vadd.f32 %v3808_v58, %v3513_v32  ;;  %v3213_v58 = vsel %vm4985_vm4, %v3208_v29, %v6088_v11  ;;  %v2462_v40 = vpack.c.b16 %v2441_v26, %v2440_v7  ;;  %v3220_v62 = vshll.u32 %v6095_v39, 16 }
 0x200   : > { %v3224_v32 = vshrl.u32 %v6095_v39, 16  ;;  %v3344_v29 = vunpack.c.l.b16 %v3203_v24  ;;  %v2611_v7 = vadd.f32 %v2535_v45, %v5505_v47  ;;  %v3345_v26 = vunpack.c.l.b16 %v3213_v58 }
 0x201   : > { %v2823_v22 = vpop.f32.mrf.mxu2  ;;  %v3923_v12 = vadd.f32 %v6048_v57, %v3887_v1  ;;  %4656 = vmatmul.msk.bf16.gmra.mxu3 %vm647_vm3, %v3365_v4  ;;  %v2387_v1 = vrot.slane %v4831_v55, 5  ;;  %v6121_v24 = vrot.slane %v3220_v62, 5  ;;  %v2390_v58 = vrot.slane %v4832_v10, 5 }
 0x202   : > { %v2900_v44 = vadd.f32 %v2823_v22, %v2610_v19  ;;  %v3811_v35 = vpop.f32.mrf.mxu0  ;;  %v3216_v19 = vrot.slane %v3214_v13, 4  ;;  %v4741_v13 = vld [vmem:[%s4961_s7 + $0x8c] sm:$0xff] }
 0x203   : > { %v3955_v0 = vmax.f32 %v3923_v12, 0.0 }
 0x204   : > { %v3437_v4 = vpop.f32.mrf.mxu3 }
 0x205   : > { %v3987_v41 = vpack.c.bf16 %v3955_v0, %v3955_v0  ;;  %4689 = vmatmul.msk.bf16.gmra.mxu0 %vm647_vm3, %v3739_v6  ;;  %v3514_v14 = vadd.f32 %v3437_v4, %v2900_v44  ;;  %v3663_v6 = vsel %vm5196_vm7, %v3661_v15, %v3662_v38  ;;  %v2386_v44 = vrot.slane %v2384_v33, 4 }
 0x206   : > { %v2538_v48 = vpop.f32.mrf.mxu1  ;;  %v2389_v0 = vrot.slane %v2387_v1, 4  ;;  %v3718_v33 = vunpack.c.l.b16 %v3660_v8  ;;  %v3719_v62 = vunpack.c.l.b16 %v3663_v6  ;;  %v4636_v8 = vld [vmem:[%s4961_s7 + $0xa0] sm:$0xf]  ;;  %v6142_v6 = vld [vmem:[%s4961_s7 + $0xa4] sm:$0xf] }
 0x207   : > { %4020 = vst.msk [vmem:[%s6076_s4 + $0x4] sm:$0xf] %vm4018_vm8, %v3987_v41  ;;  %v3888_v22 = vadd.f32 %v3811_v35, %v3514_v14  ;;  %v3226_v35 = vrot.slane %v3224_v32, 4  ;;  %v3366_v41 = vpack.c.b16 %v3345_v26, %v3344_v29  ;;  %v3230_v14 = vshll.u32 %v6127_v2, 16 }
 0x208   : > { %v2612_v26 = vadd.f32 %v2538_v48, %v5521_v25  ;;  %v3238_v25 = vshll.u32 %v4636_v8, 16  ;;  %v3244_v48 = vshll.u32 %v6142_v6, 16 }
 0x209   : > { %v2825_v12 = vpop.f32.mrf.mxu2  ;;  %4485 = vmatmul.msk.bf16.gmra.mxu1 %vm647_vm3, %v2462_v40  ;;  %v3924_v47 = vadd.f32 %v6048_v57, %v3888_v22  ;;  %v3217_v40 = vor.u32 %v3216_v19, %v6088_v11  ;;  %v3227_v32 = vor.u32 %v3226_v35, %v6121_v24  ;;  %v2391_v11 = vsel %vm5196_vm7, %v2389_v0, %v2390_v58 }
 0x20a   : > { %v2901_v45 = vadd.f32 %v2825_v12, %v2611_v7  ;;  %v3813_v4 = vpop.f32.mrf.mxu0  ;;  %v2388_v12 = vsel %vm5196_vm7, %v2386_v44, %v2387_v1  ;;  %v3232_v10 = vrot.slane %v3230_v14, 5  ;;  %v3740_v1 = vpack.c.b16 %v3719_v62, %v3718_v33  ;;  %v4833_v33 = vld [vmem:[%s4961_s7 + $0x90] sm:$0xf] }
 0x20b   : > { %v3956_v15 = vmax.f32 %v3924_v47, 0.0  ;;  %v3218_v29 = vrot.slane %v3217_v40, 4  ;;  %v2442_v47 = vunpack.c.l.b16 %v2388_v12  ;;  %v3665_v0 = vrot.slane %v6095_v39, 5 }
 0x20c   : > { %v3439_v52 = vpop.f32.mrf.mxu3  ;;  %v3248_v40 = vshrl.u32 %v6142_v6, 16  ;;  %v3664_v39 = vrot.slane %v3662_v38, 4  ;;  %v2394_v62 = vrot.slane %v4833_v33, 5 }
 0x20d   : > { %v3988_v55 = vpack.c.bf16 %v3956_v15, %v3956_v15  ;;  %v3515_v22 = vadd.f32 %v3439_v52, %v2901_v45  ;;  %v2443_v45 = vunpack.c.l.b16 %v2391_v11 }
 0x20e   : > { %4600 = vmatmul.msk.bf16.gmra.mxu2 %vm647_vm3, %v4741_v13  ;;  %v2540_v7 = vpop.f32.mrf.mxu1  ;;  %v3228_v13 = vrot.slane %v3227_v32, 4  ;;  %v3223_v32 = vsel %vm4985_vm4, %v3218_v29, %v6121_v24  ;;  %v3668_v24 = vrot.slane %v6127_v2, 5  ;;  %v4464_v29 = vld [vmem:[%s4961_s7 + $0x8c] sm:$0xe]  ;;  %v3250_v17 = vrot.slane %v3248_v40, 4  ;;  %v4742_v40 = vld [vmem:[%s4961_s7 + $0x94] sm:$0xff] }
 0x20f   : > { %4021 = vst.msk [vmem:[%s6076_s4 + $0x8] sm:$0xf] %vm4018_vm8, %v3988_v55  ;;  %v3889_v19 = vadd.f32 %v3813_v4, %v3515_v22  ;;  %v3235_v4 = vshrl.u32 %v4636_v8, 16  ;;  %v2463_v55 = vpack.c.b16 %v2443_v45, %v2442_v47  ;;  %v3240_v8 = vrot.slane %v3238_v25, 5 }
 0x210   : > { %v2613_v47 = vadd.f32 %v2540_v7, %v5531_v61  ;;  %v3346_v45 = vunpack.c.l.b16 %v3223_v32  ;;  %v3666_v61 = vsel %vm5196_vm7, %v3664_v39, %v3665_v0 }
 0x211   : > { %v2828_v35 = vpop.f32.mrf.mxu2  ;;  %v3925_v15 = vadd.f32 %v6048_v57, %v3889_v19  ;;  %4657 = vmatmul.msk.bf16.gmra.mxu3 %vm647_vm3, %v3366_v41  ;;  %v3233_v41 = vsel %vm4985_vm4, %v3228_v13, %v3232_v10  ;;  %v3667_v19 = vrot.slane %v3665_v0, 4  ;;  %v6166_v13 = vld [vmem:[%s4961_s7 + $0xa8] sm:$0xf] }
 0x212   : > { %v2902_v44 = vadd.f32 %v2828_v35, %v2612_v26  ;;  %v3816_v58 = vpop.f32.mrf.mxu0  ;;  %v3237_v26 = vrot.slane %v3235_v4, 4  ;;  %v6160_v35 = vrot.slane %v3244_v48, 5  ;;  %v3347_v2 = vunpack.c.l.b16 %v3233_v41 }
 0x213   : > { %v3957_v52 = vmax.f32 %v3925_v15, 0.0  ;;  %v4472_v15 = vrot.slane %v4464_v29, 9 }
 0x214   : > { %v3442_v14 = vpop.f32.mrf.mxu3  ;;  %v3251_v32 = vor.u32 %v3250_v17, %v6160_v35  ;;  %v3367_v33 = vpack.c.b16 %v3347_v2, %v3346_v45  ;;  %v4669_v2 = vld [vmem:[%s4961_s7 + $0xa0] sm:$0xe] }
 0x215   : > { %v3989_v22 = vpack.c.bf16 %v3957_v52, %v3957_v52  ;;  %4690 = vmatmul.msk.bf16.gmra.mxu0 %vm647_vm3, %v3740_v1  ;;  %v3516_v12 = vadd.f32 %v3442_v14, %v2902_v44  ;;  %v2396_v1 = vrot.slane %v2394_v62, 4  ;;  %v6170_v44 = vld [vmem:[%s4961_s7 + $0x94] sm:$0xf]  ;;  %v3241_v52 = vor.u32 %v3240_v8, %v3237_v26 }
 0x216   : > { %v2543_v11 = vpop.f32.mrf.mxu1  ;;  %v2397_v4 = vrot.slane %v6170_v44, 5  ;;  %v3254_v14 = vshll.u32 %v6166_v13, 16  ;;  %v3252_v8 = vrot.slane %v3251_v32, 4 }
 0x217   : > { %4022 = vst.msk [vmem:[%s6076_s4 + $0xc] sm:$0xf] %vm4018_vm8, %v3989_v22  ;;  %v3890_v38 = vadd.f32 %v3816_v58, %v3516_v12  ;;  %v3669_v58 = vsel %vm5196_vm7, %v3667_v19, %v3668_v24  ;;  %v2395_v22 = vsel %vm5196_vm7, %v4472_v15, %v2394_v62  ;;  %v3720_v19 = vunpack.c.l.b16 %v3666_v61 }
 0x218   : > { %v2398_v0 = vsel %vm5196_vm7, %v2396_v1, %v2397_v4  ;;  %v3721_v24 = vunpack.c.l.b16 %v3669_v58  ;;  %v3242_v26 = vrot.slane %v3241_v52, 4  ;;  %v6188_v17 = vrot.slane %v3254_v14, 5 }
 0x219   : > { %v2830_v10 = vpop.f32.mrf.mxu2  ;;  %4486 = vmatmul.msk.bf16.gmra.mxu1 %vm647_vm3, %v2463_v55  ;;  %v3926_v25 = vadd.f32 %v6048_v57, %v3890_v38  ;;  %v2614_v38 = vadd.f32 %v2543_v11, %v5541_v53  ;;  %v2445_v45 = vunpack.c.l.b16 %v2398_v0  ;;  %v3672_v15 = vrot.slane %v6142_v6, 5 }
 0x21a   : > { %v2903_v48 = vadd.f32 %v2830_v10, %v2613_v47  ;;  %v3818_v7 = vpop.f32.mrf.mxu0  ;;  %v2444_v47 = vunpack.c.l.b16 %v2395_v22  ;;  %v3247_v53 = vsel %vm4985_vm4, %v3242_v26, %v6160_v35  ;;  %v3258_v11 = vshrl.u32 %v6166_v13, 16 }
 0x21b   : > { %v3958_v55 = vmax.f32 %v3926_v25, 0.0  ;;  %v3741_v25 = vpack.c.b16 %v3721_v24, %v3720_v19  ;;  %v3257_v6 = vsel %vm4985_vm4, %v3252_v8, %v6188_v17  ;;  %v4677_v52 = vrot.slane %v4669_v2, 9 }
 0x21c   : > { %v3444_v41 = vpop.f32.mrf.mxu3  ;;  %v2464_v58 = vpack.c.b16 %v2445_v45, %v2444_v47  ;;  %v3674_v14 = vrot.slane %v3672_v15, 4  ;;  %v3348_v19 = vunpack.c.l.b16 %v3247_v53  ;;  %v3260_v24 = vrot.slane %v3258_v11, 4  ;;  %v6230_v53 = vld [vmem:[%s4961_s7 + $0xb0] sm:$0x1] }
 0x21d   : > { %v3990_v39 = vpack.c.bf16 %v3958_v55, %v3958_v55  ;;  %v3517_v12 = vadd.f32 %v3444_v41, %v2903_v48  ;;  %v3675_v55 = vrot.slane %v6166_v13, 5 }
 0x21e   : > { %4601 = vmatmul.msk.bf16.gmra.mxu2 %vm647_vm3, %v4742_v40  ;;  %v2545_v29 = vpop.f32.mrf.mxu1  ;;  %v6198_v40 = vld [vmem:[%s4961_s7 + $0xac] sm:$0xf] }
 0x21f   : > { %4023 = vst.msk [vmem:[%s6076_s4 + $0x10] sm:$0xf] %vm4018_vm8, %v3990_v39  ;;  %v3891_v62 = vadd.f32 %v3818_v7, %v3517_v12  ;;  %v3264_v41 = vshll.u32 %v6198_v40, 16  ;;  %v4835_v39 = vld [vmem:[%s4961_s7 + $0x98] sm:$0xf]  ;;  %v2615_v8 = vadd.f32 %v2545_v29, %v5554_v31  ;;  %v3676_v45 = vsel %vm5196_vm7, %v3674_v14, %v3675_v55 }
 0x220   : > { %v2400_v12 = vrot.slane %v4835_v39, 5  ;;  %v3274_v14 = vshll.u32 %v6230_v53, 16 }
 0x221   : > { %v2833_v10 = vpop.f32.mrf.mxu2  ;;  %v3927_v1 = vadd.f32 %v6048_v57, %v3891_v62  ;;  %4658 = vmatmul.msk.bf16.gmra.mxu3 %vm647_vm3, %v3367_v33  ;;  %v3268_v33 = vshrl.u32 %v6198_v40, 16  ;;  %v3349_v62 = vunpack.c.l.b16 %v3257_v6  ;;  %v6224_v2 = vrot.slane %v3264_v41, 5 }
 0x222   : > { %v2904_v48 = vadd.f32 %v2833_v10, %v2614_v38  ;;  %v3821_v61 = vpop.f32.mrf.mxu0  ;;  %v3673_v38 = vsel %vm5196_vm7, %v4677_v52, %v3672_v15  ;;  %v2399_v10 = vrot.slane %v2397_v4, 4  ;;  %v4836_v15 = vld [vmem:[%s4961_s7 + $0x9c] sm:$0x1]  ;;  %v3723_v52 = vunpack.c.l.b16 %v3676_v45 }
 0x223   : > { %v3959_v7 = vmax.f32 %v3927_v1, 0.0  ;;  %v3270_v1 = vrot.slane %v3268_v33, 4  ;;  %v3368_v6 = vpack.c.b16 %v3349_v62, %v3348_v19  ;;  %v3722_v4 = vunpack.c.l.b16 %v3673_v38 }
 0x224   : > { %v3447_v32 = vpop.f32.mrf.mxu3 }
 0x225   : > { %v3991_v22 = vpack.c.bf16 %v3959_v7, %v3959_v7  ;;  %4691 = vmatmul.msk.bf16.gmra.mxu0 %vm647_vm3, %v3741_v25  ;;  %v3518_v35 = vadd.f32 %v3447_v32, %v2904_v48  ;;  %v4743_v25 = vld [vmem:[%s4961_s7 + $0xa0] sm:$0xff]  ;;  %v2402_v48 = vrot.slane %v2400_v12, 4  ;;  %v3261_v7 = vor.u32 %v3260_v24, %v6188_v17 }
 0x226   : > { %v2548_v0 = vpop.f32.mrf.mxu1  ;;  %v3271_v32 = vor.u32 %v3270_v1, %v6224_v2  ;;  %v3742_v62 = vpack.c.b16 %v3723_v52, %v3722_v4  ;;  %v3678_v1 = vrot.slane %v6198_v40, 5 }
 0x227   : > { %4024 = vst.msk [vmem:[%s6076_s4 + $0x14] sm:$0xf] %vm4018_vm8, %v3991_v22  ;;  %v3892_v26 = vadd.f32 %v3821_v61, %v3518_v35  ;;  %v2403_v61 = vrot.slane %v4836_v15, 5  ;;  %v2401_v35 = vsel %vm5196_vm7, %v2399_v10, %v2400_v12  ;;  %v3262_v39 = vrot.slane %v3261_v7, 4 }
 0x228   : > { %v2616_v24 = vadd.f32 %v2548_v0, %v5566_v9 }
 0x229   : > { %v2835_v47 = vpop.f32.mrf.mxu2  ;;  %4487 = vmatmul.msk.bf16.gmra.mxu1 %vm647_vm3, %v2464_v58  ;;  %v3928_v31 = vadd.f32 %v6048_v57, %v3892_v26  ;;  %v2404_v17 = vsel %vm5196_vm7, %v2402_v48, %v2403_v61  ;;  %v4641_v26 = vld [vmem:[%s4961_s7 + $0xb4] sm:$0xf]  ;;  %v3267_v40 = vsel %vm4985_vm4, %v3262_v39, %v6224_v2  ;;  %v4837_v2 = vld [vmem:[%s4961_s7 + $0xa4] sm:$0xf] }
 0x22a   : > { %v2905_v29 = vadd.f32 %v2835_v47, %v2615_v8  ;;  %v3823_v11 = vpop.f32.mrf.mxu0  ;;  %v6245_v8 = vld [vmem:[%s4961_s7 + $0xb8] sm:$0xf]  ;;  %v2446_v47 = vunpack.c.l.b16 %v2401_v35  ;;  %v2447_v45 = vunpack.c.l.b16 %v2404_v17  ;;  %v3279_v48 = vshrl.u32 %v4641_v26, 16 }
 0x22b   : > { %v3960_v58 = vmax.f32 %v3928_v31, 0.0  ;;  %v3272_v31 = vrot.slane %v3271_v32, 4  ;;  %v3282_v9 = vshll.u32 %v4641_v26, 16  ;;  %v3288_v0 = vshll.u32 %v6245_v8, 16 }
 0x22c   : > { %v3449_v44 = vpop.f32.mrf.mxu3  ;;  %v3292_v15 = vshrl.u32 %v6245_v8, 16  ;;  %v2465_v7 = vpack.c.b16 %v2447_v45, %v2446_v47  ;;  %v3281_v35 = vrot.slane %v3279_v48, 4 }
 0x22d   : > { %v3992_v41 = vpack.c.bf16 %v3960_v58, %v3960_v58  ;;  %v3519_v33 = vadd.f32 %v3449_v44, %v2905_v29  ;;  %v3276_v29 = vrot.slane %v3274_v14, 5  ;;  %v3677_v58 = vrot.slane %v3675_v55, 4 }
 0x22e   : > { %4602 = vmatmul.msk.bf16.gmra.mxu2 %vm647_vm3, %v4743_v25  ;;  %v2550_v22 = vpop.f32.mrf.mxu1  ;;  %v3681_v44 = vrot.slane %v6230_v53, 5  ;;  %v3284_v17 = vrot.slane %v3282_v9, 5  ;;  %v6263_v13 = vrot.slane %v3288_v0, 5  ;;  %v3294_v55 = vrot.slane %v3292_v15, 4 }
 0x22f   : > { %4025 = vst.msk [vmem:[%s6076_s4 + $0x18] sm:$0xf] %vm4018_vm8, %v3992_v41  ;;  %v3893_v19 = vadd.f32 %v3823_v11, %v3519_v33  ;;  %v3277_v14 = vsel %vm4985_vm4, %v3272_v31, %v3276_v29  ;;  %v4465_v41 = vld [vmem:[%s4961_s7 + $0xa0] sm:$0xe]  ;;  %v2407_v33 = vrot.slane %v4837_v2, 5  ;;  %v2617_v39 = vadd.f32 %v2550_v22, %v5580_v42  ;;  %v4744_v31 = vld [vmem:[%s4961_s7 + $0xa8] sm:$0xff] }
 0x230   : > { %v4473_v45 = vrot.slane %v4465_v41, 9  ;;  %v4838_v42 = vld [vmem:[%s4961_s7 + $0xa8] sm:$0xf]  ;;  %v3285_v48 = vor.u32 %v3284_v17, %v3281_v35  ;;  %v3295_v9 = vor.u32 %v3294_v55, %v6263_v13  ;;  %v6465_v35 = vld [vmem:[#allocation2_spill] sm:$0xff]  ;;  %v3685_v55 = vrot.slane %v6245_v8, 5 }
 0x231   : > { %v2838_v38 = vpop.f32.mrf.mxu2  ;;  %v3929_v12 = vadd.f32 %v6048_v57, %v3893_v19  ;;  %4659 = vmatmul.msk.bf16.gmra.mxu3 %vm647_vm3, %v3368_v6  ;;  %v3680_v6 = vrot.slane %v3678_v1, 4  ;;  %v3350_v19 = vunpack.c.l.b16 %v3267_v40  ;;  %v2409_v29 = vrot.slane %v2407_v33, 4 }
 0x232   : > { %v2906_v10 = vadd.f32 %v2838_v38, %v2616_v24  ;;  %v3826_v25 = vpop.f32.mrf.mxu0  ;;  %v6269_v24 = vld [vmem:[%s4961_s7 + $0xbc] sm:$0xf]  ;;  %v3679_v38 = vsel %vm5196_vm7, %v3677_v58, %v3678_v1  ;;  %v2410_v22 = vrot.slane %v4838_v42, 5 }
 0x233   : > { %v3961_v61 = vmax.f32 %v3929_v12, 0.0  ;;  %v3682_v47 = vsel %vm5196_vm7, %v3680_v6, %v3681_v44  ;;  %v3298_v0 = vshll.u32 %v6269_v24, 16  ;;  %v3724_v40 = vunpack.c.l.b16 %v3679_v38 }
 0x234   : > { %v3452_v11 = vpop.f32.mrf.mxu3  ;;  %v2408_v44 = vsel %vm5196_vm7, %v4473_v45, %v2407_v33 }
 0x235   : > { %v3993_v4 = vpack.c.bf16 %v3961_v61, %v3961_v61  ;;  %4692 = vmatmul.msk.bf16.gmra.mxu0 %vm647_vm3, %v3742_v62  ;;  %v3520_v52 = vadd.f32 %v3452_v11, %v2906_v10  ;;  %v3351_v62 = vunpack.c.l.b16 %v3277_v14  ;;  %v3725_v11 = vunpack.c.l.b16 %v3682_v47  ;;  %v6296_v47 = vld [vmem:[%s4961_s7 + $0xc0] sm:$0xf] }
 0x236   : > { %v2553_v32 = vpop.f32.mrf.mxu1  ;;  %v3296_v14 = vrot.slane %v3295_v9, 4  ;;  %v6286_v41 = vrot.slane %v3298_v0, 5  ;;  %v3308_v9 = vshll.u32 %v6296_v47, 16  ;;  %v3312_v0 = vshrl.u32 %v6296_v47, 16 }
 0x237   : > { %4026 = vst.msk [vmem:[%s6076_s4 + $0x1c] sm:$0xf] %vm4018_vm8, %v3993_v4  ;;  %v3894_v53 = vadd.f32 %v3826_v25, %v3520_v52  ;;  %v3369_v61 = vpack.c.b16 %v3351_v62, %v3350_v19  ;;  %v2411_v4 = vsel %vm5196_vm7, %v2409_v29, %v2410_v22  ;;  %v3286_v52 = vrot.slane %v3285_v48, 4 }
 0x238   : > { %v2618_v17 = vadd.f32 %v2553_v32, %v6465_v35  ;;  %v2449_v19 = vunpack.c.l.b16 %v2411_v4  ;;  %v3743_v62 = vpack.c.b16 %v3725_v11, %v3724_v40  ;;  %v3301_v8 = vsel %vm4985_vm4, %v3296_v14, %v6286_v41 }
 0x239   : > { %v2840_v26 = vpop.f32.mrf.mxu2  ;;  %4488 = vmatmul.msk.bf16.gmra.mxu1 %vm647_vm3, %v2465_v7  ;;  %v3930_v12 = vadd.f32 %v6048_v57, %v3894_v53  ;;  %v3291_v32 = vsel %vm4985_vm4, %v3286_v52, %v6263_v13  ;;  %v3688_v29 = vrot.slane %v6269_v24, 5  ;;  %v3302_v48 = vshrl.u32 %v6269_v24, 16 }
 0x23a   : > { %v2907_v10 = vadd.f32 %v2840_v26, %v2617_v39  ;;  %v3828_v25 = vpop.f32.mrf.mxu0  ;;  %v2448_v39 = vunpack.c.l.b16 %v2408_v44  ;;  %v4670_v26 = vld [vmem:[%s4961_s7 + $0xb4] sm:$0xe]  ;;  %v3352_v11 = vunpack.c.l.b16 %v3291_v32 }
 0x23b   : > { %v3962_v15 = vmax.f32 %v3930_v12, 0.0  ;;  %v3304_v35 = vrot.slane %v3302_v48, 4 }
 0x23c   : > { %v3454_v1 = vpop.f32.mrf.mxu3 }
 0x23d   : > { %v3994_v7 = vpack.c.bf16 %v3962_v15, %v3962_v15  ;;  %v3521_v58 = vadd.f32 %v3454_v1, %v2907_v10  ;;  %v4678_v10 = vrot.slane %v4670_v26, 9  ;;  %v4745_v26 = vld [vmem:[%s4961_s7 + $0xb4] sm:$0xff] }
 0x23e   : > { %4603 = vmatmul.msk.bf16.gmra.mxu2 %vm647_vm3, %v4744_v31  ;;  %v2555_v6 = vpop.f32.mrf.mxu1  ;;  %v3687_v31 = vrot.slane %v3685_v55, 4 }
 0x23f   : > { %4027 = vst.msk [vmem:[%s6076_s4 + $0x20] sm:$0xf] %vm4018_vm8, %v3994_v7  ;;  %v3895_v2 = vadd.f32 %v3828_v25, %v3521_v58  ;;  %v2466_v25 = vpack.c.b16 %v2449_v19, %v2448_v39  ;;  %v3353_v7 = vunpack.c.l.b16 %v3301_v8  ;;  %v2619_v44 = vadd.f32 %v2555_v6, %v5629_v34  ;;  %v4840_v6 = vld [vmem:[%s4961_s7 + $0xb0] sm:$0x1] }
 0x240   : > { %v3686_v4 = vsel %vm5196_vm7, %v4678_v10, %v3685_v55  ;;  %v3689_v52 = vsel %vm5196_vm7, %v3687_v31, %v3688_v29  ;;  %v4645_v55 = vld [vmem:[%s4961_s7 + $0xc4] sm:$0x1] }
 0x241   : > { %v2843_v53 = vpop.f32.mrf.mxu2  ;;  %v3931_v33 = vadd.f32 %v6048_v57, %v3895_v2  ;;  %4660 = vmatmul.msk.bf16.gmra.mxu3 %vm647_vm3, %v3369_v61  ;;  %v4839_v61 = vld [vmem:[%s4961_s7 + $0xac] sm:$0xf]  ;;  %v2412_v2 = vrot.slane %v2410_v22, 4  ;;  %v3726_v32 = vunpack.c.l.b16 %v3686_v4  ;;  %v3305_v22 = vor.u32 %v3304_v35, %v6286_v41 }
 0x242   : > { %v2908_v38 = vadd.f32 %v2843_v53, %v2618_v17  ;;  %v3831_v45 = vpop.f32.mrf.mxu0  ;;  %v2413_v40 = vrot.slane %v4839_v61, 5  ;;  %v3310_v17 = vrot.slane %v3308_v9, 5  ;;  %v3314_v53 = vrot.slane %v3312_v0, 4 }
 0x243   : > { %v3963_v12 = vmax.f32 %v3931_v33, 0.0  ;;  %v2416_v33 = vrot.slane %v4840_v6, 5  ;;  %v3318_v31 = vshll.u32 %v4645_v55, 16  ;;  %v3690_v6 = vrot.slane %v3688_v29, 4 }
 0x244   : > { %v3457_v42 = vpop.f32.mrf.mxu3  ;;  %v2415_v34 = vrot.slane %v2413_v40, 4  ;;  %v3315_v10 = vor.u32 %v3314_v53, %v3310_v17  ;;  %v2414_v9 = vsel %vm5196_vm7, %v2412_v2, %v2413_v40  ;;  %v3691_v2 = vrot.slane %v6296_v47, 5 }
 0x245   : > { %v3995_v15 = vpack.c.bf16 %v3963_v12, %v3963_v12  ;;  %4693 = vmatmul.msk.bf16.gmra.mxu0 %vm647_vm3, %v3743_v62  ;;  %v3522_v13 = vadd.f32 %v3457_v42, %v2908_v38  ;;  %v3727_v12 = vunpack.c.l.b16 %v3689_v52  ;;  %v3320_v40 = vrot.slane %v3318_v31, 5 }
 0x246   : > { %v2558_v1 = vpop.f32.mrf.mxu1  ;;  %v2417_v0 = vsel %vm5196_vm7, %v2415_v34, %v2416_v33  ;;  %v3316_v52 = vrot.slane %v3315_v10, 4  ;;  %v3693_v33 = vrot.slane %v3691_v2, 4  ;;  %v3694_v47 = vrot.slane %v4645_v55, 5 }
 0x247   : > { %4028 = vst.msk [vmem:[%s6076_s4 + $0x24] sm:$0xf] %vm4018_vm8, %v3995_v15  ;;  %v3896_v58 = vadd.f32 %v3831_v45, %v3522_v13  ;;  %v3370_v45 = vpack.c.b16 %v3353_v7, %v3352_v11  ;;  %v2620_v13 = vadd.f32 %v2558_v1, %v5641_v16  ;;  %v3744_v61 = vpack.c.b16 %v3727_v12, %v3726_v32  ;;  %v4746_v12 = vld [vmem:[%s4961_s7 + $0xbc] sm:$0xff] }
 0x248   : > { %v2450_v11 = vunpack.c.l.b16 %v2414_v9  ;;  %v2451_v7 = vunpack.c.l.b16 %v2417_v0  ;;  %v3321_v34 = vsel %vm4985_vm4, %v3316_v52, %v3320_v40  ;;  %v3692_v24 = vsel %vm5196_vm7, %v3690_v6, %v3691_v2 }
 0x249   : > { %v2845_v14 = vpop.f32.mrf.mxu2  ;;  %4489 = vmatmul.msk.bf16.gmra.mxu1 %vm647_vm3, %v2466_v25  ;;  %v3932_v39 = vadd.f32 %v6048_v57, %v3896_v58  ;;  %v3306_v58 = vrot.slane %v3305_v22, 4  ;;  %v3695_v29 = vsel %vm5196_vm7, %v3693_v33, %v3694_v47 }
 0x24a   : > { %v2909_v19 = vadd.f32 %v2845_v14, %v2619_v44  ;;  %v3833_v62 = vpop.f32.mrf.mxu0 }
 0x24b   : > { %v3964_v38 = vmax.f32 %v3932_v39, 0.0  ;;  %v2467_v39 = vpack.c.b16 %v2451_v7, %v2450_v11 }
 0x24c   : > { %v3459_v8 = vpop.f32.mrf.mxu3 }
 0x24d   : > { %v3996_v42 = vpack.c.bf16 %v3964_v38, %v3964_v38  ;;  %v3523_v25 = vadd.f32 %v3459_v8, %v2909_v19  ;;  %v3355_v8 = vunpack.c.l.b16 %v3321_v34 }
 0x24e   : > { %4604 = vmatmul.msk.bf16.gmra.mxu2 %vm647_vm3, %v4745_v26  ;;  %v2560_v48 = vpop.f32.mrf.mxu1  ;;  %v3311_v26 = vsel %vm4985_vm4, %v3306_v58, %v3310_v17 }
 0x24f   : > { %4029 = vst.msk [vmem:[%s6076_s4 + $0x28] sm:$0xf] %vm4018_vm8, %v3996_v42  ;;  %v3897_v15 = vadd.f32 %v3833_v62, %v3523_v25  ;;  %v2621_v38 = vadd.f32 %v2560_v48, %v5669_v60  ;;  %v3354_v32 = vunpack.c.l.b16 %v3311_v26  ;;  %v3728_v25 = vunpack.c.l.b16 %v3692_v24 }
 0x250   : > { %v3729_v48 = vunpack.c.l.b16 %v3695_v29 }
 0x251   : > { %v2848_v41 = vpop.f32.mrf.mxu2  ;;  %v3933_v44 = vadd.f32 %v6048_v57, %v3897_v15  ;;  %4661 = vmatmul.msk.bf16.gmra.mxu3 %vm647_vm3, %v3370_v45  ;;  %v3371_v60 = vpack.c.b16 %v3355_v8, %v3354_v32 }
 0x252   : > { %v2910_v4 = vadd.f32 %v2848_v41, %v2620_v13  ;;  %v3836_v14 = vpop.f32.mrf.mxu0 }
 0x253   : > { %v3965_v35 = vmax.f32 %v3933_v44, 0.0 }
 0x254   : > { %v3462_v53 = vpop.f32.mrf.mxu3 }
 0x255   : > { %v3997_v16 = vpack.c.bf16 %v3965_v35, %v3965_v35  ;;  %4694 = vmatmul.msk.bf16.gmra.mxu0 %vm647_vm3, %v3744_v61  ;;  %v3524_v1 = vadd.f32 %v3462_v53, %v2910_v4  ;;  %v3745_v61 = vpack.c.b16 %v3729_v48, %v3728_v25 }
 0x256   : > { %v2563_v19 = vpop.f32.mrf.mxu1 }
 0x257   : > { %4030 = vst.msk [vmem:[%s6076_s4 + $0x2c] sm:$0xf] %vm4018_vm8, %v3997_v16  ;;  %v3898_v62 = vadd.f32 %v3836_v14, %v3524_v1  ;;  %v2622_v15 = vadd.f32 %v2563_v19, %v5684_v21 }
 0x259   : > { %v2850_v45 = vpop.f32.mrf.mxu2  ;;  %4490 = vmatmul.msk.bf16.gmra.mxu1 %vm647_vm3, %v2467_v39  ;;  %v3934_v17 = vadd.f32 %v6048_v57, %v3898_v62 }
 0x25a   : > { %v2911_v36 = vadd.f32 %v2850_v45, %v2621_v38  ;;  %v3838_v22 = vpop.f32.mrf.mxu0 }
 0x25b   : > { %v3966_v55 = vmax.f32 %v3934_v17, 0.0 }
 0x25c   : > { %v3464_v10 = vpop.f32.mrf.mxu3 }
 0x25d   : > { %v3998_v31 = vpack.c.bf16 %v3966_v55, %v3966_v55  ;;  %v3525_v42 = vadd.f32 %v3464_v10, %v2911_v36 }
 0x25e   : > { %4605 = vmatmul.msk.bf16.gmra.mxu2 %vm647_vm3, %v4746_v12  ;;  %v2565_v9 = vpop.f32.mrf.mxu1 }
 0x25f   : > { %4031 = vst.msk [vmem:[%s6076_s4 + $0x30] sm:$0xf] %vm4018_vm8, %v3998_v31  ;;  %v3899_v0 = vadd.f32 %v3838_v22, %v3525_v42  ;;  %v2623_v21 = vadd.f32 %v2565_v9, %v5701_v63 }
 0x261   : > { %v2853_v13 = vpop.f32.mrf.mxu2  ;;  %v3935_v23 = vadd.f32 %v6048_v57, %v3899_v0  ;;  %4662 = vmatmul.msk.bf16.gmra.mxu3 %vm647_vm3, %v3371_v60 }
 0x262   : > { %v2912_v41 = vadd.f32 %v2853_v13, %v2622_v15  ;;  %v3841_v11 = vpop.f32.mrf.mxu0 }
 0x263   : > { %v3967_v7 = vmax.f32 %v3935_v23, 0.0 }
 0x264   : > { %v3467_v58 = vpop.f32.mrf.mxu3 }
 0x265   : > { %v3999_v44 = vpack.c.bf16 %v3967_v7, %v3967_v7  ;;  %4695 = vmatmul.msk.bf16.gmra.mxu0 %vm647_vm3, %v3745_v61  ;;  %v3526_v4 = vadd.f32 %v3467_v58, %v2912_v41 }
 0x266   : > { %v2568_v52 = vpop.f32.mrf.mxu1 }
 0x267   : > { %4032 = vst.msk [vmem:[%s6076_s4 + $0x34] sm:$0xf] %vm4018_vm8, %v3999_v44  ;;  %v3900_v40 = vadd.f32 %v3841_v11, %v3526_v4  ;;  %v2624_v6 = vadd.f32 %v2568_v52, %v5714_v28 }
 0x269   : > { %v2855_v14 = vpop.f32.mrf.mxu2  ;;  %v3936_v2 = vadd.f32 %v6048_v57, %v3900_v40 }
 0x26a   : > { %v2913_v35 = vadd.f32 %v2855_v14, %v2623_v21  ;;  %v3843_v53 = vpop.f32.mrf.mxu0 }
 0x26b   : > { %v3968_v39 = vmax.f32 %v3936_v2, 0.0 }
 0x26c   : > { %v3469_v16 = vpop.f32.mrf.mxu3 }
 0x26d   : > { %v4000_v1 = vpack.c.bf16 %v3968_v39, %v3968_v39  ;;  %v3527_v19 = vadd.f32 %v3469_v16, %v2913_v35 }
 0x26e   : > { %v2570_v26 = vpop.f32.mrf.mxu1 }
 0x26f   : > { %4033 = vst.msk [vmem:[%s6076_s4 + $0x38] sm:$0xf] %vm4018_vm8, %v4000_v1  ;;  %v3901_v34 = vadd.f32 %v3843_v53, %v3527_v19  ;;  %v2625_v12 = vadd.f32 %v2570_v26, %v5742_v46 }
 0x271   : > { %v2858_v33 = vpop.f32.mrf.mxu2  ;;  %v3937_v47 = vadd.f32 %v6048_v57, %v3901_v34 }
 0x272   : > { %v2914_v63 = vadd.f32 %v2858_v33, %v2624_v6  ;;  %v3846_v62 = vpop.f32.mrf.mxu0 }
 0x273   : > { %v3969_v38 = vmax.f32 %v3937_v47, 0.0 }
 0x274   : > { %v3472_v45 = vpop.f32.mrf.mxu3 }
 0x275   : > { %v4001_v32 = vpack.c.bf16 %v3969_v38, %v3969_v38  ;;  %v3528_v8 = vadd.f32 %v3472_v45, %v2914_v63 }
 0x276   : > { %v2573_v17 = vpop.f32.mrf.mxu1 }
 0x277   : > { %4034 = vst.msk [vmem:[%s6076_s4 + $0x3c] sm:$0xf] %vm4018_vm8, %v4001_v32  ;;  %v3902_v36 = vadd.f32 %v3846_v62, %v3528_v8  ;;  %v2626_v48 = vadd.f32 %v2573_v17, %v5757_v50 }
 0x279   : > { %v2860_v22 = vpop.f32.mrf.mxu2  ;;  %v3938_v24 = vadd.f32 %v6048_v57, %v3902_v36 }
 0x27a   : > { %v2915_v28 = vadd.f32 %v2860_v22, %v2625_v12  ;;  %v3848_v29 = vpop.f32.mrf.mxu0 }
 0x27b   : > { %v3970_v55 = vmax.f32 %v3938_v24, 0.0 }
 0x27c   : > { %v3474_v10 = vpop.f32.mrf.mxu3 }
 0x27d   : > { %v4002_v60 = vpack.c.bf16 %v3970_v55, %v3970_v55  ;;  %v3529_v31 = vadd.f32 %v3474_v10, %v2915_v28 }
 0x27e   : > { %v2575_v42 = vpop.f32.mrf.mxu1 }
 0x27f   : > { %4035 = vst.msk [vmem:[%s6076_s4 + $0x40] sm:$0xf] %vm4018_vm8, %v4002_v60  ;;  %v3903_v25 = vadd.f32 %v3848_v29, %v3529_v31  ;;  %v2627_v58 = vadd.f32 %v2575_v42, %v5781_v56  ;;  %v6386_v56 = vld [vmem:[%s6455_s2] ss:$0 sm:$0xff] }
 0x281   : > { %v2863_v9 = vpop.f32.mrf.mxu2  ;;  %v3939_v0 = vadd.f32 %v6048_v57, %v3903_v25 }
 0x282   : > { %v2916_v46 = vadd.f32 %v2863_v9, %v2626_v48  ;;  %v3851_v15 = vpop.f32.mrf.mxu0 }
 0x283   : > { %v3971_v13 = vmax.f32 %v3939_v0, 0.0 }
 0x284   : > { %v3477_v23 = vpop.f32.mrf.mxu3 }
 0x285   : > { %v4003_v61 = vpack.c.bf16 %v3971_v13, %v3971_v13  ;;  %v3530_v41 = vadd.f32 %v3477_v23, %v2916_v46 }
 0x286   : > { %v2578_v11 = vpop.f32.mrf.mxu1 }
 0x287   : > { %4036 = vst.msk [vmem:[%s6076_s4 + $0x44] sm:$0xf] %vm4018_vm8, %v4003_v61  ;;  %v3904_v7 = vadd.f32 %v3851_v15, %v3530_v41  ;;  %v2628_v39 = vadd.f32 %v2578_v11, %v5795_v54 }
 0x289   : > { %v2865_v44 = vpop.f32.mrf.mxu2  ;;  %v3940_v4 = vadd.f32 %v6048_v57, %v3904_v7 }
 0x28a   : > { %v2917_v50 = vadd.f32 %v2865_v44, %v2627_v58  ;;  %v3853_v52 = vpop.f32.mrf.mxu0 }
 0x28b   : > { %v3972_v40 = vmax.f32 %v3940_v4, 0.0 }
 0x28c   : > { %v3479_v21 = vpop.f32.mrf.mxu3 }
 0x28d   : > { %v4004_v14 = vpack.c.bf16 %v3972_v40, %v3972_v40  ;;  %v3531_v2 = vadd.f32 %v3479_v21, %v2917_v50 }
 0x28e   : > { %v2580_v35 = vpop.f32.mrf.mxu1 }
 0x28f   : > { %4037 = vst.msk [vmem:[%s6076_s4 + $0x48] sm:$0xf] %vm4018_vm8, %v4004_v14  ;;  %v3905_v53 = vadd.f32 %v3853_v52, %v3531_v2  ;;  %v2629_v54 = vadd.f32 %v2580_v35, %v5822_v59 }
 0x291   : > { %v2868_v16 = vpop.f32.mrf.mxu2  ;;  %v3941_v57 = vadd.f32 %v6386_v56, %v3905_v53 }
 0x292   : > { %v2918_v1 = vadd.f32 %v2868_v16, %v2628_v39  ;;  %v3856_v19 = vpop.f32.mrf.mxu0 }
 0x293   : > { %v3973_v26 = vmax.f32 %v3941_v57, 0.0 }
 0x294   : > { %v3482_v34 = vpop.f32.mrf.mxu3 }
 0x295   : > { %v4005_v6 = vpack.c.bf16 %v3973_v26, %v3973_v26  ;;  %v3532_v33 = vadd.f32 %v3482_v34, %v2918_v1 }
 0x296   : > { %v2583_v47 = vpop.f32.mrf.mxu1 }
 0x297   : > { %4038 = vst.msk [vmem:[%s6076_s4 + $0x4c] sm:$0xf] %vm4018_vm8, %v4005_v6  ;;  %v3906_v63 = vadd.f32 %v3856_v19, %v3532_v33  ;;  %v2630_v28 = vadd.f32 %v2583_v47, %v5837_v37 }
 0x299   : > { %v2870_v62 = vpop.f32.mrf.mxu2  ;;  %v3942_v38 = vadd.f32 %v6386_v56, %v3906_v63 }
 0x29a   : > { %v2919_v45 = vadd.f32 %v2870_v62, %v2629_v54  ;;  %v3858_v32 = vpop.f32.mrf.mxu0 }
 0x29b   : > { %v3974_v8 = vmax.f32 %v3942_v38, 0.0 }
 0x29c   : > { %v3484_v17 = vpop.f32.mrf.mxu3 }
 0x29d   : > { %v4006_v36 = vpack.c.bf16 %v3974_v8, %v3974_v8  ;;  %v3533_v12 = vadd.f32 %v3484_v17, %v2919_v45 }
 0x29e   : > { %v2585_v22 = vpop.f32.mrf.mxu1 }
 0x29f   : > { %4039 = vst.msk [vmem:[%s6076_s4 + $0x50] sm:$0xf] %vm4018_vm8, %v4006_v36  ;;  %v3907_v24 = vadd.f32 %v3858_v32, %v3533_v12  ;;  %v2631_v0 = vadd.f32 %v2585_v22, %v5861_v49 }
 0x2a1   : > { %v2873_v29 = vpop.f32.mrf.mxu2  ;;  %v3943_v55 = vadd.f32 %v6386_v56, %v3907_v24 }
 0x2a2   : > { %v2920_v59 = vadd.f32 %v2873_v29, %v2630_v28  ;;  %v3861_v10 = vpop.f32.mrf.mxu0 }
 0x2a3   : > { %v3975_v60 = vmax.f32 %v3943_v55, 0.0 }
 0x2a4   : > { %v3487_v31 = vpop.f32.mrf.mxu3 }
 0x2a5   : > { %v4007_v42 = vpack.c.bf16 %v3975_v60, %v3975_v60  ;;  %v3534_v25 = vadd.f32 %v3487_v31, %v2920_v59 }
 0x2a6   : > { %v2588_v48 = vpop.f32.mrf.mxu1 }
 0x2a7   : > { %4040 = vst.msk [vmem:[%s6076_s4 + $0x54] sm:$0xf] %vm4018_vm8, %v4007_v42  ;;  %v3908_v9 = vadd.f32 %v3861_v10, %v3534_v25  ;;  %v2632_v44 = vadd.f32 %v2588_v48, %v5875_v5 }
 0x2a9   : > { %v2875_v46 = vpop.f32.mrf.mxu2  ;;  %v3944_v15 = vadd.f32 %v6386_v56, %v3908_v9 }
 0x2aa   : > { %v2921_v37 = vadd.f32 %v2875_v46, %v2631_v0  ;;  %v3863_v13 = vpop.f32.mrf.mxu0 }
 0x2ab   : > { %v3976_v23 = vmax.f32 %v3944_v15, 0.0 }
 0x2ac   : > { %v3489_v61 = vpop.f32.mrf.mxu3 }
 0x2ad   : > { %v4008_v41 = vpack.c.bf16 %v3976_v23, %v3976_v23  ;;  %v3535_v11 = vadd.f32 %v3489_v61, %v2921_v37 }
 0x2ae   : > { %v2590_v7 = vpop.f32.mrf.mxu1 }
 0x2af   : > { %4041 = vst.msk [vmem:[%s6076_s4 + $0x58] sm:$0xf] %vm4018_vm8, %v4008_v41  ;;  %v3909_v58 = vadd.f32 %v3863_v13, %v3535_v11  ;;  %v2633_v39 = vadd.f32 %v2590_v7, %v5902_v18 }
 0x2b1   : > { %v2878_v4 = vpop.f32.mrf.mxu2  ;;  %v3945_v50 = vadd.f32 %v6386_v56, %v3909_v58 }
 0x2b2   : > { %v2922_v49 = vadd.f32 %v2878_v4, %v2632_v44  ;;  %v3866_v52 = vpop.f32.mrf.mxu0 }
 0x2b3   : > { %v3977_v40 = vmax.f32 %v3945_v50, 0.0 }
 0x2b4   : > { %v3492_v21 = vpop.f32.mrf.mxu3 }
 0x2b5   : > { %v4009_v14 = vpack.c.bf16 %v3977_v40, %v3977_v40  ;;  %v3536_v2 = vadd.f32 %v3492_v21, %v2922_v49 }
 0x2b6   : > { %v2593_v35 = vpop.f32.mrf.mxu1 }
 0x2b7   : > { %4042 = vst.msk [vmem:[%s6076_s4 + $0x5c] sm:$0xf] %vm4018_vm8, %v4009_v14  ;;  %v3910_v53 = vadd.f32 %v3866_v52, %v3536_v2  ;;  %v2634_v63 = vadd.f32 %v2593_v35, %v5917_v3 }
 0x2b9   : > { %v2880_v16 = vpop.f32.mrf.mxu2  ;;  %v3946_v57 = vadd.f32 %v6386_v56, %v3910_v53 }
 0x2ba   : > { %v2923_v5 = vadd.f32 %v2880_v16, %v2633_v39  ;;  %v3868_v1 = vpop.f32.mrf.mxu0 }
 0x2bb   : > { %v3978_v19 = vmax.f32 %v3946_v57, 0.0 }
 0x2bc   : > { %v3494_v26 = vpop.f32.mrf.mxu3 }
 0x2bd   : > { %v4010_v34 = vpack.c.bf16 %v3978_v19, %v3978_v19  ;;  %v3537_v6 = vadd.f32 %v3494_v26, %v2923_v5 }
 0x2be   : > { %v2595_v33 = vpop.f32.mrf.mxu1 }
 0x2bf   : > { %4043 = vst.msk [vmem:[%s6076_s4 + $0x60] sm:$0xf] %vm4018_vm8, %v4010_v34  ;;  %v3911_v47 = vadd.f32 %v3868_v1, %v3537_v6  ;;  %v2635_v22 = vadd.f32 %v2595_v33, %v5941_v20 }
 0x2c1   : > { %v2883_v54 = vpop.f32.mrf.mxu2  ;;  %v3947_v62 = vadd.f32 %v6386_v56, %v3911_v47 }
 0x2c2   : > { %v2924_v18 = vadd.f32 %v2883_v54, %v2634_v63  ;;  %v3871_v38 = vpop.f32.mrf.mxu0 }
 0x2c3   : > { %v3979_v45 = vmax.f32 %v3947_v62, 0.0 }
 0x2c4   : > { %v3497_v32 = vpop.f32.mrf.mxu3 }
 0x2c5   : > { %v4011_v8 = vpack.c.bf16 %v3979_v45, %v3979_v45  ;;  %v3538_v17 = vadd.f32 %v3497_v32, %v2924_v18 }
 0x2c6   : > { %v2598_v36 = vpop.f32.mrf.mxu1 }
 0x2c7   : > { %4044 = vst.msk [vmem:[%s6076_s4 + $0x64] sm:$0xf] %vm4018_vm8, %v4011_v8  ;;  %v3912_v12 = vadd.f32 %v3871_v38, %v3538_v17  ;;  %v2636_v42 = vadd.f32 %v2598_v36, %v5955_v43 }
 0x2c9   : > { %v2885_v24 = vpop.f32.mrf.mxu2  ;;  %v3948_v28 = vadd.f32 %v6386_v56, %v3912_v12 }
 0x2ca   : > { %v2925_v3 = vadd.f32 %v2885_v24, %v2635_v22  ;;  %v3873_v29 = vpop.f32.mrf.mxu0 }
 0x2cb   : > { %v3980_v55 = vmax.f32 %v3948_v28, 0.0 }
 0x2cc   : > { %v3499_v59 = vpop.f32.mrf.mxu3 }
 0x2cd   : > { %v4012_v10 = vpack.c.bf16 %v3980_v55, %v3980_v55  ;;  %v3539_v60 = vadd.f32 %v3499_v59, %v2925_v3 }
 0x2ce   : > { %v2600_v25 = vpop.f32.mrf.mxu1 }
 0x2cf   : > { %4045 = vst.msk [vmem:[%s6076_s4 + $0x68] sm:$0xf] %vm4018_vm8, %v4012_v10  ;;  %v3913_v31 = vadd.f32 %v3873_v29, %v3539_v60  ;;  %v2637_v61 = vadd.f32 %v2600_v25, %v5980_v27 }
 0x2d1   : > { %v2888_v48 = vpop.f32.mrf.mxu2  ;;  %v3949_v9 = vadd.f32 %v6386_v56, %v3913_v31 }
 0x2d2   : > { %v2926_v20 = vadd.f32 %v2888_v48, %v2636_v42  ;;  %v3876_v0 = vpop.f32.mrf.mxu0 }
 0x2d3   : > { %v3981_v46 = vmax.f32 %v3949_v9, 0.0 }
 0x2d4   : > { %v3502_v15 = vpop.f32.mrf.mxu3 }
 0x2d5   : > { %v4013_v37 = vpack.c.bf16 %v3981_v46, %v3981_v46  ;;  %v3540_v13 = vadd.f32 %v3502_v15, %v2926_v20 }
 0x2d6   : > { %v2603_v7 = vpop.f32.mrf.mxu1 }
 0x2d7   : > { %4046 = vst.msk [vmem:[%s6076_s4 + $0x6c] sm:$0xf] %vm4018_vm8, %v4013_v37  ;;  %v3914_v23 = vadd.f32 %v3876_v0, %v3540_v13  ;;  %v2638_v40 = vadd.f32 %v2603_v7, %v5993_v51 }
 0x2d9   : > { %v2890_v41 = vpop.f32.mrf.mxu2  ;;  %v3950_v11 = vadd.f32 %v6386_v56, %v3914_v23 }
 0x2da   : > { %v2927_v43 = vadd.f32 %v2890_v41, %v2637_v61  ;;  %v3878_v58 = vpop.f32.mrf.mxu0 }
 0x2db   : > { %v3982_v44 = vmax.f32 %v3950_v11, 0.0 }
 0x2dc   : > { %v3504_v4 = vpop.f32.mrf.mxu3 }
 0x2dd   : > { %v4014_v50 = vpack.c.bf16 %v3982_v44, %v3982_v44  ;;  %v3541_v49 = vadd.f32 %v3504_v4, %v2927_v43 }
 0x2de   : > { %v2605_v35 = vpop.f32.mrf.mxu1 }
 0x2df   : > { %4047 = vst.msk [vmem:[%s6076_s4 + $0x70] sm:$0xf] %vm4018_vm8, %v4014_v50  ;;  %v3915_v52 = vadd.f32 %v3878_v58, %v3541_v49  ;;  %v2639_v1 = vadd.f32 %v2605_v35, %v6032_v30 }
 0x2e1   : > { %v2893_v21 = vpop.f32.mrf.mxu2  ;;  %v3951_v14 = vadd.f32 %v6386_v56, %v3915_v52 }
 0x2e2   : > { %v2928_v27 = vadd.f32 %v2893_v21, %v2638_v40  ;;  %v3881_v53 = vpop.f32.mrf.mxu0 }
 0x2e3   : > { %v3983_v2 = vmax.f32 %v3951_v14, 0.0 }
 0x2e4   : > { %v3507_v39 = vpop.f32.mrf.mxu3 }
 0x2e5   : > { %v4015_v16 = vpack.c.bf16 %v3983_v2, %v3983_v2  ;;  %v3542_v57 = vadd.f32 %v3507_v39, %v2928_v27 }
 0x2e7   : > { %4048 = vst.msk [vmem:[%s6076_s4 + $0x74] sm:$0xf] %vm4018_vm8, %v4015_v16  ;;  %v3916_v5 = vadd.f32 %v3881_v53, %v3542_v57 }
 0x2e9   : > { %v2895_v19 = vpop.f32.mrf.mxu2  ;;  %v3952_v51 = vadd.f32 %v6386_v56, %v3916_v5 }
 0x2ea   : > { %v2929_v26 = vadd.f32 %v2895_v19, %v2639_v1  ;;  %v3883_v63 = vpop.f32.mrf.mxu0 }
 0x2eb   : > { %v3984_v34 = vmax.f32 %v3952_v51, 0.0 }
 0x2ec   : > { %v3509_v6 = vpop.f32.mrf.mxu3 }
 0x2ed   : > { %v4016_v33 = vpack.c.bf16 %v3984_v34, %v3984_v34  ;;  %v3543_v47 = vadd.f32 %v3509_v6, %v2929_v26 }
 0x2ef   : > { %4049 = vst.msk [vmem:[%s6076_s4 + $0x78] sm:$0xf] %vm4018_vm8, %v4016_v33  ;;  %v3917_v54 = vadd.f32 %v3883_v63, %v3543_v47 }
 0x2f1   : > { %v3953_v62 = vadd.f32 %v6386_v56, %v3917_v54 }
 0x2f3   : > { %v3985_v18 = vmax.f32 %v3953_v62, 0.0 }
 0x2f5   : > { %v4017_v38 = vpack.c.bf16 %v3985_v18, %v3985_v18 }
 0x2f7   : > { %4050 = vst.msk [vmem:[%s6076_s4 + $0x7c] sm:$0xf] %vm4018_vm8, %v4017_v38 }
 0x2f8 PF: > { %s13_s16 = sadd.s32 1, %s4880_s16   ;;  %s6466_s12 = smov %s4872_s14 }
 0x2f9   : > { %p10_p7 = scmp.ge.s32.totalorder %s13_s16, 10   ;;  %s6467_s13 = smov %s4876_s15 }
 0x2fa   : > { %s6468_s14 = smov %s6471_s17  ;;  %s6469_s15 = smov %s6475_s18 }
 0x2fb   :  { %12 = sbr.rel (!%p10_p7) target bundleno = 3 (0x3), region = 73 }

// kernel: model_forward.5
= control target key start
LH: loop header
LB: loop body
LE: loop exit
PB: predicated region body
PF: predicated region fallthrough
CT: control target
= control target key end

     0   :  { %s5203_s12 = smov 0   ;;  %s5205_s13 = smov 0   ;;  %s6629_s0 = inlined_call_operand.vmem [shape: bf16[2,18,18,16], index: 0, kind: input, shape index: {}]   ;;  %s6630_s1 = inlined_call_operand.vmem [shape: bf16[9,16,32], index: 1, kind: input, shape index: {}]   ;;  %s6631_s2 = inlined_call_operand.vmem [shape: f32[1,32], index: 2, kind: input, shape index: {}]   ;;  %s6632_s3 = inlined_call_operand.vmem [shape: bf16[2,16,16,32], index: 3, kind: output, shape index: {}]  }
   0x1   :  { %s5207_s14 = smov 0  }
   0x2 LB: > { %s25_s15 = sadd.s32 1, %s5177_s13  ;;  %p4387_p0 = scmp.ge.s32.totalorder %s5181_s14, 1  ;;  %s5181_s14 = sphi %s5207_s14, %s13_s14   ;;  %s5177_s13 = sphi %s5205_s13, %s6644_s13   ;;  %s5173_s12 = sphi %s5203_s12, %s6643_s12  }
   0x3   : > { %p27_p1 = scmp.ge.s32.totalorder %s25_s15, 2  ;;  %p151_p2 = scmp.lt.s32.totalorder %s5181_s14, 3 }
   0x5   : > { %s6646_s15 = smov (%p27_p1, %s25_s15), 0  ;;  %p152_p3 = pnand %p4387_p0, %p151_p2 }
   0x7   : > { %155 = sbr.rel (%p152_p3) target bundleno = 761 (0x2f9), region = 32 }
   0xc   : > { %v5039_v0 = vld [vmem:[%s6630_s1 + $0x8] sm:$0xff]  ;;  %p180_p4 = scmp.lt.s32.totalorder %s5173_s12, 1  ;;  %v5040_v1 = vld [vmem:[%s6630_s1 + $0x10] sm:$0xff]  ;;  %v5057_v2 = vld [vmem:[%s6630_s1 + $0x18] sm:$0xff]  ;;  %vm251_vm0 = vsmask.f32 3328 }
   0xd   : > { %5079 = vmatpush.bf16.msra.mxu1 %v5039_v0  ;;  %5080 = vmatpush.bf16.msra.mxu2 %v5039_v0  ;;  %v5038_v3 = vld [vmem:[%s6630_s1] sm:$0xff]  ;;  %vm252_vm1 = vsmask.f32 7440  ;;  %vm695_vm3 = vcmask 130048   ;;  %vm1104_vm4 = vcmask 1042432   ;;  %vm1105_vm5 = vcmask 1046532  }
   0xe   : > { %s6648_s12 = smov (!%p180_p4, %s5173_s12), 1  ;;  %5081 = vmatpush.bf16.msra.mxu3 %v5039_v0  ;;  %751 = vmatpush.bf16.msra.mxu0 %v5039_v0  ;;  %v5058_v4 = vld [vmem:[%s6630_s1 + $0x20] sm:$0xff]  ;;  %vm5254_vm2 = vmor %vm251_vm0, %vm252_vm1  ;;  %vm4253_vm7 = vcmask 257024  }
   0xf   : > { %s5082_s26 = smul.u32 216, %s6648_s12  ;;  %vm5437_vm6 = vmor %vm1104_vm4, %vm1105_vm5  ;;  %s5021_s17 = sshll.u32 %s6648_s12, 7 }
  0x10   : > { %s6285_s20 = scalar_lea.vmem %s6632_s3, %s5021_s17 }
  0x11   : > { %1331 = vmatpush.bf16.msrb.mxu2 %v5040_v1  ;;  %974 = vmatpush.bf16.msrb.mxu1 %v5038_v3  ;;  %s5242_s29 = scalar_lea.vmem %s6629_s0, %s5082_s26 }
  0x12   : > { %1625 = vmatpush.bf16.msrb.mxu3 %v5057_v2  ;;  %2283 = vmatpush.bf16.msrb.mxu0 %v5058_v4  ;;  %v209_v5 = vld [vmem:[%s5242_s29 + $0x30] sm:$0xf]  ;;  %v210_v6 = vld [vmem:[%s5242_s29 + $0x34] sm:$0xf]  ;;  %v239_v7 = vld [vmem:[%s5242_s29 + $0x38] sm:$0x1] }
  0x13   : > { %v351_v8 = vshrl.u32 %v209_v5, 16  ;;  %v354_v9 = vshll.u32 %v209_v5, 16  ;;  %v360_v10 = vshll.u32 %v210_v6, 16  ;;  %v364_v11 = vshrl.u32 %v210_v6, 16  ;;  %v217_v12 = vld [vmem:[%s5242_s29 + $0x60] sm:$0xf] }
  0x14   : > { %v370_v13 = vshll.u32 %v239_v7, 16  ;;  %v218_v14 = vld [vmem:[%s5242_s29 + $0x64] sm:$0xf]  ;;  %v243_v15 = vld [vmem:[%s5242_s29 + $0x68] sm:$0x1]  ;;  %v447_v16 = vshrl.u32 %v217_v12, 16 }
  0x15   : > { %v353_v17 = vrot.slane %v351_v8, 4  ;;  %v356_v18 = vrot.slane %v354_v9, 5  ;;  %v362_v19 = vrot.slane %v360_v10, 5  ;;  %v366_v20 = vrot.slane %v364_v11, 4  ;;  %v225_v21 = vld [vmem:[%s5242_s29 + $0x90] sm:$0xf] }
  0x16   : > { %v372_v22 = vrot.slane %v370_v13, 5  ;;  %v449_v23 = vrot.slane %v447_v16, 4  ;;  %v450_v24 = vshll.u32 %v217_v12, 16  ;;  %v456_v25 = vshll.u32 %v218_v14, 16  ;;  %v226_v30 = vld [vmem:[%s5242_s29 + $0x94] sm:$0xf] }
  0x17   : > { %v357_v26 = vor.u32 %v356_v18, %v353_v17  ;;  %v367_v27 = vor.u32 %v366_v20, %v362_v19  ;;  %v460_v28 = vshrl.u32 %v218_v14, 16  ;;  %v466_v29 = vshll.u32 %v243_v15, 16  ;;  %v247_v40 = vld [vmem:[%s5242_s29 + $0x98] sm:$0x1]  ;;  %v201_v56 = vld [vmem:[%s5242_s29] sm:$0xf] }
  0x18   : > { %v452_v32 = vrot.slane %v450_v24, 5  ;;  %v458_v33 = vrot.slane %v456_v25, 5  ;;  %v543_v34 = vshrl.u32 %v225_v21, 16  ;;  %v546_v42 = vshll.u32 %v225_v21, 16  ;;  %v5267_v60 = vld [vmem:[%s5242_s29 + $0x4] sm:$0xf] }
  0x19   : > { %v358_v35 = vrot.slane %v357_v26, 4  ;;  %v368_v36 = vrot.slane %v367_v27, 4  ;;  %v462_v37 = vrot.slane %v460_v28, 4  ;;  %v468_v38 = vrot.slane %v466_v29, 5  ;;  %v5270_v61 = vld [vmem:[%s5242_s29 + $0x8] sm:$0x1] }
  0x1a   : > { %v453_v39 = vor.u32 %v452_v32, %v449_v23  ;;  %v545_v41 = vrot.slane %v543_v34, 4  ;;  %v552_v43 = vshll.u32 %v226_v30, 16  ;;  %v556_v47 = vshrl.u32 %v226_v30, 16  ;;  %v211_v14 = vld [vmem:[%s5242_s29 + $0x3c] sm:$0xf] }
  0x1b   : > { %v363_v44 = vsel %vm5254_vm2, %v358_v35, %v362_v19  ;;  %v373_v45 = vsel %vm5254_vm2, %v368_v36, %v372_v22  ;;  %v463_v46 = vor.u32 %v462_v37, %v458_v33  ;;  %v548_v51 = vrot.slane %v546_v42, 5  ;;  %v5282_v15 = vld [vmem:[%s5242_s29 + $0x40] sm:$0xf]  ;;  %v5287_v20 = vld [vmem:[%s5242_s29 + $0x44] sm:$0x1] }
  0x1c   : > { %v649_v48 = vunpack.c.l.b16 %v363_v44  ;;  %v650_v49 = vunpack.c.l.b16 %v373_v45  ;;  %v454_v50 = vrot.slane %v453_v39, 4  ;;  %v554_v53 = vrot.slane %v552_v43, 5  ;;  %v219_v28 = vld [vmem:[%s5242_s29 + $0x6c] sm:$0xf]  ;;  %v244_v42 = vld [vmem:[%s5242_s29 + $0x74] sm:$0x1] }
  0x1d   : > { %v464_v52 = vrot.slane %v463_v46, 4  ;;  %v558_v54 = vrot.slane %v556_v47, 4  ;;  %v562_v55 = vshll.u32 %v247_v40, 16  ;;  %v549_v59 = vor.u32 %v548_v51, %v545_v41 }
  0x1e   : > { %v677_v57 = vpack.c.b16 %v650_v49, %v649_v48  ;;  %v459_v58 = vsel %vm5254_vm2, %v454_v50, %v458_v33  ;;  %v255_v4 = vshrl.u32 %v201_v56, 16  ;;  %v258_v5 = vshll.u32 %v201_v56, 16  ;;  %v227_v56 = vld [vmem:[%s5242_s29 + $0x9c] sm:$0xf] }
  0x1f   : > { %v469_v62 = vsel %vm5254_vm2, %v464_v52, %v468_v38  ;;  %v657_v63 = vunpack.c.l.b16 %v459_v58  ;;  %v559_v0 = vor.u32 %v558_v54, %v554_v53  ;;  %v564_v1 = vrot.slane %v562_v55, 5  ;;  %v220_v38 = vld [vmem:[%s5242_s29 + $0x70] sm:$0xf] }
  0x20   : > { %4401 = vmatmul.msk.bf16.vlgmr.msra.gmra.mxu1 %vm695_vm3, %v677_v57  ;;  %v658_v2 = vunpack.c.l.b16 %v469_v62  ;;  %v550_v3 = vrot.slane %v549_v59, 4  ;;  %v264_v7 = vshll.u32 %v5267_v60, 16  ;;  %v268_v8 = vshrl.u32 %v5267_v60, 16  ;;  %v228_v62 = vld [vmem:[%s5242_s29 + $0xa0] sm:$0xf] }
  0x21   : > { %v560_v6 = vrot.slane %v559_v0, 4  ;;  %v274_v9 = vshll.u32 %v5270_v61, 16  ;;  %v257_v12 = vrot.slane %v255_v4, 4  ;;  %v260_v13 = vrot.slane %v258_v5, 5 }
  0x22   : > { %v681_v10 = vpack.c.b16 %v658_v2, %v657_v63  ;;  %v555_v11 = vsel %vm5254_vm2, %v550_v3, %v554_v53  ;;  %v266_v18 = vrot.slane %v264_v7, 5  ;;  %v270_v19 = vrot.slane %v268_v8, 4  ;;  %v248_v3 = vld [vmem:[%s5242_s29 + $0xa4] sm:$0x1] }
  0x23   : > { %v565_v16 = vsel %vm5254_vm2, %v560_v6, %v564_v1  ;;  %v665_v17 = vunpack.c.l.b16 %v555_v11  ;;  %v261_v22 = vor.u32 %v260_v13, %v257_v12  ;;  %v276_v23 = vrot.slane %v274_v9, 5 }
  0x24   : > { %4405 = vmatmul.msk.bf16.vlgmr.msra.gmra.mxu2 %vm695_vm3, %v681_v10  ;;  %v666_v21 = vunpack.c.l.b16 %v565_v16  ;;  %v271_v24 = vor.u32 %v270_v19, %v266_v18  ;;  %v375_v25 = vshrl.u32 %v211_v14, 16  ;;  %v378_v26 = vshll.u32 %v211_v14, 16 }
  0x25   : > { %v384_v27 = vshll.u32 %v5282_v15, 16  ;;  %v262_v30 = vrot.slane %v261_v22, 4  ;;  %v388_v32 = vshrl.u32 %v5282_v15, 16  ;;  %v394_v33 = vshll.u32 %v5287_v20, 16 }
  0x26   : > { %v685_v29 = vpack.c.b16 %v666_v21, %v665_v17  ;;  %v272_v34 = vrot.slane %v271_v24, 4  ;;  %v377_v35 = vrot.slane %v375_v25, 4  ;;  %v380_v36 = vrot.slane %v378_v26, 5  ;;  %v203_v17 = vld [vmem:[%s5242_s29 + $0xc] sm:$0xf] }
  0x27   : > { %v386_v37 = vrot.slane %v384_v27, 5  ;;  %v267_v39 = vsel %vm5254_vm2, %v262_v30, %v266_v18  ;;  %v390_v40 = vrot.slane %v388_v32, 4  ;;  %v396_v41 = vrot.slane %v394_v33, 5  ;;  %v5316_v27 = vld [vmem:[%s5242_s29 + $0x14] sm:$0x1] }
  0x28   : > { %4409 = vmatmul.msk.bf16.vlgmr.msra.gmra.mxu3 %vm695_vm3, %v685_v29  ;;  %v471_v43 = vshrl.u32 %v219_v28, 16  ;;  %v277_v44 = vsel %vm5254_vm2, %v272_v34, %v276_v23  ;;  %v641_v45 = vunpack.c.l.b16 %v267_v39  ;;  %v381_v46 = vor.u32 %v380_v36, %v377_v35  ;;  %v5313_v23 = vld [vmem:[%s5242_s29 + $0x10] sm:$0xf] }
  0x29   : > { %v474_v47 = vshll.u32 %v219_v28, 16  ;;  %v642_v48 = vunpack.c.l.b16 %v277_v44  ;;  %v391_v49 = vor.u32 %v390_v40, %v386_v37  ;;  %v480_v51 = vshll.u32 %v220_v38, 16 }
  0x2a   : > { %v473_v50 = vrot.slane %v471_v43, 4  ;;  %v382_v52 = vrot.slane %v381_v46, 4  ;;  %v484_v54 = vshrl.u32 %v220_v38, 16  ;;  %v490_v55 = vshll.u32 %v244_v42, 16  ;;  %v5326_v42 = vld [vmem:[%s5242_s29 + $0x4c] sm:$0xf] }
  0x2b   : > { %v476_v53 = vrot.slane %v474_v47, 5  ;;  %v673_v57 = vpack.c.b16 %v642_v48, %v641_v45  ;;  %v392_v58 = vrot.slane %v391_v49, 4  ;;  %v482_v59 = vrot.slane %v480_v51, 5  ;;  %v5331_v51 = vld [vmem:[%s5242_s29 + $0x50] sm:$0x1] }
  0x2c   : > { %v387_v63 = vsel %vm5254_vm2, %v382_v52, %v386_v37  ;;  %v486_v1 = vrot.slane %v484_v54, 4  ;;  %v492_v2 = vrot.slane %v490_v55, 5  ;;  %v567_v6 = vshrl.u32 %v227_v56, 16  ;;  %v213_v37 = vld [vmem:[%s5242_s29 + $0x48] sm:$0xf] }
  0x2d   : > { %v477_v0 = vor.u32 %v476_v53, %v473_v50  ;;  %4397 = vmatmul.msk.bf16.vlgmr.msra.gmra.mxu0 %vm695_vm3, %v673_v57  ;;  %v397_v4 = vsel %vm5254_vm2, %v392_v58, %v396_v41  ;;  %v651_v5 = vunpack.c.l.b16 %v387_v63  ;;  %v570_v7 = vshll.u32 %v227_v56, 16 }
  0x2e   : > { %v652_v8 = vunpack.c.l.b16 %v397_v4  ;;  %v487_v10 = vor.u32 %v486_v1, %v482_v59  ;;  %v576_v11 = vshll.u32 %v228_v62, 16  ;;  %v569_v12 = vrot.slane %v567_v6, 4 }
  0x2f   : > { %v478_v9 = vrot.slane %v477_v0, 4  ;;  %v572_v13 = vrot.slane %v570_v7, 5  ;;  %v580_v14 = vshrl.u32 %v228_v62, 16  ;;  %v586_v16 = vshll.u32 %v248_v3, 16  ;;  %v221_v62 = vld [vmem:[%s5242_s29 + $0x78] sm:$0xf] }
  0x30   : > { %v678_v18 = vpack.c.b16 %v652_v8, %v651_v5  ;;  %v488_v21 = vrot.slane %v487_v10, 4  ;;  %v578_v22 = vrot.slane %v576_v11, 5  ;;  %v279_v30 = vshrl.u32 %v203_v17, 16  ;;  %v222_v3 = vld [vmem:[%s5242_s29 + $0x7c] sm:$0xf] }
  0x31   : > { %v483_v19 = vsel %vm5254_vm2, %v478_v9, %v482_v59  ;;  %v573_v25 = vor.u32 %v572_v13, %v569_v12  ;;  %v582_v26 = vrot.slane %v580_v14, 4  ;;  %v588_v29 = vrot.slane %v586_v16, 5  ;;  %v245_v11 = vld [vmem:[%s5242_s29 + $0x80] sm:$0x1] }
  0x32   : > { %v659_v24 = vunpack.c.l.b16 %v483_v19  ;;  %4402 = vmatmul.msk.bf16.gmra.mxu1 %vm695_vm3, %v678_v18  ;;  %v493_v28 = vsel %vm5254_vm2, %v488_v21, %v492_v2  ;;  %v282_v32 = vshll.u32 %v203_v17, 16  ;;  %v288_v36 = vshll.u32 %v5313_v23, 16 }
  0x33   : > { %v660_v33 = vunpack.c.l.b16 %v493_v28  ;;  %v574_v34 = vrot.slane %v573_v25, 4  ;;  %v583_v35 = vor.u32 %v582_v26, %v578_v22  ;;  %v281_v38 = vrot.slane %v279_v30, 4 }
  0x34   : > { %v284_v39 = vrot.slane %v282_v32, 5  ;;  %v292_v40 = vshrl.u32 %v5313_v23, 16  ;;  %v298_v41 = vshll.u32 %v5316_v27, 16  ;;  %v290_v46 = vrot.slane %v288_v36, 5 }
  0x35   : > { %v682_v43 = vpack.c.b16 %v660_v33, %v659_v24  ;;  %v579_v44 = vsel %vm5254_vm2, %v574_v34, %v578_v22  ;;  %v584_v45 = vrot.slane %v583_v35, 4  ;;  %v399_v53 = vshrl.u32 %v213_v37, 16  ;;  %v230_v34 = vld [vmem:[%s5242_s29 + $0xac] sm:$0xf]  ;;  %v249_v35 = vld [vmem:[%s5242_s29 + $0xb0] sm:$0x1] }
  0x36   : > { %v667_v47 = vunpack.c.l.b16 %v579_v44  ;;  %v285_v48 = vor.u32 %v284_v39, %v281_v38  ;;  %v294_v49 = vrot.slane %v292_v40, 4  ;;  %v300_v50 = vrot.slane %v298_v41, 5 }
  0x37   : > { %4406 = vmatmul.msk.bf16.gmra.mxu2 %vm695_vm3, %v682_v43  ;;  %v589_v52 = vsel %vm5254_vm2, %v584_v45, %v588_v29  ;;  %v402_v54 = vshll.u32 %v213_v37, 16  ;;  %v408_v55 = vshll.u32 %v5326_v42, 16  ;;  %v412_v59 = vshrl.u32 %v5326_v42, 16  ;;  %v229_v29 = vld [vmem:[%s5242_s29 + $0xa8] sm:$0xf] }
  0x38   : > { %v668_v56 = vunpack.c.l.b16 %v589_v52  ;;  %v286_v57 = vrot.slane %v285_v48, 4  ;;  %v295_v58 = vor.u32 %v294_v49, %v290_v46  ;;  %v401_v63 = vrot.slane %v399_v53, 4 }
  0x39   : > { %v404_v0 = vrot.slane %v402_v54, 5  ;;  %v410_v1 = vrot.slane %v408_v55, 5  ;;  %v418_v2 = vshll.u32 %v5331_v51, 16  ;;  %v414_v7 = vrot.slane %v412_v59, 4  ;;  %v205_v54 = vld [vmem:[%s5242_s29 + $0x18] sm:$0xf] }
  0x3a   : > { %v686_v4 = vpack.c.b16 %v668_v56, %v667_v47  ;;  %v291_v5 = vsel %vm5254_vm2, %v286_v57, %v290_v46  ;;  %v296_v6 = vrot.slane %v295_v58, 4  ;;  %v495_v12 = vshrl.u32 %v221_v62, 16  ;;  %v5359_v58 = vld [vmem:[%s5242_s29 + $0x1c] sm:$0xf]  ;;  %v5362_v59 = vld [vmem:[%s5242_s29 + $0x20] sm:$0x1] }
  0x3b   : > { %v643_v8 = vunpack.c.l.b16 %v291_v5  ;;  %v405_v9 = vor.u32 %v404_v0, %v401_v63  ;;  %v420_v10 = vrot.slane %v418_v2, 5  ;;  %v415_v14 = vor.u32 %v414_v7, %v410_v1 }
  0x3c   : > { %4410 = vmatmul.msk.bf16.gmra.mxu3 %vm695_vm3, %v686_v4  ;;  %v301_v13 = vsel %vm5254_vm2, %v296_v6, %v300_v50  ;;  %v498_v16 = vshll.u32 %v221_v62, 16  ;;  %v504_v17 = vshll.u32 %v222_v3, 16  ;;  %v497_v21 = vrot.slane %v495_v12, 4 }
  0x3d   : > { %v644_v18 = vunpack.c.l.b16 %v301_v13  ;;  %v406_v19 = vrot.slane %v405_v9, 4  ;;  %v508_v22 = vshrl.u32 %v222_v3, 16  ;;  %v416_v24 = vrot.slane %v415_v14, 4 }
  0x3e   : > { %v500_v25 = vrot.slane %v498_v16, 5  ;;  %v506_v26 = vrot.slane %v504_v17, 5  ;;  %v514_v28 = vshll.u32 %v245_v11, 16  ;;  %v591_v43 = vshrl.u32 %v229_v29, 16  ;;  %v5372_v16 = vld [vmem:[%s5242_s29 + $0x58] sm:$0xf] }
  0x3f   : > { %v674_v30 = vpack.c.b16 %v644_v18, %v643_v8  ;;  %v411_v32 = vsel %vm5254_vm2, %v406_v19, %v410_v1  ;;  %v510_v33 = vrot.slane %v508_v22, 4  ;;  %v421_v36 = vsel %vm5254_vm2, %v416_v24, %v420_v10  ;;  %v215_v10 = vld [vmem:[%s5242_s29 + $0x54] sm:$0xf]  ;;  %v5377_v22 = vld [vmem:[%s5242_s29 + $0x5c] sm:$0x1] }
  0x40   : > { %v653_v37 = vunpack.c.l.b16 %v411_v32  ;;  %v501_v38 = vor.u32 %v500_v25, %v497_v21  ;;  %v516_v39 = vrot.slane %v514_v28, 5  ;;  %v654_v40 = vunpack.c.l.b16 %v421_v36 }
  0x41   : > { %4398 = vmatmul.msk.bf16.gmra.mxu0 %vm695_vm3, %v674_v30  ;;  %v511_v41 = vor.u32 %v510_v33, %v506_v26  ;;  %v594_v44 = vshll.u32 %v229_v29, 16  ;;  %v600_v46 = vshll.u32 %v230_v34, 16  ;;  %v604_v47 = vshrl.u32 %v230_v34, 16  ;;  %v223_v34 = vld [vmem:[%s5242_s29 + $0x84] sm:$0xf] }
  0x42   : > { %v502_v45 = vrot.slane %v501_v38, 4  ;;  %v610_v48 = vshll.u32 %v249_v35, 16  ;;  %v679_v49 = vpack.c.b16 %v654_v40, %v653_v37  ;;  %v593_v52 = vrot.slane %v591_v43, 4 }
  0x43   : > { %v512_v50 = vrot.slane %v511_v41, 4  ;;  %v596_v53 = vrot.slane %v594_v44, 5  ;;  %v602_v56 = vrot.slane %v600_v46, 5  ;;  %v606_v57 = vrot.slane %v604_v47, 4  ;;  %v224_v44 = vld [vmem:[%s5242_s29 + $0x88] sm:$0xf] }
  0x44   : > { %v507_v55 = vsel %vm5254_vm2, %v502_v45, %v506_v26  ;;  %4403 = vmatmul.msk.bf16.gmra.mxu1 %vm695_vm3, %v679_v49  ;;  %v612_v1 = vrot.slane %v610_v48, 5  ;;  %v303_v4 = vshrl.u32 %v205_v54, 16  ;;  %v306_v5 = vshll.u32 %v205_v54, 16  ;;  %v246_v48 = vld [vmem:[%s5242_s29 + $0x8c] sm:$0x1] }
  0x45   : > { %v517_v62 = vsel %vm5254_vm2, %v512_v50, %v516_v39  ;;  %v661_v63 = vunpack.c.l.b16 %v507_v55  ;;  %v597_v0 = vor.u32 %v596_v53, %v593_v52  ;;  %v607_v3 = vor.u32 %v606_v57, %v602_v56 }
  0x46   : > { %v662_v2 = vunpack.c.l.b16 %v517_v62  ;;  %v312_v7 = vshll.u32 %v5359_v58, 16  ;;  %v316_v8 = vshrl.u32 %v5359_v58, 16  ;;  %v322_v9 = vshll.u32 %v5362_v59, 16 }
  0x47   : > { %v598_v6 = vrot.slane %v597_v0, 4  ;;  %v608_v12 = vrot.slane %v607_v3, 4  ;;  %v305_v13 = vrot.slane %v303_v4, 4  ;;  %v308_v14 = vrot.slane %v306_v5, 5  ;;  %v231_v3 = vld [vmem:[%s5242_s29 + $0xb4] sm:$0xf] }
  0x48   : > { %v683_v11 = vpack.c.b16 %v662_v2, %v661_v63  ;;  %v314_v18 = vrot.slane %v312_v7, 5  ;;  %v318_v19 = vrot.slane %v316_v8, 4  ;;  %v324_v21 = vrot.slane %v322_v9, 5  ;;  %v232_v7 = vld [vmem:[%s5242_s29 + $0xb8] sm:$0xf] }
  0x49   : > { %v603_v17 = vsel %vm5254_vm2, %v598_v6, %v602_v56  ;;  %v613_v24 = vsel %vm5254_vm2, %v608_v12, %v612_v1  ;;  %v309_v26 = vor.u32 %v308_v14, %v305_v13  ;;  %v423_v28 = vshrl.u32 %v215_v10, 16  ;;  %v250_v12 = vld [vmem:[%s5242_s29 + $0xbc] sm:$0x1]  ;;  %v5076_v13 = vld [vmem:[%s6630_s1 + $0x30] sm:$0xff] }
  0x4a   : > { %4407 = vmatmul.msk.bf16.gmra.mxu2 %vm695_vm3, %v683_v11  ;;  %v669_v25 = vunpack.c.l.b16 %v603_v17  ;;  %v670_v29 = vunpack.c.l.b16 %v613_v24  ;;  %v319_v30 = vor.u32 %v318_v19, %v314_v18  ;;  %v426_v32 = vshll.u32 %v215_v10, 16 }
  0x4b   : > { %v432_v33 = vshll.u32 %v5372_v16, 16  ;;  %v310_v35 = vrot.slane %v309_v26, 4  ;;  %v425_v36 = vrot.slane %v423_v28, 4  ;;  %v436_v37 = vshrl.u32 %v5372_v16, 16  ;;  %2979 = vmatpush.bf16.msra.mxu2 %v5076_v13 }
  0x4c   : > { %v442_v38 = vshll.u32 %v5377_v22, 16  ;;  %v687_v39 = vpack.c.b16 %v670_v29, %v669_v25  ;;  %v320_v40 = vrot.slane %v319_v30, 4  ;;  %v428_v41 = vrot.slane %v426_v32, 5 }
  0x4d   : > { %v434_v43 = vrot.slane %v432_v33, 5  ;;  %v315_v45 = vsel %vm5254_vm2, %v310_v35, %v314_v18  ;;  %v438_v46 = vrot.slane %v436_v37, 4  ;;  %v519_v49 = vshrl.u32 %v223_v34, 16  ;;  %v207_v33 = vld [vmem:[%s5242_s29 + $0x24] sm:$0xf] }
  0x4e   : > { %v444_v47 = vrot.slane %v442_v38, 5  ;;  %4411 = vmatmul.msk.bf16.gmra.mxu3 %vm695_vm3, %v687_v39  ;;  %v325_v50 = vsel %vm5254_vm2, %v320_v40, %v324_v21  ;;  %v645_v52 = vunpack.c.l.b16 %v315_v45  ;;  %v429_v53 = vor.u32 %v428_v41, %v425_v36  ;;  %v5408_v38 = vld [vmem:[%s5242_s29 + $0x28] sm:$0xf]  ;;  %v5411_v39 = vld [vmem:[%s5242_s29 + $0x2c] sm:$0x1]  ;;  %v5077_v45 = vld [vmem:[%s6630_s1 + $0x38] sm:$0xff] }
  0x4f   : > { %v522_v54 = vshll.u32 %v223_v34, 16  ;;  %v646_v55 = vunpack.c.l.b16 %v325_v50  ;;  %v439_v56 = vor.u32 %v438_v46, %v434_v43  ;;  %v521_v57 = vrot.slane %v519_v49, 4  ;;  %v5059_v46 = vld [vmem:[%s6630_s1 + $0x28] sm:$0xff]  ;;  %3637 = vmatpush.bf16.msra.mxu3 %v5077_v45 }
  0x50   : > { %v528_v62 = vshll.u32 %v224_v44, 16  ;;  %v430_v63 = vrot.slane %v429_v53, 4  ;;  %v532_v1 = vshrl.u32 %v224_v44, 16  ;;  %v538_v2 = vshll.u32 %v246_v48, 16  ;;  %2685 = vmatpush.bf16.msra.mxu1 %v5059_v46 }
  0x51   : > { %v524_v0 = vrot.slane %v522_v54, 5  ;;  %v675_v4 = vpack.c.b16 %v646_v55, %v645_v52  ;;  %v440_v5 = vrot.slane %v439_v56, 4  ;;  %v615_v18 = vshrl.u32 %v231_v3, 16 }
  0x52   : > { %v530_v6 = vrot.slane %v528_v62, 5  ;;  %v435_v8 = vsel %vm5254_vm2, %v430_v63, %v434_v43  ;;  %v534_v10 = vrot.slane %v532_v1, 4  ;;  %v540_v11 = vrot.slane %v538_v2, 5  ;;  %v1056_v1 = vld [vmem:[%s5242_s29] sm:$0xe] }
  0x53   : > { %v525_v9 = vor.u32 %v524_v0, %v521_v57  ;;  %4399 = vmatmul.msk.bf16.gmra.mxu0 %vm695_vm3, %v675_v4  ;;  %v445_v14 = vsel %vm5254_vm2, %v440_v5, %v444_v47  ;;  %v655_v17 = vunpack.c.l.b16 %v435_v8  ;;  %v618_v19 = vshll.u32 %v231_v3, 16  ;;  %v5078_v47 = vld [vmem:[%s6630_s1 + $0x40] sm:$0xff] }
  0x54   : > { %v656_v21 = vunpack.c.l.b16 %v445_v14  ;;  %v535_v25 = vor.u32 %v534_v10, %v530_v6  ;;  %v624_v26 = vshll.u32 %v232_v7, 16  ;;  %v617_v28 = vrot.slane %v615_v18, 4  ;;  %4039 = vmatpush.bf16.msra.mxu0 %v5078_v47  ;;  %v4653_v10 = vld [vmem:[%s5242_s29 + $0xc] sm:$0xf] }
  0x55   : > { %v526_v24 = vrot.slane %v525_v9, 4  ;;  %v620_v29 = vrot.slane %v618_v19, 5  ;;  %v628_v30 = vshrl.u32 %v232_v7, 16  ;;  %v634_v32 = vshll.u32 %v250_v12, 16 }
  0x56   : > { %v680_v34 = vpack.c.b16 %v656_v21, %v655_v17  ;;  %v536_v36 = vrot.slane %v535_v25, 4  ;;  %v626_v37 = vrot.slane %v624_v26, 5  ;;  %v1112_v40 = vrot.slane %v5270_v61, 5  ;;  %v4656_v61 = vld [vmem:[%s5242_s29 + $0x18] sm:$0xf] }
  0x57   : > { %v531_v35 = vsel %vm5254_vm2, %v526_v24, %v530_v6  ;;  %v621_v43 = vor.u32 %v620_v29, %v617_v28  ;;  %v630_v44 = vrot.slane %v628_v30, 4  ;;  %v636_v49 = vrot.slane %v634_v32, 5 }
  0x58   : > { %v663_v41 = vunpack.c.l.b16 %v531_v35  ;;  %4404 = vmatmul.msk.bf16.gmra.mxu1 %vm695_vm3, %v680_v34  ;;  %v541_v48 = vsel %vm5254_vm2, %v536_v36, %v540_v11  ;;  %v327_v50 = vshrl.u32 %v207_v33, 16  ;;  %v330_v52 = vshll.u32 %v207_v33, 16  ;;  %v4654_v11 = vld [vmem:[%s5242_s29 + $0x10] sm:$0xf] }
  0x59   : > { %v664_v53 = vunpack.c.l.b16 %v541_v48  ;;  %v622_v54 = vrot.slane %v621_v43, 4  ;;  %v631_v55 = vor.u32 %v630_v44, %v626_v37  ;;  %v336_v56 = vshll.u32 %v5408_v38, 16  ;;  %v5022_v48 = vld [vmem:[%s5242_s29] sm:$0xff] }
  0x5a   : > { %v329_v57 = vrot.slane %v327_v50, 4  ;;  %v332_v62 = vrot.slane %v330_v52, 5  ;;  %v340_v63 = vshrl.u32 %v5408_v38, 16  ;;  %v346_v0 = vshll.u32 %v5411_v39, 16 }
  0x5b   : > { %v684_v2 = vpack.c.b16 %v664_v53, %v663_v41  ;;  %v627_v3 = vsel %vm5254_vm2, %v622_v54, %v626_v37  ;;  %v632_v4 = vrot.slane %v631_v55, 4  ;;  %v338_v5 = vrot.slane %v336_v56, 5  ;;  %v4655_v37 = vld [vmem:[%s5242_s29 + $0x14] sm:$0x1] }
  0x5c   : > { %v671_v6 = vunpack.c.l.b16 %v627_v3  ;;  %v333_v7 = vor.u32 %v332_v62, %v329_v57  ;;  %v342_v8 = vrot.slane %v340_v63, 4  ;;  %v348_v9 = vrot.slane %v346_v0, 5  ;;  %v4657_v63 = vld [vmem:[%s5242_s29 + $0x1c] sm:$0xf]  ;;  %v1057_v0 = vld [vmem:[%s5242_s29 + $0xc] sm:$0xe] }
  0x5d   : > { %4408 = vmatmul.msk.bf16.gmra.mxu2 %vm695_vm3, %v684_v2  ;;  %v637_v12 = vsel %vm5254_vm2, %v632_v4, %v636_v49  ;;  %v4497_v13 = vrot.slane %v1056_v1, 9  ;;  %v1109_v21 = vrot.slane %v5267_v60, 5  ;;  %v1788_v24 = vshrl.u32 %v4653_v10, 16 }
  0x5e   : > { %v672_v14 = vunpack.c.l.b16 %v637_v12  ;;  %v334_v17 = vrot.slane %v333_v7, 4  ;;  %v343_v18 = vor.u32 %v342_v8, %v338_v5  ;;  %v1791_v25 = vshll.u32 %v4653_v10, 16  ;;  %v5041_v7 = vld [vmem:[%s5242_s29 + $0xc] sm:$0xff] }
  0x5f   : > { %v1797_v26 = vshll.u32 %v4654_v11, 16  ;;  %v1801_v28 = vshrl.u32 %v4654_v11, 16  ;;  %v1110_v33 = vsel %vm5437_vm6, %v4497_v13, %v1109_v21  ;;  %v1111_v35 = vrot.slane %v1109_v21, 4 }
  0x60   : > { %v688_v29 = vpack.c.b16 %v672_v14, %v671_v6  ;;  %v339_v30 = vsel %vm5254_vm2, %v334_v17, %v338_v5  ;;  %v344_v32 = vrot.slane %v343_v18, 4  ;;  %v1222_v36 = vunpack.c.l.b16 %v1110_v33  ;;  %v4658_v18 = vld [vmem:[%s5242_s29 + $0x20] sm:$0x1] }
  0x61   : > { %v647_v34 = vunpack.c.l.b16 %v339_v30  ;;  %v1790_v41 = vrot.slane %v1788_v24, 4  ;;  %v1793_v43 = vrot.slane %v1791_v25, 5  ;;  %v1799_v44 = vrot.slane %v1797_v26, 5  ;;  %v5023_v26 = vld [vmem:[%s5242_s29 + $0xc] sm:$0xff] }
  0x62   : > { %4412 = vmatmul.msk.bf16.gmra.mxu3 %vm695_vm3, %v688_v29  ;;  %v349_v60 = vsel %vm5254_vm2, %v344_v32, %v348_v9  ;;  %v1803_v45 = vrot.slane %v1801_v28, 4  ;;  %v1113_v47 = vsel %vm5437_vm6, %v1111_v35, %v1112_v40  ;;  %v1807_v53 = vshll.u32 %v4655_v37, 16  ;;  %v4660_v37 = vld [vmem:[%s5242_s29 + $0x28] sm:$0xf] }
  0x63   : > { %v648_v46 = vunpack.c.l.b16 %v349_v60  ;;  %v1223_v49 = vunpack.c.l.b16 %v1113_v47  ;;  %v1794_v50 = vor.u32 %v1793_v43, %v1790_v41  ;;  %v1116_v40 = vrot.slane %v5313_v23, 5  ;;  %v1058_v60 = vld [vmem:[%s5242_s29 + $0x18] sm:$0xe] }
  0x64   : > { %v1804_v52 = vor.u32 %v1803_v45, %v1799_v44  ;;  %v1809_v62 = vrot.slane %v1807_v53, 5  ;;  %v1812_v1 = vshrl.u32 %v4656_v61, 16  ;;  %v1815_v2 = vshll.u32 %v4656_v61, 16 }
  0x65   : > { %v676_v54 = vpack.c.b16 %v648_v46, %v647_v34  ;;  %v1254_v55 = vpack.c.b16 %v1223_v49, %v1222_v36  ;;  %v1795_v56 = vrot.slane %v1794_v50, 4  ;;  %v1821_v5 = vshll.u32 %v4657_v63, 16  ;;  %v4659_v34 = vld [vmem:[%s5242_s29 + $0x24] sm:$0xf] }
  0x66   : > { %v1805_v57 = vrot.slane %v1804_v52, 4  ;;  %v1825_v6 = vshrl.u32 %v4657_v63, 16  ;;  %v4498_v8 = vrot.slane %v1057_v0, 9  ;;  %v1118_v9 = vrot.slane %v1116_v40, 4  ;;  %v5042_v52 = vld [vmem:[%s5242_s29 + $0x18] sm:$0xff] }
  0x67   : > { %4400 = vmatmul.msk.bf16.gmra.mxu0 %vm695_vm3, %v676_v54  ;;  %v1800_v3 = vsel %vm5254_vm2, %v1795_v56, %v1799_v44  ;;  %v1119_v23 = vrot.slane %v5316_v27, 5  ;;  %v1814_v12 = vrot.slane %v1812_v1, 4  ;;  %v1817_v13 = vrot.slane %v1815_v2, 5  ;;  %v4661_v63 = vld [vmem:[%s5242_s29 + $0x2c] sm:$0x1] }
  0x68   : > { %4481 = vmatmul.msk.bf16.vlgmr.msrb.gmra.mxu1 %vm695_vm3, %v5022_v48  ;;  %v1810_v4 = vsel %vm5254_vm2, %v1805_v57, %v1809_v62  ;;  %v2174_v10 = vunpack.c.l.b16 %v1800_v3  ;;  %v1823_v14 = vrot.slane %v1821_v5, 5  ;;  %v1827_v17 = vrot.slane %v1825_v6, 4 }
  0x69   : > { %v2175_v11 = vunpack.c.l.b16 %v1810_v4  ;;  %v1117_v21 = vsel %vm5437_vm6, %v4498_v8, %v1116_v40  ;;  %v1120_v24 = vsel %vm5437_vm6, %v1118_v9, %v1119_v23  ;;  %v1818_v27 = vor.u32 %v1817_v13, %v1814_v12  ;;  %v5024_v4 = vld [vmem:[%s5242_s29 + $0x18] sm:$0xff] }
  0x6a   : > { %v1828_v28 = vor.u32 %v1827_v17, %v1823_v14  ;;  %v1831_v29 = vshll.u32 %v4658_v18, 16  ;;  %v1224_v30 = vunpack.c.l.b16 %v1117_v21  ;;  %v1225_v32 = vunpack.c.l.b16 %v1120_v24  ;;  %v1059_v17 = vld [vmem:[%s5242_s29 + $0x24] sm:$0xe] }
  0x6b   : > { %v2206_v25 = vpack.c.b16 %v2175_v11, %v2174_v10  ;;  %v1819_v33 = vrot.slane %v1818_v27, 4  ;;  %v1123_v43 = vrot.slane %v5359_v58, 5  ;;  %v1836_v44 = vshrl.u32 %v4659_v34, 16  ;;  %v4662_v10 = vld [vmem:[%s5242_s29 + $0x30] sm:$0xf]  ;;  %v5043_v27 = vld [vmem:[%s5242_s29 + $0x24] sm:$0xff] }
  0x6c   : > { %v1829_v35 = vrot.slane %v1828_v28, 4  ;;  %v1833_v36 = vrot.slane %v1831_v29, 5  ;;  %v1255_v41 = vpack.c.b16 %v1225_v32, %v1224_v30  ;;  %v1839_v46 = vshll.u32 %v4659_v34, 16  ;;  %v4663_v11 = vld [vmem:[%s5242_s29 + $0x34] sm:$0xf] }
  0x6d   : > { %4519 = vmatmul.msk.bf16.vlgmr.msrb.gmra.mxu2 %vm695_vm3, %v1254_v55  ;;  %v1824_v45 = vsel %vm5254_vm2, %v1819_v33, %v1823_v14  ;;  %v1845_v47 = vshll.u32 %v4660_v37, 16  ;;  %v1849_v48 = vshrl.u32 %v4660_v37, 16  ;;  %v4499_v50 = vrot.slane %v1058_v60, 9 }
  0x6e   : > { %v1834_v49 = vsel %vm5254_vm2, %v1829_v35, %v1833_v36  ;;  %v2176_v53 = vunpack.c.l.b16 %v1824_v45  ;;  %v1125_v54 = vrot.slane %v1123_v43, 4  ;;  %v1126_v58 = vrot.slane %v5362_v59, 5  ;;  %v4664_v36 = vld [vmem:[%s5242_s29 + $0x38] sm:$0x1] }
  0x6f   : > { %v1838_v55 = vrot.slane %v1836_v44, 4  ;;  %v2177_v56 = vunpack.c.l.b16 %v1834_v49  ;;  %v1841_v57 = vrot.slane %v1839_v46, 5  ;;  %v1847_v62 = vrot.slane %v1845_v47, 5  ;;  %v4666_v49 = vld [vmem:[%s5242_s29 + $0x40] sm:$0xf] }
  0x70   : > { %v1851_v61 = vrot.slane %v1849_v48, 4  ;;  %v1124_v40 = vsel %vm5437_vm6, %v4499_v50, %v1123_v43  ;;  %v1127_v0 = vsel %vm5437_vm6, %v1125_v54, %v1126_v58  ;;  %v1855_v59 = vshll.u32 %v4661_v63, 16  ;;  %v4665_v48 = vld [vmem:[%s5242_s29 + $0x3c] sm:$0xf]  ;;  %v5108_v58 = vld [vmem:[%s5242_s29 + $0x34] sm:$0xf] }
  0x71   : > { %v2207_v1 = vpack.c.b16 %v2177_v56, %v2176_v53  ;;  %v1842_v2 = vor.u32 %v1841_v57, %v1838_v55  ;;  %v1226_v5 = vunpack.c.l.b16 %v1124_v40  ;;  %v1227_v6 = vunpack.c.l.b16 %v1127_v0  ;;  %v1060_v56 = vld [vmem:[%s5242_s29 + $0x30] sm:$0xe] }
  0x72   : > { %4637 = vmatmul.msk.bf16.vlgmr.msrb.gmra.mxu3 %vm695_vm3, %v5041_v7  ;;  %v1852_v3 = vor.u32 %v1851_v61, %v1847_v62  ;;  %v1857_v9 = vrot.slane %v1855_v59, 5  ;;  %v1130_v12 = vrot.slane %v5408_v38, 5  ;;  %v1860_v18 = vshrl.u32 %v4662_v10, 16  ;;  %v5109_v59 = vld [vmem:[%s5242_s29 + $0x38] sm:$0x1] }
  0x73   : > { %v1843_v7 = vrot.slane %v1842_v2, 4  ;;  %v1256_v23 = vpack.c.b16 %v1227_v6, %v1226_v5  ;;  %v1863_v21 = vshll.u32 %v4662_v10, 16  ;;  %v1869_v24 = vshll.u32 %v4663_v11, 16  ;;  %v5044_v5 = vld [vmem:[%s5242_s29 + $0x30] sm:$0xff] }
  0x74   : > { %v1853_v8 = vrot.slane %v1852_v3, 4  ;;  %v1132_v28 = vrot.slane %v1130_v12, 4  ;;  %v1133_v38 = vrot.slane %v5411_v39, 5  ;;  %v1862_v32 = vrot.slane %v1860_v18, 4  ;;  %v5025_v39 = vld [vmem:[%s5242_s29 + $0x24] sm:$0xff] }
  0x75   : > { %v1848_v13 = vsel %vm5254_vm2, %v1843_v7, %v1847_v62  ;;  %v1865_v33 = vrot.slane %v1863_v21, 5  ;;  %v1871_v34 = vrot.slane %v1869_v24, 5  ;;  %v1879_v45 = vshll.u32 %v4664_v36, 16  ;;  %v5026_v24 = vld [vmem:[%s5242_s29 + $0x30] sm:$0xff] }
  0x76   : > { %v1858_v14 = vsel %vm5254_vm2, %v1853_v8, %v1857_v9  ;;  %v2178_v29 = vunpack.c.l.b16 %v1848_v13  ;;  %v1137_v55 = vrot.slane %v5108_v58, 5  ;;  %v1884_v57 = vshrl.u32 %v4665_v48, 16 }
  0x77   : > { %4707 = vmatmul.msk.bf16.vlgmr.msrb.gmra.mxu0 %vm695_vm3, %v2206_v25  ;;  %v1873_v25 = vshrl.u32 %v4663_v11, 16  ;;  %v2179_v30 = vunpack.c.l.b16 %v1858_v14  ;;  %v1866_v43 = vor.u32 %v1865_v33, %v1862_v32  ;;  %v1881_v53 = vrot.slane %v1879_v45, 5  ;;  %v4667_v11 = vld [vmem:[%s5242_s29 + $0x44] sm:$0x1]  ;;  %v4668_v32 = vld [vmem:[%s5242_s29 + $0x48] sm:$0xf] }
  0x78   : > { %4482 = vmatmul.msk.bf16.gmra.mxu1 %vm695_vm3, %v5023_v26  ;;  %v4500_v26 = vrot.slane %v1059_v17, 9  ;;  %v1887_v62 = vshll.u32 %v4665_v48, 16  ;;  %v1893_v61 = vshll.u32 %v4666_v49, 16  ;;  %v1897_v63 = vshrl.u32 %v4666_v49, 16  ;;  %v4669_v33 = vld [vmem:[%s5242_s29 + $0x4c] sm:$0xf] }
  0x79   : > { %v1875_v35 = vrot.slane %v1873_v25, 4  ;;  %v2208_v60 = vpack.c.b16 %v2179_v30, %v2178_v29  ;;  %v1867_v50 = vrot.slane %v1866_v43, 4  ;;  %v4501_v2 = vrot.slane %v1060_v56, 9  ;;  %v5045_v48 = vld [vmem:[%s5242_s29 + $0x3c] sm:$0xff] }
  0x7a   : > { %v1131_v37 = vsel %vm5437_vm6, %v4500_v26, %v1130_v12  ;;  %v1139_v3 = vrot.slane %v1137_v55, 4  ;;  %v1886_v6 = vrot.slane %v1884_v57, 4  ;;  %v1889_v7 = vrot.slane %v1887_v62, 5  ;;  %v4670_v62 = vld [vmem:[%s5242_s29 + $0x50] sm:$0x1] }
  0x7b   : > { %v1876_v44 = vor.u32 %v1875_v35, %v1871_v34  ;;  %v1228_v46 = vunpack.c.l.b16 %v1131_v37  ;;  %v1872_v0 = vsel %vm5254_vm2, %v1867_v50, %v1871_v34  ;;  %v1895_v8 = vrot.slane %v1893_v61, 5 }
  0x7c   : > { %v1899_v9 = vrot.slane %v1897_v63, 4  ;;  %v1138_v12 = vsel %vm5437_vm6, %v4501_v2, %v1137_v55  ;;  %v1890_v14 = vor.u32 %v1889_v7, %v1886_v6  ;;  %v1903_v18 = vshll.u32 %v4667_v11, 16 }
  0x7d   : > { %4520 = vmatmul.msk.bf16.gmra.mxu2 %vm695_vm3, %v1255_v41  ;;  %v1134_v41 = vsel %vm5437_vm6, %v1132_v28, %v1133_v38  ;;  %v1908_v43 = vshrl.u32 %v4668_v32, 16  ;;  %v1917_v45 = vshll.u32 %v4669_v33, 16 }
  0x7e   : > { %v1229_v47 = vunpack.c.l.b16 %v1134_v41  ;;  %v1900_v17 = vor.u32 %v1899_v9, %v1895_v8  ;;  %v1891_v38 = vrot.slane %v1890_v14, 4  ;;  %v1905_v30 = vrot.slane %v1903_v18, 5 }
  0x7f   : > { %v1919_v56 = vrot.slane %v1917_v45, 5  ;;  %v1151_v14 = vrot.slane %v5326_v42, 5 }
  0x80   : > { %v1257_v54 = vpack.c.b16 %v1229_v47, %v1228_v46  ;;  %v1901_v29 = vrot.slane %v1900_v17, 4  ;;  %v1896_v36 = vsel %vm5254_vm2, %v1891_v38, %v1895_v8  ;;  %v1921_v46 = vshrl.u32 %v4669_v33, 16 }
  0x81   : > { %v2182_v47 = vunpack.c.l.b16 %v1896_v36  ;;  %v1153_v33 = vrot.slane %v1151_v14, 4 }
  0x82   : > { %4638 = vmatmul.msk.bf16.gmra.mxu3 %vm695_vm3, %v5042_v52  ;;  %v1877_v52 = vrot.slane %v1876_v44, 4  ;;  %v1906_v37 = vsel %vm5254_vm2, %v1901_v29, %v1905_v30  ;;  %v1911_v44 = vshll.u32 %v4668_v32, 16  ;;  %v1923_v57 = vrot.slane %v1921_v46, 4  ;;  %v5046_v30 = vld [vmem:[%s5242_s29 + $0x48] sm:$0xff]  ;;  %v4673_v46 = vld [vmem:[%s5242_s29 + $0x5c] sm:$0x1] }
  0x83   : > { %v2183_v49 = vunpack.c.l.b16 %v1906_v37 }
  0x84   : > { %v1913_v55 = vrot.slane %v1911_v44, 5  ;;  %v1924_v2 = vor.u32 %v1923_v57, %v1919_v56 }
  0x86   : > { %v1925_v8 = vrot.slane %v1924_v2, 4 }
  0x87   : > { %4708 = vmatmul.msk.bf16.gmra.mxu0 %vm695_vm3, %v2207_v1  ;;  %v1882_v1 = vsel %vm5254_vm2, %v1877_v52, %v1881_v53 }
  0x88   : > { %4483 = vmatmul.msk.bf16.gmra.mxu1 %vm695_vm3, %v5024_v4  ;;  %v1140_v4 = vrot.slane %v5109_v59, 5  ;;  %v2181_v10 = vunpack.c.l.b16 %v1882_v1 }
  0x8a   : > { %v1141_v13 = vsel %vm5437_vm6, %v1139_v3, %v1140_v4  ;;  %v1927_v3 = vshll.u32 %v4670_v62, 16  ;;  %v5027_v4 = vld [vmem:[%s5242_s29 + $0x3c] sm:$0xff] }
  0x8b   : > { %v1231_v26 = vunpack.c.l.b16 %v1141_v13  ;;  %v4672_v13 = vld [vmem:[%s5242_s29 + $0x58] sm:$0xf]  ;;  %v4674_v62 = vld [vmem:[%s5242_s29 + $0x60] sm:$0xf] }
  0x8c   : > { %v1929_v9 = vrot.slane %v1927_v3, 5  ;;  %v1945_v38 = vshrl.u32 %v4672_v13, 16 }
  0x8d   : > { %4521 = vmatmul.msk.bf16.gmra.mxu2 %vm695_vm3, %v1256_v23  ;;  %v2180_v23 = vunpack.c.l.b16 %v1872_v0  ;;  %v2210_v0 = vpack.c.b16 %v2183_v49, %v2182_v47 }
  0x8e   : > { %v1930_v18 = vsel %vm5254_vm2, %v1925_v8, %v1929_v9  ;;  %v1947_v44 = vrot.slane %v1945_v38, 4 }
  0x8f   : > { %v2209_v21 = vpack.c.b16 %v2181_v10, %v2180_v23  ;;  %v2185_v37 = vunpack.c.l.b16 %v1930_v18 }
  0x92   : > { %4639 = vmatmul.msk.bf16.gmra.mxu3 %vm695_vm3, %v5043_v27  ;;  %v1230_v27 = vunpack.c.l.b16 %v1138_v12  ;;  %v4671_v12 = vld [vmem:[%s5242_s29 + $0x54] sm:$0xf] }
  0x94   : > { %v1258_v35 = vpack.c.b16 %v1231_v26, %v1230_v27  ;;  %v1935_v27 = vshll.u32 %v4671_v12, 16  ;;  %v1941_v26 = vshll.u32 %v4672_v13, 16 }
  0x97   : > { %4709 = vmatmul.msk.bf16.gmra.mxu0 %vm695_vm3, %v2208_v60  ;;  %v1144_v60 = vrot.slane %v5282_v15, 5  ;;  %v1910_v15 = vrot.slane %v1908_v43, 4  ;;  %v1943_v43 = vrot.slane %v1941_v26, 5  ;;  %v1161_v26 = vrot.slane %v5377_v22, 5 }
  0x98   : > { %4484 = vmatmul.msk.bf16.gmra.mxu1 %vm695_vm3, %v5025_v39  ;;  %v1061_v39 = vld [vmem:[%s5242_s29 + $0x3c] sm:$0xe] }
  0x99   : > { %v4502_v52 = vrot.slane %v1061_v39, 9  ;;  %v1146_v53 = vrot.slane %v1144_v60, 4  ;;  %v1937_v39 = vrot.slane %v1935_v27, 5 }
  0x9b   : > { %v1145_v61 = vsel %vm5437_vm6, %v4502_v52, %v1144_v60  ;;  %v5028_v52 = vld [vmem:[%s5242_s29 + $0x48] sm:$0xff] }
  0x9d   : > { %v5521_v40 = vpop.f32.mrf.mxu1  ;;  %4522 = vmatmul.msk.bf16.gmra.mxu2 %vm695_vm3, %v1257_v54  ;;  %v1147_v54 = vrot.slane %v5287_v20, 5  ;;  %v1914_v20 = vor.u32 %v1913_v55, %v1910_v15  ;;  %v1951_v15 = vshll.u32 %v4673_v46, 16  ;;  %v5029_v46 = vld [vmem:[%s5242_s29 + $0x54] sm:$0xff] }
  0x9f   : > { %v1148_v63 = vsel %vm5437_vm6, %v1146_v53, %v1147_v54  ;;  %v1915_v7 = vrot.slane %v1914_v20, 4  ;;  %v1948_v54 = vor.u32 %v1947_v44, %v1943_v43  ;;  %v1953_v2 = vrot.slane %v1951_v15, 5 }
  0xa0   : > { %v1233_v6 = vunpack.c.l.b16 %v1148_v63 }
  0xa1   : > { %v1920_v17 = vsel %vm5254_vm2, %v1915_v7, %v1919_v56  ;;  %v1949_v20 = vrot.slane %v1948_v54, 4  ;;  %v1158_v7 = vrot.slane %v5372_v16, 5 }
  0xa2   : > { %4640 = vmatmul.msk.bf16.gmra.mxu3 %vm695_vm3, %v5044_v5  ;;  %v1232_v5 = vunpack.c.l.b16 %v1145_v61  ;;  %v2184_v36 = vunpack.c.l.b16 %v1920_v17  ;;  %v4675_v61 = vld [vmem:[%s5242_s29 + $0x64] sm:$0xf] }
  0xa3   : > { %v1969_v8 = vshrl.u32 %v4675_v61, 16  ;;  %v1954_v13 = vsel %vm5254_vm2, %v1949_v20, %v1953_v2  ;;  %v1160_v27 = vrot.slane %v1158_v7, 4  ;;  %v5110_v2 = vld [vmem:[%s5242_s29 + $0x64] sm:$0xf] }
  0xa4   : > { %v1259_v10 = vpack.c.b16 %v1233_v6, %v1232_v5  ;;  %v2211_v49 = vpack.c.b16 %v2185_v37, %v2184_v36  ;;  %v1959_v5 = vshll.u32 %v4674_v62, 16  ;;  %v1965_v6 = vshll.u32 %v4675_v61, 16 }
  0xa5   : > { %v5537_v25 = vpop.f32.mrf.mxu1  ;;  %v1971_v38 = vrot.slane %v1969_v8, 4 }
  0xa6   : > { %v1961_v18 = vrot.slane %v1959_v5, 5  ;;  %v1064_v5 = vld [vmem:[%s5242_s29 + $0x60] sm:$0xe] }
  0xa7   : > { %v5539_v28 = vpop.f32.mrf.mxu2  ;;  %4710 = vmatmul.msk.bf16.gmra.mxu0 %vm695_vm3, %v2209_v21  ;;  %v1062_v21 = vld [vmem:[%s5242_s29 + $0x48] sm:$0xe] }
  0xa8   : > { %4485 = vmatmul.msk.bf16.gmra.mxu1 %vm695_vm3, %v5026_v24  ;;  %v1932_v24 = vshrl.u32 %v4671_v12, 16  ;;  %v4503_v42 = vrot.slane %v1062_v21, 9  ;;  %v1967_v21 = vrot.slane %v1965_v6, 5 }
  0xaa   : > { %v5545_v34 = vpop.f32.mrf.mxu0  ;;  %v1934_v60 = vrot.slane %v1932_v24, 4  ;;  %v5047_v24 = vld [vmem:[%s5242_s29 + $0x54] sm:$0xff]  ;;  %v1972_v22 = vor.u32 %v1971_v38, %v1967_v21 }
  0xab   : > { %v5551_v41 = vpop.f32.mrf.mxu3 }
  0xac   : > { %v1938_v53 = vor.u32 %v1937_v39, %v1934_v60  ;;  %v1162_v39 = vsel %vm5437_vm6, %v1160_v27, %v1161_v26  ;;  %v1973_v54 = vrot.slane %v1972_v22, 4 }
  0xad   : > { %4523 = vmatmul.msk.bf16.gmra.mxu2 %vm695_vm3, %v1258_v35  ;;  %v1154_v35 = vrot.slane %v5331_v51, 5 }
  0xaf   : > { %v5557_v50 = vpop.f32.mrf.mxu1  ;;  %v5560_v58 = vpop.f32.mrf.mxu2  ;;  %v1155_v51 = vsel %vm5437_vm6, %v1153_v33, %v1154_v35  ;;  %v4676_v33 = vld [vmem:[%s5242_s29 + $0x68] sm:$0x1] }
  0xb0   : > { %v1235_v56 = vunpack.c.l.b16 %v1155_v51 }
  0xb2   : > { %4641 = vmatmul.msk.bf16.gmra.mxu3 %vm695_vm3, %v5045_v48  ;;  %v5568_v1 = vpop.f32.mrf.mxu0  ;;  %v1152_v48 = vsel %vm5437_vm6, %v4503_v42, %v1151_v14  ;;  %v2187_v42 = vunpack.c.l.b16 %v1954_v13 }
  0xb3   : > { %v5570_v59 = vpop.f32.mrf.mxu3  ;;  %v1234_v55 = vunpack.c.l.b16 %v1152_v48 }
  0xb5   : > { %v1260_v3 = vpack.c.b16 %v1235_v56, %v1234_v55  ;;  %v4677_v55 = vld [vmem:[%s5242_s29 + $0x6c] sm:$0xf]  ;;  %v4678_v56 = vld [vmem:[%s5242_s29 + $0x70] sm:$0xf] }
  0xb6   : > { %v1980_v6 = vshrl.u32 %v4677_v55, 16  ;;  %v1989_v8 = vshll.u32 %v4678_v56, 16 }
  0xb7   : > { %4711 = vmatmul.msk.bf16.gmra.mxu0 %vm695_vm3, %v2210_v0  ;;  %v5574_v23 = vpop.f32.mrf.mxu1  ;;  %v1939_v0 = vrot.slane %v1938_v53, 4 }
  0xb8   : > { %4486 = vmatmul.msk.bf16.gmra.mxu1 %vm695_vm3, %v5027_v4  ;;  %v1956_v4 = vshrl.u32 %v4674_v62, 16  ;;  %v1982_v26 = vrot.slane %v1980_v6, 4  ;;  %v4681_v6 = vld [vmem:[%s5242_s29 + $0x7c] sm:$0xf] }
  0xb9   : > { %v1944_v12 = vsel %vm5254_vm2, %v1939_v0, %v1943_v43  ;;  %v1975_v43 = vshll.u32 %v4676_v33, 16 }
  0xba   : > { %v5577_v11 = vpop.f32.mrf.mxu2  ;;  %v1958_v17 = vrot.slane %v1956_v4, 4 }
  0xbb   : > { %v1977_v15 = vrot.slane %v1975_v43, 5 }
  0xbc   : > { %v1962_v37 = vor.u32 %v1961_v18, %v1958_v17  ;;  %v5048_v18 = vld [vmem:[%s5242_s29 + $0x60] sm:$0xff] }
  0xbd   : > { %4524 = vmatmul.msk.bf16.gmra.mxu2 %vm695_vm3, %v1259_v10  ;;  %v1063_v10 = vld [vmem:[%s5242_s29 + $0x54] sm:$0xe]  ;;  %v1978_v20 = vsel %vm5254_vm2, %v1973_v54, %v1977_v15 }
  0xbe   : > { %v5587_v29 = vpop.f32.mrf.mxu0  ;;  %v4504_v16 = vrot.slane %v1063_v10, 9  ;;  %v1963_v53 = vrot.slane %v1962_v37, 4  ;;  %v1993_v10 = vshrl.u32 %v4678_v56, 16  ;;  %v4679_v37 = vld [vmem:[%s5242_s29 + $0x74] sm:$0x1] }
  0xbf   : > { %v5591_v32 = vpop.f32.mrf.mxu3 }
  0xc0   : > { %v1159_v60 = vsel %vm5437_vm6, %v4504_v16, %v1158_v7  ;;  %v1968_v0 = vsel %vm5254_vm2, %v1963_v53, %v1967_v21  ;;  %v1983_v7 = vshll.u32 %v4677_v55, 16  ;;  %v4505_v16 = vrot.slane %v1064_v5, 9  ;;  %v4680_v5 = vld [vmem:[%s5242_s29 + $0x78] sm:$0xf] }
  0xc1   : > { %v5594_v45 = vpop.f32.mrf.mxu1  ;;  %v1236_v51 = vunpack.c.l.b16 %v1159_v60  ;;  %v2188_v21 = vunpack.c.l.b16 %v1968_v0 }
  0xc2   : > { %4642 = vmatmul.msk.bf16.gmra.mxu3 %vm695_vm3, %v5046_v30  ;;  %v5598_v47 = vpop.f32.mrf.mxu2  ;;  %v2186_v30 = vunpack.c.l.b16 %v1944_v12  ;;  %v5111_v12 = vld [vmem:[%s5242_s29 + $0x68] sm:$0x1]  ;;  %v1985_v38 = vrot.slane %v1983_v7, 5  ;;  %v5112_v7 = vld [vmem:[%s5242_s29 + $0x70] sm:$0xf] }
  0xc3   : > { %v1168_v13 = vrot.slane %v5111_v12, 5  ;;  %v1065_v12 = vld [vmem:[%s5242_s29 + $0x6c] sm:$0xe] }
  0xc4   : > { %v2212_v44 = vpack.c.b16 %v2187_v42, %v2186_v30  ;;  %v1991_v30 = vrot.slane %v1989_v8, 5  ;;  %v1995_v42 = vrot.slane %v1993_v10, 4  ;;  %v1986_v43 = vor.u32 %v1985_v38, %v1982_v26  ;;  %v5113_v38 = vld [vmem:[%s5242_s29 + $0x74] sm:$0x1] }
  0xc5   : > { %v1172_v8 = vrot.slane %v5112_v7, 5 }
  0xc6   : > { %v5605_v57 = vpop.f32.mrf.mxu0 }
  0xc7   : > { %4712 = vmatmul.msk.bf16.gmra.mxu0 %vm695_vm3, %v2211_v49  ;;  %v5610_v63 = vpop.f32.mrf.mxu3  ;;  %v1237_v49 = vunpack.c.l.b16 %v1162_v39 }
  0xc8   : > { %4487 = vmatmul.msk.bf16.gmra.mxu1 %vm695_vm3, %v5028_v52 }
  0xc9   : > { %v5614_v9 = vpop.f32.mrf.mxu1  ;;  %v1261_v62 = vpack.c.b16 %v1237_v49, %v1236_v51  ;;  %v5030_v49 = vld [vmem:[%s5242_s29 + $0x60] sm:$0xff] }
  0xcd   : > { %v5621_v14 = vpop.f32.mrf.mxu2  ;;  %4525 = vmatmul.msk.bf16.gmra.mxu2 %vm695_vm3, %v1260_v3  ;;  %v1165_v3 = vrot.slane %v5110_v2, 5 }
  0xcf   : > { %v1167_v27 = vrot.slane %v1165_v3, 4  ;;  %v1166_v60 = vsel %vm5437_vm6, %v4505_v16, %v1165_v3  ;;  %v2017_v16 = vshrl.u32 %v4681_v6, 16 }
  0xd0   : > { %v5627_v35 = vpop.f32.mrf.mxu0  ;;  %v1238_v15 = vunpack.c.l.b16 %v1166_v60  ;;  %v4506_v60 = vrot.slane %v1065_v12, 9 }
  0xd1   : > { %v5629_v36 = vpop.f32.mrf.mxu3  ;;  %v1169_v39 = vsel %vm5437_vm6, %v1167_v27, %v1168_v13 }
  0xd2   : > { %4643 = vmatmul.msk.bf16.gmra.mxu3 %vm695_vm3, %v5047_v24  ;;  %v2189_v24 = vunpack.c.l.b16 %v1978_v20  ;;  %v1239_v55 = vunpack.c.l.b16 %v1169_v39  ;;  %v1174_v39 = vrot.slane %v1172_v8, 4 }
  0xd4   : > { %v2213_v22 = vpack.c.b16 %v2189_v24, %v2188_v21  ;;  %v1262_v3 = vpack.c.b16 %v1239_v55, %v1238_v15  ;;  %v2007_v21 = vshll.u32 %v4680_v5, 16  ;;  %v2013_v24 = vshll.u32 %v4681_v6, 16 }
  0xd5   : > { %v5637_v48 = vpop.f32.mrf.mxu1  ;;  %v5639_v52 = vpop.f32.mrf.mxu2  ;;  %v2019_v15 = vrot.slane %v2017_v16, 4 }
  0xd7   : > { %4713 = vmatmul.msk.bf16.gmra.mxu0 %vm695_vm3, %v2212_v44  ;;  %v1996_v44 = vor.u32 %v1995_v42, %v1991_v30  ;;  %v1175_v42 = vrot.slane %v5113_v38, 5 }
  0xd8   : > { %4488 = vmatmul.msk.bf16.gmra.mxu1 %vm695_vm3, %v5029_v46  ;;  %v5645_v61 = vpop.f32.mrf.mxu0  ;;  %v1999_v46 = vshll.u32 %v4679_v37, 16  ;;  %v5049_v37 = vld [vmem:[%s5242_s29 + $0x6c] sm:$0xff] }
  0xd9   : > { %v5652_v4 = vpop.f32.mrf.mxu3  ;;  %v1997_v0 = vrot.slane %v1996_v44, 4 }
  0xda   : > { %v2001_v20 = vrot.slane %v1999_v46, 5 }
  0xdd   : > { %4526 = vmatmul.msk.bf16.gmra.mxu2 %vm695_vm3, %v1261_v62  ;;  %v5657_v17 = vpop.f32.mrf.mxu1  ;;  %v1987_v62 = vrot.slane %v1986_v43, 4 }
  0xdf   : > { %v1992_v10 = vsel %vm5254_vm2, %v1987_v62, %v1991_v30  ;;  %v4682_v62 = vld [vmem:[%s5242_s29 + $0x80] sm:$0x1] }
  0xe0   : > { %v5660_v33 = vpop.f32.mrf.mxu2 }
  0xe2   : > { %4644 = vmatmul.msk.bf16.gmra.mxu3 %vm695_vm3, %v5048_v18  ;;  %v2004_v18 = vshrl.u32 %v4680_v5, 16  ;;  %v5031_v5 = vld [vmem:[%s5242_s29 + $0x6c] sm:$0xff] }
  0xe4   : > { %v5668_v51 = vpop.f32.mrf.mxu0  ;;  %v2006_v46 = vrot.slane %v2004_v18, 4 }
  0xe5   : > { %v5671_v53 = vpop.f32.mrf.mxu3  ;;  %v976_v54 = vpop.f32.mrf.mxu1 }
  0xe6   : > { %v977_v56 = vadd.f32 %v976_v54, %v5545_v34  ;;  %v2002_v34 = vsel %vm5254_vm2, %v1997_v0, %v2001_v20  ;;  %v2015_v54 = vrot.slane %v2013_v24, 5  ;;  %v1173_v0 = vsel %vm5437_vm6, %v4506_v60, %v1172_v8 }
  0xe7   : > { %4714 = vmatmul.msk.bf16.gmra.mxu0 %vm695_vm3, %v2213_v22  ;;  %v2190_v22 = vunpack.c.l.b16 %v1992_v10  ;;  %v2191_v43 = vunpack.c.l.b16 %v2002_v34  ;;  %v2023_v10 = vshll.u32 %v4682_v62, 16 }
  0xe8   : > { %v5675_v2 = vpop.f32.mrf.mxu2  ;;  %4489 = vmatmul.msk.bf16.gmra.mxu1 %vm695_vm3, %v5030_v49  ;;  %v2009_v49 = vrot.slane %v2007_v21, 5  ;;  %v2020_v7 = vor.u32 %v2019_v15, %v2015_v54 }
  0xe9   : > { %v2214_v20 = vpack.c.b16 %v2191_v43, %v2190_v22  ;;  %v2025_v38 = vrot.slane %v2023_v10, 5  ;;  %v4684_v22 = vld [vmem:[%s5242_s29 + $0x88] sm:$0xf]  ;;  %v5114_v43 = vld [vmem:[%s5242_s29 + $0x7c] sm:$0xf] }
  0xea   : > { %v2010_v6 = vor.u32 %v2009_v49, %v2006_v46  ;;  %v1066_v46 = vld [vmem:[%s5242_s29 + $0x78] sm:$0xe] }
  0xec   : > { %v5686_v13 = vpop.f32.mrf.mxu0  ;;  %v2011_v16 = vrot.slane %v2010_v6, 4 }
  0xed   : > { %v5688_v27 = vpop.f32.mrf.mxu3  ;;  %4527 = vmatmul.msk.bf16.gmra.mxu2 %vm695_vm3, %v1262_v3  ;;  %v978_v26 = vpop.f32.mrf.mxu1 }
  0xee   : > { %v979_v30 = vadd.f32 %v978_v26, %v5568_v1  ;;  %v1176_v1 = vsel %vm5437_vm6, %v1174_v39, %v1175_v42  ;;  %v2021_v26 = vrot.slane %v2020_v7, 4  ;;  %v4683_v42 = vld [vmem:[%s5242_s29 + $0x84] sm:$0xf]  ;;  %v5050_v7 = vld [vmem:[%s5242_s29 + $0x78] sm:$0xff] }
  0xef   : > { %v1241_v18 = vunpack.c.l.b16 %v1176_v1  ;;  %v2031_v49 = vshll.u32 %v4683_v42, 16  ;;  %v2041_v1 = vshrl.u32 %v4684_v22, 16 }
  0xf0   : > { %v1333_v44 = vpop.f32.mrf.mxu2  ;;  %v2026_v62 = vsel %vm5254_vm2, %v2021_v26, %v2025_v38 }
  0xf1   : > { %v1413_v55 = vadd.f32 %v1333_v44, %v977_v56  ;;  %v1240_v56 = vunpack.c.l.b16 %v1173_v0  ;;  %v1179_v44 = vrot.slane %v5114_v43, 5  ;;  %v2037_v0 = vshll.u32 %v4684_v22, 16 }
  0xf2   : > { %4645 = vmatmul.msk.bf16.gmra.mxu3 %vm695_vm3, %v5049_v37  ;;  %v2043_v26 = vrot.slane %v2041_v1, 4 }
  0xf3   : > { %v1263_v39 = vpack.c.b16 %v1241_v18, %v1240_v56 }
  0xf4   : > { %v2285_v3 = vpop.f32.mrf.mxu0 }
  0xf5   : > { %v1627_v34 = vpop.f32.mrf.mxu3  ;;  %v981_v12 = vpop.f32.mrf.mxu1 }
  0xf6   : > { %v1707_v21 = vadd.f32 %v1627_v34, %v1413_v55  ;;  %v982_v8 = vadd.f32 %v981_v12, %v5587_v29  ;;  %v2028_v29 = vshrl.u32 %v4683_v42, 16  ;;  %v2016_v55 = vsel %vm5254_vm2, %v2011_v16, %v2015_v54 }
  0xf7   : > { %4715 = vmatmul.msk.bf16.gmra.mxu0 %vm695_vm3, %v2214_v20  ;;  %v5115_v20 = vld [vmem:[%s5242_s29 + $0x80] sm:$0x1]  ;;  %v4507_v34 = vrot.slane %v1066_v46, 9  ;;  %v1181_v12 = vrot.slane %v1179_v44, 4  ;;  %v2192_v56 = vunpack.c.l.b16 %v2016_v55  ;;  %v2193_v54 = vunpack.c.l.b16 %v2026_v62 }
  0xf8   : > { %v1335_v24 = vpop.f32.mrf.mxu2  ;;  %4490 = vmatmul.msk.bf16.gmra.mxu1 %vm695_vm3, %v5031_v5  ;;  %v5705_v37 = vadd.f32 %v2285_v3, %v1707_v21  ;;  %v1182_v3 = vrot.slane %v5115_v20, 5  ;;  %v2030_v18 = vrot.slane %v2028_v29, 4  ;;  %v2033_v21 = vrot.slane %v2031_v49, 5  ;;  %v5032_v29 = vld [vmem:[%s5242_s29 + $0x78] sm:$0xff] }
  0xf9   : > { %v1414_v60 = vadd.f32 %v1335_v24, %v979_v30  ;;  %v2039_v16 = vrot.slane %v2037_v0, 5  ;;  %v2215_v22 = vpack.c.b16 %v2193_v54, %v2192_v56  ;;  %v4687_v56 = vld [vmem:[%s5242_s29 + $0x94] sm:$0xf]  ;;  %v5116_v54 = vld [vmem:[%s5242_s29 + $0x88] sm:$0xf] }
  0xfa   : > { %v2034_v43 = vor.u32 %v2033_v21, %v2030_v18  ;;  %v1186_v18 = vrot.slane %v5116_v54, 5  ;;  %v1067_v21 = vld [vmem:[%s5242_s29 + $0x84] sm:$0xe] }
  0xfb   : > { %v2044_v49 = vor.u32 %v2043_v26, %v2039_v16 }
  0xfc   : > { %v2287_v15 = vpop.f32.mrf.mxu0  ;;  %v2035_v20 = vrot.slane %v2034_v43, 4 }
  0xfd   : > { %v1629_v30 = vpop.f32.mrf.mxu3  ;;  %4528 = vmatmul.msk.bf16.gmra.mxu2 %vm695_vm3, %v1263_v39  ;;  %v983_v5 = vpop.f32.mrf.mxu1  ;;  %v4685_v39 = vld [vmem:[%s5242_s29 + $0x8c] sm:$0x1] }
  0xfe   : > { %v1708_v6 = vadd.f32 %v1629_v30, %v1414_v60  ;;  %v984_v10 = vadd.f32 %v983_v5, %v5605_v57  ;;  %v1180_v60 = vsel %vm5437_vm6, %v4507_v34, %v1179_v44  ;;  %v1183_v57 = vsel %vm5437_vm6, %v1181_v12, %v1182_v3 }
  0xff   : > { %v2047_v55 = vshll.u32 %v4685_v39, 16  ;;  %v1243_v0 = vunpack.c.l.b16 %v1183_v57  ;;  %v2045_v30 = vrot.slane %v2044_v49, 4  ;;  %v2065_v57 = vshrl.u32 %v4687_v56, 16  ;;  %v5051_v49 = vld [vmem:[%s5242_s29 + $0x84] sm:$0xff] }
 0x100   : > { %v1338_v24 = vpop.f32.mrf.mxu2  ;;  %v5718_v38 = vadd.f32 %v2287_v15, %v1708_v6  ;;  %v4686_v6 = vld [vmem:[%s5242_s29 + $0x90] sm:$0xf] }
 0x101   : > { %v1415_v42 = vadd.f32 %v1338_v24, %v982_v8  ;;  %v1242_v8 = vunpack.c.l.b16 %v1180_v60  ;;  %v2049_v5 = vrot.slane %v2047_v55, 5  ;;  %v2052_v24 = vshrl.u32 %v4686_v6, 16 }
 0x102   : > { %4646 = vmatmul.msk.bf16.gmra.mxu3 %vm695_vm3, %v5050_v7  ;;  %v2055_v39 = vshll.u32 %v4686_v6, 16  ;;  %v2061_v60 = vshll.u32 %v4687_v56, 16  ;;  %v4508_v55 = vrot.slane %v1067_v21, 9 }
 0x103   : > { %v1264_v12 = vpack.c.b16 %v1243_v0, %v1242_v8  ;;  %v2054_v0 = vrot.slane %v2052_v24, 4 }
 0x104   : > { %v2290_v46 = vpop.f32.mrf.mxu0 }
 0x105   : > { %v1632_v62 = vpop.f32.mrf.mxu3  ;;  %v986_v15 = vpop.f32.mrf.mxu1 }
 0x106   : > { %v1709_v1 = vadd.f32 %v1632_v62, %v1415_v42  ;;  %v987_v44 = vadd.f32 %v986_v15, %v5627_v35  ;;  %v2040_v35 = vsel %vm5254_vm2, %v2035_v20, %v2039_v16  ;;  %v2050_v42 = vsel %vm5254_vm2, %v2045_v30, %v2049_v5 }
 0x107   : > { %4716 = vmatmul.msk.bf16.gmra.mxu0 %vm695_vm3, %v2215_v22  ;;  %v5117_v22 = vld [vmem:[%s5242_s29 + $0x8c] sm:$0x1]  ;;  %v1188_v62 = vrot.slane %v1186_v18, 4  ;;  %v2194_v15 = vunpack.c.l.b16 %v2040_v35  ;;  %v2195_v8 = vunpack.c.l.b16 %v2050_v42  ;;  %v2057_v20 = vrot.slane %v2055_v39, 5  ;;  %v5033_v35 = vld [vmem:[%s5242_s29 + $0x84] sm:$0xff] }
 0x108   : > { %v1340_v3 = vpop.f32.mrf.mxu2  ;;  %4491 = vmatmul.msk.bf16.gmra.mxu1 %vm695_vm3, %v5032_v29  ;;  %v5731_v7 = vadd.f32 %v2290_v46, %v1709_v1  ;;  %v1189_v43 = vrot.slane %v5117_v22, 5  ;;  %v2067_v30 = vrot.slane %v2065_v57, 4 }
 0x109   : > { %v1416_v34 = vadd.f32 %v1340_v3, %v984_v10  ;;  %v2063_v3 = vrot.slane %v2061_v60, 5  ;;  %v2216_v56 = vpack.c.b16 %v2195_v8, %v2194_v15  ;;  %v2058_v21 = vor.u32 %v2057_v20, %v2054_v0  ;;  %v4690_v15 = vld [vmem:[%s5242_s29 + $0xa0] sm:$0xf]  ;;  %v1068_v20 = vld [vmem:[%s5242_s29 + $0x90] sm:$0xe] }
 0x10b   : > { %v2068_v24 = vor.u32 %v2067_v30, %v2063_v3 }
 0x10c   : > { %v2292_v26 = vpop.f32.mrf.mxu0 }
 0x10d   : > { %v1634_v10 = vpop.f32.mrf.mxu3  ;;  %4529 = vmatmul.msk.bf16.gmra.mxu2 %vm695_vm3, %v1264_v12  ;;  %v988_v46 = vpop.f32.mrf.mxu1  ;;  %v4688_v12 = vld [vmem:[%s5242_s29 + $0x98] sm:$0x1] }
 0x10e   : > { %v1710_v29 = vadd.f32 %v1634_v10, %v1416_v34  ;;  %v989_v16 = vadd.f32 %v988_v46, %v5645_v61  ;;  %v1187_v61 = vsel %vm5437_vm6, %v4508_v55, %v1186_v18  ;;  %v1190_v34 = vsel %vm5437_vm6, %v1188_v62, %v1189_v43  ;;  %v4689_v18 = vld [vmem:[%s5242_s29 + $0x9c] sm:$0xf] }
 0x10f   : > { %v2071_v42 = vshll.u32 %v4688_v12, 16  ;;  %v1245_v60 = vunpack.c.l.b16 %v1190_v34  ;;  %v2059_v10 = vrot.slane %v2058_v21, 4  ;;  %v2069_v46 = vrot.slane %v2068_v24, 4 }
 0x110   : > { %v1343_v1 = vpop.f32.mrf.mxu2  ;;  %v5744_v5 = vadd.f32 %v2292_v26, %v1710_v29  ;;  %v2076_v8 = vshrl.u32 %v4689_v18, 16  ;;  %v2079_v0 = vshll.u32 %v4689_v18, 16  ;;  %v2089_v34 = vshrl.u32 %v4690_v15, 16 }
 0x111   : > { %v1417_v6 = vadd.f32 %v1343_v1, %v987_v44  ;;  %v1244_v44 = vunpack.c.l.b16 %v1187_v61  ;;  %v2073_v29 = vrot.slane %v2071_v42, 5  ;;  %v5118_v1 = vld [vmem:[%s5242_s29 + $0x94] sm:$0xf]  ;;  %v2085_v61 = vshll.u32 %v4690_v15, 16 }
 0x112   : > { %4647 = vmatmul.msk.bf16.gmra.mxu3 %vm695_vm3, %v5051_v49  ;;  %v2078_v21 = vrot.slane %v2076_v8, 4  ;;  %v2081_v24 = vrot.slane %v2079_v0, 5 }
 0x113   : > { %v1265_v62 = vpack.c.b16 %v1245_v60, %v1244_v44  ;;  %v2074_v12 = vsel %vm5254_vm2, %v2069_v46, %v2073_v29  ;;  %v4509_v44 = vrot.slane %v1068_v20, 9 }
 0x114   : > { %v2295_v54 = vpop.f32.mrf.mxu0  ;;  %v2082_v15 = vor.u32 %v2081_v24, %v2078_v21  ;;  %v4693_v21 = vld [vmem:[%s5242_s29 + $0xac] sm:$0xf] }
 0x115   : > { %v1637_v39 = vpop.f32.mrf.mxu3  ;;  %v991_v26 = vpop.f32.mrf.mxu1 }
 0x116   : > { %v1711_v57 = vadd.f32 %v1637_v39, %v1417_v6  ;;  %v992_v22 = vadd.f32 %v991_v26, %v5668_v51  ;;  %v1193_v51 = vrot.slane %v5118_v1, 5  ;;  %v2064_v6 = vsel %vm5254_vm2, %v2059_v10, %v2063_v3  ;;  %v5052_v39 = vld [vmem:[%s5242_s29 + $0x90] sm:$0xff] }
 0x117   : > { %4717 = vmatmul.msk.bf16.gmra.mxu0 %vm695_vm3, %v2216_v56  ;;  %v5119_v56 = vld [vmem:[%s5242_s29 + $0x98] sm:$0x1]  ;;  %v2196_v60 = vunpack.c.l.b16 %v2064_v6  ;;  %v2091_v10 = vrot.slane %v2089_v34, 4  ;;  %v5034_v1 = vld [vmem:[%s5242_s29 + $0x90] sm:$0xff] }
 0x118   : > { %v1345_v43 = vpop.f32.mrf.mxu2  ;;  %4492 = vmatmul.msk.bf16.gmra.mxu1 %vm695_vm3, %v5033_v35  ;;  %v5757_v49 = vadd.f32 %v2295_v54, %v1711_v57  ;;  %v1196_v54 = vrot.slane %v5119_v56, 5  ;;  %v1195_v3 = vrot.slane %v1193_v51, 4  ;;  %v2197_v57 = vunpack.c.l.b16 %v2074_v12 }
 0x119   : > { %v1418_v55 = vadd.f32 %v1345_v43, %v989_v16  ;;  %v2087_v43 = vrot.slane %v2085_v61, 5  ;;  %v2083_v56 = vrot.slane %v2082_v15, 4  ;;  %v5121_v15 = vld [vmem:[%s5242_s29 + $0xa4] sm:$0x1] }
 0x11a   : > { %v2217_v8 = vpack.c.b16 %v2197_v57, %v2196_v60  ;;  %v5120_v60 = vld [vmem:[%s5242_s29 + $0xa0] sm:$0xf] }
 0x11b   : > { %v2092_v20 = vor.u32 %v2091_v10, %v2087_v43  ;;  %v1200_v57 = vrot.slane %v5120_v60, 5  ;;  %v1069_v10 = vld [vmem:[%s5242_s29 + $0x9c] sm:$0xe] }
 0x11c   : > { %v2297_v30 = vpop.f32.mrf.mxu0 }
 0x11d   : > { %v1639_v16 = vpop.f32.mrf.mxu3  ;;  %4530 = vmatmul.msk.bf16.gmra.mxu2 %vm695_vm3, %v1265_v62  ;;  %v993_v35 = vpop.f32.mrf.mxu1  ;;  %v4691_v62 = vld [vmem:[%s5242_s29 + $0xa4] sm:$0x1] }
 0x11e   : > { %v1712_v42 = vadd.f32 %v1639_v16, %v1418_v55  ;;  %v994_v26 = vadd.f32 %v993_v35, %v5686_v13  ;;  %v1194_v55 = vsel %vm5437_vm6, %v4509_v44, %v1193_v51  ;;  %v1197_v13 = vsel %vm5437_vm6, %v1195_v3, %v1196_v54  ;;  %v4692_v16 = vld [vmem:[%s5242_s29 + $0xa8] sm:$0xf] }
 0x11f   : > { %v2095_v6 = vshll.u32 %v4691_v62, 16  ;;  %v1247_v61 = vunpack.c.l.b16 %v1197_v13  ;;  %v2093_v54 = vrot.slane %v2092_v20, 4  ;;  %v2100_v44 = vshrl.u32 %v4692_v16, 16 }
 0x120   : > { %v1348_v18 = vpop.f32.mrf.mxu2  ;;  %v5770_v46 = vadd.f32 %v2297_v30, %v1712_v42  ;;  %v2088_v3 = vsel %vm5254_vm2, %v2083_v56, %v2087_v43  ;;  %v2113_v62 = vshrl.u32 %v4693_v21, 16 }
 0x121   : > { %v1419_v29 = vadd.f32 %v1348_v18, %v992_v22  ;;  %v1246_v22 = vunpack.c.l.b16 %v1194_v55  ;;  %v2097_v35 = vrot.slane %v2095_v6, 5  ;;  %v2103_v18 = vshll.u32 %v4692_v16, 16  ;;  %v5053_v6 = vld [vmem:[%s5242_s29 + $0x9c] sm:$0xff] }
 0x122   : > { %4648 = vmatmul.msk.bf16.gmra.mxu3 %vm695_vm3, %v5052_v39  ;;  %v2102_v43 = vrot.slane %v2100_v44, 4 }
 0x123   : > { %v1266_v39 = vpack.c.b16 %v1247_v61, %v1246_v22  ;;  %v2098_v13 = vsel %vm5254_vm2, %v2093_v54, %v2097_v35  ;;  %v1202_v22 = vrot.slane %v1200_v57, 4  ;;  %v2105_v61 = vrot.slane %v2103_v18, 5  ;;  %v4694_v35 = vld [vmem:[%s5242_s29 + $0xb0] sm:$0x1] }
 0x124   : > { %v2300_v0 = vpop.f32.mrf.mxu0  ;;  %v2199_v56 = vunpack.c.l.b16 %v2098_v13 }
 0x125   : > { %v1642_v30 = vpop.f32.mrf.mxu3  ;;  %v996_v12 = vpop.f32.mrf.mxu1  ;;  %v2106_v44 = vor.u32 %v2105_v61, %v2102_v43 }
 0x126   : > { %v1713_v34 = vadd.f32 %v1642_v30, %v1419_v29  ;;  %v2109_v29 = vshll.u32 %v4693_v21, 16  ;;  %v4510_v30 = vrot.slane %v1069_v10, 9  ;;  %v5035_v10 = vld [vmem:[%s5242_s29 + $0x9c] sm:$0xff] }
 0x127   : > { %4718 = vmatmul.msk.bf16.gmra.mxu0 %vm695_vm3, %v2217_v8  ;;  %v1203_v8 = vrot.slane %v5121_v15, 5 }
 0x128   : > { %v1350_v51 = vpop.f32.mrf.mxu2  ;;  %4493 = vmatmul.msk.bf16.gmra.mxu1 %vm695_vm3, %v5034_v1  ;;  %v5783_v24 = vadd.f32 %v2300_v0, %v1713_v34  ;;  %v2198_v0 = vunpack.c.l.b16 %v2088_v3  ;;  %v997_v34 = vadd.f32 %v996_v12, %v5521_v40  ;;  %v2111_v16 = vrot.slane %v2109_v29, 5 }
 0x129   : > { %v1420_v42 = vadd.f32 %v1350_v51, %v994_v26  ;;  %v2115_v51 = vrot.slane %v2113_v62, 4  ;;  %v2119_v3 = vshll.u32 %v4694_v35, 16 }
 0x12a   : > { %v2218_v40 = vpack.c.b16 %v2199_v56, %v2198_v0  ;;  %v4695_v0 = vld [vmem:[%s5242_s29 + $0xb4] sm:$0xf] }
 0x12b   : > { %v2116_v12 = vor.u32 %v2115_v51, %v2111_v16  ;;  %v2121_v43 = vrot.slane %v2119_v3, 5  ;;  %v2127_v35 = vshll.u32 %v4695_v0, 16 }
 0x12c   : > { %v2302_v55 = vpop.f32.mrf.mxu0 }
 0x12d   : > { %v1644_v26 = vpop.f32.mrf.mxu3  ;;  %4531 = vmatmul.msk.bf16.gmra.mxu2 %vm695_vm3, %v1266_v39  ;;  %v998_v1 = vpop.f32.mrf.mxu1  ;;  %v1204_v39 = vsel %vm5437_vm6, %v1202_v22, %v1203_v8  ;;  %v2117_v8 = vrot.slane %v2116_v12, 4 }
 0x12e   : > { %v1714_v20 = vadd.f32 %v1644_v26, %v1420_v42  ;;  %v1201_v42 = vsel %vm5437_vm6, %v4510_v30, %v1200_v57  ;;  %v1249_v13 = vunpack.c.l.b16 %v1204_v39  ;;  %v2107_v26 = vrot.slane %v2106_v44, 4  ;;  %v5123_v44 = vld [vmem:[%s5242_s29 + $0xb0] sm:$0x1] }
 0x12f   : > { %v999_v57 = vadd.f32 %v998_v1, %v5537_v25  ;;  %v2124_v25 = vshrl.u32 %v4695_v0, 16  ;;  %v2122_v1 = vsel %vm5254_vm2, %v2117_v8, %v2121_v43 }
 0x130   : > { %v1353_v54 = vpop.f32.mrf.mxu2  ;;  %v5796_v21 = vadd.f32 %v2302_v55, %v1714_v20  ;;  %v1248_v55 = vunpack.c.l.b16 %v1201_v42  ;;  %v2112_v51 = vsel %vm5254_vm2, %v2107_v26, %v2111_v16 }
 0x131   : > { %v1421_v60 = vadd.f32 %v1353_v54, %v997_v34  ;;  %v5122_v34 = vld [vmem:[%s5242_s29 + $0xac] sm:$0xf]  ;;  %v1070_v54 = vld [vmem:[%s5242_s29 + $0xa8] sm:$0xe] }
 0x132   : > { %4649 = vmatmul.msk.bf16.gmra.mxu3 %vm695_vm3, %v5053_v6  ;;  %v4696_v6 = vld [vmem:[%s5242_s29 + $0xb8] sm:$0xf]  ;;  %v1267_v61 = vpack.c.b16 %v1249_v13, %v1248_v55  ;;  %v1207_v56 = vrot.slane %v5122_v34, 5  ;;  %v2200_v55 = vunpack.c.l.b16 %v2112_v51  ;;  %v2201_v13 = vunpack.c.l.b16 %v2122_v1  ;;  %v4697_v34 = vld [vmem:[%s5242_s29 + $0xbc] sm:$0x1] }
 0x133   : > { %v2137_v42 = vshrl.u32 %v4696_v6, 16 }
 0x134   : > { %v2305_v18 = vpop.f32.mrf.mxu0 }
 0x135   : > { %v1647_v29 = vpop.f32.mrf.mxu3  ;;  %v1001_v62 = vpop.f32.mrf.mxu1  ;;  %v2139_v43 = vrot.slane %v2137_v42, 4 }
 0x136   : > { %v1715_v15 = vadd.f32 %v1647_v29, %v1421_v60  ;;  %v2133_v60 = vshll.u32 %v4696_v6, 16  ;;  %v5054_v29 = vld [vmem:[%s5242_s29 + $0xa8] sm:$0xff]  ;;  %v1002_v26 = vadd.f32 %v1001_v62, %v5557_v50  ;;  %v2219_v50 = vpack.c.b16 %v2201_v13, %v2200_v55 }
 0x137   : > { %4719 = vmatmul.msk.bf16.gmra.mxu0 %vm695_vm3, %v2218_v40  ;;  %v1210_v40 = vrot.slane %v5123_v44, 5 }
 0x138   : > { %v1355_v20 = vpop.f32.mrf.mxu2  ;;  %4494 = vmatmul.msk.bf16.gmra.mxu1 %vm695_vm3, %v5035_v10  ;;  %v5809_v30 = vadd.f32 %v2305_v18, %v1715_v15  ;;  %v4511_v18 = vrot.slane %v1070_v54, 9  ;;  %v1209_v10 = vrot.slane %v1207_v56, 4  ;;  %v2126_v15 = vrot.slane %v2124_v25, 4  ;;  %v5036_v25 = vld [vmem:[%s5242_s29 + $0xa8] sm:$0xff] }
 0x139   : > { %v1422_v22 = vadd.f32 %v1355_v20, %v999_v57  ;;  %v2129_v57 = vrot.slane %v2127_v35, 5  ;;  %v5821_v8 = vrot.slane %v2133_v60, 5  ;;  %v2143_v60 = vshll.u32 %v4697_v34, 16 }
 0x13b   : > { %v2130_v62 = vor.u32 %v2129_v57, %v2126_v15  ;;  %v2140_v51 = vor.u32 %v2139_v43, %v5821_v8  ;;  %v2145_v15 = vrot.slane %v2143_v60, 5 }
 0x13c   : > { %v2307_v39 = vpop.f32.mrf.mxu0 }
 0x13d   : > { %v1649_v12 = vpop.f32.mrf.mxu3  ;;  %4532 = vmatmul.msk.bf16.gmra.mxu2 %vm695_vm3, %v1267_v61  ;;  %v1003_v3 = vpop.f32.mrf.mxu1  ;;  %v1208_v61 = vsel %vm5437_vm6, %v4511_v18, %v1207_v56  ;;  %v4698_v56 = vld [vmem:[%s5242_s29 + $0xc0] sm:$0xf]  ;;  %v5124_v18 = vld [vmem:[%s5242_s29 + $0x10] sm:$0xf] }
 0x13e   : > { %v1716_v16 = vadd.f32 %v1649_v12, %v1422_v22  ;;  %v1211_v22 = vsel %vm5437_vm6, %v1209_v10, %v1210_v40  ;;  %v1250_v1 = vunpack.c.l.b16 %v1208_v61  ;;  %v4699_v12 = vld [vmem:[%s5242_s29 + $0xc4] sm:$0xf]  ;;  %v2463_v40 = vrot.slane %v5124_v18, 5 }
 0x13f   : > { %v1251_v35 = vunpack.c.l.b16 %v1211_v22  ;;  %v1004_v10 = vadd.f32 %v1003_v3, %v5574_v23  ;;  %v2151_v57 = vshll.u32 %v4698_v56, 16  ;;  %v5125_v22 = vld [vmem:[%s5242_s29 + $0xb8] sm:$0xf]  ;;  %v1071_v3 = vld [vmem:[%s5242_s29 + $0xb4] sm:$0xe] }
 0x140   : > { %v1358_v0 = vpop.f32.mrf.mxu2  ;;  %v5823_v20 = vadd.f32 %v2307_v39, %v1716_v16  ;;  %v2131_v16 = vrot.slane %v2130_v62, 4  ;;  %v1214_v34 = vrot.slane %v5125_v22, 5  ;;  %v2465_v62 = vrot.slane %v2463_v40, 4  ;;  %v5055_v22 = vld [vmem:[%s5242_s29 + $0xb4] sm:$0xff] }
 0x141   : > { %v1423_v6 = vadd.f32 %v1358_v0, %v1002_v26  ;;  %v1268_v13 = vpack.c.b16 %v1251_v35, %v1250_v1  ;;  %v2148_v26 = vshrl.u32 %v4698_v56, 16  ;;  %v2157_v0 = vshll.u32 %v4699_v12, 16 }
 0x142   : > { %6637 = vst [vmem:[#allocation2_spill] sm:$0xff] %v5823_v20  ;;  %4650 = vmatmul.msk.bf16.gmra.mxu3 %vm695_vm3, %v5054_v29  ;;  %v2141_v29 = vrot.slane %v2140_v51, 4  ;;  %v5127_v51 = vld [vmem:[%s5242_s29 + $0x14] sm:$0x1]  ;;  %v2136_v1 = vsel %vm5254_vm2, %v2131_v16, %v5821_v8 }
 0x143   : > { %v2150_v56 = vrot.slane %v2148_v26, 4  ;;  %v2202_v16 = vunpack.c.l.b16 %v2136_v1 }
 0x144   : > { %v2310_v54 = vpop.f32.mrf.mxu0  ;;  %v2146_v35 = vsel %vm5254_vm2, %v2141_v29, %v2145_v15  ;;  %v4700_v15 = vld [vmem:[%s5242_s29 + $0xc8] sm:$0x1] }
 0x145   : > { %v1652_v42 = vpop.f32.mrf.mxu3  ;;  %v1006_v39 = vpop.f32.mrf.mxu1  ;;  %v2203_v29 = vunpack.c.l.b16 %v2146_v35  ;;  %v5037_v35 = vld [vmem:[%s5242_s29 + $0xb4] sm:$0xff] }
 0x146   : > { %v1717_v44 = vadd.f32 %v1652_v42, %v1423_v6  ;;  %v2161_v6 = vshrl.u32 %v4699_v12, 16  ;;  %v2466_v42 = vrot.slane %v5127_v51, 5  ;;  %v5851_v12 = vrot.slane %v2157_v0, 5 }
 0x147   : > { %4720 = vmatmul.msk.bf16.gmra.mxu0 %vm695_vm3, %v2219_v50  ;;  %v5126_v50 = vld [vmem:[%s5242_s29 + $0xbc] sm:$0x1]  ;;  %v1216_v51 = vrot.slane %v1214_v34, 4  ;;  %v1007_v8 = vadd.f32 %v1006_v39, %v5594_v45 }
 0x148   : > { %v1360_v55 = vpop.f32.mrf.mxu2  ;;  %4495 = vmatmul.msk.bf16.gmra.mxu1 %vm695_vm3, %v5036_v25  ;;  %v5839_v61 = vadd.f32 %v2310_v54, %v1717_v44  ;;  %v1217_v23 = vrot.slane %v5126_v50, 5  ;;  %v2153_v44 = vrot.slane %v2151_v57, 5  ;;  %v2163_v18 = vrot.slane %v2161_v6, 4 }
 0x149   : > { %v1424_v43 = vadd.f32 %v1360_v55, %v1004_v10  ;;  %v4723_v10 = vld [vmem:[%s5242_s29 + $0xc] sm:$0xe]  ;;  %v4512_v50 = vrot.slane %v1071_v3, 9  ;;  %v2467_v26 = vsel %vm5437_vm6, %v2465_v62, %v2466_v42  ;;  %v4895_v62 = vld [vmem:[%s5242_s29 + $0x18] sm:$0xf] }
 0x14a   : > { %6638 = vst [vmem:[#allocation3_spill] sm:$0xff] %v5839_v61  ;;  %v4739_v61 = vrot.slane %v4723_v10, 9  ;;  %v2577_v6 = vunpack.c.l.b16 %v2467_v26  ;;  %v1218_v39 = vsel %vm5437_vm6, %v1216_v51, %v1217_v23  ;;  %v2164_v3 = vor.u32 %v2163_v18, %v5851_v12 }
 0x14b   : > { %v1215_v45 = vsel %vm5437_vm6, %v4512_v50, %v1214_v34  ;;  %v1253_v34 = vunpack.c.l.b16 %v1218_v39  ;;  %v3142_v18 = vshrl.u32 %v4895_v62, 16  ;;  %v4897_v39 = vld [vmem:[%s5242_s29 + $0x20] sm:$0x1] }
 0x14c   : > { %v2312_v25 = vpop.f32.mrf.mxu0  ;;  %v1252_v10 = vunpack.c.l.b16 %v1215_v45  ;;  %v2165_v23 = vrot.slane %v2164_v3, 4 }
 0x14d   : > { %v1654_v54 = vpop.f32.mrf.mxu3  ;;  %4533 = vmatmul.msk.bf16.gmra.mxu2 %vm695_vm3, %v1268_v13  ;;  %v1008_v60 = vpop.f32.mrf.mxu1  ;;  %v2464_v13 = vsel %vm5437_vm6, %v4739_v61, %v2463_v40  ;;  %v2167_v40 = vshll.u32 %v4700_v15, 16  ;;  %v2220_v61 = vpack.c.b16 %v2203_v29, %v2202_v16 }
 0x14e   : > { %v1718_v55 = vadd.f32 %v1654_v54, %v1424_v43  ;;  %v2154_v43 = vor.u32 %v2153_v44, %v2150_v56  ;;  %v2576_v0 = vunpack.c.l.b16 %v2464_v13  ;;  %v5874_v54 = vld [vmem:[%s5242_s29 + $0x1c] sm:$0xf]  ;;  %v1269_v13 = vpack.c.b16 %v1253_v34, %v1252_v10 }
 0x14f   : > { %v2169_v51 = vrot.slane %v2167_v40, 5  ;;  %v3155_v16 = vshrl.u32 %v5874_v54, 16  ;;  %v3161_v34 = vshll.u32 %v4897_v39, 16 }
 0x150   : > { %v1363_v20 = vpop.f32.mrf.mxu2  ;;  %v5867_v1 = vpack.c.b16 %v2577_v6, %v2576_v0  ;;  %v5870_v42 = vadd.f32 %v2312_v25, %v1718_v55  ;;  %v3145_v25 = vshll.u32 %v4895_v62, 16  ;;  %v3151_v55 = vshll.u32 %v5874_v54, 16  ;;  %v5056_v62 = vld [vmem:[%s5242_s29 + $0xc0] sm:$0xff] }
 0x151   : > { %v1425_v57 = vadd.f32 %v1363_v20, %v1007_v8  ;;  %v1009_v8 = vadd.f32 %v1008_v60, %v5614_v9  ;;  %v2170_v9 = vsel %vm5254_vm2, %v2165_v23, %v2169_v51  ;;  %v3144_v60 = vrot.slane %v3142_v18, 4  ;;  %v4898_v23 = vld [vmem:[%s5242_s29 + $0x24] sm:$0xf] }
 0x152   : > { %4651 = vmatmul.msk.bf16.gmra.mxu3 %vm695_vm3, %v5055_v22  ;;  %v2155_v22 = vrot.slane %v2154_v43, 4  ;;  %v3147_v43 = vrot.slane %v3145_v25, 5  ;;  %v3153_v0 = vrot.slane %v3151_v55, 5  ;;  %v3157_v6 = vrot.slane %v3155_v16, 4  ;;  %v5895_v55 = vld [vmem:[%s5242_s29 + $0x28] sm:$0xf] }
 0x153   : > { %v3163_v25 = vrot.slane %v3161_v34, 5 }
 0x154   : > { %v2315_v20 = vpop.f32.mrf.mxu0  ;;  %v3158_v10 = vor.u32 %v3157_v6, %v3153_v0  ;;  %v5129_v6 = vld [vmem:[%s5242_s29 + $0x20] sm:$0x1] }
 0x155   : > { %v1657_v56 = vpop.f32.mrf.mxu3  ;;  %v1011_v44 = vpop.f32.mrf.mxu1 }
 0x156   : > { %v1719_v50 = vadd.f32 %v1657_v56, %v1425_v57  ;;  %v2160_v57 = vsel %vm5254_vm2, %v2155_v22, %v5851_v12  ;;  %v1012_v12 = vadd.f32 %v1011_v44, %v5637_v48  ;;  %v3148_v56 = vor.u32 %v3147_v43, %v3144_v60  ;;  %v4965_v44 = vld [vmem:[%s5242_s29 + $0x18] sm:$0xe]  ;;  %v5128_v60 = vld [vmem:[%s5242_s29 + $0x1c] sm:$0xf] }
 0x157   : > { %4721 = vmatmul.msk.bf16.gmra.mxu0 %vm695_vm3, %v2220_v61  ;;  %v2470_v43 = vrot.slane %v5128_v60, 5 }
 0x158   : > { %v1365_v29 = vpop.f32.mrf.mxu2  ;;  %4496 = vmatmul.msk.bf16.gmra.mxu1 %vm695_vm3, %v5037_v35  ;;  %v5881_v26 = vadd.f32 %v2315_v20, %v1719_v50  ;;  %v2204_v20 = vunpack.c.l.b16 %v2160_v57  ;;  %v2205_v35 = vunpack.c.l.b16 %v2170_v9  ;;  %v3149_v18 = vrot.slane %v3148_v56, 4 }
 0x159   : > { %v1426_v15 = vadd.f32 %v1365_v29, %v1009_v8  ;;  %v3159_v8 = vrot.slane %v3158_v10, 4  ;;  %v3817_v29 = vrot.slane %v5874_v54, 5  ;;  %v4981_v56 = vrot.slane %v4965_v44, 9 }
 0x15a   : > { %v2221_v51 = vpack.c.b16 %v2205_v35, %v2204_v20  ;;  %v4724_v20 = vld [vmem:[%s5242_s29 + $0x18] sm:$0xe]  ;;  %v3175_v35 = vshll.u32 %v5895_v55, 16  ;;  %v3154_v54 = vsel %vm5254_vm2, %v3149_v18, %v3153_v0 }
 0x15b   : > { %v3819_v34 = vrot.slane %v3817_v29, 4  ;;  %v4740_v60 = vrot.slane %v4724_v20, 9  ;;  %v3528_v0 = vunpack.c.l.b16 %v3154_v54 }
 0x15c   : > { %v2317_v45 = vpop.f32.mrf.mxu0 }
 0x15d   : > { %v1659_v3 = vpop.f32.mrf.mxu3  ;;  %4534 = vmatmul.msk.bf16.gmra.mxu2 %vm695_vm3, %v1269_v13  ;;  %v1013_v40 = vpop.f32.mrf.mxu1  ;;  %v3169_v13 = vshll.u32 %v4898_v23, 16 }
 0x15e   : > { %v1720_v61 = vadd.f32 %v1659_v3, %v1426_v15  ;;  %v3166_v15 = vshrl.u32 %v4898_v23, 16  ;;  %v2473_v3 = vrot.slane %v5129_v6, 5  ;;  %v3177_v6 = vrot.slane %v3175_v35, 5 }
 0x15f   : > { %v3171_v23 = vrot.slane %v3169_v13, 5 }
 0x160   : > { %v1368_v22 = vpop.f32.mrf.mxu2  ;;  %v5897_v16 = vadd.f32 %v2317_v45, %v1720_v61  ;;  %v3179_v45 = vshrl.u32 %v5895_v55, 16  ;;  %v1014_v61 = vadd.f32 %v1013_v40, %v5657_v17  ;;  %v2472_v17 = vrot.slane %v2470_v43, 4 }
 0x161   : > { %v1427_v50 = vadd.f32 %v1368_v22, %v1012_v12  ;;  %v3164_v12 = vsel %vm5254_vm2, %v3159_v8, %v3163_v25  ;;  %v3820_v22 = vrot.slane %v4897_v39, 5  ;;  %v5918_v25 = vld [vmem:[%s5242_s29 + $0x2c] sm:$0x1] }
 0x162   : > { %4652 = vmatmul.msk.bf16.gmra.mxu3 %vm695_vm3, %v5056_v62  ;;  %v3529_v18 = vunpack.c.l.b16 %v3164_v12  ;;  %v3181_v8 = vrot.slane %v3179_v45, 4 }
 0x163   : > { %v3821_v39 = vsel %vm5437_vm6, %v3819_v34, %v3820_v22 }
 0x164   : > { %v2320_v48 = vpop.f32.mrf.mxu0  ;;  %v3560_v45 = vpack.c.b16 %v3529_v18, %v3528_v0  ;;  %v5938_v18 = vld [vmem:[%s5242_s29 + $0x34] sm:$0xf] }
 0x165   : > { %v1662_v57 = vpop.f32.mrf.mxu3  ;;  %v1016_v9 = vpop.f32.mrf.mxu1 }
 0x166   : > { %v1721_v62 = vadd.f32 %v1662_v57, %v1427_v50  ;;  %v3168_v50 = vrot.slane %v3166_v15, 4  ;;  %v1017_v54 = vadd.f32 %v1016_v9, %v5539_v28 }
 0x167   : > { %4722 = vmatmul.msk.bf16.gmra.mxu0 %vm695_vm3, %v2221_v51  ;;  %v5060_v51 = vld [vmem:[%s5242_s29 + $0x18] sm:$0xff] }
 0x168   : > { %v1370_v10 = vpop.f32.mrf.mxu2  ;;  %4761 = vmatmul.msk.bf16.vlgmr.msra.gmra.mxu1 %vm695_vm3, %v5867_v1  ;;  %v5915_v40 = vadd.f32 %v2320_v48, %v1721_v62  ;;  %v3818_v1 = vsel %vm5437_vm6, %v4981_v56, %v3817_v29  ;;  %v2471_v48 = vsel %vm5437_vm6, %v4740_v60, %v2470_v43  ;;  %v2474_v62 = vsel %vm5437_vm6, %v2472_v17, %v2473_v3  ;;  %v4901_v17 = vld [vmem:[%s5242_s29 + $0x30] sm:$0xf] }
 0x169   : > { %v1428_v57 = vadd.f32 %v1370_v10, %v1014_v61  ;;  %v3172_v20 = vor.u32 %v3171_v23, %v3168_v50  ;;  %v3182_v61 = vor.u32 %v3181_v8, %v3177_v6  ;;  %v3185_v29 = vshll.u32 %v5918_v25, 16  ;;  %v4966_v23 = vld [vmem:[%s5242_s29 + $0x24] sm:$0xe] }
 0x16a   : > { %v3930_v12 = vunpack.c.l.b16 %v3818_v1  ;;  %v3931_v56 = vunpack.c.l.b16 %v3821_v39  ;;  %v2578_v34 = vunpack.c.l.b16 %v2471_v48  ;;  %v2579_v22 = vunpack.c.l.b16 %v2474_v62  ;;  %v5130_v62 = vld [vmem:[%s5242_s29 + $0x28] sm:$0xf] }
 0x16b   : > { %v3183_v3 = vrot.slane %v3182_v61, 4  ;;  %v3187_v50 = vrot.slane %v3185_v29, 5  ;;  %v3827_v48 = vrot.slane %v5918_v25, 5  ;;  %v3190_v61 = vshrl.u32 %v4901_v17, 16  ;;  %v5131_v25 = vld [vmem:[%s5242_s29 + $0x2c] sm:$0x1] }
 0x16c   : > { %v2322_v44 = vpop.f32.mrf.mxu0  ;;  %v3962_v60 = vpack.c.b16 %v3931_v56, %v3930_v12  ;;  %v2609_v0 = vpack.c.b16 %v2579_v22, %v2578_v34  ;;  %v3203_v12 = vshrl.u32 %v5938_v18, 16  ;;  %v2480_v56 = vrot.slane %v5131_v25, 5  ;;  %v5061_v22 = vld [vmem:[%s5242_s29 + $0x24] sm:$0xff] }
 0x16d   : > { %v1664_v15 = vpop.f32.mrf.mxu3  ;;  %4879 = vmatmul.msk.bf16.vlgmr.msra.gmra.mxu2 %vm695_vm3, %v5060_v51  ;;  %v1018_v13 = vpop.f32.mrf.mxu1  ;;  %v3173_v51 = vrot.slane %v3172_v20, 4 }
 0x16e   : > { %v1722_v35 = vadd.f32 %v1664_v15, %v1428_v57  ;;  %v3824_v57 = vrot.slane %v5895_v55, 5  ;;  %v4982_v15 = vrot.slane %v4966_v23, 9  ;;  %v2477_v55 = vrot.slane %v5130_v62, 5 }
 0x16f   : > { %v3178_v39 = vsel %vm5254_vm2, %v3173_v51, %v3177_v6  ;;  %v1019_v29 = vadd.f32 %v1018_v13, %v5560_v58  ;;  %v3199_v6 = vshll.u32 %v5938_v18, 16  ;;  %v3205_v62 = vrot.slane %v3203_v12, 4 }
 0x170   : > { %v1373_v10 = vpop.f32.mrf.mxu2  ;;  %v5935_v28 = vadd.f32 %v2322_v44, %v1722_v35  ;;  %v3188_v44 = vsel %vm5254_vm2, %v3183_v3, %v3187_v50  ;;  %v3826_v35 = vrot.slane %v3824_v57, 4  ;;  %v2479_v51 = vrot.slane %v2477_v55, 4 }
 0x171   : > { %v1429_v43 = vadd.f32 %v1373_v10, %v1017_v54  ;;  %v3193_v54 = vshll.u32 %v4901_v17, 16  ;;  %v3530_v50 = vunpack.c.l.b16 %v3178_v39  ;;  %v3531_v23 = vunpack.c.l.b16 %v3188_v44 }
 0x172   : > { %4949 = vmatmul.msk.bf16.vlgmr.msra.gmra.mxu3 %vm695_vm3, %v3560_v45  ;;  %v4725_v45 = vld [vmem:[%s5242_s29 + $0x24] sm:$0xe]  ;;  %v3825_v58 = vsel %vm5437_vm6, %v4982_v15, %v3824_v57  ;;  %v3828_v13 = vsel %vm5437_vm6, %v3826_v35, %v3827_v48  ;;  %v2481_v57 = vsel %vm5437_vm6, %v2479_v51, %v2480_v56 }
 0x173   : > { %v3195_v17 = vrot.slane %v3193_v54, 5  ;;  %v3561_v48 = vpack.c.b16 %v3531_v23, %v3530_v50  ;;  %v3933_v44 = vunpack.c.l.b16 %v3828_v13  ;;  %v3831_v13 = vrot.slane %v5938_v18, 5 }
 0x174   : > { %v2325_v9 = vpop.f32.mrf.mxu0 }
 0x175   : > { %v1667_v8 = vpop.f32.mrf.mxu3  ;;  %v1021_v1 = vpop.f32.mrf.mxu1 }
 0x176   : > { %v1723_v20 = vadd.f32 %v1667_v8, %v1429_v43  ;;  %v4741_v43 = vrot.slane %v4725_v45, 9  ;;  %v3201_v8 = vrot.slane %v3199_v6, 5  ;;  %v1022_v35 = vadd.f32 %v1021_v1, %v5577_v11  ;;  %v5973_v11 = vld [vmem:[%s5242_s29 + $0x40] sm:$0xf] }
 0x177   : > { %5003 = vmatmul.msk.bf16.vlgmr.msra.gmra.mxu0 %vm695_vm3, %v3962_v60  ;;  %v3192_v60 = vrot.slane %v3190_v61, 4 }
 0x178   : > { %v1375_v10 = vpop.f32.mrf.mxu2  ;;  %4762 = vmatmul.msk.bf16.gmra.mxu1 %vm695_vm3, %v2609_v0  ;;  %v5954_v3 = vadd.f32 %v2325_v9, %v1723_v20  ;;  %v5961_v0 = vld [vmem:[%s5242_s29 + $0x38] sm:$0x1]  ;;  %v2478_v39 = vsel %vm5437_vm6, %v4741_v43, %v2477_v55  ;;  %v3932_v20 = vunpack.c.l.b16 %v3825_v58  ;;  %v3206_v61 = vor.u32 %v3205_v62, %v3201_v8  ;;  %v4904_v55 = vld [vmem:[%s5242_s29 + $0x3c] sm:$0xf]  ;;  %v4967_v58 = vld [vmem:[%s5242_s29 + $0x30] sm:$0xe] }
 0x179   : > { %v1430_v34 = vadd.f32 %v1375_v10, %v1019_v29  ;;  %v3196_v45 = vor.u32 %v3195_v17, %v3192_v60  ;;  %v3209_v54 = vshll.u32 %v5961_v0, 16  ;;  %v2580_v12 = vunpack.c.l.b16 %v2478_v39  ;;  %v5132_v39 = vld [vmem:[%s5242_s29 + $0x34] sm:$0xf] }
 0x17a   : > { %v2581_v10 = vunpack.c.l.b16 %v2481_v57  ;;  %v3963_v56 = vpack.c.b16 %v3933_v44, %v3932_v20  ;;  %v3207_v43 = vrot.slane %v3206_v61, 4  ;;  %v3214_v60 = vshrl.u32 %v4904_v55, 16 }
 0x17b   : > { %v3211_v51 = vrot.slane %v3209_v54, 5  ;;  %v3217_v17 = vshll.u32 %v4904_v55, 16  ;;  %v2484_v57 = vrot.slane %v5132_v39, 5  ;;  %v4983_v54 = vrot.slane %v4967_v58, 9 }
 0x17c   : > { %v2327_v25 = vpop.f32.mrf.mxu0  ;;  %v2610_v23 = vpack.c.b16 %v2581_v10, %v2580_v12  ;;  %v3833_v12 = vrot.slane %v3831_v13, 4  ;;  %v3834_v10 = vrot.slane %v5961_v0, 5 }
 0x17d   : > { %v1669_v29 = vpop.f32.mrf.mxu3  ;;  %4880 = vmatmul.msk.bf16.gmra.mxu2 %vm695_vm3, %v5061_v22  ;;  %v1023_v9 = vpop.f32.mrf.mxu1  ;;  %v3212_v61 = vsel %vm5254_vm2, %v3207_v43, %v3211_v51  ;;  %v3219_v55 = vrot.slane %v3217_v17, 5  ;;  %v5996_v51 = vld [vmem:[%s5242_s29 + $0x44] sm:$0x1] }
 0x17e   : > { %v1724_v15 = vadd.f32 %v1669_v29, %v1430_v34  ;;  %v3197_v34 = vrot.slane %v3196_v45, 4  ;;  %v3223_v45 = vshll.u32 %v5973_v11, 16  ;;  %v3835_v0 = vsel %vm5437_vm6, %v3833_v12, %v3834_v10 }
 0x180   : > { %v1378_v6 = vpop.f32.mrf.mxu2  ;;  %v5975_v1 = vadd.f32 %v2327_v25, %v1724_v15  ;;  %v3227_v25 = vshrl.u32 %v5973_v11, 16  ;;  %v1024_v15 = vadd.f32 %v1023_v9, %v5598_v47  ;;  %v3202_v18 = vsel %vm5254_vm2, %v3197_v34, %v3201_v8 }
 0x181   : > { %v1431_v22 = vadd.f32 %v1378_v6, %v1022_v35  ;;  %v4726_v35 = vld [vmem:[%s5242_s29 + $0x30] sm:$0xe]  ;;  %v2486_v47 = vrot.slane %v2484_v57, 4  ;;  %v3532_v8 = vunpack.c.l.b16 %v3202_v18  ;;  %v3533_v34 = vunpack.c.l.b16 %v3212_v61 }
 0x182   : > { %4950 = vmatmul.msk.bf16.gmra.mxu3 %vm695_vm3, %v3561_v48  ;;  %v5133_v48 = vld [vmem:[%s5242_s29 + $0x38] sm:$0x1]  ;;  %v4742_v39 = vrot.slane %v4726_v35, 9  ;;  %v3229_v43 = vrot.slane %v3227_v25, 4 }
 0x183   : > { %v2487_v20 = vrot.slane %v5133_v48, 5  ;;  %v3225_v48 = vrot.slane %v3223_v45, 5  ;;  %v3562_v25 = vpack.c.b16 %v3533_v34, %v3532_v8  ;;  %v6016_v34 = vld [vmem:[%s5242_s29 + $0x4c] sm:$0xf] }
 0x184   : > { %v2330_v50 = vpop.f32.mrf.mxu0 }
 0x185   : > { %v1672_v62 = vpop.f32.mrf.mxu3  ;;  %v1026_v29 = vpop.f32.mrf.mxu1 }
 0x186   : > { %v1725_v44 = vadd.f32 %v1672_v62, %v1431_v22  ;;  %v3216_v22 = vrot.slane %v3214_v60, 4  ;;  %v1027_v18 = vadd.f32 %v1026_v29, %v5621_v14 }
 0x187   : > { %5004 = vmatmul.msk.bf16.gmra.mxu0 %vm695_vm3, %v3963_v56  ;;  %v5062_v56 = vld [vmem:[%s5242_s29 + $0x30] sm:$0xff] }
 0x188   : > { %v1380_v6 = vpop.f32.mrf.mxu2  ;;  %4763 = vmatmul.msk.bf16.gmra.mxu1 %vm695_vm3, %v2610_v23  ;;  %v5993_v9 = vadd.f32 %v2330_v50, %v1725_v44  ;;  %v3832_v23 = vsel %vm5437_vm6, %v4983_v54, %v3831_v13  ;;  %v2485_v50 = vsel %vm5437_vm6, %v4742_v39, %v2484_v57  ;;  %v2488_v44 = vsel %vm5437_vm6, %v2486_v47, %v2487_v20  ;;  %v4907_v47 = vld [vmem:[%s5242_s29 + $0x48] sm:$0xf] }
 0x189   : > { %v1432_v62 = vadd.f32 %v1380_v6, %v1024_v15  ;;  %v3220_v35 = vor.u32 %v3219_v55, %v3216_v22  ;;  %v3230_v15 = vor.u32 %v3229_v43, %v3225_v48  ;;  %v3233_v13 = vshll.u32 %v5996_v51, 16  ;;  %v4968_v55 = vld [vmem:[%s5242_s29 + $0x3c] sm:$0xe] }
 0x18a   : > { %v3934_v61 = vunpack.c.l.b16 %v3832_v23  ;;  %v3935_v54 = vunpack.c.l.b16 %v3835_v0  ;;  %v2582_v12 = vunpack.c.l.b16 %v2485_v50  ;;  %v2583_v10 = vunpack.c.l.b16 %v2488_v44  ;;  %v5134_v44 = vld [vmem:[%s5242_s29 + $0x40] sm:$0xf] }
 0x18b   : > { %v3231_v20 = vrot.slane %v3230_v15, 4  ;;  %v3235_v22 = vrot.slane %v3233_v13, 5  ;;  %v3841_v50 = vrot.slane %v5996_v51, 5  ;;  %v3238_v15 = vshrl.u32 %v4907_v47, 16  ;;  %v5135_v51 = vld [vmem:[%s5242_s29 + $0x44] sm:$0x1] }
 0x18c   : > { %v2332_v58 = vpop.f32.mrf.mxu0  ;;  %v3964_v39 = vpack.c.b16 %v3935_v54, %v3934_v61  ;;  %v2611_v8 = vpack.c.b16 %v2583_v10, %v2582_v12  ;;  %v3251_v61 = vshrl.u32 %v6016_v34, 16  ;;  %v2494_v54 = vrot.slane %v5135_v51, 5  ;;  %v5063_v10 = vld [vmem:[%s5242_s29 + $0x3c] sm:$0xff] }
 0x18d   : > { %v1674_v60 = vpop.f32.mrf.mxu3  ;;  %4881 = vmatmul.msk.bf16.gmra.mxu2 %vm695_vm3, %v5062_v56  ;;  %v1028_v17 = vpop.f32.mrf.mxu1  ;;  %v3221_v56 = vrot.slane %v3220_v35, 4 }
 0x18e   : > { %v1726_v45 = vadd.f32 %v1674_v60, %v1432_v62  ;;  %v3838_v62 = vrot.slane %v5973_v11, 5  ;;  %v4984_v60 = vrot.slane %v4968_v55, 9  ;;  %v2491_v11 = vrot.slane %v5134_v44, 5 }
 0x18f   : > { %v3226_v0 = vsel %vm5254_vm2, %v3221_v56, %v3225_v48  ;;  %v1029_v13 = vadd.f32 %v1028_v17, %v5639_v52  ;;  %v3247_v48 = vshll.u32 %v6016_v34, 16  ;;  %v3253_v44 = vrot.slane %v3251_v61, 4 }
 0x190   : > { %v1383_v6 = vpop.f32.mrf.mxu2  ;;  %v6013_v14 = vadd.f32 %v2332_v58, %v1726_v45  ;;  %v3236_v58 = vsel %vm5254_vm2, %v3231_v20, %v3235_v22  ;;  %v3840_v45 = vrot.slane %v3838_v62, 4  ;;  %v2493_v56 = vrot.slane %v2491_v11, 4 }
 0x191   : > { %v1433_v57 = vadd.f32 %v1383_v6, %v1027_v18  ;;  %v3241_v18 = vshll.u32 %v4907_v47, 16  ;;  %v3534_v22 = vunpack.c.l.b16 %v3226_v0  ;;  %v3535_v55 = vunpack.c.l.b16 %v3236_v58 }
 0x192   : > { %4951 = vmatmul.msk.bf16.gmra.mxu3 %vm695_vm3, %v3562_v25  ;;  %v4727_v25 = vld [vmem:[%s5242_s29 + $0x3c] sm:$0xe]  ;;  %v3839_v52 = vsel %vm5437_vm6, %v4984_v60, %v3838_v62  ;;  %v3842_v17 = vsel %vm5437_vm6, %v3840_v45, %v3841_v50  ;;  %v2495_v62 = vsel %vm5437_vm6, %v2493_v56, %v2494_v54 }
 0x193   : > { %v3243_v47 = vrot.slane %v3241_v18, 5  ;;  %v3563_v50 = vpack.c.b16 %v3535_v55, %v3534_v22  ;;  %v3937_v58 = vunpack.c.l.b16 %v3842_v17  ;;  %v3845_v17 = vrot.slane %v6016_v34, 5 }
 0x194   : > { %v2335_v29 = vpop.f32.mrf.mxu0 }
 0x195   : > { %v1677_v43 = vpop.f32.mrf.mxu3  ;;  %v1031_v23 = vpop.f32.mrf.mxu1 }
 0x196   : > { %v1727_v35 = vadd.f32 %v1677_v43, %v1433_v57  ;;  %v4743_v57 = vrot.slane %v4727_v25, 9  ;;  %v3249_v43 = vrot.slane %v3247_v48, 5  ;;  %v1032_v45 = vadd.f32 %v1031_v23, %v5660_v33  ;;  %v6051_v33 = vld [vmem:[%s5242_s29 + $0x58] sm:$0xf] }
 0x197   : > { %5005 = vmatmul.msk.bf16.gmra.mxu0 %vm695_vm3, %v3964_v39  ;;  %v3240_v39 = vrot.slane %v3238_v15, 4 }
 0x198   : > { %v1385_v6 = vpop.f32.mrf.mxu2  ;;  %4764 = vmatmul.msk.bf16.gmra.mxu1 %vm695_vm3, %v2611_v8  ;;  %v6032_v20 = vadd.f32 %v2335_v29, %v1727_v35  ;;  %v6039_v8 = vld [vmem:[%s5242_s29 + $0x50] sm:$0x1]  ;;  %v2492_v0 = vsel %vm5437_vm6, %v4743_v57, %v2491_v11  ;;  %v3936_v35 = vunpack.c.l.b16 %v3839_v52  ;;  %v3254_v15 = vor.u32 %v3253_v44, %v3249_v43  ;;  %v4910_v11 = vld [vmem:[%s5242_s29 + $0x54] sm:$0xf]  ;;  %v4969_v52 = vld [vmem:[%s5242_s29 + $0x48] sm:$0xe] }
 0x199   : > { %v1434_v12 = vadd.f32 %v1385_v6, %v1029_v13  ;;  %v3244_v25 = vor.u32 %v3243_v47, %v3240_v39  ;;  %v3257_v18 = vshll.u32 %v6039_v8, 16  ;;  %v2584_v61 = vunpack.c.l.b16 %v2492_v0  ;;  %v5136_v0 = vld [vmem:[%s5242_s29 + $0x4c] sm:$0xf] }
 0x19a   : > { %v2585_v6 = vunpack.c.l.b16 %v2495_v62  ;;  %v3965_v54 = vpack.c.b16 %v3937_v58, %v3936_v35  ;;  %v3255_v57 = vrot.slane %v3254_v15, 4  ;;  %v3262_v39 = vshrl.u32 %v4910_v11, 16 }
 0x19b   : > { %v3259_v56 = vrot.slane %v3257_v18, 5  ;;  %v3265_v47 = vshll.u32 %v4910_v11, 16  ;;  %v2498_v62 = vrot.slane %v5136_v0, 5  ;;  %v4985_v18 = vrot.slane %v4969_v52, 9 }
 0x19c   : > { %v2337_v51 = vpop.f32.mrf.mxu0  ;;  %v2612_v55 = vpack.c.b16 %v2585_v6, %v2584_v61  ;;  %v3847_v61 = vrot.slane %v3845_v17, 4  ;;  %v3848_v6 = vrot.slane %v6039_v8, 5 }
 0x19d   : > { %v1679_v13 = vpop.f32.mrf.mxu3  ;;  %4882 = vmatmul.msk.bf16.gmra.mxu2 %vm695_vm3, %v5063_v10  ;;  %v1033_v29 = vpop.f32.mrf.mxu1  ;;  %v3260_v15 = vsel %vm5254_vm2, %v3255_v57, %v3259_v56  ;;  %v3267_v11 = vrot.slane %v3265_v47, 5  ;;  %v6074_v56 = vld [vmem:[%s5242_s29 + $0x5c] sm:$0x1] }
 0x19e   : > { %v1728_v60 = vadd.f32 %v1679_v13, %v1434_v12  ;;  %v3245_v12 = vrot.slane %v3244_v25, 4  ;;  %v3271_v25 = vshll.u32 %v6051_v33, 16  ;;  %v3849_v8 = vsel %vm5437_vm6, %v3847_v61, %v3848_v6 }
 0x1a0   : > { %v1388_v48 = vpop.f32.mrf.mxu2  ;;  %v6053_v23 = vadd.f32 %v2337_v51, %v1728_v60  ;;  %v3275_v51 = vshrl.u32 %v6051_v33, 16  ;;  %v1034_v60 = vadd.f32 %v1033_v29, %v5675_v2  ;;  %v3250_v34 = vsel %vm5254_vm2, %v3245_v12, %v3249_v43 }
 0x1a1   : > { %v1435_v10 = vadd.f32 %v1388_v48, %v1032_v45  ;;  %v4728_v45 = vld [vmem:[%s5242_s29 + $0x48] sm:$0xe]  ;;  %v2500_v2 = vrot.slane %v2498_v62, 4  ;;  %v3536_v43 = vunpack.c.l.b16 %v3250_v34  ;;  %v3537_v12 = vunpack.c.l.b16 %v3260_v15 }
 0x1a2   : > { %4952 = vmatmul.msk.bf16.gmra.mxu3 %vm695_vm3, %v3563_v50  ;;  %v5137_v50 = vld [vmem:[%s5242_s29 + $0x50] sm:$0x1]  ;;  %v4744_v0 = vrot.slane %v4728_v45, 9  ;;  %v3277_v57 = vrot.slane %v3275_v51, 4 }
 0x1a3   : > { %v2501_v35 = vrot.slane %v5137_v50, 5  ;;  %v3273_v50 = vrot.slane %v3271_v25, 5  ;;  %v3564_v51 = vpack.c.b16 %v3537_v12, %v3536_v43  ;;  %v6094_v12 = vld [vmem:[%s5242_s29 + $0x64] sm:$0xf] }
 0x1a4   : > { %v2340_v22 = vpop.f32.mrf.mxu0 }
 0x1a5   : > { %v1682_v44 = vpop.f32.mrf.mxu3  ;;  %v1036_v13 = vpop.f32.mrf.mxu1 }
 0x1a6   : > { %v1729_v58 = vadd.f32 %v1682_v44, %v1435_v10  ;;  %v3264_v10 = vrot.slane %v3262_v39, 4  ;;  %v1037_v34 = vadd.f32 %v1036_v13, %v5551_v41 }
 0x1a7   : > { %5006 = vmatmul.msk.bf16.gmra.mxu0 %vm695_vm3, %v3965_v54  ;;  %v5064_v54 = vld [vmem:[%s5242_s29 + $0x48] sm:$0xff] }
 0x1a8   : > { %v1390_v48 = vpop.f32.mrf.mxu2  ;;  %4765 = vmatmul.msk.bf16.gmra.mxu1 %vm695_vm3, %v2612_v55  ;;  %v6071_v29 = vadd.f32 %v2340_v22, %v1729_v58  ;;  %v3846_v55 = vsel %vm5437_vm6, %v4985_v18, %v3845_v17  ;;  %v2499_v22 = vsel %vm5437_vm6, %v4744_v0, %v2498_v62  ;;  %v2502_v58 = vsel %vm5437_vm6, %v2500_v2, %v2501_v35  ;;  %v4913_v2 = vld [vmem:[%s5242_s29 + $0x60] sm:$0xf] }
 0x1a9   : > { %v1436_v44 = vadd.f32 %v1390_v48, %v1034_v60  ;;  %v3268_v45 = vor.u32 %v3267_v11, %v3264_v10  ;;  %v3278_v60 = vor.u32 %v3277_v57, %v3273_v50  ;;  %v3281_v17 = vshll.u32 %v6074_v56, 16  ;;  %v4970_v11 = vld [vmem:[%s5242_s29 + $0x54] sm:$0xe] }
 0x1aa   : > { %v3938_v15 = vunpack.c.l.b16 %v3846_v55  ;;  %v3939_v18 = vunpack.c.l.b16 %v3849_v8  ;;  %v2586_v61 = vunpack.c.l.b16 %v2499_v22  ;;  %v2587_v6 = vunpack.c.l.b16 %v2502_v58  ;;  %v5138_v58 = vld [vmem:[%s5242_s29 + $0x58] sm:$0xf] }
 0x1ab   : > { %v3279_v35 = vrot.slane %v3278_v60, 4  ;;  %v3283_v10 = vrot.slane %v3281_v17, 5  ;;  %v3855_v22 = vrot.slane %v6074_v56, 5  ;;  %v3286_v60 = vshrl.u32 %v4913_v2, 16  ;;  %v5139_v56 = vld [vmem:[%s5242_s29 + $0x5c] sm:$0x1] }
 0x1ac   : > { %v2342_v52 = vpop.f32.mrf.mxu0  ;;  %v3966_v0 = vpack.c.b16 %v3939_v18, %v3938_v15  ;;  %v2613_v43 = vpack.c.b16 %v2587_v6, %v2586_v61  ;;  %v3299_v15 = vshrl.u32 %v6094_v12, 16  ;;  %v2508_v18 = vrot.slane %v5139_v56, 5  ;;  %v5065_v6 = vld [vmem:[%s5242_s29 + $0x54] sm:$0xff] }
 0x1ad   : > { %v1684_v39 = vpop.f32.mrf.mxu3  ;;  %4883 = vmatmul.msk.bf16.gmra.mxu2 %vm695_vm3, %v5064_v54  ;;  %v1038_v47 = vpop.f32.mrf.mxu1  ;;  %v3269_v54 = vrot.slane %v3268_v45, 4 }
 0x1ae   : > { %v1730_v25 = vadd.f32 %v1684_v39, %v1436_v44  ;;  %v3852_v44 = vrot.slane %v6051_v33, 5  ;;  %v4986_v39 = vrot.slane %v4970_v11, 9  ;;  %v2505_v33 = vrot.slane %v5138_v58, 5 }
 0x1af   : > { %v3274_v8 = vsel %vm5254_vm2, %v3269_v54, %v3273_v50  ;;  %v1039_v17 = vadd.f32 %v1038_v47, %v5570_v59  ;;  %v3295_v50 = vshll.u32 %v6094_v12, 16  ;;  %v3301_v58 = vrot.slane %v3299_v15, 4 }
 0x1b0   : > { %v1393_v48 = vpop.f32.mrf.mxu2  ;;  %v6091_v41 = vadd.f32 %v2342_v52, %v1730_v25  ;;  %v3284_v52 = vsel %vm5254_vm2, %v3279_v35, %v3283_v10  ;;  %v3854_v25 = vrot.slane %v3852_v44, 4  ;;  %v2507_v54 = vrot.slane %v2505_v33, 4 }
 0x1b1   : > { %v1437_v62 = vadd.f32 %v1393_v48, %v1037_v34  ;;  %v3289_v34 = vshll.u32 %v4913_v2, 16  ;;  %v3538_v10 = vunpack.c.l.b16 %v3274_v8  ;;  %v3539_v11 = vunpack.c.l.b16 %v3284_v52 }
 0x1b2   : > { %4953 = vmatmul.msk.bf16.gmra.mxu3 %vm695_vm3, %v3564_v51  ;;  %v4729_v51 = vld [vmem:[%s5242_s29 + $0x54] sm:$0xe]  ;;  %v3853_v59 = vsel %vm5437_vm6, %v4986_v39, %v3852_v44  ;;  %v3856_v47 = vsel %vm5437_vm6, %v3854_v25, %v3855_v22  ;;  %v2509_v44 = vsel %vm5437_vm6, %v2507_v54, %v2508_v18 }
 0x1b3   : > { %v3291_v2 = vrot.slane %v3289_v34, 5  ;;  %v3565_v22 = vpack.c.b16 %v3539_v11, %v3538_v10  ;;  %v3941_v52 = vunpack.c.l.b16 %v3856_v47  ;;  %v3859_v47 = vrot.slane %v6094_v12, 5 }
 0x1b4   : > { %v2345_v13 = vpop.f32.mrf.mxu0 }
 0x1b5   : > { %v1687_v57 = vpop.f32.mrf.mxu3  ;;  %v1041_v55 = vpop.f32.mrf.mxu1 }
 0x1b6   : > { %v1731_v45 = vadd.f32 %v1687_v57, %v1437_v62  ;;  %v4745_v62 = vrot.slane %v4729_v51, 9  ;;  %v3297_v57 = vrot.slane %v3295_v50, 5  ;;  %v1042_v25 = vadd.f32 %v1041_v55, %v5591_v32  ;;  %v6129_v32 = vld [vmem:[%s5242_s29 + $0x70] sm:$0xf] }
 0x1b7   : > { %5007 = vmatmul.msk.bf16.gmra.mxu0 %vm695_vm3, %v3966_v0  ;;  %v3288_v0 = vrot.slane %v3286_v60, 4 }
 0x1b8   : > { %v1395_v48 = vpop.f32.mrf.mxu2  ;;  %4766 = vmatmul.msk.bf16.gmra.mxu1 %vm695_vm3, %v2613_v43  ;;  %v6110_v35 = vadd.f32 %v2345_v13, %v1731_v45  ;;  %v6117_v43 = vld [vmem:[%s5242_s29 + $0x68] sm:$0x1]  ;;  %v2506_v8 = vsel %vm5437_vm6, %v4745_v62, %v2505_v33  ;;  %v3940_v45 = vunpack.c.l.b16 %v3853_v59  ;;  %v3302_v60 = vor.u32 %v3301_v58, %v3297_v57  ;;  %v4916_v33 = vld [vmem:[%s5242_s29 + $0x6c] sm:$0xf]  ;;  %v4971_v59 = vld [vmem:[%s5242_s29 + $0x60] sm:$0xe] }
 0x1b9   : > { %v1438_v61 = vadd.f32 %v1395_v48, %v1039_v17  ;;  %v3292_v51 = vor.u32 %v3291_v2, %v3288_v0  ;;  %v3305_v34 = vshll.u32 %v6117_v43, 16  ;;  %v2588_v15 = vunpack.c.l.b16 %v2506_v8  ;;  %v5140_v8 = vld [vmem:[%s5242_s29 + $0x64] sm:$0xf] }
 0x1ba   : > { %v2589_v48 = vunpack.c.l.b16 %v2509_v44  ;;  %v3967_v18 = vpack.c.b16 %v3941_v52, %v3940_v45  ;;  %v3303_v62 = vrot.slane %v3302_v60, 4  ;;  %v3310_v0 = vshrl.u32 %v4916_v33, 16 }
 0x1bb   : > { %v3307_v54 = vrot.slane %v3305_v34, 5  ;;  %v3313_v2 = vshll.u32 %v4916_v33, 16  ;;  %v2512_v44 = vrot.slane %v5140_v8, 5  ;;  %v4987_v34 = vrot.slane %v4971_v59, 9 }
 0x1bc   : > { %v2347_v56 = vpop.f32.mrf.mxu0  ;;  %v2614_v11 = vpack.c.b16 %v2589_v48, %v2588_v15  ;;  %v3861_v15 = vrot.slane %v3859_v47, 4  ;;  %v3862_v48 = vrot.slane %v6117_v43, 5 }
 0x1bd   : > { %v1689_v17 = vpop.f32.mrf.mxu3  ;;  %4884 = vmatmul.msk.bf16.gmra.mxu2 %vm695_vm3, %v5065_v6  ;;  %v1043_v13 = vpop.f32.mrf.mxu1  ;;  %v3308_v60 = vsel %vm5254_vm2, %v3303_v62, %v3307_v54  ;;  %v3315_v33 = vrot.slane %v3313_v2, 5  ;;  %v6154_v54 = vld [vmem:[%s5242_s29 + $0x74] sm:$0x1] }
 0x1be   : > { %v1732_v39 = vadd.f32 %v1689_v17, %v1438_v61  ;;  %v3293_v61 = vrot.slane %v3292_v51, 4  ;;  %v3319_v51 = vshll.u32 %v6129_v32, 16  ;;  %v3863_v43 = vsel %vm5437_vm6, %v3861_v15, %v3862_v48 }
 0x1c0   : > { %v1398_v50 = vpop.f32.mrf.mxu2  ;;  %v6131_v55 = vadd.f32 %v2347_v56, %v1732_v39  ;;  %v3323_v56 = vshrl.u32 %v6129_v32, 16  ;;  %v1044_v39 = vadd.f32 %v1043_v13, %v5610_v63  ;;  %v3298_v12 = vsel %vm5254_vm2, %v3293_v61, %v3297_v57 }
 0x1c1   : > { %v1439_v6 = vadd.f32 %v1398_v50, %v1042_v25  ;;  %v4730_v25 = vld [vmem:[%s5242_s29 + $0x60] sm:$0xe]  ;;  %v2514_v63 = vrot.slane %v2512_v44, 4  ;;  %v3540_v57 = vunpack.c.l.b16 %v3298_v12  ;;  %v3541_v61 = vunpack.c.l.b16 %v3308_v60 }
 0x1c2   : > { %4954 = vmatmul.msk.bf16.gmra.mxu3 %vm695_vm3, %v3565_v22  ;;  %v5141_v22 = vld [vmem:[%s5242_s29 + $0x68] sm:$0x1]  ;;  %v4746_v8 = vrot.slane %v4730_v25, 9  ;;  %v3325_v62 = vrot.slane %v3323_v56, 4 }
 0x1c3   : > { %v2515_v45 = vrot.slane %v5141_v22, 5  ;;  %v6151_v22 = vrot.slane %v3319_v51, 5  ;;  %v3566_v56 = vpack.c.b16 %v3541_v61, %v3540_v57  ;;  %v6173_v57 = vld [vmem:[%s5242_s29 + $0x7c] sm:$0xf] }
 0x1c4   : > { %v2350_v10 = vpop.f32.mrf.mxu0  ;;  %v2513_v2 = vsel %vm5437_vm6, %v4746_v8, %v2512_v44  ;;  %v4919_v44 = vld [vmem:[%s5242_s29 + $0x78] sm:$0xf] }
 0x1c5   : > { %v1692_v58 = vpop.f32.mrf.mxu3  ;;  %v1046_v17 = vpop.f32.mrf.mxu1  ;;  %v2590_v15 = vunpack.c.l.b16 %v2513_v2 }
 0x1c6   : > { %v1733_v52 = vadd.f32 %v1692_v58, %v1439_v6  ;;  %v3312_v6 = vrot.slane %v3310_v0, 4  ;;  %v1047_v12 = vadd.f32 %v1046_v17, %v5629_v36  ;;  %v3334_v36 = vshrl.u32 %v4919_v44, 16 }
 0x1c7   : > { %5008 = vmatmul.msk.bf16.gmra.mxu0 %vm695_vm3, %v3967_v18  ;;  %v5066_v18 = vld [vmem:[%s5242_s29 + $0x60] sm:$0xff]  ;;  %v3337_v17 = vshll.u32 %v4919_v44, 16  ;;  %v5067_v44 = vld [vmem:[%s5242_s29 + $0x6c] sm:$0xff] }
 0x1c8   : > { %v1400_v50 = vpop.f32.mrf.mxu2  ;;  %4767 = vmatmul.msk.bf16.gmra.mxu1 %vm695_vm3, %v2614_v11  ;;  %v6149_v13 = vadd.f32 %v2350_v10, %v1733_v52  ;;  %v3860_v11 = vsel %vm5437_vm6, %v4987_v34, %v3859_v47  ;;  %v2516_v52 = vsel %vm5437_vm6, %v2514_v63, %v2515_v45  ;;  %v3316_v25 = vor.u32 %v3315_v33, %v3312_v6  ;;  %v4972_v33 = vld [vmem:[%s5242_s29 + $0x6c] sm:$0xe] }
 0x1c9   : > { %v1440_v58 = vadd.f32 %v1400_v50, %v1044_v39  ;;  %v3326_v47 = vor.u32 %v3325_v62, %v6151_v22  ;;  %v3329_v39 = vshll.u32 %v6154_v54, 16  ;;  %v3942_v60 = vunpack.c.l.b16 %v3860_v11 }
 0x1ca   : > { %v3943_v34 = vunpack.c.l.b16 %v3863_v43  ;;  %v2591_v48 = vunpack.c.l.b16 %v2516_v52  ;;  %v3317_v8 = vrot.slane %v3316_v25, 4  ;;  %v4988_v52 = vrot.slane %v4972_v33, 9 }
 0x1cb   : > { %v3327_v45 = vrot.slane %v3326_v47, 4  ;;  %v3331_v6 = vrot.slane %v3329_v39, 5  ;;  %v3869_v25 = vrot.slane %v6154_v54, 5  ;;  %v3347_v54 = vshrl.u32 %v6173_v57, 16 }
 0x1cc   : > { %v2352_v59 = vpop.f32.mrf.mxu0  ;;  %v3968_v63 = vpack.c.b16 %v3943_v34, %v3942_v60  ;;  %v2615_v11 = vpack.c.b16 %v2591_v48, %v2590_v15  ;;  %v3322_v2 = vsel %vm5254_vm2, %v3317_v8, %v6151_v22  ;;  %v3336_v22 = vrot.slane %v3334_v36, 4  ;;  %v5143_v8 = vld [vmem:[%s5242_s29 + $0x74] sm:$0x1] }
 0x1cd   : > { %v1694_v0 = vpop.f32.mrf.mxu3  ;;  %4885 = vmatmul.msk.bf16.gmra.mxu2 %vm695_vm3, %v5066_v18  ;;  %v1048_v10 = vpop.f32.mrf.mxu1  ;;  %v3339_v34 = vrot.slane %v3337_v17, 5  ;;  %v3542_v33 = vunpack.c.l.b16 %v3322_v2 }
 0x1ce   : > { %v1734_v51 = vadd.f32 %v1694_v0, %v1440_v58  ;;  %v3866_v58 = vrot.slane %v6129_v32, 5  ;;  %v5142_v32 = vld [vmem:[%s5242_s29 + $0x70] sm:$0xf]  ;;  %v1049_v60 = vadd.f32 %v1048_v10, %v5652_v4 }
 0x1cf   : > { %v2519_v47 = vrot.slane %v5142_v32, 5  ;;  %v3340_v36 = vor.u32 %v3339_v34, %v3336_v22 }
 0x1d0   : > { %v1403_v50 = vpop.f32.mrf.mxu2  ;;  %v6175_v61 = vadd.f32 %v2352_v59, %v1734_v51  ;;  %v3332_v59 = vsel %vm5254_vm2, %v3327_v45, %v3331_v6  ;;  %v3868_v51 = vrot.slane %v3866_v58, 4  ;;  %v2522_v45 = vrot.slane %v5143_v8, 5 }
 0x1d1   : > { %v1441_v18 = vadd.f32 %v1403_v50, %v1047_v12  ;;  %v3343_v12 = vshll.u32 %v6173_v57, 16  ;;  %v3867_v4 = vsel %vm5437_vm6, %v4988_v52, %v3866_v58 }
 0x1d2   : > { %4955 = vmatmul.msk.bf16.gmra.mxu3 %vm695_vm3, %v3566_v56  ;;  %v4731_v56 = vld [vmem:[%s5242_s29 + $0x6c] sm:$0xe]  ;;  %v3870_v10 = vsel %vm5437_vm6, %v3868_v51, %v3869_v25  ;;  %v3944_v25 = vunpack.c.l.b16 %v3867_v4  ;;  %v3341_v51 = vrot.slane %v3340_v36, 4 }
 0x1d3   : > { %v4747_v15 = vrot.slane %v4731_v56, 9  ;;  %v3345_v17 = vrot.slane %v3343_v12, 5  ;;  %v4921_v56 = vld [vmem:[%s5242_s29 + $0x80] sm:$0x1] }
 0x1d4   : > { %v2355_v62 = vpop.f32.mrf.mxu0  ;;  %v3353_v22 = vshll.u32 %v4921_v56, 16 }
 0x1d5   : > { %v1697_v43 = vpop.f32.mrf.mxu3  ;;  %v1051_v0 = vpop.f32.mrf.mxu1 }
 0x1d6   : > { %v1735_v39 = vadd.f32 %v1697_v43, %v1441_v18  ;;  %v2521_v18 = vrot.slane %v2519_v47, 4 }
 0x1d7   : > { %5009 = vmatmul.msk.bf16.gmra.mxu0 %vm695_vm3, %v3968_v63  ;;  %v3543_v63 = vunpack.c.l.b16 %v3332_v59  ;;  %v1052_v59 = vadd.f32 %v1051_v0, %v5671_v53  ;;  %v3346_v53 = vsel %vm5254_vm2, %v3341_v51, %v3345_v17 }
 0x1d8   : > { %v1405_v50 = vpop.f32.mrf.mxu2  ;;  %4768 = vmatmul.msk.bf16.gmra.mxu1 %vm695_vm3, %v2615_v11  ;;  %v6192_v6 = vadd.f32 %v2355_v62, %v1735_v39  ;;  %v3349_v11 = vrot.slane %v3347_v54, 4  ;;  %v2520_v62 = vsel %vm5437_vm6, %v4747_v15, %v2519_v47  ;;  %v2523_v58 = vsel %vm5437_vm6, %v2521_v18, %v2522_v45  ;;  %v6212_v45 = vld [vmem:[%s5242_s29 + $0x88] sm:$0xf] }
 0x1d9   : > { %v1442_v48 = vadd.f32 %v1405_v50, %v1049_v60  ;;  %v3567_v52 = vpack.c.b16 %v3543_v63, %v3542_v33  ;;  %v3945_v39 = vunpack.c.l.b16 %v3870_v10  ;;  %v2592_v54 = vunpack.c.l.b16 %v2520_v62 }
 0x1da   : > { %6639 = vst [vmem:[#allocation4_spill] sm:$0xff] %v6192_v6  ;;  %v3350_v12 = vor.u32 %v3349_v11, %v3345_v17  ;;  %v2593_v50 = vunpack.c.l.b16 %v2523_v58  ;;  %v4922_v6 = vld [vmem:[%s5242_s29 + $0x84] sm:$0xf]  ;;  %v3873_v15 = vrot.slane %v6173_v57, 5  ;;  %v3876_v62 = vrot.slane %v4921_v56, 5 }
 0x1db   : > { %v3969_v47 = vpack.c.b16 %v3945_v39, %v3944_v25  ;;  %v3358_v4 = vshrl.u32 %v4922_v6, 16  ;;  %v3361_v10 = vshll.u32 %v4922_v6, 16  ;;  %v4732_v58 = vld [vmem:[%s5242_s29 + $0x78] sm:$0xe]  ;;  %v3367_v39 = vshll.u32 %v6212_v45, 16 }
 0x1dc   : > { %v2357_v43 = vpop.f32.mrf.mxu0  ;;  %v3351_v0 = vrot.slane %v3350_v12, 4  ;;  %v2616_v63 = vpack.c.b16 %v2593_v50, %v2592_v54  ;;  %v3875_v17 = vrot.slane %v3873_v15, 4  ;;  %v4748_v12 = vrot.slane %v4732_v58, 9  ;;  %v5068_v50 = vld [vmem:[%s5242_s29 + $0x78] sm:$0xff] }
 0x1dd   : > { %v1699_v32 = vpop.f32.mrf.mxu3  ;;  %4886 = vmatmul.msk.bf16.gmra.mxu2 %vm695_vm3, %v5067_v44  ;;  %v1053_v60 = vpop.f32.mrf.mxu1  ;;  %v4973_v44 = vld [vmem:[%s5242_s29 + $0x78] sm:$0xe] }
 0x1de   : > { %v1736_v2 = vadd.f32 %v1699_v32, %v1442_v48  ;;  %v3355_v48 = vrot.slane %v3353_v22, 5  ;;  %v4989_v18 = vrot.slane %v4973_v44, 9  ;;  %v1054_v6 = vadd.f32 %v1053_v60, %v5688_v27 }
 0x1df   : > { %v3360_v22 = vrot.slane %v3358_v4, 4 }
 0x1e0   : > { %v1408_v34 = vpop.f32.mrf.mxu2  ;;  %v6214_v36 = vadd.f32 %v2357_v43, %v1736_v2  ;;  %v3356_v43 = vsel %vm5254_vm2, %v3351_v0, %v3355_v48  ;;  %v3544_v2 = vunpack.c.l.b16 %v3346_v53  ;;  %v3874_v51 = vsel %vm5437_vm6, %v4989_v18, %v3873_v15 }
 0x1e1   : > { %v1443_v8 = vadd.f32 %v1408_v34, %v1052_v59  ;;  %v3371_v59 = vshrl.u32 %v6212_v45, 16  ;;  %v3363_v34 = vrot.slane %v3361_v10, 5  ;;  %v3545_v60 = vunpack.c.l.b16 %v3356_v43 }
 0x1e2   : > { %4956 = vmatmul.msk.bf16.gmra.mxu3 %vm695_vm3, %v3567_v52  ;;  %v5144_v52 = vld [vmem:[%s5242_s29 + $0x7c] sm:$0xf]  ;;  %v3877_v53 = vsel %vm5437_vm6, %v3875_v17, %v3876_v62  ;;  %v6233_v0 = vrot.slane %v3367_v39, 5  ;;  %v3946_v18 = vunpack.c.l.b16 %v3874_v51 }
 0x1e3   : > { %v2526_v57 = vrot.slane %v5144_v52, 5  ;;  %v3373_v48 = vrot.slane %v3371_v59, 4  ;;  %v3947_v10 = vunpack.c.l.b16 %v3877_v53  ;;  %v3364_v58 = vor.u32 %v3363_v34, %v3360_v22  ;;  %v4974_v59 = vld [vmem:[%s5242_s29 + $0x84] sm:$0xe]  ;;  %v6247_v53 = vld [vmem:[%s5242_s29 + $0x94] sm:$0xf] }
 0x1e4   : > { %v2360_v33 = vpop.f32.mrf.mxu0 }
 0x1e5   : > { %v1702_v11 = vpop.f32.mrf.mxu3  ;;  %v2687_v32 = vpop.f32.mrf.mxu1  ;;  %v2528_v44 = vrot.slane %v2526_v57, 4  ;;  %v3374_v17 = vor.u32 %v3373_v48, %v6233_v0 }
 0x1e6   : > { %v1737_v25 = vadd.f32 %v1702_v11, %v1443_v8  ;;  %v5145_v8 = vld [vmem:[%s5242_s29 + $0x80] sm:$0x1]  ;;  %v2767_v43 = vadd.f32 %v2687_v32, %v5705_v37 }
 0x1e7   : > { %5010 = vmatmul.msk.bf16.gmra.mxu0 %vm695_vm3, %v3969_v47  ;;  %v2529_v47 = vrot.slane %v5145_v8, 5  ;;  %v4925_v8 = vld [vmem:[%s5242_s29 + $0x90] sm:$0xf]  ;;  %v3375_v22 = vrot.slane %v3374_v17, 4 }
 0x1e8   : > { %v1410_v56 = vpop.f32.mrf.mxu2  ;;  %4769 = vmatmul.msk.bf16.gmra.mxu1 %vm695_vm3, %v2616_v63  ;;  %v6229_v27 = vadd.f32 %v2360_v33, %v1737_v25  ;;  %v4924_v63 = vld [vmem:[%s5242_s29 + $0x8c] sm:$0x1]  ;;  %v2527_v33 = vsel %vm5437_vm6, %v4748_v12, %v2526_v57  ;;  %v3568_v25 = vpack.c.b16 %v3545_v60, %v3544_v2  ;;  %v3970_v57 = vpack.c.b16 %v3947_v10, %v3946_v18 }
 0x1e9   : > { %v1444_v54 = vadd.f32 %v1410_v56, %v1054_v6  ;;  %v2530_v62 = vsel %vm5437_vm6, %v2528_v44, %v2529_v47  ;;  %v3377_v39 = vshll.u32 %v4924_v63, 16  ;;  %v3880_v6 = vrot.slane %v6212_v45, 5 }
 0x1ea   : > { %v2594_v51 = vunpack.c.l.b16 %v2527_v33  ;;  %v3365_v12 = vrot.slane %v3364_v58, 4  ;;  %v3883_v45 = vrot.slane %v4924_v63, 5  ;;  %v3382_v47 = vshrl.u32 %v4925_v8, 16  ;;  %v5146_v33 = vld [vmem:[%s5242_s29 + $0x88] sm:$0xf] }
 0x1eb   : > { %v3379_v34 = vrot.slane %v3377_v39, 5  ;;  %v3882_v44 = vrot.slane %v3880_v6, 4  ;;  %v3385_v48 = vshll.u32 %v4925_v8, 16  ;;  %v3391_v18 = vshll.u32 %v6247_v53, 16  ;;  %v6258_v63 = vld [vmem:[%s6631_s2] ss:$0 sm:$0xff] }
 0x1ec   : > { %v2362_v15 = vpop.f32.mrf.mxu0  ;;  %v3395_v58 = vshrl.u32 %v6247_v53, 16 }
 0x1ed   : > { %v1704_v4 = vpop.f32.mrf.mxu3  ;;  %4887 = vmatmul.msk.bf16.gmra.mxu2 %vm695_vm3, %v5068_v50  ;;  %v2689_v11 = vpop.f32.mrf.mxu1  ;;  %v2595_v50 = vunpack.c.l.b16 %v2530_v62  ;;  %v2533_v62 = vrot.slane %v5146_v33, 5  ;;  %v3380_v17 = vsel %vm5254_vm2, %v3375_v22, %v3379_v34  ;;  %v6273_v8 = vrot.slane %v3391_v18, 5  ;;  %v5147_v22 = vld [vmem:[%s5242_s29 + $0x8c] sm:$0x1] }
 0x1ee   : > { %v1738_v52 = vadd.f32 %v1704_v4, %v1444_v54  ;;  %v4990_v54 = vrot.slane %v4974_v59, 9  ;;  %v3884_v59 = vsel %vm5437_vm6, %v3882_v44, %v3883_v45  ;;  %v2536_v34 = vrot.slane %v5147_v22, 5  ;;  %v6299_v22 = vld [vmem:[%s5242_s29 + $0xa0] sm:$0xf] }
 0x1ef   : > { %v2617_v60 = vpack.c.b16 %v2595_v50, %v2594_v51  ;;  %v2768_v51 = vadd.f32 %v2689_v11, %v5718_v38  ;;  %v3387_v50 = vrot.slane %v3385_v48, 5  ;;  %v6280_v38 = vld [vmem:[%s5242_s29 + $0x98] sm:$0x1]  ;;  %v3949_v48 = vunpack.c.l.b16 %v3884_v59 }
 0x1f0   : > { %v2981_v56 = vpop.f32.mrf.mxu2  ;;  %v6250_v37 = vadd.f32 %v2362_v15, %v1738_v52  ;;  %v3370_v15 = vsel %vm5254_vm2, %v3365_v12, %v6233_v0  ;;  %v4733_v52 = vld [vmem:[%s5242_s29 + $0x84] sm:$0xe]  ;;  %v3881_v39 = vsel %vm5437_vm6, %v4990_v54, %v3880_v6  ;;  %v3397_v6 = vrot.slane %v3395_v58, 4 }
 0x1f1   : > { %v3061_v2 = vadd.f32 %v2981_v56, %v2767_v43  ;;  %v3384_v43 = vrot.slane %v3382_v47, 4  ;;  %v4749_v12 = vrot.slane %v4733_v52, 9  ;;  %v3546_v45 = vunpack.c.l.b16 %v3370_v15 }
 0x1f2   : > { %4957 = vmatmul.msk.bf16.gmra.mxu3 %vm695_vm3, %v3568_v25  ;;  %v3547_v47 = vunpack.c.l.b16 %v3380_v17  ;;  %v3398_v15 = vor.u32 %v3397_v6, %v6273_v8  ;;  %v3401_v59 = vshll.u32 %v6280_v38, 16 }
 0x1f3   : > { %v2534_v33 = vsel %vm5437_vm6, %v4749_v12, %v2533_v62  ;;  %v4928_v12 = vld [vmem:[%s5242_s29 + $0x9c] sm:$0xf] }
 0x1f4   : > { %v4041_v32 = vpop.f32.mrf.mxu0 }
 0x1f5   : > { %v3639_v4 = vpop.f32.mrf.mxu3  ;;  %v2692_v10 = vpop.f32.mrf.mxu1 }
 0x1f6   : > { %v3719_v25 = vadd.f32 %v3639_v4, %v3061_v2  ;;  %v2535_v2 = vrot.slane %v2533_v62, 4 }
 0x1f7   : > { %5011 = vmatmul.msk.bf16.gmra.mxu0 %vm695_vm3, %v3970_v57  ;;  %v5069_v57 = vld [vmem:[%s5242_s29 + $0x84] sm:$0xff] }
 0x1f8   : > { %v4121_v56 = vadd.f32 %v4041_v32, %v3719_v25  ;;  %v2983_v0 = vpop.f32.mrf.mxu2  ;;  %4770 = vmatmul.msk.bf16.gmra.mxu1 %vm695_vm3, %v2617_v60  ;;  %v3948_v60 = vunpack.c.l.b16 %v3881_v39  ;;  %v2537_v58 = vsel %vm5437_vm6, %v2535_v2, %v2536_v34  ;;  %v3388_v25 = vor.u32 %v3387_v50, %v3384_v43 }
 0x1f9   : > { %v3062_v44 = vadd.f32 %v2983_v0, %v2768_v51  ;;  %v3569_v39 = vpack.c.b16 %v3547_v47, %v3546_v45  ;;  %v2769_v51 = vadd.f32 %v2692_v10, %v5731_v7  ;;  %v2597_v62 = vunpack.c.l.b16 %v2537_v58 }
 0x1fa   : > { %v4157_v54 = vadd.f32 %v6258_v63, %v4121_v56  ;;  %v3971_v43 = vpack.c.b16 %v3949_v48, %v3948_v60  ;;  %v3389_v50 = vrot.slane %v3388_v25, 4  ;;  %v3399_v2 = vrot.slane %v3398_v15, 4 }
 0x1fb   : > { %v3887_v7 = vrot.slane %v6247_v53, 5  ;;  %v3406_v10 = vshrl.u32 %v4928_v12, 16  ;;  %v3409_v45 = vshll.u32 %v4928_v12, 16  ;;  %v3415_v47 = vshll.u32 %v6299_v22, 16  ;;  %v4734_v53 = vld [vmem:[%s5242_s29 + $0x90] sm:$0xe] }
 0x1fc   : > { %v4189_v11 = vmax.f32 %v4157_v54, 0.0  ;;  %v4043_v32 = vpop.f32.mrf.mxu0  ;;  %v3403_v54 = vrot.slane %v3401_v59, 5  ;;  %v3394_v58 = vsel %vm5254_vm2, %v3389_v50, %v6273_v8  ;;  %v3890_v15 = vrot.slane %v6280_v38, 5 }
 0x1fd   : > { %v3641_v18 = vpop.f32.mrf.mxu3  ;;  %4888 = vmatmul.msk.bf16.gmra.mxu2 %vm695_vm3, %v5069_v57  ;;  %v2694_v4 = vpop.f32.mrf.mxu1  ;;  %v2596_v57 = vunpack.c.l.b16 %v2534_v33  ;;  %v6316_v8 = vrot.slane %v3415_v47, 5 }
 0x1fe   : > { %v4221_v52 = vpack.c.bf16 %v4189_v11, %v4189_v11  ;;  %v3720_v17 = vadd.f32 %v3641_v18, %v3062_v44  ;;  %v4975_v44 = vld [vmem:[%s5242_s29 + $0x90] sm:$0xe]  ;;  %v3419_v11 = vshrl.u32 %v6299_v22, 16  ;;  %v2770_v12 = vadd.f32 %v2694_v4, %v5744_v5 }
 0x1ff   : > { %v2618_v48 = vpack.c.b16 %v2597_v62, %v2596_v57  ;;  %v4991_v25 = vrot.slane %v4975_v44, 9  ;;  %v3411_v57 = vrot.slane %v3409_v45, 5 }
 0x200   : > { %4254 = vst.msk [vmem:[%s6285_s20] sm:$0xf] %vm4253_vm7, %v4221_v52  ;;  %v4122_v56 = vadd.f32 %v4043_v32, %v3720_v17  ;;  %v2986_v0 = vpop.f32.mrf.mxu2  ;;  %v5148_v52 = vld [vmem:[%s5242_s29 + $0x94] sm:$0xf]  ;;  %v3421_v62 = vrot.slane %v3419_v11, 4 }
 0x201   : > { %v3063_v6 = vadd.f32 %v2986_v0, %v2769_v51  ;;  %v2540_v17 = vrot.slane %v5148_v52, 5  ;;  %v3889_v51 = vrot.slane %v3887_v7, 4  ;;  %v3408_v0 = vrot.slane %v3406_v10, 4 }
 0x202   : > { %v4158_v34 = vadd.f32 %v6258_v63, %v4122_v56  ;;  %4958 = vmatmul.msk.bf16.gmra.mxu3 %vm695_vm3, %v3569_v39  ;;  %v3404_v56 = vsel %vm5254_vm2, %v3399_v2, %v3403_v54  ;;  %v5070_v2 = vld [vmem:[%s5242_s29 + $0x90] sm:$0xff]  ;;  %v3548_v54 = vunpack.c.l.b16 %v3394_v58 }
 0x203   : > { %v2542_v44 = vrot.slane %v2540_v17, 4  ;;  %v3549_v11 = vunpack.c.l.b16 %v3404_v56  ;;  %v3891_v5 = vsel %vm5437_vm6, %v3889_v51, %v3890_v15  ;;  %v3412_v4 = vor.u32 %v3411_v57, %v3408_v0 }
 0x204   : > { %v4190_v32 = vmax.f32 %v4158_v34, 0.0  ;;  %v4046_v60 = vpop.f32.mrf.mxu0  ;;  %v4750_v34 = vrot.slane %v4734_v53, 9  ;;  %v3951_v51 = vunpack.c.l.b16 %v3891_v5 }
 0x205   : > { %v3644_v18 = vpop.f32.mrf.mxu3  ;;  %v2697_v33 = vpop.f32.mrf.mxu1  ;;  %v3570_v56 = vpack.c.b16 %v3549_v11, %v3548_v54  ;;  %v3413_v57 = vrot.slane %v3412_v4, 4 }
 0x206   : > { %v4222_v39 = vpack.c.bf16 %v4190_v32, %v4190_v32  ;;  %v3721_v59 = vadd.f32 %v3644_v18, %v3063_v6  ;;  %v6323_v6 = vld [vmem:[%s5242_s29 + $0xa4] sm:$0x1]  ;;  %v3888_v32 = vsel %vm5437_vm6, %v4991_v25, %v3887_v7  ;;  %v2541_v53 = vsel %vm5437_vm6, %v4750_v34, %v2540_v17 }
 0x207   : > { %5012 = vmatmul.msk.bf16.gmra.mxu0 %vm695_vm3, %v3971_v43  ;;  %v5149_v43 = vld [vmem:[%s5242_s29 + $0x98] sm:$0x1]  ;;  %v2598_v0 = vunpack.c.l.b16 %v2541_v53  ;;  %v3897_v11 = vrot.slane %v6323_v6, 5  ;;  %v5150_v53 = vld [vmem:[%s5242_s29 + $0xa0] sm:$0xf] }
 0x208   : > { %4255 = vst.msk [vmem:[%s6285_s20 + $0x4] sm:$0xf] %vm4253_vm7, %v4222_v39  ;;  %v4123_v38 = vadd.f32 %v4046_v60, %v3721_v59  ;;  %v2988_v50 = vpop.f32.mrf.mxu2  ;;  %4771 = vmatmul.msk.bf16.gmra.mxu1 %vm695_vm3, %v2618_v48  ;;  %v2543_v10 = vrot.slane %v5149_v43, 5  ;;  %v3422_v60 = vor.u32 %v3421_v62, %v6316_v8  ;;  %v3425_v48 = vshll.u32 %v6323_v6, 16  ;;  %v4931_v43 = vld [vmem:[%s5242_s29 + $0xa8] sm:$0xf] }
 0x209   : > { %v3064_v47 = vadd.f32 %v2988_v50, %v2770_v12  ;;  %v3950_v39 = vunpack.c.l.b16 %v3888_v32  ;;  %v2771_v12 = vadd.f32 %v2697_v33, %v5757_v49 }
 0x20a   : > { %v4159_v45 = vadd.f32 %v6258_v63, %v4123_v38  ;;  %v2544_v25 = vsel %vm5437_vm6, %v2542_v44, %v2543_v10  ;;  %v3423_v62 = vrot.slane %v3422_v60, 4  ;;  %v3427_v38 = vrot.slane %v3425_v48, 5 }
 0x20b   : > { %v2599_v34 = vunpack.c.l.b16 %v2544_v25  ;;  %v3894_v44 = vrot.slane %v6299_v22, 5  ;;  %v3972_v54 = vpack.c.b16 %v3951_v51, %v3950_v39  ;;  %v6354_v22 = vld [vmem:[%s5242_s29 + $0xac] sm:$0xf]  ;;  %v3430_v48 = vshrl.u32 %v4931_v43, 16 }
 0x20c   : > { %v4191_v18 = vmax.f32 %v4159_v45, 0.0  ;;  %v4048_v58 = vpop.f32.mrf.mxu0  ;;  %v3428_v49 = vsel %vm5254_vm2, %v3423_v62, %v3427_v38  ;;  %v3443_v6 = vshrl.u32 %v6354_v22, 16 }
 0x20d   : > { %v3646_v52 = vpop.f32.mrf.mxu3  ;;  %4889 = vmatmul.msk.bf16.gmra.mxu2 %vm695_vm3, %v5070_v2  ;;  %v2699_v7 = vpop.f32.mrf.mxu1  ;;  %v4976_v2 = vld [vmem:[%s5242_s29 + $0x9c] sm:$0xe]  ;;  %v2619_v4 = vpack.c.b16 %v2599_v34, %v2598_v0  ;;  %v3896_v60 = vrot.slane %v3894_v44, 4  ;;  %v3551_v51 = vunpack.c.l.b16 %v3428_v49 }
 0x20e   : > { %v4223_v15 = vpack.c.bf16 %v4191_v18, %v4191_v18  ;;  %v3722_v59 = vadd.f32 %v3646_v52, %v3064_v47  ;;  %v3418_v47 = vsel %vm5254_vm2, %v3413_v57, %v6316_v8  ;;  %v4992_v33 = vrot.slane %v4976_v2, 9 }
 0x20f   : > { %v2547_v52 = vrot.slane %v5150_v53, 5  ;;  %v3433_v8 = vshll.u32 %v4931_v43, 16  ;;  %v2772_v62 = vadd.f32 %v2699_v7, %v5770_v46  ;;  %v5151_v43 = vld [vmem:[%s5242_s29 + $0xa4] sm:$0x1]  ;;  %v3445_v49 = vrot.slane %v3443_v6, 4 }
 0x210   : > { %4256 = vst.msk [vmem:[%s6285_s20 + $0x8] sm:$0xf] %vm4253_vm7, %v4223_v15  ;;  %v4124_v17 = vadd.f32 %v4048_v58, %v3722_v59  ;;  %v2991_v50 = vpop.f32.mrf.mxu2  ;;  %v4735_v15 = vld [vmem:[%s5242_s29 + $0x9c] sm:$0xe]  ;;  %v3439_v59 = vshll.u32 %v6354_v22, 16  ;;  %v3895_v0 = vsel %vm5437_vm6, %v4992_v33, %v3894_v44 }
 0x211   : > { %v3065_v45 = vadd.f32 %v2991_v50, %v2771_v12  ;;  %v3432_v12 = vrot.slane %v3430_v48, 4  ;;  %v5071_v50 = vld [vmem:[%s5242_s29 + $0x9c] sm:$0xff]  ;;  %v4751_v34 = vrot.slane %v4735_v15, 9  ;;  %v2549_v2 = vrot.slane %v2547_v52, 4  ;;  %v6375_v46 = vld [vmem:[%s5242_s29 + $0xb0] sm:$0x1] }
 0x212   : > { %v4160_v10 = vadd.f32 %v6258_v63, %v4124_v17  ;;  %4959 = vmatmul.msk.bf16.gmra.mxu3 %vm695_vm3, %v3570_v56  ;;  %v3550_v56 = vunpack.c.l.b16 %v3418_v47  ;;  %v3898_v17 = vsel %vm5437_vm6, %v3896_v60, %v3897_v11  ;;  %v6372_v47 = vrot.slane %v3439_v59, 5 }
 0x213   : > { %v3952_v11 = vunpack.c.l.b16 %v3895_v0  ;;  %v2548_v48 = vsel %vm5437_vm6, %v4751_v34, %v2547_v52  ;;  %v3449_v15 = vshll.u32 %v6375_v46, 16  ;;  %v4934_v52 = vld [vmem:[%s5242_s29 + $0xb4] sm:$0xf] }
 0x214   : > { %v4192_v32 = vmax.f32 %v4160_v10, 0.0  ;;  %v4051_v5 = vpop.f32.mrf.mxu0  ;;  %v2550_v10 = vrot.slane %v5151_v43, 5  ;;  %v3454_v43 = vshrl.u32 %v4934_v52, 16 }
 0x215   : > { %v3649_v18 = vpop.f32.mrf.mxu3  ;;  %v2702_v58 = vpop.f32.mrf.mxu1  ;;  %v3451_v34 = vrot.slane %v3449_v15, 5 }
 0x216   : > { %v4224_v39 = vpack.c.bf16 %v4192_v32, %v4192_v32  ;;  %v3723_v25 = vadd.f32 %v3649_v18, %v3065_v45  ;;  %v3571_v32 = vpack.c.b16 %v3551_v51, %v3550_v56  ;;  %v2551_v18 = vsel %vm5437_vm6, %v2549_v2, %v2550_v10  ;;  %v4977_v2 = vld [vmem:[%s5242_s29 + $0xa8] sm:$0xe] }
 0x217   : > { %5013 = vmatmul.msk.bf16.gmra.mxu0 %vm695_vm3, %v3972_v54  ;;  %v3435_v54 = vrot.slane %v3433_v8, 5  ;;  %v2773_v6 = vadd.f32 %v2702_v58, %v5783_v24  ;;  %v2600_v51 = vunpack.c.l.b16 %v2548_v48  ;;  %v2601_v0 = vunpack.c.l.b16 %v2551_v18 }
 0x218   : > { %4257 = vst.msk [vmem:[%s6285_s20 + $0xc] sm:$0xf] %vm4253_vm7, %v4224_v39  ;;  %v4125_v57 = vadd.f32 %v4051_v5, %v3723_v25  ;;  %v2993_v38 = vpop.f32.mrf.mxu2  ;;  %4772 = vmatmul.msk.bf16.gmra.mxu1 %vm695_vm3, %v2619_v4  ;;  %v3953_v4 = vunpack.c.l.b16 %v3898_v17  ;;  %v3446_v25 = vor.u32 %v3445_v49, %v6372_v47  ;;  %v3457_v10 = vshll.u32 %v4934_v52, 16  ;;  %v5072_v52 = vld [vmem:[%s5242_s29 + $0xa8] sm:$0xff] }
 0x219   : > { %v3066_v45 = vadd.f32 %v2993_v38, %v2772_v62  ;;  %v3436_v53 = vor.u32 %v3435_v54, %v3432_v12  ;;  %v3901_v49 = vrot.slane %v6354_v22, 5  ;;  %v3456_v22 = vrot.slane %v3454_v43, 4 }
 0x21a   : > { %v4161_v44 = vadd.f32 %v6258_v63, %v4125_v57  ;;  %v6389_v57 = vld [vmem:[%s5242_s29 + $0xb8] sm:$0xf]  ;;  %v3973_v62 = vpack.c.b16 %v3953_v4, %v3952_v11  ;;  %v5152_v11 = vld [vmem:[%s5242_s29 + $0xac] sm:$0xf] }
 0x21b   : > { %v3437_v38 = vrot.slane %v3436_v53, 4  ;;  %v3463_v24 = vshll.u32 %v6389_v57, 16  ;;  %v3467_v58 = vshrl.u32 %v6389_v57, 16 }
 0x21c   : > { %v4193_v7 = vmax.f32 %v4161_v44, 0.0  ;;  %v4053_v33 = vpop.f32.mrf.mxu0 }
 0x21d   : > { %v3651_v5 = vpop.f32.mrf.mxu3  ;;  %4890 = vmatmul.msk.bf16.gmra.mxu2 %vm695_vm3, %v5071_v50  ;;  %v2704_v60 = vpop.f32.mrf.mxu1  ;;  %v3447_v50 = vrot.slane %v3446_v25, 4  ;;  %v3442_v18 = vsel %vm5254_vm2, %v3437_v38, %v6372_v47  ;;  %v6405_v25 = vrot.slane %v3463_v24, 5  ;;  %v3469_v15 = vrot.slane %v3467_v58, 4 }
 0x21e   : > { %v4225_v8 = vpack.c.bf16 %v4193_v7, %v4193_v7  ;;  %v3724_v39 = vadd.f32 %v3651_v5, %v3066_v45  ;;  %v2620_v45 = vpack.c.b16 %v2601_v0, %v2600_v51  ;;  %v2554_v5 = vrot.slane %v5152_v11, 5  ;;  %v6413_v0 = vld [vmem:[%s5242_s29 + $0xbc] sm:$0x1] }
 0x21f   : > { %v3452_v53 = vsel %vm5254_vm2, %v3447_v50, %v3451_v34  ;;  %v3903_v47 = vrot.slane %v3901_v49, 4  ;;  %v3904_v51 = vrot.slane %v6375_v46, 5  ;;  %v3473_v46 = vshll.u32 %v6413_v0, 16 }
 0x220   : > { %4258 = vst.msk [vmem:[%s6285_s20 + $0x10] sm:$0xf] %vm4253_vm7, %v4225_v8  ;;  %v4126_v59 = vadd.f32 %v4053_v33, %v3724_v39  ;;  %v2996_v56 = vpop.f32.mrf.mxu2  ;;  %v4736_v8 = vld [vmem:[%s5242_s29 + $0xa8] sm:$0xe]  ;;  %v3459_v39 = vrot.slane %v3457_v10, 5  ;;  %v2556_v38 = vrot.slane %v2554_v5, 4  ;;  %v3553_v43 = vunpack.c.l.b16 %v3452_v53 }
 0x221   : > { %v3067_v12 = vadd.f32 %v2996_v56, %v2773_v6  ;;  %v2774_v6 = vadd.f32 %v2704_v60, %v5796_v21  ;;  %v3470_v10 = vor.u32 %v3469_v15, %v6405_v25 }
 0x222   : > { %v4162_v17 = vadd.f32 %v6258_v63, %v4126_v59  ;;  %4960 = vmatmul.msk.bf16.gmra.mxu3 %vm695_vm3, %v3571_v32  ;;  %v4993_v32 = vrot.slane %v4977_v2, 9  ;;  %v3552_v2 = vunpack.c.l.b16 %v3442_v18  ;;  %v3460_v60 = vor.u32 %v3459_v39, %v3456_v22 }
 0x223   : > { %v3475_v22 = vrot.slane %v3473_v46, 5 }
 0x224   : > { %v4194_v54 = vmax.f32 %v4162_v17, 0.0  ;;  %v4056_v44 = vpop.f32.mrf.mxu0  ;;  %v5153_v17 = vld [vmem:[%s5242_s29 + $0xb0] sm:$0x1]  ;;  %v3902_v21 = vsel %vm5437_vm6, %v4993_v32, %v3901_v49  ;;  %v3461_v53 = vrot.slane %v3460_v60, 4  ;;  %v5154_v60 = vld [vmem:[%s5242_s29 + $0xb8] sm:$0xf] }
 0x225   : > { %v3654_v7 = vpop.f32.mrf.mxu3  ;;  %v2707_v33 = vpop.f32.mrf.mxu1 }
 0x226   : > { %v4226_v4 = vpack.c.bf16 %v4194_v54, %v4194_v54  ;;  %v3725_v48 = vadd.f32 %v3654_v7, %v3067_v12  ;;  %v2557_v12 = vrot.slane %v5153_v17, 5  ;;  %v3905_v54 = vsel %vm5437_vm6, %v3903_v47, %v3904_v51 }
 0x227   : > { %5014 = vmatmul.msk.bf16.gmra.mxu0 %vm695_vm3, %v3973_v62  ;;  %v4752_v62 = vrot.slane %v4736_v8, 9  ;;  %v3955_v18 = vunpack.c.l.b16 %v3905_v54  ;;  %v3471_v8 = vrot.slane %v3470_v10, 4  ;;  %v2775_v15 = vadd.f32 %v2707_v33, %v5809_v30  ;;  %v6441_v30 = vld [vmem:[%s5242_s29 + $0xc4] sm:$0xf] }
 0x228   : > { %4259 = vst.msk [vmem:[%s6285_s20 + $0x14] sm:$0xf] %vm4253_vm7, %v4226_v4  ;;  %v4127_v59 = vadd.f32 %v4056_v44, %v3725_v48  ;;  %v2998_v56 = vpop.f32.mrf.mxu2  ;;  %4773 = vmatmul.msk.bf16.gmra.mxu1 %vm695_vm3, %v2620_v45  ;;  %v2558_v49 = vsel %vm5437_vm6, %v2556_v38, %v2557_v12  ;;  %v3572_v4 = vpack.c.b16 %v3553_v43, %v3552_v2  ;;  %v3954_v48 = vunpack.c.l.b16 %v3902_v21 }
 0x229   : > { %v3068_v34 = vadd.f32 %v2998_v56, %v2774_v6  ;;  %v2555_v7 = vsel %vm5437_vm6, %v4752_v62, %v2554_v5  ;;  %v2603_v6 = vunpack.c.l.b16 %v2558_v49  ;;  %v4937_v56 = vld [vmem:[%s5242_s29 + $0xc0] sm:$0xf]  ;;  %v3466_v62 = vsel %vm5254_vm2, %v3461_v53, %v6405_v25 }
 0x22a   : > { %v4163_v50 = vadd.f32 %v6258_v63, %v4127_v59  ;;  %v2602_v59 = vunpack.c.l.b16 %v2555_v7  ;;  %v3476_v38 = vsel %vm5254_vm2, %v3471_v8, %v3475_v22  ;;  %v3478_v2 = vshrl.u32 %v4937_v56, 16  ;;  %v5073_v22 = vld [vmem:[%s5242_s29 + $0xb4] sm:$0xff] }
 0x22b   : > { %v2561_v10 = vrot.slane %v5154_v60, 5  ;;  %v3481_v46 = vshll.u32 %v4937_v56, 16  ;;  %v3487_v54 = vshll.u32 %v6441_v30, 16  ;;  %v3554_v7 = vunpack.c.l.b16 %v3466_v62 }
 0x22c   : > { %v4195_v24 = vmax.f32 %v4163_v50, 0.0  ;;  %v4058_v58 = vpop.f32.mrf.mxu0  ;;  %v2621_v12 = vpack.c.b16 %v2603_v6, %v2602_v59  ;;  %v4978_v50 = vld [vmem:[%s5242_s29 + $0xb4] sm:$0xe]  ;;  %v3480_v8 = vrot.slane %v3478_v2, 4 }
 0x22d   : > { %v3656_v44 = vpop.f32.mrf.mxu3  ;;  %4891 = vmatmul.msk.bf16.gmra.mxu2 %vm695_vm3, %v5072_v52  ;;  %v2709_v45 = vpop.f32.mrf.mxu1  ;;  %v3974_v52 = vpack.c.b16 %v3955_v18, %v3954_v48  ;;  %v4994_v49 = vrot.slane %v4978_v50, 9  ;;  %v3483_v6 = vrot.slane %v3481_v46, 5 }
 0x22e   : > { %v4227_v32 = vpack.c.bf16 %v4195_v24, %v4195_v24  ;;  %v3726_v11 = vadd.f32 %v3656_v44, %v3068_v34  ;;  %v3908_v34 = vrot.slane %v6389_v57, 5  ;;  %v3491_v44 = vshrl.u32 %v6441_v30, 16 }
 0x22f   : > { %v3555_v57 = vunpack.c.l.b16 %v3476_v38  ;;  %v3484_v60 = vor.u32 %v3483_v6, %v3480_v8  ;;  %v4979_v8 = vld [vmem:[%s5242_s29 + $0xc0] sm:$0xe]  ;;  %v6483_v6 = vld [vmem:[%s5242_s29 + $0xd0] sm:$0xf] }
 0x230   : > { %4260 = vst.msk [vmem:[%s6285_s20 + $0x18] sm:$0xf] %vm4253_vm7, %v4227_v32  ;;  %v4128_v39 = vadd.f32 %v4058_v58, %v3726_v11  ;;  %v3001_v5 = vpop.f32.mrf.mxu2  ;;  %v4737_v58 = vld [vmem:[%s5242_s29 + $0xb4] sm:$0xe]  ;;  %v3911_v32 = vrot.slane %v6413_v0, 5  ;;  %v3910_v53 = vrot.slane %v3908_v34, 4  ;;  %v3909_v38 = vsel %vm5437_vm6, %v4994_v49, %v3908_v34 }
 0x231   : > { %v3069_v51 = vadd.f32 %v3001_v5, %v2775_v15  ;;  %v2563_v15 = vrot.slane %v2561_v10, 4  ;;  %v5155_v5 = vld [vmem:[%s5242_s29 + $0xbc] sm:$0x1] }
 0x232   : > { %v4164_v47 = vadd.f32 %v6258_v63, %v4128_v39  ;;  %4961 = vmatmul.msk.bf16.gmra.mxu3 %vm695_vm3, %v3572_v4  ;;  %v6640_v4 = vld [vmem:[#allocation2_spill] sm:$0xff]  ;;  %v4753_v39 = vrot.slane %v4737_v58, 9  ;;  %v2564_v59 = vrot.slane %v5155_v5, 5  ;;  %v3956_v58 = vunpack.c.l.b16 %v3909_v38 }
 0x233   : > { %v2776_v48 = vadd.f32 %v2709_v45, %v6640_v4  ;;  %v3915_v5 = vrot.slane %v6441_v30, 5  ;;  %v4738_v30 = vld [vmem:[%s5242_s29 + $0xc0] sm:$0xe] }
 0x234   : > { %v4196_v33 = vmax.f32 %v4164_v47, 0.0  ;;  %v4061_v17 = vpop.f32.mrf.mxu0  ;;  %v6458_v47 = vrot.slane %v3487_v54, 5  ;;  %v2562_v2 = vsel %vm5437_vm6, %v4753_v39, %v2561_v10 }
 0x235   : > { %v3659_v43 = vpop.f32.mrf.mxu3  ;;  %v2712_v21 = vpop.f32.mrf.mxu1  ;;  %v2604_v49 = vunpack.c.l.b16 %v2562_v2 }
 0x236   : > { %v4228_v25 = vpack.c.bf16 %v4196_v33, %v4196_v33  ;;  %v3727_v24 = vadd.f32 %v3659_v43, %v3069_v51  ;;  %v3493_v51 = vrot.slane %v3491_v44, 4  ;;  %v3912_v33 = vsel %vm5437_vm6, %v3910_v53, %v3911_v32 }
 0x237   : > { %5015 = vmatmul.msk.bf16.gmra.mxu0 %vm695_vm3, %v3974_v52  ;;  %v6461_v52 = vld [vmem:[%s5242_s29 + $0xc8] sm:$0x1]  ;;  %v2565_v43 = vsel %vm5437_vm6, %v2563_v15, %v2564_v59  ;;  %v3957_v54 = vunpack.c.l.b16 %v3912_v33  ;;  %v4940_v59 = vld [vmem:[%s5242_s29 + $0xcc] sm:$0xf] }
 0x238   : > { %4261 = vst.msk [vmem:[%s6285_s20 + $0x1c] sm:$0xf] %vm4253_vm7, %v4228_v25  ;;  %v4129_v11 = vadd.f32 %v4061_v17, %v3727_v24  ;;  %v3003_v18 = vpop.f32.mrf.mxu2  ;;  %4774 = vmatmul.msk.bf16.gmra.mxu1 %vm695_vm3, %v2621_v12  ;;  %v3573_v12 = vpack.c.b16 %v3555_v57, %v3554_v7  ;;  %v3494_v24 = vor.u32 %v3493_v51, %v6458_v47  ;;  %v3497_v34 = vshll.u32 %v6461_v52, 16  ;;  %v6641_v7 = vld [vmem:[#allocation3_spill] sm:$0xff] }
 0x239   : > { %v3070_v0 = vadd.f32 %v3003_v18, %v2776_v48  ;;  %v2777_v57 = vadd.f32 %v2712_v21, %v6641_v7  ;;  %v2605_v32 = vunpack.c.l.b16 %v2565_v43  ;;  %v4995_v51 = vrot.slane %v4979_v8, 9 }
 0x23a   : > { %v4165_v56 = vadd.f32 %v6258_v63, %v4129_v11  ;;  %v3485_v11 = vrot.slane %v3484_v60, 4  ;;  %v3495_v18 = vrot.slane %v3494_v24, 4  ;;  %v3499_v53 = vrot.slane %v3497_v34, 5 }
 0x23b   : > { %v2622_v21 = vpack.c.b16 %v2605_v32, %v2604_v49  ;;  %v3502_v2 = vshrl.u32 %v4940_v59, 16  ;;  %v3505_v43 = vshll.u32 %v4940_v59, 16  ;;  %v3511_v60 = vshll.u32 %v6483_v6, 16 }
 0x23c   : > { %v4197_v45 = vmax.f32 %v4165_v56, 0.0  ;;  %v4063_v62 = vpop.f32.mrf.mxu0  ;;  %v4754_v7 = vrot.slane %v4738_v30, 9 }
 0x23d   : > { %v3661_v17 = vpop.f32.mrf.mxu3  ;;  %4892 = vmatmul.msk.bf16.gmra.mxu2 %vm695_vm3, %v5073_v22  ;;  %v2714_v50 = vpop.f32.mrf.mxu1  ;;  %v3975_v22 = vpack.c.b16 %v3957_v54, %v3956_v58  ;;  %v3918_v58 = vrot.slane %v6461_v52, 5  ;;  %v5074_v54 = vld [vmem:[%s5242_s29 + $0xc0] sm:$0xff] }
 0x23e   : > { %v4229_v46 = vpack.c.bf16 %v4197_v45, %v4197_v45  ;;  %v3728_v25 = vadd.f32 %v3661_v17, %v3070_v0  ;;  %v5156_v45 = vld [vmem:[%s5242_s29 + $0xc4] sm:$0xf]  ;;  %v3490_v17 = vsel %vm5254_vm2, %v3485_v11, %v6458_v47  ;;  %v2778_v24 = vadd.f32 %v2714_v50, %v5870_v42 }
 0x23f   : > { %v3917_v47 = vrot.slane %v3915_v5, 4  ;;  %v3916_v42 = vsel %vm5437_vm6, %v4995_v51, %v3915_v5  ;;  %v3504_v50 = vrot.slane %v3502_v2, 4 }
 0x240   : > { %4262 = vst.msk [vmem:[%s6285_s20 + $0x20] sm:$0xf] %vm4253_vm7, %v4229_v46  ;;  %v4130_v44 = vadd.f32 %v4063_v62, %v3728_v25  ;;  %v3006_v10 = vpop.f32.mrf.mxu2  ;;  %v2568_v62 = vrot.slane %v5156_v45, 5  ;;  %v3515_v46 = vshrl.u32 %v6483_v6, 16 }
 0x241   : > { %v3071_v48 = vadd.f32 %v3006_v10, %v2777_v57  ;;  %v5157_v10 = vld [vmem:[%s5242_s29 + $0xc8] sm:$0x1] }
 0x242   : > { %v4166_v4 = vadd.f32 %v6258_v63, %v4130_v44  ;;  %4962 = vmatmul.msk.bf16.gmra.mxu3 %vm695_vm3, %v3573_v12  ;;  %v3500_v12 = vsel %vm5254_vm2, %v3495_v18, %v3499_v53  ;;  %v3556_v44 = vunpack.c.l.b16 %v3490_v17  ;;  %v2570_v57 = vrot.slane %v2568_v62, 4 }
 0x243   : > { %v2571_v49 = vrot.slane %v5157_v10, 5  ;;  %v3513_v18 = vrot.slane %v3511_v60, 5  ;;  %v3517_v53 = vrot.slane %v3515_v46, 4  ;;  %v2569_v59 = vsel %vm5437_vm6, %v4754_v7, %v2568_v62  ;;  %v4980_v10 = vld [vmem:[%s5242_s29 + $0xcc] sm:$0xe] }
 0x244   : > { %v4198_v39 = vmax.f32 %v4166_v4, 0.0  ;;  %v4066_v15 = vpop.f32.mrf.mxu0  ;;  %v3557_v4 = vunpack.c.l.b16 %v3500_v12  ;;  %v2606_v46 = vunpack.c.l.b16 %v2569_v59 }
 0x245   : > { %v3664_v56 = vpop.f32.mrf.mxu3  ;;  %v2717_v0 = vpop.f32.mrf.mxu1  ;;  %v2572_v5 = vsel %vm5437_vm6, %v2570_v57, %v2571_v49  ;;  %v3518_v12 = vor.u32 %v3517_v53, %v3513_v18  ;;  %v3922_v49 = vrot.slane %v6483_v6, 5 }
 0x246   : > { %v4230_v38 = vpack.c.bf16 %v4198_v39, %v4198_v39  ;;  %v3729_v33 = vadd.f32 %v3664_v56, %v3071_v48  ;;  %v3507_v48 = vrot.slane %v3505_v43, 5  ;;  %v4942_v39 = vld [vmem:[%s5242_s29 + $0xd4] sm:$0x1]  ;;  %v3574_v45 = vpack.c.b16 %v3557_v4, %v3556_v44 }
 0x247   : > { %5016 = vmatmul.msk.bf16.gmra.mxu0 %vm695_vm3, %v3975_v22  ;;  %v3919_v22 = vsel %vm5437_vm6, %v3917_v47, %v3918_v58  ;;  %v3521_v30 = vshll.u32 %v4942_v39, 16  ;;  %v2779_v43 = vadd.f32 %v2717_v0, %v5881_v26  ;;  %v2607_v62 = vunpack.c.l.b16 %v2572_v5 }
 0x248   : > { %4263 = vst.msk [vmem:[%s6285_s20 + $0x24] sm:$0xf] %vm4253_vm7, %v4230_v38  ;;  %v4131_v25 = vadd.f32 %v4066_v15, %v3729_v33  ;;  %v3008_v34 = vpop.f32.mrf.mxu2  ;;  %4775 = vmatmul.msk.bf16.gmra.mxu1 %vm695_vm3, %v2622_v21  ;;  %v3958_v38 = vunpack.c.l.b16 %v3916_v42  ;;  %v3959_v33 = vunpack.c.l.b16 %v3919_v22  ;;  %v3508_v17 = vor.u32 %v3507_v48, %v3504_v50  ;;  %v5075_v22 = vld [vmem:[%s5242_s29 + $0xcc] sm:$0xff] }
 0x249   : > { %v3072_v11 = vadd.f32 %v3008_v34, %v2778_v24  ;;  %v3519_v58 = vrot.slane %v3518_v12, 4  ;;  %v2623_v57 = vpack.c.b16 %v2607_v62, %v2606_v46  ;;  %v4996_v50 = vrot.slane %v4980_v10, 9 }
 0x24a   : > { %v4167_v32 = vadd.f32 %v6258_v63, %v4131_v25  ;;  %v3976_v34 = vpack.c.b16 %v3959_v33, %v3958_v38  ;;  %v3509_v47 = vrot.slane %v3508_v17, 4 }
 0x24c   : > { %v4199_v8 = vmax.f32 %v4167_v32, 0.0  ;;  %v4068_v52 = vpop.f32.mrf.mxu0  ;;  %v3514_v4 = vsel %vm5254_vm2, %v3509_v47, %v3513_v18 }
 0x24d   : > { %v3666_v15 = vpop.f32.mrf.mxu3  ;;  %4893 = vmatmul.msk.bf16.gmra.mxu2 %vm695_vm3, %v5074_v54  ;;  %v2719_v21 = vpop.f32.mrf.mxu1  ;;  %v3523_v54 = vrot.slane %v3521_v30, 5  ;;  %v3558_v18 = vunpack.c.l.b16 %v3514_v4 }
 0x24e   : > { %v4231_v56 = vpack.c.bf16 %v4199_v8, %v4199_v8  ;;  %v3730_v51 = vadd.f32 %v3666_v15, %v3072_v11  ;;  %v2780_v53 = vadd.f32 %v2719_v21, %v5897_v16  ;;  %v3924_v8 = vrot.slane %v3922_v49, 4 }
 0x24f   : > { %v3524_v42 = vsel %vm5254_vm2, %v3519_v58, %v3523_v54 }
 0x250   : > { %4264 = vst.msk [vmem:[%s6285_s20 + $0x28] sm:$0xf] %vm4253_vm7, %v4231_v56  ;;  %v4132_v2 = vadd.f32 %v4068_v52, %v3730_v51  ;;  %v3011_v60 = vpop.f32.mrf.mxu2  ;;  %v3925_v52 = vrot.slane %v4942_v39, 5  ;;  %v3559_v5 = vunpack.c.l.b16 %v3524_v42  ;;  %v3923_v51 = vsel %vm5437_vm6, %v4996_v50, %v3922_v49 }
 0x251   : > { %v3073_v24 = vadd.f32 %v3011_v60, %v2779_v43  ;;  %v3960_v17 = vunpack.c.l.b16 %v3923_v51 }
 0x252   : > { %v4168_v25 = vadd.f32 %v6258_v63, %v4132_v2  ;;  %4963 = vmatmul.msk.bf16.gmra.mxu3 %vm695_vm3, %v3574_v45  ;;  %v3926_v16 = vsel %vm5437_vm6, %v3924_v8, %v3925_v52  ;;  %v3575_v33 = vpack.c.b16 %v3559_v5, %v3558_v18 }
 0x253   : > { %v3961_v12 = vunpack.c.l.b16 %v3926_v16 }
 0x254   : > { %v4200_v44 = vmax.f32 %v4168_v25, 0.0  ;;  %v4071_v7 = vpop.f32.mrf.mxu0 }
 0x255   : > { %v3669_v26 = vpop.f32.mrf.mxu3  ;;  %v2722_v0 = vpop.f32.mrf.mxu1  ;;  %v3977_v46 = vpack.c.b16 %v3961_v12, %v3960_v17 }
 0x256   : > { %v4232_v32 = vpack.c.bf16 %v4200_v44, %v4200_v44  ;;  %v3731_v11 = vadd.f32 %v3669_v26, %v3073_v24  ;;  %v2781_v2 = vadd.f32 %v2722_v0, %v5915_v40 }
 0x257   : > { %5017 = vmatmul.msk.bf16.gmra.mxu0 %vm695_vm3, %v3976_v34 }
 0x258   : > { %4265 = vst.msk [vmem:[%s6285_s20 + $0x2c] sm:$0xf] %vm4253_vm7, %v4232_v32  ;;  %v4133_v48 = vadd.f32 %v4071_v7, %v3731_v11  ;;  %v3013_v6 = vpop.f32.mrf.mxu2  ;;  %4776 = vmatmul.msk.bf16.gmra.mxu1 %vm695_vm3, %v2623_v57 }
 0x259   : > { %v3074_v59 = vadd.f32 %v3013_v6, %v2780_v53 }
 0x25a   : > { %v4169_v15 = vadd.f32 %v6258_v63, %v4133_v48 }
 0x25c   : > { %v4201_v31 = vmax.f32 %v4169_v15, 0.0  ;;  %v4073_v56 = vpop.f32.mrf.mxu0 }
 0x25d   : > { %v3671_v21 = vpop.f32.mrf.mxu3  ;;  %4894 = vmatmul.msk.bf16.gmra.mxu2 %vm695_vm3, %v5075_v22  ;;  %v2724_v45 = vpop.f32.mrf.mxu1 }
 0x25e   : > { %v4233_v39 = vpack.c.bf16 %v4201_v31, %v4201_v31  ;;  %v3732_v38 = vadd.f32 %v3671_v21, %v3074_v59  ;;  %v2782_v40 = vadd.f32 %v2724_v45, %v5935_v28 }
 0x260   : > { %4266 = vst.msk [vmem:[%s6285_s20 + $0x30] sm:$0xf] %vm4253_vm7, %v4233_v39  ;;  %v4134_v30 = vadd.f32 %v4073_v56, %v3732_v38  ;;  %v3016_v43 = vpop.f32.mrf.mxu2 }
 0x261   : > { %v3075_v19 = vadd.f32 %v3016_v43, %v2781_v2 }
 0x262   : > { %v4170_v60 = vadd.f32 %v6258_v63, %v4134_v30  ;;  %4964 = vmatmul.msk.bf16.gmra.mxu3 %vm695_vm3, %v3575_v33 }
 0x264   : > { %v4202_v62 = vmax.f32 %v4170_v60, 0.0  ;;  %v4076_v25 = vpop.f32.mrf.mxu0 }
 0x265   : > { %v3674_v24 = vpop.f32.mrf.mxu3  ;;  %v2727_v34 = vpop.f32.mrf.mxu1 }
 0x266   : > { %v4234_v47 = vpack.c.bf16 %v4202_v62, %v4202_v62  ;;  %v3733_v58 = vadd.f32 %v3674_v24, %v3075_v19  ;;  %v2783_v42 = vadd.f32 %v2727_v34, %v5954_v3 }
 0x267   : > { %5018 = vmatmul.msk.bf16.gmra.mxu0 %vm695_vm3, %v3977_v46 }
 0x268   : > { %4267 = vst.msk [vmem:[%s6285_s20 + $0x34] sm:$0xf] %vm4253_vm7, %v4234_v47  ;;  %v4135_v54 = vadd.f32 %v4076_v25, %v3733_v58  ;;  %v3018_v44 = vpop.f32.mrf.mxu2 }
 0x269   : > { %v3076_v57 = vadd.f32 %v3018_v44, %v2782_v40 }
 0x26a   : > { %v4171_v7 = vadd.f32 %v6258_v63, %v4135_v54 }
 0x26c   : > { %v4203_v10 = vmax.f32 %v4171_v7, 0.0  ;;  %v4078_v49 = vpop.f32.mrf.mxu0 }
 0x26d   : > { %v3676_v26 = vpop.f32.mrf.mxu3  ;;  %v2729_v0 = vpop.f32.mrf.mxu1 }
 0x26e   : > { %v4235_v32 = vpack.c.bf16 %v4203_v10, %v4203_v10  ;;  %v3734_v11 = vadd.f32 %v3676_v26, %v3076_v57  ;;  %v2784_v18 = vadd.f32 %v2729_v0, %v5975_v1 }
 0x270   : > { %4268 = vst.msk [vmem:[%s6285_s20 + $0x38] sm:$0xf] %vm4253_vm7, %v4235_v32  ;;  %v4136_v4 = vadd.f32 %v4078_v49, %v3734_v11  ;;  %v3021_v50 = vpop.f32.mrf.mxu2 }
 0x271   : > { %v3077_v28 = vadd.f32 %v3021_v50, %v2783_v42 }
 0x272   : > { %v4172_v48 = vadd.f32 %v6258_v63, %v4136_v4 }
 0x274   : > { %v4204_v53 = vmax.f32 %v4172_v48, 0.0  ;;  %v4081_v6 = vpop.f32.mrf.mxu0 }
 0x275   : > { %v3679_v8 = vpop.f32.mrf.mxu3  ;;  %v2732_v52 = vpop.f32.mrf.mxu1 }
 0x276   : > { %v4236_v22 = vpack.c.bf16 %v4204_v53, %v4204_v53  ;;  %v3735_v15 = vadd.f32 %v3679_v8, %v3077_v28  ;;  %v2785_v33 = vadd.f32 %v2732_v52, %v5993_v9  ;;  %v6564_v9 = vld [vmem:[%s6631_s2] ss:$0 sm:$0xff] }
 0x278   : > { %4269 = vst.msk [vmem:[%s6285_s20 + $0x3c] sm:$0xf] %vm4253_vm7, %v4236_v22  ;;  %v4137_v59 = vadd.f32 %v4081_v6, %v3735_v15  ;;  %v3023_v5 = vpop.f32.mrf.mxu2 }
 0x279   : > { %v3078_v3 = vadd.f32 %v3023_v5, %v2784_v18 }
 0x27a   : > { %v4173_v31 = vadd.f32 %v6258_v63, %v4137_v59 }
 0x27c   : > { %v4205_v56 = vmax.f32 %v4173_v31, 0.0  ;;  %v4083_v51 = vpop.f32.mrf.mxu0 }
 0x27d   : > { %v3681_v16 = vpop.f32.mrf.mxu3  ;;  %v2734_v21 = vpop.f32.mrf.mxu1 }
 0x27e   : > { %v4237_v45 = vpack.c.bf16 %v4205_v56, %v4205_v56  ;;  %v3736_v39 = vadd.f32 %v3681_v16, %v3078_v3  ;;  %v2786_v25 = vadd.f32 %v2734_v21, %v6013_v14 }
 0x280   : > { %4270 = vst.msk [vmem:[%s6285_s20 + $0x40] sm:$0xf] %vm4253_vm7, %v4237_v45  ;;  %v4138_v38 = vadd.f32 %v4083_v51, %v3736_v39  ;;  %v3026_v17 = vpop.f32.mrf.mxu2 }
 0x281   : > { %v3079_v1 = vadd.f32 %v3026_v17, %v2785_v33 }
 0x282   : > { %v4174_v12 = vadd.f32 %v6258_v63, %v4138_v38 }
 0x284   : > { %v4206_v30 = vmax.f32 %v4174_v12, 0.0  ;;  %v4086_v2 = vpop.f32.mrf.mxu0 }
 0x285   : > { %v3684_v43 = vpop.f32.mrf.mxu3  ;;  %v2737_v60 = vpop.f32.mrf.mxu1 }
 0x286   : > { %v4238_v19 = vpack.c.bf16 %v4206_v30, %v4206_v30  ;;  %v3737_v46 = vadd.f32 %v3684_v43, %v3079_v1  ;;  %v2787_v14 = vadd.f32 %v2737_v60, %v6032_v20 }
 0x288   : > { %4271 = vst.msk [vmem:[%s6285_s20 + $0x44] sm:$0xf] %vm4253_vm7, %v4238_v19  ;;  %v4139_v62 = vadd.f32 %v4086_v2, %v3737_v46  ;;  %v3028_v24 = vpop.f32.mrf.mxu2 }
 0x289   : > { %v3080_v34 = vadd.f32 %v3028_v24, %v2786_v25 }
 0x28a   : > { %v4175_v63 = vadd.f32 %v6564_v9, %v4139_v62 }
 0x28c   : > { %v4207_v47 = vmax.f32 %v4175_v63, 0.0  ;;  %v4088_v58 = vpop.f32.mrf.mxu0 }
 0x28d   : > { %v3686_v54 = vpop.f32.mrf.mxu3  ;;  %v2739_v40 = vpop.f32.mrf.mxu1 }
 0x28e   : > { %v4239_v44 = vpack.c.bf16 %v4207_v47, %v4207_v47  ;;  %v3738_v7 = vadd.f32 %v3686_v54, %v3080_v34  ;;  %v2788_v28 = vadd.f32 %v2739_v40, %v6053_v23 }
 0x290   : > { %4272 = vst.msk [vmem:[%s6285_s20 + $0x48] sm:$0xf] %vm4253_vm7, %v4239_v44  ;;  %v4140_v57 = vadd.f32 %v4088_v58, %v3738_v7  ;;  %v3031_v10 = vpop.f32.mrf.mxu2 }
 0x291   : > { %v3081_v26 = vadd.f32 %v3031_v10, %v2787_v14 }
 0x292   : > { %v4176_v49 = vadd.f32 %v6564_v9, %v4140_v57 }
 0x294   : > { %v4208_v0 = vmax.f32 %v4176_v49, 0.0  ;;  %v4091_v32 = vpop.f32.mrf.mxu0 }
 0x295   : > { %v3689_v11 = vpop.f32.mrf.mxu3  ;;  %v2742_v4 = vpop.f32.mrf.mxu1 }
 0x296   : > { %v4240_v42 = vpack.c.bf16 %v4208_v0, %v4208_v0  ;;  %v3739_v50 = vadd.f32 %v3689_v11, %v3081_v26  ;;  %v2789_v31 = vadd.f32 %v2742_v4, %v6071_v29 }
 0x298   : > { %4273 = vst.msk [vmem:[%s6285_s20 + $0x4c] sm:$0xf] %vm4253_vm7, %v4240_v42  ;;  %v4141_v48 = vadd.f32 %v4091_v32, %v3739_v50  ;;  %v3033_v53 = vpop.f32.mrf.mxu2 }
 0x299   : > { %v3082_v20 = vadd.f32 %v3033_v53, %v2788_v28 }
 0x29a   : > { %v4177_v6 = vadd.f32 %v6564_v9, %v4141_v48 }
 0x29c   : > { %v4209_v8 = vmax.f32 %v4177_v6, 0.0  ;;  %v4093_v52 = vpop.f32.mrf.mxu0 }
 0x29d   : > { %v3691_v22 = vpop.f32.mrf.mxu3  ;;  %v2744_v15 = vpop.f32.mrf.mxu1 }
 0x29e   : > { %v4241_v59 = vpack.c.bf16 %v4209_v8, %v4209_v8  ;;  %v3740_v18 = vadd.f32 %v3691_v22, %v3082_v20  ;;  %v2790_v17 = vadd.f32 %v2744_v15, %v6091_v41 }
 0x2a0   : > { %4274 = vst.msk [vmem:[%s6285_s20 + $0x50] sm:$0xf] %vm4253_vm7, %v4241_v59  ;;  %v4142_v5 = vadd.f32 %v4093_v52, %v3740_v18  ;;  %v3036_v3 = vpop.f32.mrf.mxu2 }
 0x2a1   : > { %v3083_v23 = vadd.f32 %v3036_v3, %v2789_v31 }
 0x2a2   : > { %v4178_v56 = vadd.f32 %v6564_v9, %v4142_v5 }
 0x2a4   : > { %v4210_v51 = vmax.f32 %v4178_v56, 0.0  ;;  %v4096_v16 = vpop.f32.mrf.mxu0 }
 0x2a5   : > { %v3694_v21 = vpop.f32.mrf.mxu3  ;;  %v2747_v45 = vpop.f32.mrf.mxu1 }
 0x2a6   : > { %v4242_v39 = vpack.c.bf16 %v4210_v51, %v4210_v51  ;;  %v3741_v38 = vadd.f32 %v3694_v21, %v3083_v23  ;;  %v2791_v25 = vadd.f32 %v2747_v45, %v6110_v35  ;;  %v6642_v21 = vld [vmem:[#allocation4_spill] sm:$0xff] }
 0x2a8   : > { %4275 = vst.msk [vmem:[%s6285_s20 + $0x54] sm:$0xf] %vm4253_vm7, %v4242_v39  ;;  %v4143_v33 = vadd.f32 %v4096_v16, %v3741_v38  ;;  %v3038_v12 = vpop.f32.mrf.mxu2 }
 0x2a9   : > { %v3084_v29 = vadd.f32 %v3038_v12, %v2790_v17 }
 0x2aa   : > { %v4179_v1 = vadd.f32 %v6564_v9, %v4143_v33 }
 0x2ac   : > { %v4211_v30 = vmax.f32 %v4179_v1, 0.0  ;;  %v4098_v2 = vpop.f32.mrf.mxu0 }
 0x2ad   : > { %v3696_v43 = vpop.f32.mrf.mxu3  ;;  %v2749_v60 = vpop.f32.mrf.mxu1 }
 0x2ae   : > { %v4243_v19 = vpack.c.bf16 %v4211_v30, %v4211_v30  ;;  %v3742_v46 = vadd.f32 %v3696_v43, %v3084_v29  ;;  %v2792_v57 = vadd.f32 %v2749_v60, %v6131_v55 }
 0x2b0   : > { %4276 = vst.msk [vmem:[%s6285_s20 + $0x58] sm:$0xf] %vm4253_vm7, %v4243_v19  ;;  %v4144_v62 = vadd.f32 %v4098_v2, %v3742_v46  ;;  %v3041_v24 = vpop.f32.mrf.mxu2 }
 0x2b1   : > { %v3085_v41 = vadd.f32 %v3041_v24, %v2791_v25 }
 0x2b2   : > { %v4180_v63 = vadd.f32 %v6564_v9, %v4144_v62 }
 0x2b4   : > { %v4212_v34 = vmax.f32 %v4180_v63, 0.0  ;;  %v4101_v47 = vpop.f32.mrf.mxu0 }
 0x2b5   : > { %v3699_v58 = vpop.f32.mrf.mxu3  ;;  %v2752_v54 = vpop.f32.mrf.mxu1 }
 0x2b6   : > { %v4244_v40 = vpack.c.bf16 %v4212_v34, %v4212_v34  ;;  %v3743_v44 = vadd.f32 %v3699_v58, %v3085_v41  ;;  %v2793_v50 = vadd.f32 %v2752_v54, %v6149_v13 }
 0x2b8   : > { %4277 = vst.msk [vmem:[%s6285_s20 + $0x5c] sm:$0xf] %vm4253_vm7, %v4244_v40  ;;  %v4145_v7 = vadd.f32 %v4101_v47, %v3743_v44  ;;  %v3043_v14 = vpop.f32.mrf.mxu2 }
 0x2b9   : > { %v3086_v35 = vadd.f32 %v3043_v14, %v2792_v57 }
 0x2ba   : > { %v4181_v10 = vadd.f32 %v6564_v9, %v4145_v7 }
 0x2bc   : > { %v4213_v49 = vmax.f32 %v4181_v10, 0.0  ;;  %v4103_v26 = vpop.f32.mrf.mxu0 }
 0x2bd   : > { %v3701_v0 = vpop.f32.mrf.mxu3  ;;  %v2754_v32 = vpop.f32.mrf.mxu1 }
 0x2be   : > { %v4245_v11 = vpack.c.bf16 %v4213_v49, %v4213_v49  ;;  %v3744_v4 = vadd.f32 %v3701_v0, %v3086_v35  ;;  %v2794_v59 = vadd.f32 %v2754_v32, %v6175_v61 }
 0x2c0   : > { %4278 = vst.msk [vmem:[%s6285_s20 + $0x60] sm:$0xf] %vm4253_vm7, %v4245_v11  ;;  %v4146_v42 = vadd.f32 %v4103_v26, %v3744_v4  ;;  %v3046_v48 = vpop.f32.mrf.mxu2 }
 0x2c1   : > { %v3087_v55 = vadd.f32 %v3046_v48, %v2793_v50 }
 0x2c2   : > { %v4182_v28 = vadd.f32 %v6564_v9, %v4146_v42 }
 0x2c4   : > { %v4214_v53 = vmax.f32 %v4182_v28, 0.0  ;;  %v4106_v6 = vpop.f32.mrf.mxu0 }
 0x2c5   : > { %v3704_v20 = vpop.f32.mrf.mxu3  ;;  %v2757_v22 = vpop.f32.mrf.mxu1 }
 0x2c6   : > { %v4246_v8 = vpack.c.bf16 %v4214_v53, %v4214_v53  ;;  %v3745_v52 = vadd.f32 %v3704_v20, %v3087_v55  ;;  %v2795_v45 = vadd.f32 %v2757_v22, %v6642_v21 }
 0x2c8   : > { %4279 = vst.msk [vmem:[%s6285_s20 + $0x64] sm:$0xf] %vm4253_vm7, %v4246_v8  ;;  %v4147_v15 = vadd.f32 %v4106_v6, %v3745_v52  ;;  %v3048_v18 = vpop.f32.mrf.mxu2 }
 0x2c9   : > { %v3088_v13 = vadd.f32 %v3048_v18, %v2794_v59 }
 0x2ca   : > { %v4183_v5 = vadd.f32 %v6564_v9, %v4147_v15 }
 0x2cc   : > { %v4215_v31 = vmax.f32 %v4183_v5, 0.0  ;;  %v4108_v3 = vpop.f32.mrf.mxu0 }
 0x2cd   : > { %v3706_v56 = vpop.f32.mrf.mxu3  ;;  %v2759_v38 = vpop.f32.mrf.mxu1 }
 0x2ce   : > { %v4247_v23 = vpack.c.bf16 %v4215_v31, %v4215_v31  ;;  %v3746_v51 = vadd.f32 %v3706_v56, %v3088_v13  ;;  %v2796_v43 = vadd.f32 %v2759_v38, %v6214_v36 }
 0x2d0   : > { %4280 = vst.msk [vmem:[%s6285_s20 + $0x68] sm:$0xf] %vm4253_vm7, %v4247_v23  ;;  %v4148_v16 = vadd.f32 %v4108_v3, %v3746_v51  ;;  %v3051_v39 = vpop.f32.mrf.mxu2 }
 0x2d1   : > { %v3089_v61 = vadd.f32 %v3051_v39, %v2795_v45 }
 0x2d2   : > { %v4184_v33 = vadd.f32 %v6564_v9, %v4148_v16 }
 0x2d4   : > { %v4216_v17 = vmax.f32 %v4184_v33, 0.0  ;;  %v4111_v12 = vpop.f32.mrf.mxu0 }
 0x2d5   : > { %v3709_v1 = vpop.f32.mrf.mxu3  ;;  %v2762_v62 = vpop.f32.mrf.mxu1 }
 0x2d6   : > { %v4248_v29 = vpack.c.bf16 %v4216_v17, %v4216_v17  ;;  %v3747_v30 = vadd.f32 %v3709_v1, %v3089_v61  ;;  %v2797_v58 = vadd.f32 %v2762_v62, %v6229_v27 }
 0x2d8   : > { %4281 = vst.msk [vmem:[%s6285_s20 + $0x6c] sm:$0xf] %vm4253_vm7, %v4248_v29  ;;  %v4149_v2 = vadd.f32 %v4111_v12, %v3747_v30  ;;  %v3053_v60 = vpop.f32.mrf.mxu2 }
 0x2d9   : > { %v3090_v46 = vadd.f32 %v3053_v60, %v2796_v43 }
 0x2da   : > { %v4185_v19 = vadd.f32 %v6564_v9, %v4149_v2 }
 0x2dc   : > { %v4217_v25 = vmax.f32 %v4185_v19, 0.0  ;;  %v4113_v24 = vpop.f32.mrf.mxu0 }
 0x2dd   : > { %v3711_v63 = vpop.f32.mrf.mxu3  ;;  %v2764_v7 = vpop.f32.mrf.mxu1 }
 0x2de   : > { %v4249_v41 = vpack.c.bf16 %v4217_v25, %v4217_v25  ;;  %v3748_v34 = vadd.f32 %v3711_v63, %v3090_v46  ;;  %v2798_v26 = vadd.f32 %v2764_v7, %v6250_v37 }
 0x2e0   : > { %4282 = vst.msk [vmem:[%s6285_s20 + $0x70] sm:$0xf] %vm4253_vm7, %v4249_v41  ;;  %v4150_v47 = vadd.f32 %v4113_v24, %v3748_v34  ;;  %v3056_v54 = vpop.f32.mrf.mxu2 }
 0x2e1   : > { %v3091_v36 = vadd.f32 %v3056_v54, %v2797_v58 }
 0x2e2   : > { %v4186_v40 = vadd.f32 %v6564_v9, %v4150_v47 }
 0x2e4   : > { %v4218_v44 = vmax.f32 %v4186_v40, 0.0  ;;  %v4116_v57 = vpop.f32.mrf.mxu0 }
 0x2e5   : > { %v3714_v14 = vpop.f32.mrf.mxu3 }
 0x2e6   : > { %v4250_v10 = vpack.c.bf16 %v4218_v44, %v4218_v44  ;;  %v3749_v35 = vadd.f32 %v3714_v14, %v3091_v36 }
 0x2e8   : > { %4283 = vst.msk [vmem:[%s6285_s20 + $0x74] sm:$0xf] %vm4253_vm7, %v4250_v10  ;;  %v4151_v49 = vadd.f32 %v4116_v57, %v3749_v35  ;;  %v3058_v0 = vpop.f32.mrf.mxu2 }
 0x2e9   : > { %v3092_v32 = vadd.f32 %v3058_v0, %v2798_v26 }
 0x2ea   : > { %v4187_v27 = vadd.f32 %v6564_v9, %v4151_v49 }
 0x2ec   : > { %v4219_v11 = vmax.f32 %v4187_v27, 0.0  ;;  %v4118_v48 = vpop.f32.mrf.mxu0 }
 0x2ed   : > { %v3716_v4 = vpop.f32.mrf.mxu3 }
 0x2ee   : > { %v4251_v42 = vpack.c.bf16 %v4219_v11, %v4219_v11  ;;  %v3750_v50 = vadd.f32 %v3716_v4, %v3092_v32 }
 0x2f0   : > { %4284 = vst.msk [vmem:[%s6285_s20 + $0x78] sm:$0xf] %vm4253_vm7, %v4251_v42  ;;  %v4152_v28 = vadd.f32 %v4118_v48, %v3750_v50 }
 0x2f2   : > { %v4188_v55 = vadd.f32 %v6564_v9, %v4152_v28 }
 0x2f4   : > { %v4220_v53 = vmax.f32 %v4188_v55, 0.0 }
 0x2f6   : > { %v4252_v6 = vpack.c.bf16 %v4220_v53, %v4220_v53 }
 0x2f8   : > { %4285 = vst.msk [vmem:[%s6285_s20 + $0x7c] sm:$0xf] %vm4253_vm7, %v4252_v6 }
 0x2f9 PF: > { %s13_s14 = sadd.s32 1, %s5181_s14   ;;  %s6643_s12 = smov %s5177_s13 }
 0x2fa   : > { %p10_p5 = scmp.ge.s32.totalorder %s13_s14, 4   ;;  %s6644_s13 = smov %s6646_s15 }
 0x2fc   :  { %12 = sbr.rel (!%p10_p5) target bundleno = 2 (0x2), region = 73 }

// kernel: model_forward.6
= control target key start
LH: loop header
LB: loop body
LE: loop exit
PB: predicated region body
PF: predicated region fallthrough
CT: control target
= control target key end

     0   :  { %s2113_s12 = smov 0   ;;  %s2115_s13 = smov 0   ;;  %s2601_s0 = inlined_call_operand.vmem [shape: bf16[2,10,10,32], index: 0, kind: input, shape index: {}]   ;;  %s2602_s1 = inlined_call_operand.vmem [shape: bf16[9,32,128], index: 1, kind: input, shape index: {}]   ;;  %s2603_s2 = inlined_call_operand.vmem [shape: f32[1,128], index: 2, kind: input, shape index: {}]   ;;  %s2604_s3 = inlined_call_operand.vmem [shape: bf16[8,2,8,128], index: 3, kind: output, shape index: {}]  }
   0x1   :  { %s2117_s14 = smov 0   ;;  %s2119_s15 = smov 0  }
   0x2   :  { %s2121_s16 = smov 0  }
   0x3 LB: > { %s1665_s17 = sadd.s32 4294967295, %s2091_s16   ;;  %s25_s18 = sadd.s32 1, %s2087_s15  ;;  %s2091_s16 = sphi %s2121_s16, %s13_s16   ;;  %s2087_s15 = sphi %s2119_s15, %s2613_s15   ;;  %s2083_s14 = sphi %s2117_s14, %s2612_s14   ;;  %s2079_s13 = sphi %s2115_s13, %s2611_s13   ;;  %s2075_s12 = sphi %s2113_s12, %s2610_s12  }
   0x4   : > { %p27_p0 = scmp.ge.s32.totalorder %s25_s18, 2  ;;  %s102_s19 = sadd.s32 1, %s2079_s13 }
   0x5   : > { %p112_p1 = scmp.ne.s32.totalorder %s2079_s13, %s2075_s12  ;;  %p113_p2 = scmp.eq.s32.totalorder %s1665_s17, 1 }
   0x6   : > { %s2615_s18 = smov (%p27_p0, %s25_s18), 0  ;;  %p1669_p4 = scmp.ge.s32.totalorder %s2091_s16, 1 }
   0x7   : > { %p2145_p3 = por %p113_p2, %p112_p1  ;;  %s98_s21 = ssub.s32 %s2087_s15, %s2615_s18 }
   0x8   : > { %p151_p5 = scmp.lt.s32.totalorder %s2091_s16, 3  ;;  %p100_p6 = scmp.eq.s32.totalorder %s98_s21, 0 }
   0xa   : > { %p152_p7 = pnand %p1669_p4, %p151_p5 }
   0xb   : > { %s2154_s22 = scalar_select %p100_p6, %s2079_s13, %s102_s19  }
   0xc   : > { %155 = sbr.rel (%p152_p7) target bundleno = 335 (0x14f), region = 32  ;;  %p174_p8 = scmp.lt.s32.totalorder (!%p152_p7), %s2083_s14, 1 }
  0x11   : > { %v1959_v0 = vld [vmem:[%s2602_s1 + $0x18] sm:$0xff]  ;;  %v1958_v1 = vld [vmem:[%s2602_s1 + $0x10] sm:$0xff]  ;;  %s175_s27 = scalar_select %p174_p8, %s2083_s14, 1  ;;  %v1961_v2 = vld [vmem:[%s2602_s1 + $0x28] sm:$0xff]  ;;  %vm205_vm0 = vsmask.f32 3328 }
  0x12   : > { %2005 = vmatpush.bf16.msra.mxu1 %v1959_v0  ;;  %2006 = vmatpush.bf16.msra.mxu2 %v1959_v0  ;;  %v1967_v3 = vld [vmem:[%s2602_s1 + $0x38] sm:$0xff]  ;;  %v1957_v4 = vld [vmem:[%s2602_s1 + $0x8] sm:$0xff]  ;;  %vm206_vm1 = vsmask.f32 7440  ;;  %v1960_v6 = vld [vmem:[%s2602_s1 + $0x20] sm:$0xff]  ;;  %vm349_vm2 = vcmask 261120  }
  0x13   : > { %2007 = vmatpush.bf16.msra.mxu3 %v1959_v0  ;;  %368 = vmatpush.bf16.msra.mxu0 %v1959_v0  ;;  %s2011_s28 = smul.u32 80, %s175_s27  ;;  %v1969_v5 = vld [vmem:[%s2602_s1 + $0x48] sm:$0xff]  ;;  %v1966_v7 = vld [vmem:[%s2602_s1 + $0x30] sm:$0xff]  ;;  %v1956_v11 = vld [vmem:[%s2602_s1] sm:$0xff]  ;;  %vm488_vm4 = vcmask 1042432   ;;  %vm489_vm5 = vcmask 1046532  }
  0x14   : > { %v1968_v12 = vld [vmem:[%s2602_s1 + $0x40] sm:$0xff]  ;;  %vm2215_vm3 = vmor %vm205_vm0, %vm206_vm1 }
  0x15   : > { %s2179_s17 = scalar_lea.vmem %s2601_s0, %s2011_s28  ;;  %vm2255_vm6 = vmor %vm488_vm4, %vm489_vm5  ;;  %s171_s28 = sand.u32 1, %s2075_s12  }
  0x16   : > { %2008 = vmatpush.bf16.msra.mxu1 %v1958_v1  ;;  %2009 = vmatpush.bf16.msra.mxu2 %v1958_v1  ;;  %v187_v8 = vld [vmem:[%s2179_s17 + $0x10] sm:$0xf]  ;;  %v188_v9 = vld [vmem:[%s2179_s17 + $0x18] sm:$0xf]  ;;  %v2190_v10 = vld [vmem:[%s2179_s17 + $0x14] sm:$0x1] }
  0x17   : > { %2010 = vmatpush.bf16.msra.mxu3 %v1958_v1  ;;  %369 = vmatpush.bf16.msra.mxu0 %v1958_v1  ;;  %v2199_v13 = vld [vmem:[%s2179_s17 + $0x1c] sm:$0x1]  ;;  %v237_v14 = vshrl.u32 %v187_v8, 16  ;;  %v240_v15 = vshll.u32 %v187_v8, 16  ;;  %v246_v16 = vshll.u32 %v2190_v10, 16  ;;  %v251_v17 = vshrl.u32 %v188_v9, 16 }
  0x18   : > { %v254_v18 = vshll.u32 %v188_v9, 16  ;;  %v260_v19 = vshll.u32 %v2199_v13, 16  ;;  %v189_v20 = vld [vmem:[%s2179_s17 + $0x20] sm:$0xf]  ;;  %v190_v21 = vld [vmem:[%s2179_s17 + $0x28] sm:$0xf] }
  0x19   : > { %v239_v22 = vrot.slane %v237_v14, 4  ;;  %v242_v23 = vrot.slane %v240_v15, 5  ;;  %v248_v24 = vrot.slane %v246_v16, 5  ;;  %v253_v25 = vrot.slane %v251_v17, 4  ;;  %v2206_v26 = vld [vmem:[%s2179_s17 + $0x24] sm:$0x1] }
  0x1a   : > { %570 = vmatpush.bf16.msrb.mxu2 %v1961_v2  ;;  %441 = vmatpush.bf16.msrb.mxu1 %v1957_v4  ;;  %v256_v27 = vrot.slane %v254_v18, 5  ;;  %v262_v28 = vrot.slane %v260_v19, 5  ;;  %v2209_v29 = vld [vmem:[%s2179_s17 + $0x2c] sm:$0x1]  ;;  %v265_v30 = vshrl.u32 %v189_v20, 16  ;;  %v268_v31 = vshll.u32 %v189_v20, 16 }
  0x1b   : > { %668 = vmatpush.bf16.msrb.mxu3 %v1967_v3  ;;  %874 = vmatpush.bf16.msrb.mxu0 %v1969_v5  ;;  %v243_v32 = vor.u32 %v242_v23, %v239_v22  ;;  %v274_v33 = vshll.u32 %v2206_v26, 16  ;;  %v279_v34 = vshrl.u32 %v190_v21, 16  ;;  %v282_v35 = vshll.u32 %v190_v21, 16  ;;  %v191_v36 = vld [vmem:[%s2179_s17 + $0x30] sm:$0xf]  ;;  %v1977_v22 = vld [vmem:[%s2602_s1 + $0x68] sm:$0xff] }
  0x1c   : > { %v257_v38 = vor.u32 %v256_v27, %v253_v25  ;;  %v267_v39 = vrot.slane %v265_v30, 4  ;;  %v270_v40 = vrot.slane %v268_v31, 5  ;;  %v288_v41 = vshll.u32 %v2209_v29, 16  ;;  %v2221_v46 = vld [vmem:[%s2179_s17 + $0x34] sm:$0x1]  ;;  %s1670_s29 = sshll.u32 %s171_s28, 5 }
  0x1d   : > { %v244_v42 = vrot.slane %v243_v32, 4  ;;  %v276_v43 = vrot.slane %v274_v33, 5  ;;  %v281_v44 = vrot.slane %v279_v34, 4  ;;  %v284_v45 = vrot.slane %v282_v35, 5  ;;  %v192_v53 = vld [vmem:[%s2179_s17 + $0x38] sm:$0xf] }
  0x1e   : > { %571 = vmatpush.bf16.msrb.mxu2 %v1960_v6  ;;  %442 = vmatpush.bf16.msrb.mxu1 %v1956_v11  ;;  %v258_v47 = vrot.slane %v257_v38, 4  ;;  %v271_v48 = vor.u32 %v270_v40, %v267_v39  ;;  %v290_v49 = vrot.slane %v288_v41, 5  ;;  %v293_v50 = vshrl.u32 %v191_v36, 16  ;;  %v2227_v54 = vld [vmem:[%s2179_s17 + $0x3c] sm:$0x1]  ;;  %s2548_s30 = scalar_lea.vmem [#allocation2], %s1670_s29 }
  0x1f   : > { %669 = vmatpush.bf16.msrb.mxu3 %v1966_v7  ;;  %875 = vmatpush.bf16.msrb.mxu0 %v1968_v12  ;;  %v249_v51 = vsel %vm2215_vm3, %v244_v42, %v248_v24  ;;  %v285_v52 = vor.u32 %v284_v45, %v281_v44  ;;  %v296_v55 = vshll.u32 %v191_v36, 16  ;;  %v302_v56 = vshll.u32 %v2221_v46, 16  ;;  %v185_v1 = vld [vmem:[%s2179_s17] sm:$0xf]  ;;  %v197_v6 = vld [vmem:[%s2179_s17 + $0x4] sm:$0x1] }
  0x20   : > { %v263_v57 = vsel %vm2215_vm3, %v258_v47, %v262_v28  ;;  %v327_v58 = vunpack.c.l.b16 %v249_v51  ;;  %v272_v59 = vrot.slane %v271_v48, 4  ;;  %v295_v60 = vrot.slane %v293_v50, 4  ;;  %v186_v12 = vld [vmem:[%s2179_s17 + $0x8] sm:$0xf]  ;;  %v198_v25 = vld [vmem:[%s2179_s17 + $0xc] sm:$0x1] }
  0x21   : > { %v328_v61 = vunpack.c.l.b16 %v263_v57  ;;  %v286_v62 = vrot.slane %v285_v52, 4  ;;  %v298_v63 = vrot.slane %v296_v55, 5  ;;  %v304_v0 = vrot.slane %v302_v56, 5  ;;  %v464_v34 = vld [vmem:[%s2179_s17] sm:$0xe]  ;;  %v1971_v35 = vld [vmem:[%s2602_s1 + $0x58] sm:$0xff] }
  0x22   : > { %v277_v2 = vsel %vm2215_vm3, %v272_v59, %v276_v43  ;;  %v307_v3 = vshrl.u32 %v192_v53, 16  ;;  %v310_v4 = vshll.u32 %v192_v53, 16  ;;  %v316_v5 = vshll.u32 %v2227_v54, 16  ;;  %v465_v41 = vld [vmem:[%s2179_s17 + $0x8] sm:$0xe]  ;;  %s1949_s12 = sshll.u32 (%p2145_p3), %s2083_s14, 2 }
  0x23   : > { %v334_v7 = vpack.c.b16 %v328_v61, %v327_v58  ;;  %v291_v8 = vsel %vm2215_vm3, %v286_v62, %v290_v49  ;;  %v329_v9 = vunpack.c.l.b16 %v277_v2  ;;  %v299_v11 = vor.u32 %v298_v63, %v295_v60  ;;  %v1780_v48 = vld [vmem:[%s2179_s17 + $0x8] sm:$0xf]  ;;  %v1782_v59 = vld [vmem:[%s2179_s17 + $0x10] sm:$0xf]  ;;  %v1979_v61 = vld [vmem:[%s2602_s1 + $0x78] sm:$0xff]  ;;  %s1524_s6 = scalar_lea.vmem (%p2145_p3), %s2604_s3, %s1949_s12 }
  0x24   : > { %v330_v14 = vunpack.c.l.b16 %v291_v8  ;;  %v309_v15 = vrot.slane %v307_v3, 4  ;;  %v312_v16 = vrot.slane %v310_v4, 5  ;;  %v318_v17 = vrot.slane %v316_v5, 5  ;;  %v2276_v2 = vld [vmem:[%s2179_s17 + $0x14] sm:$0x1] }
  0x25   : > { %1685 = vmatmul.msk.bf16.vlgmr.msra.gmra.mxu1 %vm349_vm2, %v334_v7  ;;  %v300_v18 = vrot.slane %v299_v11, 4  ;;  %v209_v19 = vshrl.u32 %v185_v1, 16  ;;  %v212_v20 = vshll.u32 %v185_v1, 16  ;;  %v218_v21 = vshll.u32 %v197_v6, 16  ;;  %v2273_v1 = vld [vmem:[%s2179_s17 + $0xc] sm:$0x1] }
  0x26   : > { %v335_v23 = vpack.c.b16 %v330_v14, %v329_v9  ;;  %v313_v24 = vor.u32 %v312_v16, %v309_v15  ;;  %v223_v27 = vshrl.u32 %v186_v12, 16  ;;  %v226_v28 = vshll.u32 %v186_v12, 16  ;;  %1008 = vmatpush.bf16.msra.mxu1 %v1971_v35  ;;  %v1690_v5 = vld [vmem:[%s2179_s17] sm:$0xf] }
  0x27   : > { %v305_v30 = vsel %vm2215_vm3, %v300_v18, %v304_v0  ;;  %v211_v31 = vrot.slane %v209_v19, 4  ;;  %v214_v32 = vrot.slane %v212_v20, 5  ;;  %v220_v33 = vrot.slane %v218_v21, 5  ;;  %v1981_v18 = vld [vmem:[%s2602_s1 + $0x88] sm:$0xff] }
  0x28   : > { %1686 = vmatmul.msk.bf16.vlgmr.msra.gmra.mxu2 %vm349_vm2, %v335_v23  ;;  %v314_v36 = vrot.slane %v313_v24, 4  ;;  %v331_v38 = vunpack.c.l.b16 %v305_v30  ;;  %v225_v39 = vrot.slane %v223_v27, 4  ;;  %v228_v40 = vrot.slane %v226_v28, 5 }
  0x29   : > { %v215_v42 = vor.u32 %v214_v32, %v211_v31  ;;  %v232_v43 = vshll.u32 %v198_v25, 16  ;;  %v493_v44 = vrot.slane %v197_v6, 5  ;;  %v497_v45 = vrot.slane %v198_v25, 5  ;;  %1106 = vmatpush.bf16.msra.mxu2 %v1977_v22  ;;  %v1952_v6 = vld [vmem:[%s2179_s17 + $0x4] sm:$0xf0] }
  0x2a   : > { %v319_v49 = vsel %vm2215_vm3, %v314_v36, %v318_v17  ;;  %v229_v50 = vor.u32 %v228_v40, %v225_v39  ;;  %v1716_v51 = vrot.slane %v464_v34, 9  ;;  %v1717_v56 = vrot.slane %v465_v41, 9  ;;  %v466_v31 = vld [vmem:[%s2179_s17 + $0x10] sm:$0xe]  ;;  %v1784_v32 = vld [vmem:[%s2179_s17 + $0x18] sm:$0xf] }
  0x2b   : > { %v332_v52 = vunpack.c.l.b16 %v319_v49  ;;  %v216_v53 = vrot.slane %v215_v42, 4  ;;  %v234_v55 = vrot.slane %v232_v43, 5  ;;  %v716_v60 = vshrl.u32 %v1780_v48, 16  ;;  %v1786_v34 = vld [vmem:[%s2179_s17 + $0x20] sm:$0xf] }
  0x2c   : > { %v230_v57 = vrot.slane %v229_v50, 4  ;;  %v494_v58 = vsel %vm2255_vm6, %v1716_v51, %v493_v44  ;;  %v498_v0 = vsel %vm2255_vm6, %v1717_v56, %v497_v45  ;;  %v719_v11 = vshll.u32 %v1780_v48, 16  ;;  %v467_v36 = vld [vmem:[%s2179_s17 + $0x18] sm:$0xe]  ;;  %v1754_v42 = vld [vmem:[%s2179_s17 + $0x8] sm:$0xf] }
  0x2d   : > { %v336_v62 = vpack.c.b16 %v332_v52, %v331_v38  ;;  %v221_v63 = vsel %vm2215_vm3, %v216_v53, %v220_v33  ;;  %v528_v7 = vunpack.c.l.b16 %v494_v58  ;;  %v718_v9 = vrot.slane %v716_v60, 4  ;;  %v1962_v43 = vld [vmem:[%s2179_s17 + $0xc] sm:$0xf0]  ;;  %v2306_v56 = vld [vmem:[%s2179_s17 + $0x1c] sm:$0x1] }
  0x2e   : > { %v235_v3 = vsel %vm2215_vm3, %v230_v57, %v234_v55  ;;  %v325_v4 = vunpack.c.l.b16 %v221_v63  ;;  %v730_v12 = vshrl.u32 %v1782_v59, 16  ;;  %v529_v14 = vunpack.c.l.b16 %v498_v0  ;;  %v1694_v63 = vld [vmem:[%s2179_s17 + $0x10] sm:$0xf] }
  0x2f   : > { %1687 = vmatmul.msk.bf16.vlgmr.msra.gmra.mxu3 %vm349_vm2, %v336_v62  ;;  %v326_v8 = vunpack.c.l.b16 %v235_v3  ;;  %v725_v15 = vshll.u32 %v2273_v1, 16  ;;  %v733_v16 = vshll.u32 %v1782_v59, 16  ;;  %v739_v17 = vshll.u32 %v2276_v2, 16  ;;  %v2311_v62 = vld [vmem:[%s2179_s17 + $0x24] sm:$0x1] }
  0x30   : > { %1312 = vmatpush.bf16.msra.mxu3 %v1979_v61  ;;  %v1691_v20 = vor.u32 %v1952_v6, %v1690_v5  ;;  %v721_v21 = vrot.slane %v719_v11, 5  ;;  %v732_v22 = vrot.slane %v730_v12, 4  ;;  %v536_v25 = vpack.c.b16 %v529_v14, %v528_v7  ;;  %v1976_v5 = vld [vmem:[%s2602_s1 + $0x60] sm:$0xff]  ;;  %v1788_v12 = vld [vmem:[%s2179_s17 + $0x28] sm:$0xf] }
  0x31   : > { %v333_v19 = vpack.c.b16 %v326_v8, %v325_v4  ;;  %v735_v23 = vrot.slane %v733_v16, 5  ;;  %v727_v27 = vrot.slane %v725_v15, 5  ;;  %v741_v30 = vrot.slane %v739_v17, 5  ;;  %1107 = vmatpush.bf16.msra.mxu2 %v1976_v5  ;;  %v1978_v15 = vld [vmem:[%s2602_s1 + $0x70] sm:$0xff]  ;;  %v1980_v17 = vld [vmem:[%s2602_s1 + $0x80] sm:$0xff] }
  0x32   : > { %v722_v24 = vor.u32 %v721_v21, %v718_v9  ;;  %v1718_v38 = vrot.slane %v466_v31, 9  ;;  %v501_v39 = vrot.slane %v2190_v10, 5  ;;  %v744_v40 = vshrl.u32 %v1784_v32, 16  ;;  %v1970_v16 = vld [vmem:[%s2602_s1 + $0x50] sm:$0xff] }
  0x33   : > { %1684 = vmatmul.msk.bf16.vlgmr.msra.gmra.mxu0 %vm349_vm2, %v333_v19  ;;  %v736_v28 = vor.u32 %v735_v23, %v732_v22  ;;  %v747_v41 = vshll.u32 %v1784_v32, 16  ;;  %v758_v48 = vshrl.u32 %v1786_v34, 16  ;;  %v761_v49 = vshll.u32 %v1786_v34, 16  ;;  %v1790_v22 = vld [vmem:[%s2179_s17 + $0x30] sm:$0xf]  ;;  %1009 = vmatpush.bf16.msra.mxu1 %v1970_v16 }
  0x34   : > { %1446 = vmatpush.bf16.msra.mxu0 %v1981_v18  ;;  %v723_v33 = vrot.slane %v722_v24, 4  ;;  %v1719_v50 = vrot.slane %v467_v36, 9  ;;  %v505_v10 = vrot.slane %v2199_v13, 5  ;;  %v1755_v51 = vor.u32 %v1962_v43, %v1754_v42  ;;  %v1953_v13 = vld [vmem:[%s2179_s17 + $0x14] sm:$0xf0]  ;;  %1313 = vmatpush.bf16.msra.mxu3 %v1978_v15 }
  0x35   : > { %1712 = vmatmul.msk.bf16.vlgmr.msrb.gmra.mxu1 %vm349_vm2, %v1691_v20  ;;  %v737_v35 = vrot.slane %v736_v28, 4  ;;  %v502_v55 = vsel %vm2255_vm6, %v1718_v38, %v501_v39  ;;  %v746_v57 = vrot.slane %v744_v40, 4  ;;  %v749_v58 = vrot.slane %v747_v41, 5  ;;  %v468_v23 = vld [vmem:[%s2179_s17 + $0x20] sm:$0xe] }
  0x36   : > { %v728_v44 = vsel %vm2215_vm3, %v723_v33, %v727_v27  ;;  %v760_v59 = vrot.slane %v758_v48, 4  ;;  %v763_v60 = vrot.slane %v761_v49, 5  ;;  %v506_v61 = vsel %vm2255_vm6, %v1719_v50, %v505_v10  ;;  %v469_v24 = vld [vmem:[%s2179_s17 + $0x28] sm:$0xe]  ;;  %v1758_v28 = vld [vmem:[%s2179_s17 + $0x18] sm:$0xf] }
  0x37   : > { %v742_v45 = vsel %vm2215_vm3, %v737_v35, %v741_v30  ;;  %v832_v52 = vunpack.c.l.b16 %v728_v44  ;;  %v530_v3 = vunpack.c.l.b16 %v502_v55  ;;  %v753_v4 = vshll.u32 %v2306_v56, 16  ;;  %v1963_v30 = vld [vmem:[%s2179_s17 + $0x1c] sm:$0xf0] }
  0x38   : > { %1736 = vmatmul.msk.bf16.vlgmr.msrb.gmra.mxu2 %vm349_vm2, %v536_v25  ;;  %v833_v53 = vunpack.c.l.b16 %v742_v45  ;;  %v531_v6 = vunpack.c.l.b16 %v506_v61  ;;  %v750_v7 = vor.u32 %v749_v58, %v746_v57  ;;  %v764_v8 = vor.u32 %v763_v60, %v760_v59  ;;  %1447 = vmatpush.bf16.msra.mxu0 %v1980_v17  ;;  %v2346_v45 = vld [vmem:[%s2179_s17 + $0x2c] sm:$0x1] }
  0x39   : > { %v767_v9 = vshll.u32 %v2311_v62, 16  ;;  %v1695_v11 = vor.u32 %v1953_v13, %v1694_v63  ;;  %v755_v14 = vrot.slane %v753_v4, 5  ;;  %v772_v25 = vshrl.u32 %v1788_v12, 16 }
  0x3a   : > { %v840_v0 = vpack.c.b16 %v833_v53, %v832_v52  ;;  %v537_v18 = vpack.c.b16 %v531_v6, %v530_v3  ;;  %v751_v19 = vrot.slane %v750_v7, 4  ;;  %v765_v20 = vrot.slane %v764_v8, 4  ;;  %v471_v6 = vld [vmem:[%s2179_s17 + $0x38] sm:$0xe]  ;;  %v1794_v8 = vld [vmem:[%s2179_s17 + $0x40] sm:$0xf] }
  0x3b   : > { %v769_v21 = vrot.slane %v767_v9, 5  ;;  %v775_v27 = vshll.u32 %v1788_v12, 16  ;;  %v786_v33 = vshrl.u32 %v1790_v22, 16  ;;  %v789_v34 = vshll.u32 %v1790_v22, 16  ;;  %v1792_v7 = vld [vmem:[%s2179_s17 + $0x38] sm:$0xf] }
  0x3c   : > { %v756_v31 = vsel %vm2215_vm3, %v751_v19, %v755_v14  ;;  %v1720_v35 = vrot.slane %v468_v23, 9  ;;  %v509_v36 = vrot.slane %v2206_v26, 5  ;;  %v1721_v38 = vrot.slane %v469_v24, 9  ;;  %v2353_v26 = vld [vmem:[%s2179_s17 + $0x34] sm:$0x1] }
  0x3d   : > { %v770_v32 = vsel %vm2215_vm3, %v765_v20, %v769_v21  ;;  %v513_v39 = vrot.slane %v2209_v29, 5  ;;  %v774_v40 = vrot.slane %v772_v25, 4  ;;  %v777_v41 = vrot.slane %v775_v27, 5  ;;  %v1954_v29 = vld [vmem:[%s2179_s17 + $0x24] sm:$0xf0] }
  0x3e   : > { %v1759_v42 = vor.u32 %v1963_v30, %v1758_v28  ;;  %v834_v43 = vunpack.c.l.b16 %v756_v31  ;;  %v835_v44 = vunpack.c.l.b16 %v770_v32  ;;  %v788_v48 = vrot.slane %v786_v33, 4  ;;  %v1762_v9 = vld [vmem:[%s2179_s17 + $0x28] sm:$0xf]  ;;  %v1964_v14 = vld [vmem:[%s2179_s17 + $0x2c] sm:$0xf0] }
  0x3f   : > { %1776 = vmatmul.msk.bf16.vlgmr.msrb.gmra.mxu3 %vm349_vm2, %v1755_v51  ;;  %v791_v49 = vrot.slane %v789_v34, 5  ;;  %v510_v50 = vsel %vm2255_vm6, %v1720_v35, %v509_v36  ;;  %v514_v10 = vsel %vm2255_vm6, %v1721_v38, %v513_v39  ;;  %v1698_v51 = vld [vmem:[%s2179_s17 + $0x20] sm:$0xf]  ;;  %v778_v52 = vor.u32 %v777_v41, %v774_v40  ;;  %v2380_v27 = vld [vmem:[%s2179_s17 + $0x3c] sm:$0x1] }
  0x40   : > { %v781_v53 = vshll.u32 %v2346_v45, 16  ;;  %v841_v55 = vpack.c.b16 %v835_v44, %v834_v43  ;;  %v532_v57 = vunpack.c.l.b16 %v510_v50  ;;  %v533_v58 = vunpack.c.l.b16 %v514_v10  ;;  %v2383_v28 = vld [vmem:[%s2179_s17 + $0x44] sm:$0x1]  ;;  %v1702_v34 = vld [vmem:[%s2179_s17 + $0x30] sm:$0xf] }
  0x41   : > { %v792_v59 = vor.u32 %v791_v49, %v788_v48  ;;  %v795_v60 = vshll.u32 %v2353_v26, 16  ;;  %v1699_v61 = vor.u32 %v1954_v29, %v1698_v51  ;;  %v779_v63 = vrot.slane %v778_v52, 4  ;;  %v1955_v35 = vld [vmem:[%s2179_s17 + $0x34] sm:$0xf0] }
  0x42   : > { %v783_v13 = vrot.slane %v781_v53, 5  ;;  %v538_v3 = vpack.c.b16 %v533_v58, %v532_v57  ;;  %v517_v12 = vrot.slane %v2221_v46, 5  ;;  %v1723_v16 = vrot.slane %v471_v6, 9  ;;  %v1886_v49 = vld [vmem:[%s2179_s17 + $0x18] sm:$0xf] }
  0x43   : > { %1808 = vmatmul.msk.bf16.vlgmr.msrb.gmra.mxu0 %vm349_vm2, %v840_v0  ;;  %v470_v0 = vld [vmem:[%s2179_s17 + $0x30] sm:$0xe]  ;;  %v793_v4 = vrot.slane %v792_v59, 4  ;;  %v797_v5 = vrot.slane %v795_v60, 5  ;;  %v521_v17 = vrot.slane %v2227_v54, 5  ;;  %v803_v20 = vshll.u32 %v1792_v7, 16 }
  0x44   : > { %v1722_v15 = vrot.slane %v470_v0, 9  ;;  %v814_v21 = vshrl.u32 %v1794_v8, 16  ;;  %v817_v22 = vshll.u32 %v1794_v8, 16  ;;  %v1763_v23 = vor.u32 %v1964_v14, %v1762_v9  ;;  %v1812_v53 = vld [vmem:[%s2179_s17 + $0x8] sm:$0xe] }
  0x45   : > { %1713 = vmatmul.msk.bf16.gmra.mxu1 %vm349_vm2, %v1695_v11  ;;  %v784_v11 = vsel %vm2215_vm3, %v779_v63, %v783_v13  ;;  %v798_v19 = vsel %vm2215_vm3, %v793_v4, %v797_v5  ;;  %v522_v54 = vsel %vm2255_vm6, %v1723_v16, %v521_v17  ;;  %v805_v31 = vrot.slane %v803_v20, 5  ;;  %v1885_v5 = vld [vmem:[%s2179_s17 + $0x14] sm:$0x1]  ;;  %v1766_v6 = vld [vmem:[%s2179_s17 + $0x38] sm:$0xf] }
  0x46   : > { %v836_v46 = vunpack.c.l.b16 %v784_v11  ;;  %v837_v24 = vunpack.c.l.b16 %v798_v19  ;;  %v518_v25 = vsel %vm2255_vm6, %v1722_v15, %v517_v12  ;;  %v816_v32 = vrot.slane %v814_v21, 4 }
  0x47   : > { %v819_v33 = vrot.slane %v817_v22, 5  ;;  %v534_v36 = vunpack.c.l.b16 %v518_v25  ;;  %v535_v39 = vunpack.c.l.b16 %v522_v54  ;;  %v809_v40 = vshll.u32 %v2380_v27, 16  ;;  %v1858_v54 = vld [vmem:[%s2179_s17 + $0x10] sm:$0xf] }
  0x48   : > { %1737 = vmatmul.msk.bf16.gmra.mxu2 %vm349_vm2, %v537_v18  ;;  %v800_v18 = vshrl.u32 %v1792_v7, 16  ;;  %v842_v38 = vpack.c.b16 %v837_v24, %v836_v46  ;;  %v823_v41 = vshll.u32 %v2383_v28, 16  ;;  %v1703_v48 = vor.u32 %v1955_v35, %v1702_v34  ;;  %v1965_v7 = vld [vmem:[%s2179_s17 + $0x3c] sm:$0xf0] }
  0x49   : > { %v820_v44 = vor.u32 %v819_v33, %v816_v32  ;;  %v539_v51 = vpack.c.b16 %v535_v39, %v534_v36  ;;  %v811_v29 = vrot.slane %v809_v40, 5  ;;  %v1168_v59 = vshrl.u32 %v1886_v49, 16  ;;  %v1972_v32 = vld [vmem:[%s2179_s17 + $0x14] sm:$0xf0]  ;;  %v1888_v35 = vld [vmem:[%s2179_s17 + $0x20] sm:$0xf] }
  0x4a   : > { %v802_v30 = vrot.slane %v800_v18, 4  ;;  %v825_v52 = vrot.slane %v823_v41, 5  ;;  %v1171_v60 = vshll.u32 %v1886_v49, 16  ;;  %v935_v63 = vrot.slane %v2276_v2, 5  ;;  %v1887_v2 = vld [vmem:[%s2179_s17 + $0x1c] sm:$0x1] }
  0x4b   : > { %v821_v58 = vrot.slane %v820_v44, 4  ;;  %v1820_v13 = vrot.slane %v1812_v53, 9  ;;  %v1163_v16 = vshll.u32 %v1885_v5, 16  ;;  %v1767_v17 = vor.u32 %v1965_v7, %v1766_v6  ;;  %v1814_v44 = vld [vmem:[%s2179_s17 + $0x18] sm:$0xe] }
  0x4c   : > { %v806_v43 = vor.u32 %v805_v31, %v802_v30  ;;  %v1173_v11 = vrot.slane %v1171_v60, 5  ;;  %v1177_v21 = vshll.u32 %v1887_v2, 16  ;;  %v1916_v30 = vld [vmem:[%s2179_s17 + $0x10] sm:$0xe]  ;;  %v1917_v31 = vld [vmem:[%s2179_s17 + $0x18] sm:$0xe] }
  0x4d   : > { %v826_v9 = vsel %vm2215_vm3, %v821_v58, %v825_v52  ;;  %v1165_v24 = vrot.slane %v1163_v16, 5  ;;  %v1924_v40 = vrot.slane %v1916_v30, 9  ;;  %v1369_v41 = vrot.slane %v1885_v5, 5  ;;  %v1891_v6 = vld [vmem:[%s2179_s17 + $0x2c] sm:$0x1] }
  0x4e   : > { %v807_v57 = vrot.slane %v806_v43, 4  ;;  %v839_v19 = vunpack.c.l.b16 %v826_v9  ;;  %v1179_v34 = vrot.slane %v1177_v21, 5  ;;  %v1859_v43 = vor.u32 %v1972_v32, %v1858_v54  ;;  %v1862_v16 = vld [vmem:[%s2179_s17 + $0x20] sm:$0xf]  ;;  %v1892_v21 = vld [vmem:[%s2179_s17 + $0x30] sm:$0xf] }
  0x4f   : > { %1777 = vmatmul.msk.bf16.gmra.mxu3 %vm349_vm2, %v1759_v42  ;;  %v1884_v42 = vld [vmem:[%s2179_s17 + $0x10] sm:$0xf]  ;;  %v1182_v49 = vshrl.u32 %v1888_v35, 16  ;;  %v1894_v54 = vld [vmem:[%s2179_s17 + $0x38] sm:$0xf]  ;;  %v1213_v32 = vshll.u32 %v1892_v21, 16 }
  0x50   : > { %v1154_v50 = vshrl.u32 %v1884_v42, 16  ;;  %v1157_v10 = vshll.u32 %v1884_v42, 16  ;;  %v812_v8 = vsel %vm2215_vm3, %v807_v57, %v811_v29  ;;  %v1925_v42 = vrot.slane %v1917_v31, 9 }
  0x51   : > { %v838_v18 = vunpack.c.l.b16 %v812_v8  ;;  %v939_v57 = vrot.slane %v2306_v56, 5  ;;  %v1210_v31 = vshrl.u32 %v1892_v21, 16 }
  0x52   : > { %v1159_v4 = vrot.slane %v1157_v10, 5 }
  0x53   : > { %1809 = vmatmul.msk.bf16.gmra.mxu0 %vm349_vm2, %v841_v55  ;;  %v1813_v55 = vld [vmem:[%s2179_s17 + $0x10] sm:$0xe]  ;;  %v843_v25 = vpack.c.b16 %v839_v19, %v838_v18 }
  0x54   : > { %v1821_v0 = vrot.slane %v1813_v55, 9  ;;  %v1822_v55 = vrot.slane %v1814_v44, 9  ;;  %v947_v44 = vrot.slane %v2346_v45, 5  ;;  %v1895_v45 = vld [vmem:[%s2179_s17 + $0x3c] sm:$0x1] }
  0x55   : > { %1714 = vmatmul.msk.bf16.gmra.mxu1 %vm349_vm2, %v1699_v61  ;;  %v931_v61 = vrot.slane %v2273_v1, 5  ;;  %v1170_v1 = vrot.slane %v1168_v59, 4  ;;  %v943_v59 = vrot.slane %v2311_v62, 5 }
  0x56   : > { %v936_v14 = vsel %vm2255_vm6, %v1821_v0, %v935_v63  ;;  %v1184_v63 = vrot.slane %v1182_v49, 4  ;;  %v940_v62 = vsel %vm2255_vm6, %v1822_v55, %v939_v57 }
  0x57   : > { %v932_v12 = vsel %vm2255_vm6, %v1820_v13, %v931_v61  ;;  %v1174_v20 = vor.u32 %v1173_v11, %v1170_v1  ;;  %v1370_v61 = vsel %vm2255_vm6, %v1924_v40, %v1369_v41  ;;  %v1381_v41 = vrot.slane %v1891_v6, 5 }
  0x58   : > { %1738 = vmatmul.msk.bf16.gmra.mxu2 %vm349_vm2, %v538_v3  ;;  %v1156_v3 = vrot.slane %v1154_v50, 4  ;;  %v966_v22 = vunpack.c.l.b16 %v932_v12  ;;  %v1185_v50 = vshll.u32 %v1888_v35, 16  ;;  %v1404_v56 = vunpack.c.l.b16 %v1370_v61 }
  0x59   : > { %v1175_v33 = vrot.slane %v1174_v20, 4  ;;  %v1205_v12 = vshll.u32 %v1891_v6, 16  ;;  %v1918_v20 = vld [vmem:[%s2179_s17 + $0x20] sm:$0xe] }
  0x5a   : > { %v1160_v15 = vor.u32 %v1159_v4, %v1156_v3  ;;  %v1187_v13 = vrot.slane %v1185_v50, 5  ;;  %v1889_v3 = vld [vmem:[%s2179_s17 + $0x24] sm:$0x1]  ;;  %v1926_v30 = vrot.slane %v1918_v20, 9 }
  0x5b   : > { %v1180_v10 = vsel %vm2215_vm3, %v1175_v33, %v1179_v34  ;;  %v1191_v11 = vshll.u32 %v1889_v3, 16  ;;  %v1377_v35 = vrot.slane %v1889_v3, 5 }
  0x5c   : > { %v1161_v46 = vrot.slane %v1160_v15, 4  ;;  %v1271_v60 = vunpack.c.l.b16 %v1180_v10  ;;  %v1188_v1 = vor.u32 %v1187_v13, %v1184_v63  ;;  %v1212_v10 = vrot.slane %v1210_v31, 4 }
  0x5d   : > { %v1193_v19 = vrot.slane %v1191_v11, 5  ;;  %v1378_v55 = vsel %vm2255_vm6, %v1926_v30, %v1377_v35  ;;  %v1921_v11 = vld [vmem:[%s2179_s17 + $0x38] sm:$0xe]  ;;  %v1389_v30 = vrot.slane %v1895_v45, 5  ;;  %v955_v35 = vrot.slane %v2380_v27, 5 }
  0x5e   : > { %v1166_v39 = vsel %vm2215_vm3, %v1161_v46, %v1165_v24  ;;  %v1189_v18 = vrot.slane %v1188_v1, 4  ;;  %v1207_v46 = vrot.slane %v1205_v12, 5  ;;  %v1919_v24 = vld [vmem:[%s2179_s17 + $0x28] sm:$0xe]  ;;  %v1920_v1 = vld [vmem:[%s2179_s17 + $0x30] sm:$0xe] }
  0x5f   : > { %1778 = vmatmul.msk.bf16.gmra.mxu3 %vm349_vm2, %v1763_v23  ;;  %v967_v23 = vunpack.c.l.b16 %v936_v14  ;;  %v1270_v53 = vunpack.c.l.b16 %v1166_v39  ;;  %v968_v14 = vunpack.c.l.b16 %v940_v62  ;;  %v1817_v39 = vld [vmem:[%s2179_s17 + $0x30] sm:$0xe]  ;;  %v1929_v21 = vrot.slane %v1921_v11, 9 }
  0x60   : > { %v1194_v34 = vsel %vm2215_vm3, %v1189_v18, %v1193_v19  ;;  %v1825_v50 = vrot.slane %v1817_v39, 9  ;;  %v1928_v19 = vrot.slane %v1920_v1, 9 }
  0x61   : > { %v974_v36 = vpack.c.b16 %v967_v23, %v966_v22  ;;  %v1278_v8 = vpack.c.b16 %v1271_v60, %v1270_v53  ;;  %v1973_v22 = vld [vmem:[%s2179_s17 + $0x24] sm:$0xf0]  ;;  %v1893_v53 = vld [vmem:[%s2179_s17 + $0x34] sm:$0x1] }
  0x62   : > { %v1863_v33 = vor.u32 %v1973_v22, %v1862_v16  ;;  %v1219_v63 = vshll.u32 %v1893_v53, 16  ;;  %v1385_v20 = vrot.slane %v1893_v53, 5 }
  0x63   : > { %1810 = vmatmul.msk.bf16.gmra.mxu0 %vm349_vm2, %v842_v38  ;;  %v1890_v38 = vld [vmem:[%s2179_s17 + $0x28] sm:$0xf] }
  0x64   : > { %v1196_v29 = vshrl.u32 %v1890_v38, 16  ;;  %v1199_v52 = vshll.u32 %v1890_v38, 16  ;;  %v1816_v38 = vld [vmem:[%s2179_s17 + $0x28] sm:$0xe] }
  0x65   : > { %1715 = vmatmul.msk.bf16.gmra.mxu1 %vm349_vm2, %v1703_v48  ;;  %v1815_v48 = vld [vmem:[%s2179_s17 + $0x20] sm:$0xe]  ;;  %v1824_v49 = vrot.slane %v1816_v38, 9  ;;  %v959_v38 = vrot.slane %v2383_v28, 5 }
  0x66   : > { %v1823_v58 = vrot.slane %v1815_v48, 9  ;;  %v1198_v4 = vrot.slane %v1196_v29, 4  ;;  %v1201_v5 = vrot.slane %v1199_v52, 5  ;;  %v951_v48 = vrot.slane %v2353_v26, 5 }
  0x67   : > { %v1272_v29 = vunpack.c.l.b16 %v1194_v34  ;;  %v948_v26 = vsel %vm2255_vm6, %v1824_v49, %v947_v44  ;;  %v1897_v44 = vld [vmem:[%s2179_s17 + $0x44] sm:$0x1] }
  0x68   : > { %1739 = vmatmul.msk.bf16.gmra.mxu2 %vm349_vm2, %v539_v51  ;;  %v1373_v51 = vrot.slane %v1887_v2, 5  ;;  %v944_v7 = vsel %vm2255_vm6, %v1823_v58, %v943_v59  ;;  %v1202_v2 = vor.u32 %v1201_v5, %v1198_v4  ;;  %v952_v60 = vsel %vm2255_vm6, %v1825_v50, %v951_v48  ;;  %v1899_v50 = vld [vmem:[%s2179_s17 + $0x4c] sm:$0x1] }
  0x69   : > { %v969_v15 = vunpack.c.l.b16 %v944_v7  ;;  %v1233_v5 = vshll.u32 %v1895_v45, 16  ;;  %v970_v6 = vunpack.c.l.b16 %v948_v26  ;;  %v1221_v7 = vrot.slane %v1219_v63, 5 }
  0x6a   : > { %v1374_v0 = vsel %vm2255_vm6, %v1925_v42, %v1373_v51  ;;  %v1203_v23 = vrot.slane %v1202_v2, 4  ;;  %v1224_v42 = vshrl.u32 %v1894_v54, 16  ;;  %v1215_v51 = vrot.slane %v1213_v32, 5  ;;  %v1974_v2 = vld [vmem:[%s2179_s17 + $0x34] sm:$0xf0] }
  0x6b   : > { %v1405_v9 = vunpack.c.l.b16 %v1374_v0  ;;  %v1406_v0 = vunpack.c.l.b16 %v1378_v55  ;;  %v1247_v53 = vshll.u32 %v1897_v44, 16  ;;  %v1397_v11 = vrot.slane %v1899_v50, 5 }
  0x6c   : > { %v1208_v40 = vsel %vm2215_vm3, %v1203_v23, %v1207_v46  ;;  %v1226_v58 = vrot.slane %v1224_v42, 4  ;;  %v1216_v61 = vor.u32 %v1215_v51, %v1212_v10  ;;  %v1818_v23 = vld [vmem:[%s2179_s17 + $0x38] sm:$0xe]  ;;  %v1819_v46 = vld [vmem:[%s2179_s17 + $0x40] sm:$0xe] }
  0x6d   : > { %v1273_v52 = vunpack.c.l.b16 %v1208_v40  ;;  %v1826_v34 = vrot.slane %v1818_v23, 9  ;;  %v1386_v40 = vsel %vm2255_vm6, %v1928_v19, %v1385_v20 }
  0x6e   : > { %v1217_v62 = vrot.slane %v1216_v61, 4  ;;  %v1408_v10 = vunpack.c.l.b16 %v1386_v40 }
  0x6f   : > { %1779 = vmatmul.msk.bf16.gmra.mxu3 %vm349_vm2, %v1767_v17  ;;  %v1412_v17 = vpack.c.b16 %v1405_v9, %v1404_v56  ;;  %v1279_v13 = vpack.c.b16 %v1273_v52, %v1272_v29  ;;  %v971_v56 = vunpack.c.l.b16 %v952_v60  ;;  %v1866_v9 = vld [vmem:[%s2179_s17 + $0x30] sm:$0xf]  ;;  %v956_v27 = vsel %vm2255_vm6, %v1826_v34, %v955_v35 }
  0x70   : > { %v1222_v18 = vsel %vm2215_vm3, %v1217_v62, %v1221_v7  ;;  %v1867_v22 = vor.u32 %v1974_v2, %v1866_v9  ;;  %v1249_v60 = vrot.slane %v1247_v53, 5  ;;  %v1393_v7 = vrot.slane %v1897_v44, 5 }
  0x71   : > { %v976_v16 = vpack.c.b16 %v971_v56, %v970_v6 }
  0x73   : > { %1811 = vmatmul.msk.bf16.gmra.mxu0 %vm349_vm2, %v843_v25  ;;  %v975_v25 = vpack.c.b16 %v969_v15, %v968_v14  ;;  %v1235_v14 = vrot.slane %v1233_v5, 5  ;;  %v1896_v15 = vld [vmem:[%s2179_s17 + $0x40] sm:$0xf]  ;;  %v1923_v5 = vld [vmem:[%s2179_s17 + $0x48] sm:$0xe] }
  0x74   : > { %v1931_v1 = vrot.slane %v1923_v5, 9 }
  0x75   : > { %1840 = vmatmul.msk.bf16.vlgmr.msra.gmra.mxu1 %vm349_vm2, %v974_v36  ;;  %v1927_v36 = vrot.slane %v1919_v24, 9  ;;  %v1238_v24 = vshrl.u32 %v1896_v15, 16 }
  0x77   : > { %v1382_v57 = vsel %vm2255_vm6, %v1927_v36, %v1381_v41  ;;  %v1827_v36 = vrot.slane %v1819_v46, 9  ;;  %v1240_v41 = vrot.slane %v1238_v24, 4 }
  0x78   : > { %1880 = vmatmul.msk.bf16.vlgmr.msra.gmra.mxu2 %vm349_vm2, %v1859_v43  ;;  %v1227_v43 = vshll.u32 %v1894_v54, 16  ;;  %v1407_v3 = vunpack.c.l.b16 %v1382_v57  ;;  %v1261_v57 = vshll.u32 %v1899_v50, 16 }
  0x79   : > { %v960_v28 = vsel %vm2255_vm6, %v1827_v36, %v959_v38 }
  0x7a   : > { %v1229_v59 = vrot.slane %v1227_v43, 5  ;;  %v1390_v43 = vsel %vm2255_vm6, %v1929_v21, %v1389_v30  ;;  %v1263_v63 = vrot.slane %v1261_v57, 5 }
  0x7b   : > { %v1409_v29 = vunpack.c.l.b16 %v1390_v43 }
  0x7c   : > { %v1230_v4 = vor.u32 %v1229_v59, %v1226_v58  ;;  %v972_v58 = vunpack.c.l.b16 %v956_v27  ;;  %v973_v59 = vunpack.c.l.b16 %v960_v28 }
  0x7d   : > { %v1414_v45 = vpack.c.b16 %v1409_v29, %v1408_v10 }
  0x7e   : > { %v1231_v12 = vrot.slane %v1230_v4, 4  ;;  %v1975_v4 = vld [vmem:[%s2179_s17 + $0x44] sm:$0xf0] }
  0x7f   : > { %1912 = vmatmul.msk.bf16.vlgmr.msra.gmra.mxu3 %vm349_vm2, %v1278_v8  ;;  %v1413_v8 = vpack.c.b16 %v1407_v3, %v1406_v0  ;;  %v977_v0 = vpack.c.b16 %v973_v59, %v972_v58  ;;  %v1870_v3 = vld [vmem:[%s2179_s17 + $0x40] sm:$0xf] }
  0x80   : > { %v1236_v54 = vsel %vm2215_vm3, %v1231_v12, %v1235_v14 }
  0x81   : > { %v1275_v39 = vunpack.c.l.b16 %v1236_v54 }
  0x83   : > { %1944 = vmatmul.msk.bf16.vlgmr.msra.gmra.mxu0 %vm349_vm2, %v1412_v17  ;;  %v1898_v17 = vld [vmem:[%s2179_s17 + $0x48] sm:$0xf] }
  0x84   : > { %v1252_v31 = vshrl.u32 %v1898_v17, 16  ;;  %v1255_v32 = vshll.u32 %v1898_v17, 16 }
  0x85   : > { %1841 = vmatmul.msk.bf16.gmra.mxu1 %vm349_vm2, %v975_v25  ;;  %v1241_v25 = vshll.u32 %v1896_v15, 16  ;;  %v1398_v15 = vsel %vm2255_vm6, %v1931_v1, %v1397_v11 }
  0x86   : > { %v1254_v48 = vrot.slane %v1252_v31, 4  ;;  %v1257_v49 = vrot.slane %v1255_v32, 5  ;;  %v1411_v37 = vunpack.c.l.b16 %v1398_v15 }
  0x87   : > { %v1243_v42 = vrot.slane %v1241_v25, 5 }
  0x88   : > { %1881 = vmatmul.msk.bf16.gmra.mxu2 %vm349_vm2, %v1863_v33  ;;  %v1274_v33 = vunpack.c.l.b16 %v1222_v18  ;;  %v1258_v55 = vor.u32 %v1257_v49, %v1254_v48 }
  0x89   : > { %v1244_v52 = vor.u32 %v1243_v42, %v1240_v41 }
  0x8a   : > { %v1280_v51 = vpack.c.b16 %v1275_v39, %v1274_v33  ;;  %v1259_v61 = vrot.slane %v1258_v55, 4 }
  0x8b   : > { %v1245_v26 = vrot.slane %v1244_v52, 4 }
  0x8c   : > { %v1264_v9 = vsel %vm2215_vm3, %v1259_v61, %v1263_v63 }
  0x8d   : > { %v1250_v56 = vsel %vm2215_vm3, %v1245_v26, %v1249_v60  ;;  %v1277_v12 = vunpack.c.l.b16 %v1264_v9 }
  0x8e   : > { %v1276_v2 = vunpack.c.l.b16 %v1250_v56 }
  0x8f   : > { %1913 = vmatmul.msk.bf16.gmra.mxu3 %vm349_vm2, %v1279_v13  ;;  %v1922_v13 = vld [vmem:[%s2179_s17 + $0x40] sm:$0xe] }
  0x90   : > { %v1930_v62 = vrot.slane %v1922_v13, 9  ;;  %v1281_v17 = vpack.c.b16 %v1277_v12, %v1276_v2 }
  0x92   : > { %v1394_v14 = vsel %vm2255_vm6, %v1930_v62, %v1393_v7 }
  0x93   : > { %1945 = vmatmul.msk.bf16.gmra.mxu0 %vm349_vm2, %v1413_v8  ;;  %v1871_v8 = vor.u32 %v1975_v4, %v1870_v3  ;;  %v1410_v18 = vunpack.c.l.b16 %v1394_v14 }
  0x95   : > { %1842 = vmatmul.msk.bf16.gmra.mxu1 %vm349_vm2, %v976_v16  ;;  %v1415_v20 = vpack.c.b16 %v1411_v37, %v1410_v18 }
  0x98   : > { %1882 = vmatmul.msk.bf16.gmra.mxu2 %vm349_vm2, %v1867_v22 }
  0x9f   : > { %1914 = vmatmul.msk.bf16.gmra.mxu3 %vm349_vm2, %v1280_v51 }
  0xa2   : > { %v376_v6 = vpop.f32.mrf.mxu1 }
  0xa3   : > { %1946 = vmatmul.msk.bf16.gmra.mxu0 %vm349_vm2, %v1414_v45 }
  0xa5   : > { %1843 = vmatmul.msk.bf16.gmra.mxu1 %vm349_vm2, %v977_v0 }
  0xa8   : > { %1883 = vmatmul.msk.bf16.gmra.mxu2 %vm349_vm2, %v1871_v8 }
  0xaa   : > { %v2511_v16 = vpop.f32.mrf.mxu1 }
  0xab   : > { %v381_v19 = vpop.f32.mrf.mxu2 }
  0xaf   : > { %1915 = vmatmul.msk.bf16.gmra.mxu3 %vm349_vm2, %v1281_v17 }
  0xb0   : > { %v371_v21 = vpop.f32.mrf.mxu0 }
  0xb2   : > { %v386_v22 = vpop.f32.mrf.mxu3  ;;  %v444_v23 = vpop.f32.mrf.mxu1 }
  0xb3   : > { %1947 = vmatmul.msk.bf16.gmra.mxu0 %vm349_vm2, %v1415_v20  ;;  %v2515_v46 = vpop.f32.mrf.mxu2  ;;  %v445_v24 = vadd.f32 %v444_v23, %v371_v21 }
  0xb8   : > { %v373_v25 = vpop.f32.mrf.mxu0 }
  0xba   : > { %v2517_v47 = vpop.f32.mrf.mxu3  ;;  %v446_v54 = vpop.f32.mrf.mxu1 }
  0xbb   : > { %v573_v30 = vpop.f32.mrf.mxu2  ;;  %v447_v11 = vadd.f32 %v446_v54, %v373_v25 }
  0xbc   : > { %v593_v31 = vadd.f32 %v573_v30, %v445_v24 }
  0xc0   : > { %v877_v32 = vpop.f32.mrf.mxu0 }
  0xc2   : > { %v671_v33 = vpop.f32.mrf.mxu3  ;;  %v449_v34 = vpop.f32.mrf.mxu1 }
  0xc3   : > { %v691_v35 = vadd.f32 %v671_v33, %v593_v31  ;;  %v575_v36 = vpop.f32.mrf.mxu2  ;;  %v450_v38 = vadd.f32 %v449_v34, %v376_v6  ;;  %v2543_v33 = vld [vmem:[%s2603_s2] ss:$0 sm:$0xff] }
  0xc4   : > { %v594_v14 = vadd.f32 %v575_v36, %v447_v11 }
  0xc5   : > { %v897_v39 = vadd.f32 %v877_v32, %v691_v35 }
  0xc8   : > { %v879_v40 = vpop.f32.mrf.mxu0 }
  0xca   : > { %v673_v41 = vpop.f32.mrf.mxu3  ;;  %v451_v42 = vpop.f32.mrf.mxu1 }
  0xcb   : > { %v578_v43 = vpop.f32.mrf.mxu2  ;;  %v692_v17 = vadd.f32 %v673_v41, %v594_v14  ;;  %v452_v25 = vadd.f32 %v451_v42, %v2511_v16 }
  0xcc   : > { %v595_v44 = vadd.f32 %v578_v43, %v450_v38 }
  0xd0   : > { %v882_v48 = vpop.f32.mrf.mxu0 }
  0xd2   : > { %v676_v49 = vpop.f32.mrf.mxu3  ;;  %v454_v50 = vpop.f32.mrf.mxu1 }
  0xd3   : > { %v693_v10 = vadd.f32 %v676_v49, %v595_v44  ;;  %v580_v27 = vpop.f32.mrf.mxu2  ;;  %v455_v28 = vadd.f32 %v454_v50, %v381_v19 }
  0xd4   : > { %v596_v36 = vadd.f32 %v580_v27, %v452_v25 }
  0xd5   : > { %v899_v51 = vadd.f32 %v882_v48, %v693_v10 }
  0xd8   : > { %v884_v29 = vpop.f32.mrf.mxu0 }
  0xda   : > { %v678_v52 = vpop.f32.mrf.mxu3  ;;  %v2519_v53 = vpop.f32.mrf.mxu1 }
  0xdb   : > { %v583_v55 = vpop.f32.mrf.mxu2  ;;  %v694_v43 = vadd.f32 %v678_v52, %v596_v36 }
  0xdc   : > { %v597_v57 = vadd.f32 %v583_v55, %v455_v28 }
  0xdd   : > { %v900_v55 = vadd.f32 %v884_v29, %v694_v43 }
  0xe0   : > { %v887_v58 = vpop.f32.mrf.mxu0 }
  0xe2   : > { %v681_v59 = vpop.f32.mrf.mxu3  ;;  %v459_v45 = vpop.f32.mrf.mxu1 }
  0xe3   : > { %v695_v26 = vadd.f32 %v681_v59, %v597_v57  ;;  %v2521_v60 = vpop.f32.mrf.mxu2  ;;  %v460_v61 = vadd.f32 %v459_v45, %v386_v22  ;;  %v898_v22 = vadd.f32 %v879_v40, %v692_v17 }
  0xe5   : > { %v2523_v63 = vadd.f32 %v887_v58, %v695_v26 }
  0xe8   : > { %v2525_v13 = vpop.f32.mrf.mxu0 }
  0xea   : > { %v2527_v0 = vpop.f32.mrf.mxu3  ;;  %v2529_v3 = vpop.f32.mrf.mxu1 }
  0xeb   : > { %v588_v4 = vpop.f32.mrf.mxu2 }
  0xec   : > { %v599_v5 = vadd.f32 %v588_v4, %v460_v61 }
  0xf0   : > { %v892_v6 = vpop.f32.mrf.mxu0 }
  0xf2   : > { %v686_v56 = vpop.f32.mrf.mxu3  ;;  %v1011_v62 = vpop.f32.mrf.mxu1 }
  0xf3   : > { %v697_v7 = vadd.f32 %v686_v56, %v599_v5  ;;  %v2531_v8 = vpop.f32.mrf.mxu2  ;;  %v1031_v18 = vadd.f32 %v1011_v62, %v897_v39 }
  0xf5   : > { %v2533_v9 = vadd.f32 %v892_v6, %v697_v7 }
  0xf8   : > { %v2535_v1 = vpop.f32.mrf.mxu0 }
  0xfa   : > { %v2537_v2 = vpop.f32.mrf.mxu3  ;;  %v1013_v12 = vpop.f32.mrf.mxu1 }
  0xfb   : > { %v1109_v15 = vpop.f32.mrf.mxu2  ;;  %v1032_v30 = vadd.f32 %v1013_v12, %v898_v22 }
  0xfc   : > { %v1129_v19 = vadd.f32 %v1109_v15, %v1031_v18 }
 0x100   : > { %v1449_v37 = vpop.f32.mrf.mxu0 }
 0x102   : > { %v1315_v20 = vpop.f32.mrf.mxu3  ;;  %v1016_v21 = vpop.f32.mrf.mxu1 }
 0x103   : > { %v1111_v23 = vpop.f32.mrf.mxu2  ;;  %v1335_v24 = vadd.f32 %v1315_v20, %v1129_v19  ;;  %v1033_v16 = vadd.f32 %v1016_v21, %v899_v51  ;;  %v457_v51 = vadd.f32 %v2519_v53, %v2515_v46 }
 0x104   : > { %v1130_v31 = vadd.f32 %v1111_v23, %v1032_v30 }
 0x105   : > { %v1469_v54 = vadd.f32 %v1449_v37, %v1335_v24  ;;  %v598_v4 = vadd.f32 %v2521_v60, %v457_v51 }
 0x107   : > { %v1481_v40 = vadd.f32 %v2543_v33, %v1469_v54  ;;  %v696_v7 = vadd.f32 %v2527_v0, %v598_v4  ;;  %v462_v0 = vadd.f32 %v2529_v3, %v2517_v47 }
 0x108   : > { %v1451_v32 = vpop.f32.mrf.mxu0 }
 0x109   : > { %v1489_v48 = vmax.f32 %v1481_v40, 0.0  ;;  %v902_v60 = vadd.f32 %v2525_v13, %v696_v7  ;;  %v600_v30 = vadd.f32 %v2531_v8, %v462_v0 }
 0x10a   : > { %v1317_v34 = vpop.f32.mrf.mxu3  ;;  %v1018_v35 = vpop.f32.mrf.mxu1 }
 0x10b   : > { %v1336_v38 = vadd.f32 %v1317_v34, %v1130_v31  ;;  %v1114_v39 = vpop.f32.mrf.mxu2  ;;  %v1034_v59 = vadd.f32 %v1018_v35, %v900_v55  ;;  %v698_v54 = vadd.f32 %v2537_v2, %v600_v30 }
 0x10c   : > { %v1131_v50 = vadd.f32 %v1114_v39, %v1033_v16 }
 0x10d   : > { %v1470_v41 = vadd.f32 %v1451_v32, %v1336_v38  ;;  %v904_v8 = vadd.f32 %v2535_v1, %v698_v54 }
 0x10f   : > { %v1482_v44 = vadd.f32 %v2543_v33, %v1470_v41 }
 0x110   : > { %v1454_v42 = vpop.f32.mrf.mxu0 }
 0x111   : > { %v1490_v49 = vmax.f32 %v1482_v44, 0.0 }
 0x112   : > { %v1320_v10 = vpop.f32.mrf.mxu3  ;;  %v1021_v27 = vpop.f32.mrf.mxu1 }
 0x113   : > { %v1985_v28 = vpack.c.bf16 %v1490_v49, %v1489_v48  ;;  %v1116_v57 = vpop.f32.mrf.mxu2  ;;  %v1337_v58 = vadd.f32 %v1320_v10, %v1131_v50  ;;  %v1035_v12 = vadd.f32 %v1021_v27, %v2523_v63 }
 0x114   : > { %v1132_v52 = vadd.f32 %v1116_v57, %v1034_v59 }
 0x115   : > { %1986 = vst [vmem:[%s2548_s30] sm:$0xff] %v1985_v28   ;;  %v1471_v26 = vadd.f32 %v1454_v42, %v1337_v58 }
 0x117   : > { %v1483_v6 = vadd.f32 %v2543_v33, %v1471_v26 }
 0x118   : > { %v1456_v45 = vpop.f32.mrf.mxu0 }
 0x119   : > { %v1491_v15 = vmax.f32 %v1483_v6, 0.0 }
 0x11a   : > { %v1322_v61 = vpop.f32.mrf.mxu3  ;;  %v1023_v62 = vpop.f32.mrf.mxu1 }
 0x11b   : > { %v1338_v5 = vadd.f32 %v1322_v61, %v1132_v52  ;;  %v1119_v29 = vpop.f32.mrf.mxu2  ;;  %v1036_v20 = vadd.f32 %v1023_v62, %v902_v60 }
 0x11c   : > { %v1133_v53 = vadd.f32 %v1119_v29, %v1035_v12  ;;  %v1541_v1 = vld [vmem:[%s2548_s30] sm:$0xf] (%p2145_p3)  ;;  %v1543_v58 = vld [vmem:[%s2548_s30 + $0x4] sm:$0xf] (%p2145_p3) }
 0x11d   : > { %v1472_v56 = vadd.f32 %v1456_v45, %v1338_v5  ;;  %1542 = vst [vmem:[%s1524_s6] sm:$0xf] (%p2145_p3), %v1541_v1 }
 0x11e   : > { %1544 = vst [vmem:[%s1524_s6 + $0x8] sm:$0xf] (%p2145_p3), %v1543_v58 }
 0x11f   : > { %v1484_v11 = vadd.f32 %v2543_v33, %v1472_v56 }
 0x120   : > { %v1459_v14 = vpop.f32.mrf.mxu0 }
 0x121   : > { %v1492_v46 = vmax.f32 %v1484_v11, 0.0 }
 0x122   : > { %v1325_v17 = vpop.f32.mrf.mxu3  ;;  %v1026_v22 = vpop.f32.mrf.mxu1 }
 0x123   : > { %v1990_v18 = vpack.c.bf16 %v1492_v46, %v1491_v15  ;;  %v1121_v37 = vpop.f32.mrf.mxu2  ;;  %v1339_v19 = vadd.f32 %v1325_v17, %v1133_v53  ;;  %v1037_v35 = vadd.f32 %v1026_v22, %v2533_v9 }
 0x124   : > { %v1134_v21 = vadd.f32 %v1121_v37, %v1036_v20 }
 0x125   : > { %2002 = vst [vmem:[%s2548_s30 + $0x8] sm:$0xff] %v1990_v18   ;;  %v1473_v24 = vadd.f32 %v1459_v14, %v1339_v19 }
 0x127   : > { %v1485_v25 = vadd.f32 %v2543_v33, %v1473_v24 }
 0x128   : > { %v1461_v23 = vpop.f32.mrf.mxu0 }
 0x129   : > { %v1493_v36 = vmax.f32 %v1485_v25, 0.0 }
 0x12a   : > { %v1327_v63 = vpop.f32.mrf.mxu3  ;;  %v1028_v47 = vpop.f32.mrf.mxu1 }
 0x12b   : > { %v1340_v31 = vadd.f32 %v1327_v63, %v1134_v21  ;;  %v1124_v32 = vpop.f32.mrf.mxu2  ;;  %v1038_v16 = vadd.f32 %v1028_v47, %v904_v8 }
 0x12c   : > { %v1135_v39 = vadd.f32 %v1124_v32, %v1037_v35  ;;  %v1547_v59 = vld [vmem:[%s2548_s30 + $0xc] sm:$0xf] (%p2145_p3) }
 0x12d   : > { %v1474_v13 = vadd.f32 %v1461_v23, %v1340_v31  ;;  %1548 = vst [vmem:[%s1524_s6 + $0x18] sm:$0xf] (%p2145_p3), %v1547_v59 }
 0x12f   : > { %v1486_v34 = vadd.f32 %v2543_v33, %v1474_v13 }
 0x130   : > { %v1464_v3 = vpop.f32.mrf.mxu0 }
 0x131   : > { %v1494_v38 = vmax.f32 %v1486_v34, 0.0 }
 0x132   : > { %v1330_v40 = vpop.f32.mrf.mxu3 }
 0x133   : > { %v1995_v41 = vpack.c.bf16 %v1494_v38, %v1493_v36  ;;  %v1126_v43 = vpop.f32.mrf.mxu2  ;;  %v1341_v44 = vadd.f32 %v1330_v40, %v1135_v39 }
 0x134   : > { %v1136_v42 = vadd.f32 %v1126_v43, %v1038_v16 }
 0x135   : > { %2003 = vst [vmem:[%s2548_s30 + $0x10] sm:$0xff] %v1995_v41   ;;  %v1475_v2 = vadd.f32 %v1464_v3, %v1341_v44 }
 0x137   : > { %v1487_v9 = vadd.f32 %v2543_v33, %v1475_v2 }
 0x138   : > { %v1466_v50 = vpop.f32.mrf.mxu0 }
 0x139   : > { %v1495_v55 = vmax.f32 %v1487_v9, 0.0 }
 0x13a   : > { %v1332_v48 = vpop.f32.mrf.mxu3 }
 0x13b   : > { %v1342_v49 = vadd.f32 %v1332_v48, %v1136_v42 }
 0x13c   : > { %v1549_v52 = vld [vmem:[%s2548_s30 + $0x10] sm:$0xf] (%p2145_p3)  ;;  %v1551_v45 = vld [vmem:[%s2548_s30 + $0x14] sm:$0xf] (%p2145_p3) }
 0x13d   : > { %v1476_v10 = vadd.f32 %v1466_v50, %v1342_v49  ;;  %1550 = vst [vmem:[%s1524_s6 + $0x20] sm:$0xf] (%p2145_p3), %v1549_v52 }
 0x13e   : > { %1552 = vst [vmem:[%s1524_s6 + $0x28] sm:$0xf] (%p2145_p3), %v1551_v45 }
 0x13f   : > { %v1488_v28 = vadd.f32 %v2543_v33, %v1476_v10  ;;  %v1545_v33 = vld [vmem:[%s2548_s30 + $0x8] sm:$0xf] (%p2145_p3) }
 0x140   : > { %1546 = vst [vmem:[%s1524_s6 + $0x10] sm:$0xf] (%p2145_p3), %v1545_v33 }
 0x141   : > { %v1496_v57 = vmax.f32 %v1488_v28, 0.0  ;;  %1519 = sbr.rel (!%p2145_p3) target bundleno = 335 (0x14f), region = 36 }
 0x143   : > { %v2000_v27 = vpack.c.bf16 %v1496_v57, %v1495_v55 }
 0x145   : > { %2004 = vst [vmem:[%s2548_s30 + $0x18] sm:$0xff] %v2000_v27  }
 0x14c   : > { %v1553_v51 = vld [vmem:[%s2548_s30 + $0x18] sm:$0xf]  ;;  %v1555_v26 = vld [vmem:[%s2548_s30 + $0x1c] sm:$0xf] }
 0x14d   : > { %1554 = vst [vmem:[%s1524_s6 + $0x30] sm:$0xf] %v1553_v51 }
 0x14e   : > { %1556 = vst [vmem:[%s1524_s6 + $0x38] sm:$0xf] %v1555_v26 }
 0x14f PF: > { %s13_s16 = sadd.s32 1, %s2091_s16   ;;  %s2610_s12 = smov %s2079_s13 }
 0x150   : > { %p10_p9 = scmp.ge.s32.totalorder %s13_s16, 4   ;;  %s2611_s13 = smov %s2154_s22 }
 0x151   : > { %s2612_s14 = smov %s2087_s15  ;;  %s2613_s15 = smov %s2615_s18 }
 0x152   :  { %12 = sbr.rel (!%p10_p9) target bundleno = 3 (0x3), region = 114 }

// kernel: model_forward.7
= control target key start
LH: loop header
LB: loop body
LE: loop exit
PB: predicated region body
PF: predicated region fallthrough
CT: control target
= control target key end

     0   :  { %v3392_v0 = vmov 0.0   ;;  %s3423_s18 = smov 0   ;;  %s5108_s0 = inlined_call_operand.vmem [shape: bf16[8,16,128], index: 0, kind: input, shape index: {}]   ;;  %s5109_s1 = inlined_call_operand.vmem [shape: bf16[3,256,512], index: 1, kind: input, shape index: {}]   ;;  %s5110_s2 = inlined_call_operand.vmem [shape: f32[3,1,512], index: 2, kind: input, shape index: {}]   ;;  %s5111_s3 = inlined_call_operand.vmem [shape: bf16[128,128], index: 3, kind: input, shape index: {}]   ;;  %s5112_s4 = inlined_call_operand.vmem [shape: f32[1,128], index: 4, kind: input, shape index: {}]   ;;  %s5113_s5 = inlined_call_operand.vmem [shape: f32[8,16,128], index: 5, kind: output, shape index: {}]  }
   0x1   :  { %24 = vst [vmem:[#allocation2 + $0x28] sm:$0xff] %v3392_v0 }
   0x2   :  { %25 = vst [vmem:[#allocation2 + $0x10] sm:$0xff] %v3392_v0 }
   0x3   :  { %26 = vst [vmem:[#allocation2 + $0x8] sm:$0xff] %v3392_v0 }
   0x4   :  { %27 = vst [vmem:[#allocation2] sm:$0xff] %v3392_v0 }
   0x5   :  { %28 = vst [vmem:[#allocation2 + $0x18] sm:$0xff] %v3392_v0 }
   0x6   :  { %29 = vst [vmem:[#allocation2 + $0x20] sm:$0xff] %v3392_v0 }
   0x7   :  { %30 = vst [vmem:[#allocation3] sm:$0xff] %v3392_v0 }
   0x8   :  { %31 = vst [vmem:[#allocation3 + $0x8] sm:$0xff] %v3392_v0 }
   0x9   :  { %32 = vst [vmem:[#allocation3 + $0x20] sm:$0xff] %v3392_v0 }
   0xa   :  { %33 = vst [vmem:[#allocation3 + $0x18] sm:$0xff] %v3392_v0 }
   0xb   :  { %34 = vst [vmem:[#allocation3 + $0x28] sm:$0xff] %v3392_v0 }
   0xc   :  { %35 = vst [vmem:[#allocation3 + $0x10] sm:$0xff] %v3392_v0 }
   0xd LB: > { %v2241_v1 = vld [vmem:[%s5109_s1 + $0xe0] sm:$0xf]  ;;  %v3108_v2 = vld [vmem:[%s5109_s1 + $0xec] sm:$0xf0]  ;;  %v3106_v6 = vld [vmem:[%s5109_s1 + $0xe4] sm:$0xf]  ;;  %s3390_s18 = sphi %s3423_s18, %s41_s18  }
   0xe   : > { %v2369_v3 = vld [vmem:[%s5109_s1 + $0x1e0] sm:$0xf]  ;;  %v2242_v4 = vor.u32 %v3108_v2, %v2241_v1  ;;  %v3140_v5 = vld [vmem:[%s5109_s1 + $0x1ec] sm:$0xf0]  ;;  %v2243_v7 = vld [vmem:[%s5109_s1 + $0xf0] sm:$0xf0] }
   0xf   : > { %v2370_v8 = vor.u32 %v3140_v5, %v2369_v3  ;;  %v2246_v9 = vor.u32 %v3106_v6, %v2243_v7  ;;  %v3138_v10 = vld [vmem:[%s5109_s1 + $0x1e4] sm:$0xf]  ;;  %v2371_v11 = vld [vmem:[%s5109_s1 + $0x1f0] sm:$0xf0]  ;;  %v2225_v12 = vld [vmem:[%s5109_s1 + $0xc0] sm:$0xf] }
  0x10   : > { %459 = vmatpush.bf16.msra.mxu0 %v2242_v4  ;;  %v2374_v13 = vor.u32 %v3138_v10, %v2371_v11  ;;  %v3104_v14 = vld [vmem:[%s5109_s1 + $0xcc] sm:$0xf0]  ;;  %v2353_v15 = vld [vmem:[%s5109_s1 + $0x1c0] sm:$0xf]  ;;  %v3102_v19 = vld [vmem:[%s5109_s1 + $0xc4] sm:$0xf] }
  0x11   : > { %v3136_v16 = vld [vmem:[%s5109_s1 + $0x1cc] sm:$0xf0]  ;;  %473 = vmatpush.bf16.msra.mxu1 %v2370_v8  ;;  %487 = vmatpush.bf16.msra.mxu2 %v2246_v9  ;;  %v2226_v17 = vor.u32 %v3104_v14, %v2225_v12  ;;  %v2227_v20 = vld [vmem:[%s5109_s1 + $0xd0] sm:$0xf0]  ;;  %v3134_v21 = vld [vmem:[%s5109_s1 + $0x1c4] sm:$0xf] }
  0x12   : > { %v2354_v18 = vor.u32 %v3136_v16, %v2353_v15  ;;  %501 = vmatpush.bf16.msra.mxu3 %v2374_v13  ;;  %v2230_v22 = vor.u32 %v3102_v19, %v2227_v20  ;;  %v2355_v23 = vld [vmem:[%s5109_s1 + $0x1d0] sm:$0xf0]  ;;  %v2209_v24 = vld [vmem:[%s5109_s1 + $0xa0] sm:$0xf]  ;;  %v3100_v25 = vld [vmem:[%s5109_s1 + $0xac] sm:$0xf0] }
  0x13   : > { %v2358_v26 = vor.u32 %v3134_v21, %v2355_v23  ;;  %v2337_v27 = vld [vmem:[%s5109_s1 + $0x1a0] sm:$0xf]  ;;  %v3132_v28 = vld [vmem:[%s5109_s1 + $0x1ac] sm:$0xf0]  ;;  %v3098_v29 = vld [vmem:[%s5109_s1 + $0xa4] sm:$0xf]  ;;  %v2210_v30 = vor.u32 %v3100_v25, %v2209_v24 }
  0x14   : > { %460 = vmatpush.bf16.msra.mxu0 %v2226_v17  ;;  %v2211_v31 = vld [vmem:[%s5109_s1 + $0xb0] sm:$0xf0]  ;;  %v3130_v32 = vld [vmem:[%s5109_s1 + $0x1a4] sm:$0xf]  ;;  %v2338_v34 = vor.u32 %v3132_v28, %v2337_v27  ;;  %v2193_v36 = vld [vmem:[%s5109_s1 + $0x80] sm:$0xf] }
  0x15   : > { %v2339_v33 = vld [vmem:[%s5109_s1 + $0x1b0] sm:$0xf0]  ;;  %474 = vmatpush.bf16.msra.mxu1 %v2354_v18  ;;  %488 = vmatpush.bf16.msra.mxu2 %v2230_v22  ;;  %v2214_v35 = vor.u32 %v3098_v29, %v2211_v31  ;;  %v3096_v37 = vld [vmem:[%s5109_s1 + $0x8c] sm:$0xf0]  ;;  %v2321_v38 = vld [vmem:[%s5109_s1 + $0x180] sm:$0xf] }
  0x16   : > { %502 = vmatpush.bf16.msra.mxu3 %v2358_v26  ;;  %v2342_v39 = vor.u32 %v3130_v32, %v2339_v33  ;;  %v3128_v40 = vld [vmem:[%s5109_s1 + $0x18c] sm:$0xf0]  ;;  %v3094_v41 = vld [vmem:[%s5109_s1 + $0x84] sm:$0xf]  ;;  %v2195_v42 = vld [vmem:[%s5109_s1 + $0x90] sm:$0xf0]  ;;  %v2194_v45 = vor.u32 %v3096_v37, %v2193_v36 }
  0x17   : > { %v3126_v43 = vld [vmem:[%s5109_s1 + $0x184] sm:$0xf]  ;;  %v2323_v44 = vld [vmem:[%s5109_s1 + $0x190] sm:$0xf0]  ;;  %v2322_v46 = vor.u32 %v3128_v40, %v2321_v38  ;;  %v2198_v47 = vor.u32 %v3094_v41, %v2195_v42  ;;  %v2177_v48 = vld [vmem:[%s5109_s1 + $0x60] sm:$0xf] }
  0x18   : > { %461 = vmatpush.bf16.msra.mxu0 %v2210_v30  ;;  %v3092_v49 = vld [vmem:[%s5109_s1 + $0x6c] sm:$0xf0]  ;;  %v2305_v50 = vld [vmem:[%s5109_s1 + $0x160] sm:$0xf]  ;;  %v2326_v51 = vor.u32 %v3126_v43, %v2323_v44  ;;  %v3090_v53 = vld [vmem:[%s5109_s1 + $0x64] sm:$0xf] }
  0x19   : > { %475 = vmatpush.bf16.msra.mxu1 %v2338_v34  ;;  %489 = vmatpush.bf16.msra.mxu2 %v2214_v35  ;;  %v3124_v52 = vld [vmem:[%s5109_s1 + $0x16c] sm:$0xf0]  ;;  %v2179_v54 = vld [vmem:[%s5109_s1 + $0x70] sm:$0xf0]  ;;  %v3122_v55 = vld [vmem:[%s5109_s1 + $0x164] sm:$0xf]  ;;  %v2178_v57 = vor.u32 %v3092_v49, %v2177_v48 }
  0x1a   : > { %503 = vmatpush.bf16.msra.mxu3 %v2342_v39  ;;  %v2307_v56 = vld [vmem:[%s5109_s1 + $0x170] sm:$0xf0]  ;;  %v2306_v58 = vor.u32 %v3124_v52, %v2305_v50  ;;  %v2182_v59 = vor.u32 %v3090_v53, %v2179_v54  ;;  %v2161_v60 = vld [vmem:[%s5109_s1 + $0x40] sm:$0xf]  ;;  %v3088_v61 = vld [vmem:[%s5109_s1 + $0x4c] sm:$0xf0] }
  0x1b   : > { %v2289_v62 = vld [vmem:[%s5109_s1 + $0x140] sm:$0xf]  ;;  %v2310_v63 = vor.u32 %v3122_v55, %v2307_v56  ;;  %v3120_v0 = vld [vmem:[%s5109_s1 + $0x14c] sm:$0xf0]  ;;  %v3086_v1 = vld [vmem:[%s5109_s1 + $0x44] sm:$0xf]  ;;  %v2162_v5 = vor.u32 %v3088_v61, %v2161_v60 }
  0x1c   : > { %462 = vmatpush.bf16.msra.mxu0 %v2194_v45  ;;  %v2163_v2 = vld [vmem:[%s5109_s1 + $0x50] sm:$0xf0]  ;;  %v3118_v3 = vld [vmem:[%s5109_s1 + $0x144] sm:$0xf]  ;;  %v2145_v6 = vld [vmem:[%s5109_s1 + $0x20] sm:$0xf]  ;;  %v2290_v7 = vor.u32 %v3120_v0, %v2289_v62 }
  0x1d   : > { %476 = vmatpush.bf16.msra.mxu1 %v2322_v46  ;;  %490 = vmatpush.bf16.msra.mxu2 %v2198_v47  ;;  %v2291_v4 = vld [vmem:[%s5109_s1 + $0x150] sm:$0xf0]  ;;  %v2166_v8 = vor.u32 %v3086_v1, %v2163_v2  ;;  %v3084_v9 = vld [vmem:[%s5109_s1 + $0x2c] sm:$0xf0]  ;;  %v2273_v10 = vld [vmem:[%s5109_s1 + $0x120] sm:$0xf] }
  0x1e   : > { %504 = vmatpush.bf16.msra.mxu3 %v2326_v51  ;;  %v3116_v11 = vld [vmem:[%s5109_s1 + $0x12c] sm:$0xf0]  ;;  %v2294_v12 = vor.u32 %v3118_v3, %v2291_v4  ;;  %v3082_v13 = vld [vmem:[%s5109_s1 + $0x24] sm:$0xf]  ;;  %v2147_v14 = vld [vmem:[%s5109_s1 + $0x30] sm:$0xf0]  ;;  %v2146_v19 = vor.u32 %v3084_v9, %v2145_v6 }
  0x1f   : > { %v3114_v15 = vld [vmem:[%s5109_s1 + $0x124] sm:$0xf]  ;;  %v2275_v16 = vld [vmem:[%s5109_s1 + $0x130] sm:$0xf0]  ;;  %v2129_v17 = vld [vmem:[%s5109_s1] sm:$0xf]  ;;  %v2274_v23 = vor.u32 %v3116_v11, %v2273_v10  ;;  %v2150_v24 = vor.u32 %v3082_v13, %v2147_v14 }
  0x20   : > { %463 = vmatpush.bf16.msra.mxu0 %v2178_v57  ;;  %v3080_v18 = vld [vmem:[%s5109_s1 + $0xc] sm:$0xf0]  ;;  %v2257_v20 = vld [vmem:[%s5109_s1 + $0x100] sm:$0xf]  ;;  %v3078_v22 = vld [vmem:[%s5109_s1 + $0x4] sm:$0xf]  ;;  %v2278_v28 = vor.u32 %v3114_v15, %v2275_v16 }
  0x21   : > { %477 = vmatpush.bf16.msra.mxu1 %v2306_v58  ;;  %491 = vmatpush.bf16.msra.mxu2 %v2182_v59  ;;  %v3112_v21 = vld [vmem:[%s5109_s1 + $0x10c] sm:$0xf0]  ;;  %v2131_v25 = vld [vmem:[%s5109_s1 + $0x10] sm:$0xf0]  ;;  %v47_v26 = vld [vmem:[#allocation2 + $0x28] sm:$0xff]  ;;  %s3076_s27 = sshll.u32 %s3390_s18, 3  ;;  %v2130_v36 = vor.u32 %v3080_v18, %v2129_v17 }
  0x22   : > { %505 = vmatpush.bf16.msra.mxu3 %v2310_v63  ;;  %v48_v27 = vld [vmem:[#allocation2 + $0x10] sm:$0xff]  ;;  %v3110_v29 = vld [vmem:[%s5109_s1 + $0x104] sm:$0xf]  ;;  %v51_v31 = vpack.c.bf16 %v47_v26, %v47_v26  ;;  %v2249_v33 = vld [vmem:[%s5109_s1 + $0xe8] sm:$0xf]  ;;  %v2258_v40 = vor.u32 %v3112_v21, %v2257_v20  ;;  %v2134_v41 = vor.u32 %v3078_v22, %v2131_v25  ;;  %s44_s22 = scalar_lea.vmem %s5108_s0, %s3076_s27  ;;  %s3075_s23 = sshll.u32 %s3390_s18, 4 }
  0x23   : > { %v2259_v30 = vld [vmem:[%s5109_s1 + $0x110] sm:$0xf0]  ;;  %v52_v32 = vpack.c.bf16 %v48_v27, %v48_v27  ;;  %v3109_v34 = vld [vmem:[%s5109_s1 + $0xf4] sm:$0xf0]  ;;  %v2377_v35 = vld [vmem:[%s5109_s1 + $0x1e8] sm:$0xf]  ;;  %s2105_s26 = scalar_lea.vmem %s5113_s5, %s3075_s23 }
  0x24   : > { %464 = vmatpush.bf16.msra.mxu0 %v2162_v5  ;;  %v3141_v37 = vld [vmem:[%s5109_s1 + $0x1f4] sm:$0xf0]  ;;  %v3107_v38 = vld [vmem:[%s5109_s1 + $0xec] sm:$0xf]  ;;  %v2251_v39 = vld [vmem:[%s5109_s1 + $0xf8] sm:$0xf0]  ;;  %v61_v44 = vunpack.c.l.b16 %v51_v31  ;;  %v2262_v46 = vor.u32 %v3110_v29, %v2259_v30  ;;  %v2250_v47 = vor.u32 %v3109_v34, %v2249_v33 }
  0x25   : > { %478 = vmatpush.bf16.msra.mxu1 %v2290_v7  ;;  %492 = vmatpush.bf16.msra.mxu2 %v2166_v8  ;;  %v3139_v42 = vld [vmem:[%s5109_s1 + $0x1ec] sm:$0xf]  ;;  %v2379_v43 = vld [vmem:[%s5109_s1 + $0x1f8] sm:$0xf0]  ;;  %v62_v45 = vunpack.c.l.b16 %v52_v32  ;;  %v2233_v48 = vld [vmem:[%s5109_s1 + $0xc8] sm:$0xf]  ;;  %v2378_v49 = vor.u32 %v3141_v37, %v2377_v35  ;;  %v2254_v50 = vor.u32 %v3107_v38, %v2251_v39 }
  0x26   : > { %506 = vmatpush.bf16.msra.mxu3 %v2294_v12  ;;  %v3105_v51 = vld [vmem:[%s5109_s1 + $0xd4] sm:$0xf0]  ;;  %v2361_v52 = vld [vmem:[%s5109_s1 + $0x1c8] sm:$0xf]  ;;  %v2382_v54 = vor.u32 %v3139_v42, %v2379_v43  ;;  %v3660_v55 = vld [vmem:[%s44_s22] sm:$0xff]  ;;  %s41_s18 = sadd.s32 1, %s3390_s18  }
  0x27   : > { %v3137_v53 = vld [vmem:[%s5109_s1 + $0x1d4] sm:$0xf0]  ;;  %v3103_v56 = vld [vmem:[%s5109_s1 + $0xcc] sm:$0xf]  ;;  %v2235_v57 = vld [vmem:[%s5109_s1 + $0xd8] sm:$0xf0]  ;;  %v3668_v58 = vpack.c.b16 %v62_v45, %v61_v44  ;;  %v2234_v61 = vor.u32 %v3105_v51, %v2233_v48 }
  0x28   : > { %465 = vmatpush.bf16.msra.mxu0 %v2146_v19  ;;  %v3135_v59 = vld [vmem:[%s5109_s1 + $0x1cc] sm:$0xf]  ;;  %v2363_v60 = vld [vmem:[%s5109_s1 + $0x1d8] sm:$0xf0]  ;;  %v2362_v62 = vor.u32 %v3137_v53, %v2361_v52  ;;  %v2238_v63 = vor.u32 %v3103_v56, %v2235_v57  ;;  %v2217_v0 = vld [vmem:[%s5109_s1 + $0xa8] sm:$0xf] }
  0x29   : > { %479 = vmatpush.bf16.msra.mxu1 %v2274_v23  ;;  %493 = vmatpush.bf16.msra.mxu2 %v2150_v24  ;;  %v3101_v1 = vld [vmem:[%s5109_s1 + $0xb4] sm:$0xf0]  ;;  %v2345_v2 = vld [vmem:[%s5109_s1 + $0x1a8] sm:$0xf]  ;;  %v2366_v3 = vor.u32 %v3135_v59, %v2363_v60  ;;  %v3099_v5 = vld [vmem:[%s5109_s1 + $0xac] sm:$0xf] }
  0x2a   : > { %507 = vmatpush.bf16.msra.mxu3 %v2278_v28  ;;  %v3133_v4 = vld [vmem:[%s5109_s1 + $0x1b4] sm:$0xf0]  ;;  %v2219_v6 = vld [vmem:[%s5109_s1 + $0xb8] sm:$0xf0]  ;;  %v3131_v7 = vld [vmem:[%s5109_s1 + $0x1ac] sm:$0xf]  ;;  %v2218_v9 = vor.u32 %v3101_v1, %v2217_v0 }
  0x2b   : > { %v2347_v8 = vld [vmem:[%s5109_s1 + $0x1b8] sm:$0xf0]  ;;  %v2346_v10 = vor.u32 %v3133_v4, %v2345_v2  ;;  %v2222_v11 = vor.u32 %v3099_v5, %v2219_v6  ;;  %v2201_v12 = vld [vmem:[%s5109_s1 + $0x88] sm:$0xf]  ;;  %v3097_v13 = vld [vmem:[%s5109_s1 + $0x94] sm:$0xf0] }
  0x2c   : > { %466 = vmatpush.bf16.msra.mxu0 %v2130_v36  ;;  %v2329_v14 = vld [vmem:[%s5109_s1 + $0x188] sm:$0xf]  ;;  %v2350_v15 = vor.u32 %v3131_v7, %v2347_v8  ;;  %v3129_v16 = vld [vmem:[%s5109_s1 + $0x194] sm:$0xf0]  ;;  %v3095_v17 = vld [vmem:[%s5109_s1 + $0x8c] sm:$0xf]  ;;  %v2202_v21 = vor.u32 %v3097_v13, %v2201_v12 }
  0x2d   : > { %480 = vmatpush.bf16.msra.mxu1 %v2258_v40  ;;  %494 = vmatpush.bf16.msra.mxu2 %v2134_v41  ;;  %v2203_v18 = vld [vmem:[%s5109_s1 + $0x98] sm:$0xf0]  ;;  %v3127_v19 = vld [vmem:[%s5109_s1 + $0x18c] sm:$0xf]  ;;  %v2330_v22 = vor.u32 %v3129_v16, %v2329_v14  ;;  %v2185_v24 = vld [vmem:[%s5109_s1 + $0x68] sm:$0xf] }
  0x2e   : > { %508 = vmatpush.bf16.msra.mxu3 %v2262_v46  ;;  %v2331_v20 = vld [vmem:[%s5109_s1 + $0x198] sm:$0xf0]  ;;  %v2206_v23 = vor.u32 %v3095_v17, %v2203_v18  ;;  %v3093_v25 = vld [vmem:[%s5109_s1 + $0x74] sm:$0xf0]  ;;  %v2313_v26 = vld [vmem:[%s5109_s1 + $0x168] sm:$0xf] }
  0x2f   : > { %467 = vmatmul.bf16.vlgmr.msra.gmra.mxu0 %v3660_v55  ;;  %v2334_v27 = vor.u32 %v3127_v19, %v2331_v20  ;;  %v3125_v28 = vld [vmem:[%s5109_s1 + $0x174] sm:$0xf0]  ;;  %v3091_v29 = vld [vmem:[%s5109_s1 + $0x6c] sm:$0xf]  ;;  %v2187_v30 = vld [vmem:[%s5109_s1 + $0x78] sm:$0xf0]  ;;  %v2186_v33 = vor.u32 %v3093_v25, %v2185_v24 }
  0x30   : > { %515 = vmatpush.bf16.msrb.mxu0 %v2250_v47  ;;  %495 = vmatmul.bf16.vlgmr.msra.gmra.mxu2 %v3660_v55  ;;  %v3123_v31 = vld [vmem:[%s5109_s1 + $0x16c] sm:$0xf]  ;;  %v2315_v32 = vld [vmem:[%s5109_s1 + $0x178] sm:$0xf0]  ;;  %v2314_v34 = vor.u32 %v3125_v28, %v2313_v26  ;;  %v2190_v35 = vor.u32 %v3091_v29, %v2187_v30  ;;  %v2169_v36 = vld [vmem:[%s5109_s1 + $0x48] sm:$0xf] }
  0x31   : > { %529 = vmatpush.bf16.msrb.mxu1 %v2378_v49  ;;  %543 = vmatpush.bf16.msrb.mxu2 %v2254_v50  ;;  %v3089_v37 = vld [vmem:[%s5109_s1 + $0x54] sm:$0xf0]  ;;  %v2297_v38 = vld [vmem:[%s5109_s1 + $0x148] sm:$0xf]  ;;  %v2318_v39 = vor.u32 %v3123_v31, %v2315_v32  ;;  %v3087_v41 = vld [vmem:[%s5109_s1 + $0x4c] sm:$0xf] }
  0x32   : > { %557 = vmatpush.bf16.msrb.mxu3 %v2382_v54  ;;  %481 = vmatmul.bf16.vlgmr.msra.gmra.mxu1 %v3668_v58  ;;  %v3121_v40 = vld [vmem:[%s5109_s1 + $0x154] sm:$0xf0]  ;;  %v2171_v42 = vld [vmem:[%s5109_s1 + $0x58] sm:$0xf0]  ;;  %v3119_v43 = vld [vmem:[%s5109_s1 + $0x14c] sm:$0xf]  ;;  %v2170_v45 = vor.u32 %v3089_v37, %v2169_v36 }
  0x33   : > { %509 = vmatmul.bf16.vlgmr.msra.gmra.mxu3 %v3668_v58  ;;  %v2299_v44 = vld [vmem:[%s5109_s1 + $0x158] sm:$0xf0]  ;;  %v2298_v46 = vor.u32 %v3121_v40, %v2297_v38  ;;  %v2174_v47 = vor.u32 %v3087_v41, %v2171_v42  ;;  %v2153_v48 = vld [vmem:[%s5109_s1 + $0x28] sm:$0xf]  ;;  %v3085_v49 = vld [vmem:[%s5109_s1 + $0x34] sm:$0xf0] }
  0x34   : > { %516 = vmatpush.bf16.msrb.mxu0 %v2234_v61  ;;  %v2281_v50 = vld [vmem:[%s5109_s1 + $0x128] sm:$0xf]  ;;  %v2302_v51 = vor.u32 %v3119_v43, %v2299_v44  ;;  %v3117_v52 = vld [vmem:[%s5109_s1 + $0x134] sm:$0xf0]  ;;  %v3083_v53 = vld [vmem:[%s5109_s1 + $0x2c] sm:$0xf]  ;;  %v2154_v59 = vor.u32 %v3085_v49, %v2153_v48 }
  0x35   : > { %530 = vmatpush.bf16.msrb.mxu1 %v2362_v62  ;;  %544 = vmatpush.bf16.msrb.mxu2 %v2238_v63  ;;  %v2155_v54 = vld [vmem:[%s5109_s1 + $0x38] sm:$0xf0]  ;;  %v3115_v56 = vld [vmem:[%s5109_s1 + $0x12c] sm:$0xf]  ;;  %v2282_v60 = vor.u32 %v3117_v52, %v2281_v50  ;;  %v2137_v62 = vld [vmem:[%s5109_s1 + $0x8] sm:$0xf] }
  0x36   : > { %558 = vmatpush.bf16.msrb.mxu3 %v2366_v3  ;;  %v2283_v57 = vld [vmem:[%s5109_s1 + $0x138] sm:$0xf0]  ;;  %v2158_v61 = vor.u32 %v3083_v53, %v2155_v54  ;;  %v3081_v63 = vld [vmem:[%s5109_s1 + $0x14] sm:$0xf0]  ;;  %v2265_v0 = vld [vmem:[%s5109_s1 + $0x108] sm:$0xf] }
  0x37   : > { %v2286_v1 = vor.u32 %v3115_v56, %v2283_v57  ;;  %v3113_v2 = vld [vmem:[%s5109_s1 + $0x114] sm:$0xf0]  ;;  %v3079_v3 = vld [vmem:[%s5109_s1 + $0xc] sm:$0xf]  ;;  %v2139_v4 = vld [vmem:[%s5109_s1 + $0x18] sm:$0xf0]  ;;  %v2138_v7 = vor.u32 %v3081_v63, %v2137_v62 }
  0x38   : > { %517 = vmatpush.bf16.msrb.mxu0 %v2218_v9  ;;  %v3111_v5 = vld [vmem:[%s5109_s1 + $0x10c] sm:$0xf]  ;;  %v2267_v6 = vld [vmem:[%s5109_s1 + $0x118] sm:$0xf0]  ;;  %v2266_v8 = vor.u32 %v3113_v2, %v2265_v0  ;;  %v2142_v9 = vor.u32 %v3079_v3, %v2139_v4  ;;  %v2696_v12 = vld [vmem:[%s5109_s1 + $0x3e0] sm:$0xf] }
  0x39   : > { %531 = vmatpush.bf16.msrb.mxu1 %v2346_v10  ;;  %545 = vmatpush.bf16.msrb.mxu2 %v2222_v11  ;;  %v2270_v10 = vor.u32 %v3111_v5, %v2267_v6  ;;  %v3831_v11 = vld [vmem:[%s5110_s2] sm:$0xf]  ;;  %v3204_v13 = vld [vmem:[%s5109_s1 + $0x3ec] sm:$0xf0]  ;;  %v3202_v17 = vld [vmem:[%s5109_s1 + $0x3e4] sm:$0xf] }
  0x3a   : > { %559 = vmatpush.bf16.msrb.mxu3 %v2350_v15  ;;  %v131_v14 = vperm.slane %v3831_v11, 0  ;;  %v2697_v15 = vor.u32 %v3204_v13, %v2696_v12  ;;  %v3200_v16 = vld [vmem:[%s5109_s1 + $0x3cc] sm:$0xf0]  ;;  %v3170_v26 = vld [vmem:[%s5109_s1 + $0x2e4] sm:$0xf]  ;;  %v132_v30 = vperm.slane %v3831_v11, 1 }
  0x3b   : > { %v2664_v31 = vld [vmem:[%s5109_s1 + $0x3a0] sm:$0xf]  ;;  %v3196_v32 = vld [vmem:[%s5109_s1 + $0x3ac] sm:$0xf0]  ;;  %v2682_v36 = vld [vmem:[%s5109_s1 + $0x3d0] sm:$0xf0] }
  0x3c   : > { %518 = vmatpush.bf16.msrb.mxu0 %v2202_v21  ;;  %v2698_v21 = vld [vmem:[%s5109_s1 + $0x3f0] sm:$0xf0]  ;;  %v2552_v38 = vld [vmem:[%s5109_s1 + $0x2c0] sm:$0xf]  ;;  %v3166_v40 = vld [vmem:[%s5109_s1 + $0x2c4] sm:$0xf] }
  0x3d   : > { %532 = vmatpush.bf16.msrb.mxu1 %v2330_v22  ;;  %546 = vmatpush.bf16.msrb.mxu2 %v2206_v23  ;;  %v2568_v22 = vld [vmem:[%s5109_s1 + $0x2e0] sm:$0xf]  ;;  %v3172_v23 = vld [vmem:[%s5109_s1 + $0x2ec] sm:$0xf0]  ;;  %v2701_v24 = vor.u32 %v3202_v17, %v2698_v21  ;;  %v2554_v43 = vld [vmem:[%s5109_s1 + $0x2d0] sm:$0xf0] }
  0x3e   : > { %560 = vmatpush.bf16.msrb.mxu3 %v2334_v27  ;;  %v2569_v25 = vor.u32 %v3172_v23, %v2568_v22  ;;  %v2570_v27 = vld [vmem:[%s5109_s1 + $0x2f0] sm:$0xf0]  ;;  %v2648_v48 = vld [vmem:[%s5109_s1 + $0x380] sm:$0xf]  ;;  %v3192_v49 = vld [vmem:[%s5109_s1 + $0x38c] sm:$0xf0] }
  0x3f   : > { %v2573_v29 = vor.u32 %v3170_v26, %v2570_v27  ;;  %v2649_v52 = vor.u32 %v3192_v49, %v2648_v48  ;;  %v3194_v53 = vld [vmem:[%s5109_s1 + $0x3a4] sm:$0xf]  ;;  %v2666_v54 = vld [vmem:[%s5109_s1 + $0x3b0] sm:$0xf0]  ;;  %v2536_v56 = vld [vmem:[%s5109_s1 + $0x2a0] sm:$0xf] }
  0x40   : > { %519 = vmatpush.bf16.msrb.mxu0 %v2186_v33  ;;  %v2538_v62 = vld [vmem:[%s5109_s1 + $0x2b0] sm:$0xf0]  ;;  %v2632_v3 = vld [vmem:[%s5109_s1 + $0x360] sm:$0xf]  ;;  %v3188_v4 = vld [vmem:[%s5109_s1 + $0x36c] sm:$0xf0] }
  0x41   : > { %533 = vmatpush.bf16.msrb.mxu1 %v2314_v34  ;;  %547 = vmatpush.bf16.msrb.mxu2 %v2190_v35  ;;  %v2665_v34 = vor.u32 %v3196_v32, %v2664_v31  ;;  %v3198_v35 = vld [vmem:[%s5109_s1 + $0x3c4] sm:$0xf]  ;;  %v2520_v13 = vld [vmem:[%s5109_s1 + $0x280] sm:$0xf]  ;;  %v3184_v21 = vld [vmem:[%s5109_s1 + $0x34c] sm:$0xf0] }
  0x42   : > { %561 = vmatpush.bf16.msrb.mxu3 %v2318_v39  ;;  %v2685_v37 = vor.u32 %v3198_v35, %v2682_v36  ;;  %v3168_v39 = vld [vmem:[%s5109_s1 + $0x2cc] sm:$0xf0]  ;;  %v3186_v22 = vld [vmem:[%s5109_s1 + $0x364] sm:$0xf]  ;;  %v2504_v26 = vld [vmem:[%s5109_s1 + $0x260] sm:$0xf] }
  0x43   : > { %v2553_v42 = vor.u32 %v3168_v39, %v2552_v38  ;;  %v3180_v38 = vld [vmem:[%s5109_s1 + $0x32c] sm:$0xf0]  ;;  %v2490_v49 = vld [vmem:[%s5109_s1 + $0x250] sm:$0xf0]  ;;  %p38_p0 = scmp.ge.s32.totalorder %s41_s18, 8  }
  0x44   : > { %520 = vmatpush.bf16.msrb.mxu0 %v2170_v45 }
  0x45   : > { %534 = vmatpush.bf16.msrb.mxu1 %v2298_v46  ;;  %548 = vmatpush.bf16.msrb.mxu2 %v2174_v47  ;;  %v2557_v47 = vor.u32 %v3166_v40, %v2554_v43  ;;  %v2618_v43 = vld [vmem:[%s5109_s1 + $0x350] sm:$0xf0] }
  0x46   : > { %562 = vmatpush.bf16.msrb.mxu3 %v2302_v51 }
  0x48   : > { %521 = vmatpush.bf16.msrb.mxu0 %v2154_v59  ;;  %v2669_v59 = vor.u32 %v3194_v53, %v2666_v54  ;;  %v134_v53 = vperm.slane %v3831_v11, 3 }
  0x49   : > { %535 = vmatpush.bf16.msrb.mxu1 %v2282_v60  ;;  %549 = vmatpush.bf16.msrb.mxu2 %v2158_v61  ;;  %v3164_v60 = vld [vmem:[%s5109_s1 + $0x2ac] sm:$0xf0]  ;;  %v3162_v61 = vld [vmem:[%s5109_s1 + $0x2a4] sm:$0xf] }
  0x4a   : > { %563 = vmatpush.bf16.msrb.mxu3 %v2286_v1  ;;  %v2537_v0 = vor.u32 %v3164_v60, %v2536_v56  ;;  %v2541_v1 = vor.u32 %v3162_v61, %v2538_v62  ;;  %v3176_v61 = vld [vmem:[%s5109_s1 + $0x30c] sm:$0xf0]  ;;  %v3178_v62 = vld [vmem:[%s5109_s1 + $0x324] sm:$0xf] }
  0x4c   : > { %522 = vmatpush.bf16.msrb.mxu0 %v2138_v7  ;;  %v2633_v7 = vor.u32 %v3188_v4, %v2632_v3  ;;  %v2472_v3 = vld [vmem:[%s5109_s1 + $0x220] sm:$0xf] }
  0x4d   : > { %536 = vmatpush.bf16.msrb.mxu1 %v2266_v8  ;;  %550 = vmatpush.bf16.msrb.mxu2 %v2142_v9  ;;  %v3190_v8 = vld [vmem:[%s5109_s1 + $0x384] sm:$0xf]  ;;  %v2650_v9 = vld [vmem:[%s5109_s1 + $0x390] sm:$0xf0] }
  0x4e   : > { %564 = vmatpush.bf16.msrb.mxu3 %v2270_v10  ;;  %v2653_v12 = vor.u32 %v3190_v8, %v2650_v9  ;;  %v3146_v8 = vld [vmem:[%s5109_s1 + $0x224] sm:$0xf]  ;;  %v2474_v9 = vld [vmem:[%s5109_s1 + $0x230] sm:$0xf0] }
  0x4f   : > { %523 = vmatmul.bf16.vlgmr.msrb.gmra.mxu0 %v3660_v55 }
  0x50   : > { %537 = vmatmul.bf16.vlgmr.msrb.gmra.mxu1 %v3668_v58  ;;  %551 = vmatmul.bf16.vlgmr.msrb.gmra.mxu2 %v3660_v55 }
  0x51   : > { %565 = vmatmul.bf16.vlgmr.msrb.gmra.mxu3 %v3668_v58  ;;  %1133 = vmatpush.bf16.msra.mxu1 %v2697_v15  ;;  %v2680_v58 = vld [vmem:[%s5109_s1 + $0x3c0] sm:$0xf] }
  0x52   : > { %v2681_v20 = vor.u32 %v3200_v16, %v2680_v58  ;;  %1161 = vmatpush.bf16.msra.mxu3 %v2701_v24  ;;  %1119 = vmatpush.bf16.msra.mxu0 %v2569_v25  ;;  %v3158_v58 = vld [vmem:[%s5109_s1 + $0x284] sm:$0xf]  ;;  %v2522_v16 = vld [vmem:[%s5109_s1 + $0x290] sm:$0xf0] }
  0x53   : > { %1147 = vmatpush.bf16.msra.mxu2 %v2573_v29  ;;  %v2634_v25 = vld [vmem:[%s5109_s1 + $0x370] sm:$0xf0]  ;;  %v3154_v29 = vld [vmem:[%s5109_s1 + $0x264] sm:$0xf] }
  0x54   : > { %v2637_v27 = vor.u32 %v3186_v22, %v2634_v25 }
  0x55   : > { %1134 = vmatpush.bf16.msra.mxu1 %v2681_v20  ;;  %v2525_v20 = vor.u32 %v3158_v58, %v2522_v16  ;;  %v2704_v58 = vld [vmem:[%s5109_s1 + $0x3e8] sm:$0xf]  ;;  %v3205_v16 = vld [vmem:[%s5109_s1 + $0x3f4] sm:$0xf0] }
  0x56   : > { %1162 = vmatpush.bf16.msra.mxu3 %v2685_v37  ;;  %1120 = vmatpush.bf16.msra.mxu0 %v2553_v42  ;;  %v3182_v42 = vld [vmem:[%s5109_s1 + $0x344] sm:$0xf]  ;;  %v2705_v22 = vor.u32 %v3205_v16, %v2704_v58  ;;  %v3167_v58 = vld [vmem:[%s5109_s1 + $0x2cc] sm:$0xf] }
  0x57   : > { %1148 = vmatpush.bf16.msra.mxu2 %v2557_v47  ;;  %v3150_v47 = vld [vmem:[%s5109_s1 + $0x244] sm:$0xf] }
  0x58   : > { %v2493_v60 = vor.u32 %v3150_v47, %v2490_v49  ;;  %v2706_v47 = vld [vmem:[%s5109_s1 + $0x3f8] sm:$0xf0] }
  0x59   : > { %1135 = vmatpush.bf16.msra.mxu1 %v2665_v34  ;;  %v2600_v34 = vld [vmem:[%s5109_s1 + $0x320] sm:$0xf] }
  0x5a   : > { %1163 = vmatpush.bf16.msra.mxu3 %v2669_v59  ;;  %1121 = vmatpush.bf16.msra.mxu0 %v2537_v0 }
  0x5b   : > { %1149 = vmatpush.bf16.msra.mxu2 %v2541_v1 }
  0x5d   : > { %1136 = vmatpush.bf16.msra.mxu1 %v2649_v52  ;;  %v133_v52 = vperm.slane %v3831_v11, 2 }
  0x5e   : > { %1164 = vmatpush.bf16.msra.mxu3 %v2653_v12 }
  0x5f   : > { %1150 = vmatpush.bf16.msra.mxu2 %v2525_v20 }
  0x61   : > { %1137 = vmatpush.bf16.msra.mxu1 %v2633_v7  ;;  %v3148_v7 = vld [vmem:[%s5109_s1 + $0x22c] sm:$0xf0] }
  0x62   : > { %1165 = vmatpush.bf16.msra.mxu3 %v2637_v27  ;;  %v2456_v27 = vld [vmem:[%s5109_s1 + $0x200] sm:$0xf] }
  0xac   : > { %v468_v55 = vpop.f32.mrf.mxu0 }
  0xad   : > { %v469_v18 = vadd.f32 %v468_v55, %v131_v14 }
  0xaf   : > { %v482_v19 = vpop.f32.mrf.mxu1 }
  0xb0   : > { %v483_v28 = vadd.f32 %v482_v19, %v469_v18  ;;  %v2616_v19 = vld [vmem:[%s5109_s1 + $0x340] sm:$0xf] }
  0xb1   : > { %v2617_v24 = vor.u32 %v3184_v21, %v2616_v19 }
  0xb2   : > { %v2383_v33 = vmul.f32 -1.442695, %v483_v28  ;;  %v3156_v28 = vld [vmem:[%s5109_s1 + $0x26c] sm:$0xf0] }
  0xb3   : > { %v496_v41 = vpop.f32.mrf.mxu2  ;;  %1138 = vmatpush.bf16.msra.mxu1 %v2617_v24  ;;  %v2505_v32 = vor.u32 %v3156_v28, %v2504_v26  ;;  %v2586_v24 = vld [vmem:[%s5109_s1 + $0x310] sm:$0xf0]  ;;  %v3144_v28 = vld [vmem:[%s5109_s1 + $0x20c] sm:$0xf0] }
  0xb4   : > { %3288 = vpow2.f32 %v2383_v33  ;;  %v497_v44 = vadd.f32 %v496_v41, %v132_v30  ;;  %v470_v45 = vpop.f32.mrf.mxu0  ;;  %v2506_v33 = vld [vmem:[%s5109_s1 + $0x270] sm:$0xf0]  ;;  %v2601_v41 = vor.u32 %v3180_v38, %v2600_v34  ;;  %v3189_v38 = vld [vmem:[%s5109_s1 + $0x374] sm:$0xf0] }
  0xb5   : > { %v471_v50 = vadd.f32 %v470_v45, %v131_v14  ;;  %v3160_v14 = vld [vmem:[%s5109_s1 + $0x28c] sm:$0xf0]  ;;  %v2509_v37 = vor.u32 %v3154_v29, %v2506_v33  ;;  %v2488_v45 = vld [vmem:[%s5109_s1 + $0x240] sm:$0xf]  ;;  %v3142_v29 = vld [vmem:[%s5109_s1 + $0x204] sm:$0xf] }
  0xb6   : > { %v510_v46 = vpop.f32.mrf.mxu3  ;;  %v2521_v55 = vor.u32 %v3160_v14, %v2520_v13  ;;  %v2458_v34 = vld [vmem:[%s5109_s1 + $0x210] sm:$0xf0]  ;;  %v2544_v33 = vld [vmem:[%s5109_s1 + $0x2a8] sm:$0xf] }
  0xb7   : > { %v484_v51 = vpop.f32.mrf.mxu1  ;;  %v511_v57 = vadd.f32 %v510_v46, %v497_v44  ;;  %1151 = vmatpush.bf16.msra.mxu2 %v2509_v37  ;;  %v3152_v46 = vld [vmem:[%s5109_s1 + $0x24c] sm:$0xf0]  ;;  %1139 = vmatpush.bf16.msra.mxu1 %v2601_v41  ;;  %v3201_v41 = vld [vmem:[%s5109_s1 + $0x3d4] sm:$0xf0] }
  0xb8   : > { %v485_v63 = vadd.f32 %v484_v51, %v471_v50  ;;  %1122 = vmatpush.bf16.msra.mxu0 %v2521_v55  ;;  %v2584_v50 = vld [vmem:[%s5109_s1 + $0x300] sm:$0xf]  ;;  %v2489_v59 = vor.u32 %v3152_v46, %v2488_v45  ;;  %v2477_v55 = vor.u32 %v3146_v8, %v2474_v9  ;;  %v2457_v45 = vor.u32 %v3144_v28, %v2456_v27  ;;  %v3203_v46 = vld [vmem:[%s5109_s1 + $0x3ec] sm:$0xf]  ;;  %v2690_v8 = vld [vmem:[%s5109_s1 + $0x3d8] sm:$0xf0] }
  0xb9   : > { %v2384_v2 = vmul.f32 -1.442695, %v511_v57  ;;  %v2621_v57 = vor.u32 %v3182_v42, %v2618_v43  ;;  %v2585_v1 = vor.u32 %v3176_v61, %v2584_v50  ;;  %v705_v27 = vld [vmem:[#allocation2] sm:$0xff] }
  0xba   : > { %v3289_v5 = vpop.eup %3288  ;;  %v2386_v6 = vmul.f32 -1.442695, %v485_v63 }
  0xbb   : > { %v3927_v10 = vadd.f32 1.0, %v3289_v5  ;;  %3290 = vpow2.f32 %v2384_v2  ;;  %v498_v15 = vpop.f32.mrf.mxu2  ;;  %v2602_v2 = vld [vmem:[%s5109_s1 + $0x330] sm:$0xf0]  ;;  %1166 = vmatpush.bf16.msra.mxu3 %v2621_v57  ;;  %1152 = vmatpush.bf16.msra.mxu2 %v2493_v60  ;;  %v2709_v60 = vor.u32 %v3203_v46, %v2706_v47  ;;  %v2546_v46 = vld [vmem:[%s5109_s1 + $0x2b8] sm:$0xf0] }
  0xbc   : > { %3292 = vpow2.f32 %v2386_v6  ;;  %v499_v17 = vadd.f32 %v498_v15, %v132_v30  ;;  %1123 = vmatpush.bf16.msra.mxu0 %v2505_v32  ;;  %v2605_v6 = vor.u32 %v3178_v62, %v2602_v2  ;;  %1140 = vmatpush.bf16.msra.mxu1 %v2585_v1  ;;  %v2473_v15 = vor.u32 %v3148_v7, %v2472_v3  ;;  %v2578_v62 = vld [vmem:[%s5109_s1 + $0x2f8] sm:$0xf0]  ;;  %v3199_v7 = vld [vmem:[%s5109_s1 + $0x3cc] sm:$0xf] }
  0xbd   : > { %3294 = vrcp.f32 %v3927_v10  ;;  %v604_v48 = vand.u32 2147483647, %v3927_v10  ;;  %v606_v54 = vand.u32 2147483648, %v3927_v10  ;;  %vm600_vm0 = vweird.f32 %v3927_v10 }
  0xbe   : > { %v512_v18 = vpop.f32.mrf.mxu3  ;;  %v2693_v28 = vor.u32 %v3199_v7, %v2690_v8  ;;  %v2624_v8 = vld [vmem:[%s5109_s1 + $0x348] sm:$0xf] }
  0xbf   : > { %v513_v23 = vadd.f32 %v512_v18, %v499_v17  ;;  %vm4025_vm1 = vcmp.eq.f32.partialorder %v604_v48, 8.507059e+37  ;;  %v4055_v21 = vor.u32 1.1754944e-38, %v606_v54  ;;  %1167 = vmatpush.bf16.msra.mxu3 %v2605_v6  ;;  %1153 = vmatpush.bf16.msra.mxu2 %v2477_v55  ;;  %v3197_v6 = vld [vmem:[%s5109_s1 + $0x3b4] sm:$0xf0]  ;;  %v49_v48 = vld [vmem:[#allocation3] sm:$0xff] }
  0xc0   : > { %1124 = vmatpush.bf16.msra.mxu0 %v2489_v59  ;;  %1189 = vmatpush.bf16.msrb.mxu1 %v2705_v22  ;;  %v3169_v55 = vld [vmem:[%s5109_s1 + $0x2d4] sm:$0xf0]  ;;  %v2562_v22 = vld [vmem:[%s5109_s1 + $0x2d8] sm:$0xf0] }
  0xc1   : > { %v3291_v30 = vpop.eup %3290  ;;  %v2387_v31 = vmul.f32 -1.442695, %v513_v23  ;;  %v3174_v23 = vld [vmem:[%s5109_s1 + $0x304] sm:$0xf] }
  0xc2   : > { %v3293_v35 = vpop.eup %3292  ;;  %v3971_v36 = vadd.f32 1.0, %v3291_v30 }
  0xc3   : > { %v3976_v39 = vpop.eup %3294  ;;  %v3978_v40 = vadd.f32 1.0, %v3293_v35  ;;  %3296 = vpow2.f32 %v2387_v31  ;;  %v2688_v35 = vld [vmem:[%s5109_s1 + $0x3c8] sm:$0xf] }
  0xc4   : > { %v596_v44 = vmul.f32 %v3976_v39, %v3927_v10  ;;  %3298 = vrcp.f32 %v3971_v36  ;;  %v621_v56 = vand.u32 2147483648, %v3971_v36  ;;  %v619_v0 = vand.u32 2147483647, %v3971_v36  ;;  %1125 = vmatpush.bf16.msra.mxu0 %v2473_v15  ;;  %v2560_v15 = vld [vmem:[%s5109_s1 + $0x2c8] sm:$0xf] }
  0xc5   : > { %3300 = vrcp.f32 %v3978_v40  ;;  %vm601_vm2 = vweird.f32 %v3976_v39  ;;  %vm615_vm3 = vweird.f32 %v3971_v36  ;;  %v649_v10 = vand.u32 2147483647, %v3978_v40 }
  0xc6   : > { %v597_v51 = vsub.f32 1.0, %v596_v44  ;;  %v4082_v31 = vor.u32 1.1754944e-38, %v621_v56  ;;  %vm4088_vm5 = vmor %vm600_vm0, %vm601_vm2  ;;  %vm4099_vm6 = vcmp.eq.f32.partialorder %v619_v0, 8.507059e+37  ;;  %v2589_v44 = vor.u32 %v3174_v23, %v2586_v24  ;;  %v2576_v56 = vld [vmem:[%s5109_s1 + $0x2e8] sm:$0xf] }
  0xc7   : > { %v2689_v54 = vor.u32 %v3201_v41, %v2688_v35  ;;  %v2656_v23 = vld [vmem:[%s5109_s1 + $0x388] sm:$0xf]  ;;  %vm645_vm11 = vweird.f32 %v3978_v40  ;;  %vm650_vm15 = vcmp.eq.f32.partialorder %v649_v10, 8.507059e+37  ;;  %v3177_v10 = vld [vmem:[%s5109_s1 + $0x314] sm:$0xf0] }
  0xc8   : > { %v598_v63 = vmul.f32 %v3976_v39, %v597_v51  ;;  %v2461_v51 = vor.u32 %v3142_v29, %v2458_v34  ;;  %1168 = vmatpush.bf16.msra.mxu3 %v2589_v44  ;;  %1126 = vmatpush.bf16.msra.mxu0 %v2457_v45  ;;  %v704_v24 = vld [vmem:[#allocation2 + $0x8] sm:$0xff]  ;;  %v2561_v29 = vor.u32 %v3169_v55, %v2560_v15  ;;  %v3165_v34 = vld [vmem:[%s5109_s1 + $0x2b4] sm:$0xf0] }
  0xc9   : > { %v3297_v4 = vpop.eup %3296  ;;  %1190 = vmatpush.bf16.msrb.mxu1 %v2689_v54  ;;  %v3163_v45 = vld [vmem:[%s5109_s1 + $0x2ac] sm:$0xf] }
  0xca   : > { %v4038_v12 = vpop.eup %3298  ;;  %v4040_v13 = vadd.f32 1.0, %v3297_v4  ;;  %v4070_v26 = vadd.f32 %v3976_v39, %v598_v63  ;;  %v2672_v63 = vld [vmem:[%s5109_s1 + $0x3a8] sm:$0xf]  ;;  %1154 = vmatpush.bf16.msra.mxu2 %v2461_v51  ;;  %v709_v51 = vpack.c.bf16 %v704_v24, %v704_v24 }
  0xcb   : > { %v4049_v17 = vpop.eup %3300  ;;  %v611_v18 = vmul.f32 %v4038_v12, %v3971_v36  ;;  %vm616_vm4 = vweird.f32 %v4038_v12  ;;  %v3173_v36 = vld [vmem:[%s5109_s1 + $0x2f4] sm:$0xf0] }
  0xcc   : > { %v524_v14 = vpop.f32.mrf.mxu0  ;;  %v4066_v25 = vmul.f32 %v4049_v17, %v3978_v40  ;;  %3302 = vrcp.f32 %v4040_v13  ;;  %v666_v37 = vand.u32 2147483648, %v4040_v13  ;;  %vm4118_vm7 = vmor %vm615_vm3, %vm616_vm4  ;;  %v603_v50 = vsel %vm4088_vm5, %v3976_v39, %v4070_v26  ;;  %v3171_v39 = vld [vmem:[%s5109_s1 + $0x2ec] sm:$0xf]  ;;  %1217 = vmatpush.bf16.msrb.mxu3 %v2709_v60  ;;  %v2658_v60 = vld [vmem:[%s5109_s1 + $0x398] sm:$0xf0] }
  0xcd   : > { %v525_v19 = vadd.f32 %v524_v14, %v133_v52  ;;  %v538_v20 = vpop.f32.mrf.mxu1  ;;  %v612_v30 = vsub.f32 1.0, %v611_v18  ;;  %v2577_v61 = vor.u32 %v3173_v36, %v2576_v56  ;;  %v2581_v4 = vor.u32 %v3171_v39, %v2578_v62  ;;  %v3195_v26 = vld [vmem:[%s5109_s1 + $0x3ac] sm:$0xf] }
  0xce   : > { %v642_v49 = vsub.f32 1.0, %v4066_v25  ;;  %vm660_vm8 = vweird.f32 %v4040_v13  ;;  %vm646_vm9 = vweird.f32 %v4049_v17  ;;  %v2549_v36 = vor.u32 %v3163_v45, %v2546_v46 }
  0xcf   : > { %v539_v32 = vadd.f32 %v538_v20, %v525_v19  ;;  %v613_v42 = vmul.f32 %v4038_v12, %v612_v30  ;;  %1175 = vmatpush.bf16.msrb.mxu0 %v2577_v61  ;;  %1203 = vmatpush.bf16.msrb.mxu2 %v2581_v4  ;;  %v2673_v20 = vor.u32 %v3197_v6, %v2672_v63  ;;  %v2528_v61 = vld [vmem:[%s5109_s1 + $0x288] sm:$0xf]  ;;  %v664_v62 = vand.u32 2147483647, %v4040_v13  ;;  %vm4286_vm13 = vmor %vm645_vm11, %vm646_vm9 }
  0xd0   : > { %v2565_v30 = vor.u32 %v3167_v58, %v2562_v22  ;;  %1218 = vmatpush.bf16.msrb.mxu3 %v2693_v28  ;;  %v719_v7 = vunpack.c.l.b16 %v709_v51  ;;  %v651_v58 = vand.u32 2147483648, %v3978_v40  ;;  %v3151_v51 = vld [vmem:[%s5109_s1 + $0x24c] sm:$0xf]  ;;  %v2592_v40 = vld [vmem:[%s5109_s1 + $0x308] sm:$0xf] }
  0xd1   : > { %v2385_v43 = vmul.f32 -1.442695, %v539_v32  ;;  %v614_v59 = vadd.f32 %v4038_v12, %v613_v42  ;;  %1191 = vmatpush.bf16.msrb.mxu1 %v2673_v20  ;;  %v2674_v32 = vld [vmem:[%s5109_s1 + $0x3b8] sm:$0xf0]  ;;  %vm665_vm14 = vcmp.eq.f32.partialorder %v664_v62, 8.507059e+37 }
  0xd2   : > { %v4143_v0 = vpop.eup %3302  ;;  %v652_v45 = vor.u32 1.1754944e-38, %v651_v58 }
  0xd3   : > { %3304 = vpow2.f32 %v2385_v43  ;;  %v552_v57 = vpop.f32.mrf.mxu2  ;;  %v656_v9 = vmul.f32 %v4143_v0, %v4040_v13  ;;  %v618_v18 = vsel %vm4118_vm7, %v4038_v12, %v614_v59  ;;  %vm661_vm10 = vweird.f32 %v4143_v0  ;;  %v3193_v12 = vld [vmem:[%s5109_s1 + $0x394] sm:$0xf0]  ;;  %1176 = vmatpush.bf16.msrb.mxu0 %v2561_v29  ;;  %1204 = vmatpush.bf16.msrb.mxu2 %v2565_v30  ;;  %v3191_v59 = vld [vmem:[%s5109_s1 + $0x38c] sm:$0xf]  ;;  %v2514_v13 = vld [vmem:[%s5109_s1 + $0x278] sm:$0xf0] }
  0xd4   : > { %v553_v1 = vadd.f32 %v552_v57, %v134_v53  ;;  %v566_v2 = vpop.f32.mrf.mxu3  ;;  %v526_v3 = vpop.f32.mrf.mxu0  ;;  %v623_v42 = vsel %vm4099_vm6, %v4082_v31, %v618_v18  ;;  %v2657_v44 = vor.u32 %v3193_v12, %v2656_v23  ;;  %v2640_v31 = vld [vmem:[%s5109_s1 + $0x368] sm:$0xf]  ;;  %v710_v57 = vpack.c.bf16 %v705_v27, %v705_v27  ;;  %vm4257_vm12 = vmor %vm660_vm8, %vm661_vm10  ;;  %v3181_v30 = vld [vmem:[%s5109_s1 + $0x334] sm:$0xf0] }
  0xd5   : > { %v527_v14 = vadd.f32 %v526_v3, %v133_v52  ;;  %v4174_v52 = vsel %vm4025_vm1, %v4055_v21, %v603_v50  ;;  %v540_v19 = vpop.f32.mrf.mxu1  ;;  %v657_v25 = vsub.f32 1.0, %v656_v9  ;;  %v643_v21 = vmul.f32 %v4049_v17, %v642_v49  ;;  %v3185_v9 = vld [vmem:[%s5109_s1 + $0x354] sm:$0xf0]  ;;  %v2608_v29 = vld [vmem:[%s5109_s1 + $0x328] sm:$0xf] }
  0xd6   : > { %v567_v16 = vadd.f32 %v566_v2, %v553_v1  ;;  %v2677_v49 = vor.u32 %v3195_v26, %v2674_v32  ;;  %v2545_v50 = vor.u32 %v3165_v34, %v2544_v33  ;;  %1192 = vmatpush.bf16.msrb.mxu1 %v2657_v44  ;;  %v2641_v63 = vor.u32 %v3189_v38, %v2640_v31  ;;  %v3161_v1 = vld [vmem:[%s5109_s1 + $0x294] sm:$0xf0]  ;;  %v3159_v2 = vld [vmem:[%s5109_s1 + $0x28c] sm:$0xf]  ;;  %v2498_v31 = vld [vmem:[%s5109_s1 + $0x258] sm:$0xf0] }
  0xd7   : > { %v541_v5 = vadd.f32 %v540_v19, %v527_v14  ;;  %v658_v41 = vmul.f32 %v4143_v0, %v657_v25  ;;  %v687_v3 = vmul.f32 %v623_v42, %v49_v48  ;;  %v4242_v6 = vadd.f32 %v4049_v17, %v643_v21  ;;  %v3187_v19 = vld [vmem:[%s5109_s1 + $0x36c] sm:$0xf]  ;;  %1205 = vmatpush.bf16.msrb.mxu2 %v2549_v36  ;;  %v2642_v25 = vld [vmem:[%s5109_s1 + $0x378] sm:$0xf0]  ;;  %v2496_v48 = vld [vmem:[%s5109_s1 + $0x248] sm:$0xf] }
  0xd8   : > { %3306 = vtanh.f32 %v567_v16  ;;  %v720_v11 = vunpack.c.l.b16 %v710_v57  ;;  %1219 = vmatpush.bf16.msrb.mxu3 %v2677_v49  ;;  %1177 = vmatpush.bf16.msrb.mxu0 %v2545_v50  ;;  %v2661_v16 = vor.u32 %v3191_v59, %v2658_v60  ;;  %v2529_v18 = vor.u32 %v3161_v1, %v2528_v61  ;;  %v3155_v26 = vld [vmem:[%s5109_s1 + $0x26c] sm:$0xf]  ;;  %v50_v34 = vld [vmem:[#allocation3 + $0x8] sm:$0xff] }
  0xd9   : > { %v3305_v35 = vpop.eup %3304  ;;  %v2388_v43 = vmul.f32 -1.442695, %v541_v5  ;;  %v659_v56 = vadd.f32 %v4143_v0, %v658_v41  ;;  %v2512_v5 = vld [vmem:[%s5109_s1 + $0x268] sm:$0xf]  ;;  %v667_v21 = vor.u32 1.1754944e-38, %v666_v37  ;;  %v2625_v12 = vor.u32 %v3185_v9, %v2624_v8 }
  0xda   : > { %v4213_v47 = vadd.f32 1.0, %v3305_v35  ;;  %v4269_v23 = vpack.c.b16 %v720_v11, %v719_v7  ;;  %1193 = vmatpush.bf16.msrb.mxu1 %v2641_v63  ;;  %v648_v28 = vsel %vm4286_vm13, %v4049_v17, %v4242_v6  ;;  %v2645_v17 = vor.u32 %v3187_v19, %v2642_v25  ;;  %v3183_v42 = vld [vmem:[%s5109_s1 + $0x34c] sm:$0xf]  ;;  %v3153_v49 = vld [vmem:[%s5109_s1 + $0x254] sm:$0xf0] }
  0xdb   : > { %3308 = vpow2.f32 %v2388_v43  ;;  %v554_v54 = vpop.f32.mrf.mxu2  ;;  %v663_v22 = vsel %vm4257_vm12, %v4143_v0, %v659_v56  ;;  %v2626_v43 = vld [vmem:[%s5109_s1 + $0x358] sm:$0xf0]  ;;  %v2517_v46 = vor.u32 %v3155_v26, %v2514_v13  ;;  %v2609_v50 = vor.u32 %v3181_v30, %v2608_v29  ;;  %v3147_v7 = vld [vmem:[%s5109_s1 + $0x22c] sm:$0xf] }
  0xdc   : > { %3310 = vrcp.f32 %v4213_v47  ;;  %v555_v39 = vadd.f32 %v554_v54, %v134_v53  ;;  %v568_v4 = vpop.f32.mrf.mxu3  ;;  %v2530_v53 = vld [vmem:[%s5109_s1 + $0x298] sm:$0xf0]  ;;  %1169 = vmatmul.bf16.vlgmr.msra.gmra.mxu3 %v4269_v23  ;;  %1141 = vmatmul.bf16.vlgmr.msra.gmra.mxu1 %v4269_v23  ;;  %v668_v35 = vsel %vm665_vm14, %v667_v21, %v663_v22  ;;  %v636_v54 = vand.u32 2147483648, %v4213_v47  ;;  %v2464_v22 = vld [vmem:[%s5109_s1 + $0x208] sm:$0xf] }
  0xdd   : > { %v2533_v24 = vor.u32 %v3159_v2, %v2530_v53  ;;  %1220 = vmatpush.bf16.msrb.mxu3 %v2661_v16  ;;  %1178 = vmatpush.bf16.msrb.mxu0 %v2529_v18  ;;  %v653_v56 = vsel %vm650_vm15, %v652_v45, %v648_v28  ;;  %v688_v36 = vmul.f32 %v668_v35, %v50_v34  ;;  %v634_v59 = vand.u32 2147483647, %v4213_v47  ;;  %v2610_v2 = vld [vmem:[%s5109_s1 + $0x338] sm:$0xf0]  ;;  %v3175_v16 = vld [vmem:[%s5109_s1 + $0x30c] sm:$0xf] }
  0xde   : > { %v3307_v14 = vpop.eup %3306  ;;  %v569_v55 = vadd.f32 %v568_v4, %v555_v39  ;;  %1194 = vmatpush.bf16.msrb.mxu1 %v2625_v12  ;;  %v2629_v60 = vor.u32 %v3183_v42, %v2626_v43  ;;  %v2497_v61 = vor.u32 %v3153_v49, %v2496_v48  ;;  %v3179_v39 = vld [vmem:[%s5109_s1 + $0x32c] sm:$0xf]  ;;  %v2501_v1 = vor.u32 %v3151_v51, %v2498_v31  ;;  %v3149_v4 = vld [vmem:[%s5109_s1 + $0x234] sm:$0xf0]  ;;  %v2482_v11 = vld [vmem:[%s5109_s1 + $0x238] sm:$0xf0] }
  0xdf   : > { %v689_v20 = vmul.f32 %v3307_v14, %v4174_v52  ;;  %v3157_v52 = vld [vmem:[%s5109_s1 + $0x274] sm:$0xf0]  ;;  %1206 = vmatpush.bf16.msrb.mxu2 %v2533_v24  ;;  %v2593_v6 = vor.u32 %v3177_v10, %v2592_v40  ;;  %vm630_vm1 = vweird.f32 %v4213_v47  ;;  %v637_v15 = vor.u32 1.1754944e-38, %v636_v54  ;;  %v2466_v21 = vld [vmem:[%s5109_s1 + $0x218] sm:$0xf0] }
  0xe0   : > { %3312 = vtanh.f32 %v569_v55  ;;  %v2513_v41 = vor.u32 %v3157_v52, %v2512_v5  ;;  %v2613_v55 = vor.u32 %v3179_v39, %v2610_v2  ;;  %vm635_vm3 = vcmp.eq.f32.partialorder %v634_v59, 8.507059e+37  ;;  %v3145_v24 = vld [vmem:[%s5109_s1 + $0x214] sm:$0xf0]  ;;  %v3143_v52 = vld [vmem:[%s5109_s1 + $0x20c] sm:$0xf] }
  0xe1   : > { %v3309_v37 = vpop.eup %3308  ;;  %v691_v27 = vadd.f32 %v689_v20, %v687_v3  ;;  %1221 = vmatpush.bf16.msrb.mxu3 %v2645_v17  ;;  %v2480_v3 = vld [vmem:[%s5109_s1 + $0x228] sm:$0xf]  ;;  %v2485_v20 = vor.u32 %v3147_v7, %v2482_v11  ;;  %v2469_v29 = vor.u32 %v3143_v52, %v2466_v21  ;;  %v3268_v48 = vld [vmem:[%s5109_s1 + $0x5ec] sm:$0xf0]  ;;  %v3266_v51 = vld [vmem:[%s5109_s1 + $0x5e4] sm:$0xf] }
  0xe2   : > { %v4308_v32 = vpop.eup %3310  ;;  %v4310_v33 = vadd.f32 1.0, %v3309_v37  ;;  %1179 = vmatpush.bf16.msrb.mxu0 %v2513_v41  ;;  %1195 = vmatpush.bf16.msrb.mxu1 %v2609_v50  ;;  %v2481_v58 = vor.u32 %v3149_v4, %v2480_v3  ;;  %v2465_v37 = vor.u32 %v3145_v24, %v2464_v22  ;;  %v3264_v50 = vld [vmem:[%s5109_s1 + $0x5cc] sm:$0xf0]  ;;  %v2895_v54 = vld [vmem:[%s5109_s1 + $0x4e0] sm:$0xf] }
  0xe3   : > { %v626_v44 = vmul.f32 %v4308_v32, %v4213_v47  ;;  %699 = vst [vmem:[#allocation3] sm:$0xff] %v691_v27  ;;  %vm631_vm0 = vweird.f32 %v4308_v32  ;;  %1207 = vmatpush.bf16.msrb.mxu2 %v2517_v46  ;;  %v2594_v47 = vld [vmem:[%s5109_s1 + $0x318] sm:$0xf0]  ;;  %v3023_v46 = vld [vmem:[%s5109_s1 + $0x5e0] sm:$0xf] }
  0xe4   : > { %3314 = vrcp.f32 %v4310_v33  ;;  %vm4367_vm2 = vmor %vm630_vm1, %vm631_vm0  ;;  %v681_v26 = vand.u32 2147483648, %v4310_v33  ;;  %v2597_v13 = vor.u32 %v3175_v16, %v2594_v47  ;;  %v679_v28 = vand.u32 2147483647, %v4310_v33  ;;  %v3234_v10 = vld [vmem:[%s5109_s1 + $0x4e4] sm:$0xf] }
  0xe5   : > { %v627_v38 = vsub.f32 1.0, %v626_v44  ;;  %3316 = vtanh.f32 %v691_v27  ;;  %1222 = vmatpush.bf16.msrb.mxu3 %v2629_v60  ;;  %vm675_vm5 = vweird.f32 %v4310_v33  ;;  %v3024_v49 = vor.u32 %v3268_v48, %v3023_v46  ;;  %v4431_v59 = vld [vmem:[%s5110_s2 + $0x4] sm:$0xf]  ;;  %v3260_v39 = vld [vmem:[%s5109_s1 + $0x5ac] sm:$0xf0] }
  0xe6   : > { %v3313_v57 = vpop.eup %3312  ;;  %1180 = vmatpush.bf16.msrb.mxu0 %v2497_v61  ;;  %1196 = vmatpush.bf16.msrb.mxu1 %v2593_v6  ;;  %vm680_vm7 = vcmp.eq.f32.partialorder %v679_v28, 8.507059e+37  ;;  %v2991_v61 = vld [vmem:[%s5109_s1 + $0x5a0] sm:$0xf]  ;;  %v3232_v3 = vld [vmem:[%s5109_s1 + $0x4cc] sm:$0xf0]  ;;  %v792_v52 = vperm.slane %v4431_v59, 1 }
  0xe7   : > { %v628_v62 = vmul.f32 %v4308_v32, %v627_v38  ;;  %v690_v63 = vmul.f32 %v3313_v57, %v653_v56  ;;  %1208 = vmatpush.bf16.msrb.mxu2 %v2501_v1  ;;  %v3025_v38 = vld [vmem:[%s5109_s1 + $0x5f0] sm:$0xf0]  ;;  %v3236_v56 = vld [vmem:[%s5109_s1 + $0x4ec] sm:$0xf0]  ;;  %v2879_v2 = vld [vmem:[%s5109_s1 + $0x4c0] sm:$0xf] }
  0xe8   : > { %v2896_v40 = vor.u32 %v3236_v56, %v2895_v54  ;;  %v2897_v57 = vld [vmem:[%s5109_s1 + $0x4f0] sm:$0xf0]  ;;  %v2880_v7 = vor.u32 %v3232_v3, %v2879_v2  ;;  %v3230_v11 = vld [vmem:[%s5109_s1 + $0x4c4] sm:$0xf]  ;;  %v2975_v14 = vld [vmem:[%s5109_s1 + $0x580] sm:$0xf] }
  0xe9   : > { %v692_v53 = vadd.f32 %v690_v63, %v688_v36  ;;  %v629_v8 = vadd.f32 %v4308_v32, %v628_v62  ;;  %1223 = vmatpush.bf16.msrb.mxu3 %v2613_v55  ;;  %v3028_v36 = vor.u32 %v3266_v51, %v3025_v38  ;;  %v2900_v60 = vor.u32 %v3234_v10, %v2897_v57  ;;  %v3262_v62 = vld [vmem:[%s5109_s1 + $0x5c4] sm:$0xf]  ;;  %v3009_v1 = vld [vmem:[%s5109_s1 + $0x5d0] sm:$0xf0]  ;;  %v2863_v47 = vld [vmem:[%s5109_s1 + $0x4a0] sm:$0xf] }
  0xea   : > { %v3315_v9 = vpop.eup %3314  ;;  %1181 = vmatpush.bf16.msrb.mxu0 %v2481_v58  ;;  %1793 = vmatpush.bf16.msra.mxu1 %v3024_v49  ;;  %v2992_v63 = vor.u32 %v3260_v39, %v2991_v61  ;;  %v3012_v6 = vor.u32 %v3262_v62, %v3009_v1  ;;  %v3258_v55 = vld [vmem:[%s5109_s1 + $0x5a4] sm:$0xf]  ;;  %v2993_v16 = vld [vmem:[%s5109_s1 + $0x5b0] sm:$0xf0]  ;;  %v2847_v28 = vld [vmem:[%s5109_s1 + $0x480] sm:$0xf] }
  0xeb   : > { %v671_v18 = vmul.f32 %v3315_v9, %v4310_v33  ;;  %700 = vst [vmem:[#allocation3 + $0x8] sm:$0xff] %v692_v53  ;;  %v633_v19 = vsel %vm4367_vm2, %v4308_v32, %v629_v8  ;;  %v3317_v25 = vpop.eup %3316  ;;  %3318 = vtanh.f32 %v692_v53  ;;  %vm676_vm4 = vweird.f32 %v3315_v9  ;;  %1209 = vmatpush.bf16.msrb.mxu2 %v2485_v20  ;;  %v2881_v53 = vld [vmem:[%s5109_s1 + $0x4d0] sm:$0xf0]  ;;  %v3226_v24 = vld [vmem:[%s5109_s1 + $0x4a4] sm:$0xf] }
  0xec   : > { %v638_v5 = vsel %vm635_vm3, %v637_v15, %v633_v19  ;;  %1197 = vmatmul.bf16.vlgmr.msrb.gmra.mxu1 %v4269_v23  ;;  %vm677_vm6 = vmor %vm675_vm5, %vm676_vm4  ;;  %v682_v32 = vor.u32 1.1754944e-38, %v681_v26  ;;  %v791_v8 = vperm.slane %v4431_v59, 0  ;;  %v3256_v15 = vld [vmem:[%s5109_s1 + $0x58c] sm:$0xf0]  ;;  %v2996_v20 = vor.u32 %v3258_v55, %v2993_v16  ;;  %v3254_v26 = vld [vmem:[%s5109_s1 + $0x584] sm:$0xf] }
  0xed   : > { %v672_v0 = vsub.f32 1.0, %v671_v18  ;;  %v695_v12 = vmul.f32 %v3317_v25, %v638_v5  ;;  %1224 = vmatpush.bf16.msrb.mxu3 %v2597_v13  ;;  %v2976_v58 = vor.u32 %v3256_v15, %v2975_v14  ;;  %v3228_v18 = vld [vmem:[%s5109_s1 + $0x4ac] sm:$0xf0]  ;;  %v2865_v25 = vld [vmem:[%s5109_s1 + $0x4b0] sm:$0xf0] }
  0xee   : > { %1182 = vmatpush.bf16.msrb.mxu0 %v2465_v37  ;;  %v2864_v22 = vor.u32 %v3228_v18, %v2863_v47  ;;  %v2868_v21 = vor.u32 %v3226_v24, %v2865_v25  ;;  %v3250_v46 = vld [vmem:[%s5109_s1 + $0x564] sm:$0xf]  ;;  %v3220_v51 = vld [vmem:[%s5109_s1 + $0x46c] sm:$0xf0]  ;;  %v2945_v2 = vld [vmem:[%s5109_s1 + $0x550] sm:$0xf0] }
  0xef   : > { %v673_v27 = vmul.f32 %v3315_v9, %v672_v0  ;;  %697 = vst [vmem:[#allocation2 + $0x28] sm:$0xff] %v695_v12  ;;  %1210 = vmatpush.bf16.msrb.mxu2 %v2469_v29  ;;  %v701_v42 = vpack.c.bf16 %v695_v12, %v695_v12  ;;  %v2959_v0 = vld [vmem:[%s5109_s1 + $0x560] sm:$0xf]  ;;  %v3252_v12 = vld [vmem:[%s5109_s1 + $0x56c] sm:$0xf0] }
  0xf0   : > { %1225 = vmatmul.bf16.vlgmr.msrb.gmra.mxu3 %v4269_v23  ;;  %v3007_v23 = vld [vmem:[%s5109_s1 + $0x5c0] sm:$0xf]  ;;  %v2960_v37 = vor.u32 %v3252_v12, %v2959_v0  ;;  %v3224_v29 = vld [vmem:[%s5109_s1 + $0x48c] sm:$0xf0]  ;;  %v3218_v56 = vld [vmem:[%s5109_s1 + $0x464] sm:$0xf] }
  0xf1   : > { %v674_v30 = vadd.f32 %v3315_v9, %v673_v27  ;;  %v3319_v35 = vpop.eup %3318  ;;  %v713_v44 = vunpack.c.l.b16 %v701_v42  ;;  %v3008_v31 = vor.u32 %v3264_v50, %v3007_v23  ;;  %1821 = vmatpush.bf16.msra.mxu3 %v3028_v36  ;;  %v2977_v27 = vld [vmem:[%s5109_s1 + $0x590] sm:$0xf0]  ;;  %v2831_v50 = vld [vmem:[%s5109_s1 + $0x460] sm:$0xf]  ;;  %v3244_v61 = vld [vmem:[%s5109_s1 + $0x52c] sm:$0xf0] }
  0xf2   : > { %v2961_v23 = vld [vmem:[%s5109_s1 + $0x570] sm:$0xf0]  ;;  %v2832_v54 = vor.u32 %v3220_v51, %v2831_v50  ;;  %v3246_v1 = vld [vmem:[%s5109_s1 + $0x544] sm:$0xf]  ;;  %v2911_v16 = vld [vmem:[%s5109_s1 + $0x500] sm:$0xf] }
  0xf3   : > { %v678_v34 = vsel %vm677_vm6, %v3315_v9, %v674_v30  ;;  %1794 = vmatpush.bf16.msra.mxu1 %v3008_v31  ;;  %v2884_v9 = vor.u32 %v3230_v11, %v2881_v53  ;;  %v2980_v30 = vor.u32 %v3254_v26, %v2977_v27  ;;  %v2964_v38 = vor.u32 %v3250_v46, %v2961_v23  ;;  %v2833_v36 = vld [vmem:[%s5109_s1 + $0x470] sm:$0xf0]  ;;  %v3240_v47 = vld [vmem:[%s5109_s1 + $0x50c] sm:$0xf0]  ;;  %v2799_v25 = vld [vmem:[%s5109_s1 + $0x420] sm:$0xf] }
  0xf4   : > { %v683_v17 = vsel %vm680_vm7, %v682_v32, %v678_v34  ;;  %v2848_v32 = vor.u32 %v3224_v29, %v2847_v28  ;;  %v3222_v34 = vld [vmem:[%s5109_s1 + $0x484] sm:$0xf]  ;;  %v2836_v57 = vor.u32 %v3218_v56, %v2833_v36  ;;  %v2948_v3 = vor.u32 %v3246_v1, %v2945_v2  ;;  %v2817_v14 = vld [vmem:[%s5109_s1 + $0x450] sm:$0xf0]  ;;  %v3031_v28 = vld [vmem:[%s5109_s1 + $0x5e8] sm:$0xf] }
  0xf5   : > { %v696_v41 = vmul.f32 %v3319_v35, %v683_v17  ;;  %1822 = vmatpush.bf16.msra.mxu3 %v3012_v6  ;;  %v2849_v35 = vld [vmem:[%s5109_s1 + $0x490] sm:$0xf0]  ;;  %v3216_v6 = vld [vmem:[%s5109_s1 + $0x44c] sm:$0xf0]  ;;  %v794_v29 = vperm.slane %v4431_v59, 3 }
  0xf6   : > { %v2852_v42 = vor.u32 %v3222_v34, %v2849_v35  ;;  %v2929_v24 = vld [vmem:[%s5109_s1 + $0x530] sm:$0xf0]  ;;  %v3269_v34 = vld [vmem:[%s5109_s1 + $0x5f4] sm:$0xf0]  ;;  %v2783_v46 = vld [vmem:[%s5109_s1 + $0x400] sm:$0xf] }
  0xf7   : > { %698 = vst [vmem:[#allocation2 + $0x10] sm:$0xff] %v696_v41  ;;  %v702_v43 = vpack.c.bf16 %v696_v41, %v696_v41  ;;  %1795 = vmatpush.bf16.msra.mxu1 %v2992_v63  ;;  %v2801_v27 = vld [vmem:[%s5109_s1 + $0x430] sm:$0xf0]  ;;  %v3267_v2 = vld [vmem:[%s5109_s1 + $0x5ec] sm:$0xf] }
  0xf9   : > { %v714_v33 = vunpack.c.l.b16 %v702_v43  ;;  %1823 = vmatpush.bf16.msra.mxu3 %v2996_v20  ;;  %v2912_v20 = vor.u32 %v3240_v47, %v2911_v16 }
  0xfb   : > { %v715_v45 = vpack.c.b16 %v714_v33, %v713_v44  ;;  %1796 = vmatpush.bf16.msra.mxu1 %v2976_v58  ;;  %v2943_v33 = vld [vmem:[%s5109_s1 + $0x540] sm:$0xf] }
  0xfd   : > { %1127 = vmatmul.bf16.vlgmr.msra.gmra.mxu0 %v715_v45  ;;  %1155 = vmatmul.bf16.vlgmr.msra.gmra.mxu2 %v715_v45 }
  0xfe   : > { %1779 = vmatpush.bf16.msra.mxu0 %v2896_v40  ;;  %1807 = vmatpush.bf16.msra.mxu2 %v2900_v60  ;;  %v2927_v60 = vld [vmem:[%s5109_s1 + $0x520] sm:$0xf] }
  0xff   : > { %1797 = vmatpush.bf16.msra.mxu1 %v2960_v37  ;;  %1824 = vmatpush.bf16.msra.mxu3 %v2980_v30  ;;  %v2928_v63 = vor.u32 %v3244_v61, %v2927_v60  ;;  %v3210_v37 = vld [vmem:[%s5109_s1 + $0x424] sm:$0xf] }
 0x102   : > { %1780 = vmatpush.bf16.msra.mxu0 %v2880_v7  ;;  %1808 = vmatpush.bf16.msra.mxu2 %v2884_v9  ;;  %v3214_v7 = vld [vmem:[%s5109_s1 + $0x444] sm:$0xf] }
 0x103   : > { %1825 = vmatpush.bf16.msra.mxu3 %v2964_v38  ;;  %v2820_v58 = vor.u32 %v3214_v7, %v2817_v14 }
 0x106   : > { %1781 = vmatpush.bf16.msra.mxu0 %v2864_v22  ;;  %1809 = vmatpush.bf16.msra.mxu2 %v2868_v21  ;;  %v3242_v22 = vld [vmem:[%s5109_s1 + $0x524] sm:$0xf] }
 0x107   : > { %1826 = vmatpush.bf16.msra.mxu3 %v2948_v3  ;;  %v2932_v26 = vor.u32 %v3242_v22, %v2929_v24  ;;  %v3033_v3 = vld [vmem:[%s5109_s1 + $0x5f8] sm:$0xf0] }
 0x10a   : > { %1782 = vmatpush.bf16.msra.mxu0 %v2848_v32  ;;  %1810 = vmatpush.bf16.msra.mxu2 %v2852_v42  ;;  %v2804_v32 = vor.u32 %v3210_v37, %v2801_v27  ;;  %v3032_v42 = vor.u32 %v3269_v34, %v3031_v28  ;;  %v3235_v27 = vld [vmem:[%s5109_s1 + $0x4ec] sm:$0xf]  ;;  %v2905_v28 = vld [vmem:[%s5109_s1 + $0x4f8] sm:$0xf0] }
 0x10b   : > { %1827 = vmatpush.bf16.msra.mxu3 %v2932_v26 }
 0x10d   : > { %1183 = vmatmul.bf16.vlgmr.msrb.gmra.mxu0 %v715_v45  ;;  %1211 = vmatmul.bf16.vlgmr.msrb.gmra.mxu2 %v715_v45  ;;  %v3248_v45 = vld [vmem:[%s5109_s1 + $0x54c] sm:$0xf0] }
 0x10e   : > { %v2944_v49 = vor.u32 %v3248_v45, %v2943_v33  ;;  %1783 = vmatpush.bf16.msra.mxu0 %v2832_v54  ;;  %1811 = vmatpush.bf16.msra.mxu2 %v2836_v57 }
 0x110   : > { %1798 = vmatpush.bf16.msra.mxu1 %v2944_v49 }
 0x112   : > { %1812 = vmatpush.bf16.msra.mxu2 %v2820_v58 }
 0x114   : > { %1799 = vmatpush.bf16.msra.mxu1 %v2928_v63 }
 0x116   : > { %1813 = vmatpush.bf16.msra.mxu2 %v2804_v32 }
 0x118   : > { %1800 = vmatpush.bf16.msra.mxu1 %v2912_v20 }
 0x11c   : > { %1849 = vmatpush.bf16.msrb.mxu1 %v3032_v42  ;;  %v2999_v42 = vld [vmem:[%s5109_s1 + $0x5a8] sm:$0xf] }
 0x159   : > { %v1142_v4 = vpop.f32.mrf.mxu1 }
 0x15f   : > { %v1170_v41 = vpop.f32.mrf.mxu3 }
 0x161   : > { %v1144_v43 = vpop.f32.mrf.mxu1 }
 0x167   : > { %v1172_v18 = vpop.f32.mrf.mxu3 }
 0x173   : > { %v1226_v63 = vpop.f32.mrf.mxu3 }
 0x17a   : > { %v1128_v19 = vpop.f32.mrf.mxu0 }
 0x17b   : > { %v1129_v5 = vadd.f32 %v1128_v19, %v791_v8 }
 0x17d   : > { %v1143_v13 = vadd.f32 %v1142_v4, %v1129_v5  ;;  %v2815_v4 = vld [vmem:[%s5109_s1 + $0x440] sm:$0xf]  ;;  %v1198_v5 = vpop.f32.mrf.mxu1 }
 0x17e   : > { %v2816_v9 = vor.u32 %v3216_v6, %v2815_v4  ;;  %v2903_v4 = vld [vmem:[%s5109_s1 + $0x4e8] sm:$0xf] }
 0x17f   : > { %v2710_v17 = vmul.f32 -1.442695, %v1143_v13 }
 0x180   : > { %v1156_v44 = vpop.f32.mrf.mxu2  ;;  %1784 = vmatpush.bf16.msra.mxu0 %v2816_v9 }
 0x181   : > { %3320 = vpow2.f32 %v2710_v17  ;;  %v1157_v48 = vadd.f32 %v1156_v44, %v792_v52  ;;  %v2913_v44 = vld [vmem:[%s5109_s1 + $0x510] sm:$0xf0] }
 0x182   : > { %v1130_v31 = vpop.f32.mrf.mxu0 }
 0x183   : > { %v1171_v40 = vadd.f32 %v1170_v41, %v1157_v48  ;;  %v1131_v10 = vadd.f32 %v1130_v31, %v791_v8  ;;  %v793_v8 = vperm.slane %v4431_v59, 2  ;;  %v3208_v48 = vld [vmem:[%s5109_s1 + $0x40c] sm:$0xf0]  ;;  %v4612_v31 = vld [vmem:[#allocation2 + $0x18] sm:$0xff]  ;;  %v2908_v59 = vor.u32 %v3235_v27, %v2905_v28  ;;  %v1365_v28 = vld [vmem:[#allocation2 + $0x20] sm:$0xff] }
 0x184   : > { %v2784_v51 = vor.u32 %v3208_v48, %v2783_v46  ;;  %v1369_v6 = vpack.c.bf16 %v4612_v31, %v4612_v31  ;;  %v3261_v46 = vld [vmem:[%s5109_s1 + $0x5b4] sm:$0xf0]  ;;  %v3263_v48 = vld [vmem:[%s5109_s1 + $0x5cc] sm:$0xf] }
 0x185   : > { %v2711_v39 = vmul.f32 -1.442695, %v1171_v40  ;;  %v1145_v62 = vadd.f32 %v1144_v43, %v1131_v10  ;;  %v3238_v43 = vld [vmem:[%s5109_s1 + $0x504] sm:$0xf]  ;;  %v2785_v10 = vld [vmem:[%s5109_s1 + $0x410] sm:$0xf0]  ;;  %v1200_v58 = vpop.f32.mrf.mxu1 }
 0x186   : > { %v2916_v45 = vor.u32 %v3238_v43, %v2913_v44  ;;  %v3206_v40 = vld [vmem:[%s5109_s1 + $0x404] sm:$0xf]  ;;  %v708_v31 = vld [vmem:[#allocation3 + $0x18] sm:$0xff] }
 0x187   : > { %v3321_v11 = vpop.eup %3320  ;;  %3322 = vpow2.f32 %v2711_v39  ;;  %v2713_v53 = vmul.f32 -1.442695, %v1145_v62  ;;  %v3015_v39 = vld [vmem:[%s5109_s1 + $0x5c8] sm:$0xf]  ;;  %v3265_v62 = vld [vmem:[%s5109_s1 + $0x5d4] sm:$0xf0]  ;;  %v2788_v47 = vor.u32 %v3206_v40, %v2785_v10 }
 0x188   : > { %v4558_v15 = vadd.f32 1.0, %v3321_v11  ;;  %v1158_v55 = vpop.f32.mrf.mxu2  ;;  %1828 = vmatpush.bf16.msra.mxu3 %v2916_v45  ;;  %v3231_v10 = vld [vmem:[%s5109_s1 + $0x4cc] sm:$0xf] }
 0x189   : > { %3324 = vpow2.f32 %v2713_v53  ;;  %v1159_v19 = vadd.f32 %v1158_v55, %v792_v52  ;;  %v3212_v52 = vld [vmem:[%s5109_s1 + $0x42c] sm:$0xf0]  ;;  %v3237_v55 = vld [vmem:[%s5109_s1 + $0x4f4] sm:$0xf0]  ;;  %1814 = vmatpush.bf16.msra.mxu2 %v2788_v47 }
 0x18a   : > { %3326 = vrcp.f32 %v4558_v15  ;;  %v1184_v21 = vpop.f32.mrf.mxu0  ;;  %v2800_v13 = vor.u32 %v3212_v52, %v2799_v25  ;;  %v1266_v30 = vand.u32 2147483648, %v4558_v15  ;;  %v1264_v50 = vand.u32 2147483647, %v4558_v15 }
 0x18b   : > { %v1173_v0 = vadd.f32 %v1172_v18, %v1159_v19  ;;  %v1185_v12 = vadd.f32 %v1184_v21, %v793_v8  ;;  %vm1260_vm8 = vweird.f32 %v4558_v15  ;;  %v3016_v18 = vor.u32 %v3265_v62, %v3015_v39  ;;  %v1228_v62 = vpop.f32.mrf.mxu3 }
 0x18c   : > { %1785 = vmatpush.bf16.msra.mxu0 %v2800_v13  ;;  %v4619_v36 = vor.u32 1.1754944e-38, %v1266_v30  ;;  %vm4651_vm9 = vcmp.eq.f32.partialorder %v1264_v50, 8.507059e+37  ;;  %v3036_v21 = vor.u32 %v3267_v2, %v3033_v3  ;;  %v2904_v52 = vor.u32 %v3237_v55, %v2903_v4  ;;  %v3233_v50 = vld [vmem:[%s5109_s1 + $0x4d4] sm:$0xf0]  ;;  %v2983_v3 = vld [vmem:[%s5109_s1 + $0x588] sm:$0xf] }
 0x18d   : > { %v3323_v35 = vpop.eup %3322  ;;  %v2714_v17 = vmul.f32 -1.442695, %v1173_v0  ;;  %v1199_v41 = vadd.f32 %v1198_v5, %v1185_v12  ;;  %1850 = vmatpush.bf16.msrb.mxu1 %v3016_v18  ;;  %v3000_v2 = vor.u32 %v3261_v46, %v2999_v42  ;;  %v3257_v4 = vld [vmem:[%s5109_s1 + $0x594] sm:$0xf0]  ;;  %1863 = vmatpush.bf16.msrb.mxu2 %v2908_v59  ;;  %v2825_v42 = vld [vmem:[%s5109_s1 + $0x458] sm:$0xf0] }
 0x18e   : > { %v4603_v33 = vadd.f32 1.0, %v3323_v35  ;;  %1877 = vmatpush.bf16.msrb.mxu3 %v3036_v21  ;;  %v3253_v35 = vld [vmem:[%s5109_s1 + $0x574] sm:$0xf0] }
 0x18f   : > { %v3325_v49 = vpop.eup %3324  ;;  %3328 = vpow2.f32 %v2714_v17  ;;  %v2712_v23 = vmul.f32 -1.442695, %v1199_v41 }
 0x190   : > { %v4614_v38 = vpop.eup %3326  ;;  %3330 = vrcp.f32 %v4603_v33  ;;  %v4617_v54 = vadd.f32 1.0, %v3325_v49  ;;  %v1212_v56 = vpop.f32.mrf.mxu2  ;;  %v1281_v60 = vand.u32 2147483648, %v4603_v33  ;;  %1786 = vmatpush.bf16.msra.mxu0 %v2784_v51  ;;  %v1279_v9 = vand.u32 2147483647, %v4603_v33  ;;  %v3017_v49 = vld [vmem:[%s5109_s1 + $0x5d8] sm:$0xf0] }
 0x191   : > { %v1256_v57 = vmul.f32 %v4614_v38, %v4558_v15  ;;  %3332 = vpow2.f32 %v2712_v23  ;;  %v1213_v61 = vadd.f32 %v1212_v56, %v794_v29  ;;  %vm1261_vm10 = vweird.f32 %v4614_v38  ;;  %v2887_v23 = vld [vmem:[%s5109_s1 + $0x4c8] sm:$0xf]  ;;  %1851 = vmatpush.bf16.msrb.mxu1 %v3000_v2 }
 0x192   : > { %3334 = vrcp.f32 %v4617_v54  ;;  %v1186_v1 = vpop.f32.mrf.mxu0  ;;  %v1311_v16 = vand.u32 2147483648, %v4617_v54  ;;  %v4663_v20 = vor.u32 1.1754944e-38, %v1281_v60  ;;  %v1309_v25 = vand.u32 2147483647, %v4617_v54  ;;  %vm4694_vm12 = vmor %vm1260_vm8, %vm1261_vm10 }
 0x193   : > { %v1257_v7 = vsub.f32 1.0, %v1256_v57  ;;  %v1227_v11 = vadd.f32 %v1226_v63, %v1213_v61  ;;  %v1187_v14 = vadd.f32 %v1186_v1, %v793_v8  ;;  %vm4674_vm11 = vcmp.eq.f32.partialorder %v1279_v9, 8.507059e+37  ;;  %v2889_v57 = vld [vmem:[%s5109_s1 + $0x4d8] sm:$0xf0] }
 0x194   : > { %v4698_v41 = vor.u32 1.1754944e-38, %v1311_v16  ;;  %1835 = vmatpush.bf16.msrb.mxu0 %v2904_v52  ;;  %vm4708_vm13 = vcmp.eq.f32.partialorder %v1309_v25, 8.507059e+37  ;;  %vm1275_vm14 = vweird.f32 %v4603_v33  ;;  %vm1305_vm0 = vweird.f32 %v4617_v54  ;;  %v3229_v25 = vld [vmem:[%s5109_s1 + $0x4b4] sm:$0xf0] }
 0x195   : > { %v3329_v19 = vpop.eup %3328  ;;  %v1258_v22 = vmul.f32 %v4614_v38, %v1257_v7  ;;  %v1201_v24 = vadd.f32 %v1200_v58, %v1187_v14  ;;  %3336 = vtanh.f32 %v1227_v11  ;;  %v707_v11 = vld [vmem:[#allocation3 + $0x20] sm:$0xff]  ;;  %v3020_v9 = vor.u32 %v3263_v48, %v3017_v49  ;;  %v3259_v58 = vld [vmem:[%s5109_s1 + $0x5ac] sm:$0xf]  ;;  %v3225_v48 = vld [vmem:[%s5109_s1 + $0x494] sm:$0xf0] }
 0x196   : > { %v4667_v8 = vpop.eup %3330  ;;  %v4669_v5 = vadd.f32 1.0, %v3329_v19  ;;  %v2888_v14 = vor.u32 %v3233_v50, %v2887_v23  ;;  %v2892_v55 = vor.u32 %v3231_v10, %v2889_v57  ;;  %v1370_v50 = vpack.c.bf16 %v1365_v28, %v1365_v28  ;;  %v2809_v10 = vld [vmem:[%s5109_s1 + $0x438] sm:$0xf0] }
 0x197   : > { %v3333_v0 = vpop.eup %3332  ;;  %v1271_v12 = vmul.f32 %v4667_v8, %v4603_v33  ;;  %v1259_v26 = vadd.f32 %v4614_v38, %v1258_v22  ;;  %v2715_v37 = vmul.f32 -1.442695, %v1201_v24  ;;  %vm1276_vm15 = vweird.f32 %v4667_v8  ;;  %v3001_v22 = vld [vmem:[%s5109_s1 + $0x5b8] sm:$0xf0]  ;;  %v2871_v24 = vld [vmem:[%s5109_s1 + $0x4a8] sm:$0xf]  ;;  %1878 = vmatpush.bf16.msrb.mxu3 %v3020_v9 }
 0x198   : > { %v4684_v30 = vpop.eup %3334  ;;  %3338 = vrcp.f32 %v4669_v5  ;;  %v1326_v32 = vand.u32 2147483648, %v4669_v5  ;;  %v4688_v34 = vadd.f32 1.0, %v3333_v0  ;;  %v1214_v17 = vpop.f32.mrf.mxu2  ;;  %vm1320_vm1 = vweird.f32 %v4669_v5  ;;  %vm4762_vm3 = vmor %vm1275_vm14, %vm1276_vm15  ;;  %1836 = vmatpush.bf16.msrb.mxu0 %v2888_v14  ;;  %1864 = vmatpush.bf16.msrb.mxu2 %v2892_v55 }
 0x199   : > { %v1272_v43 = vsub.f32 1.0, %v1271_v12  ;;  %v1301_v44 = vmul.f32 %v4684_v30, %v4617_v54  ;;  %v1263_v15 = vsel %vm4694_vm12, %v4614_v38, %v1259_v26  ;;  %3340 = vpow2.f32 %v2715_v37  ;;  %v3227_v26 = vld [vmem:[%s5109_s1 + $0x4ac] sm:$0xf] }
 0x19a   : > { %3342 = vrcp.f32 %v4688_v34  ;;  %v4732_v56 = vor.u32 1.1754944e-38, %v1326_v32  ;;  %v1215_v40 = vadd.f32 %v1214_v17, %v794_v29  ;;  %v1296_v61 = vand.u32 2147483648, %v4688_v34  ;;  %v2967_v32 = vld [vmem:[%s5109_s1 + $0x568] sm:$0xf] }
 0x19b   : > { %v1273_v51 = vmul.f32 %v4667_v8, %v1272_v43  ;;  %v1302_v38 = vsub.f32 1.0, %v1301_v44  ;;  %v3337_v60 = vpop.eup %3336  ;;  %v1268_v39 = vsel %vm4651_vm9, %v4619_v36, %v1263_v15  ;;  %vm1306_vm2 = vweird.f32 %v4684_v30  ;;  %v2985_v43 = vld [vmem:[%s5109_s1 + $0x598] sm:$0xf0] }
 0x19c   : > { %v1229_v63 = vadd.f32 %v1228_v62, %v1215_v40  ;;  %v1324_v53 = vand.u32 2147483647, %v4669_v5  ;;  %v1349_v18 = vmul.f32 %v3337_v60, %v1268_v39  ;;  %vm4796_vm4 = vmor %vm1305_vm0, %vm1306_vm2  ;;  %v2984_v12 = vor.u32 %v3257_v4, %v2983_v3  ;;  %v2857_v40 = vld [vmem:[%s5109_s1 + $0x498] sm:$0xf0] }
 0x19d   : > { %v1274_v29 = vadd.f32 %v4667_v8, %v1273_v51  ;;  %v1303_v1 = vmul.f32 %v4684_v30, %v1302_v38  ;;  %v3004_v45 = vor.u32 %v3259_v58, %v3001_v22  ;;  %v2872_v49 = vor.u32 %v3229_v25, %v2871_v24  ;;  %v3223_v38 = vld [vmem:[%s5109_s1 + $0x48c] sm:$0xf]  ;;  %v2969_v36 = vld [vmem:[%s5109_s1 + $0x578] sm:$0xf0]  ;;  %v2935_v24 = vld [vmem:[%s5109_s1 + $0x528] sm:$0xf] }
 0x19e   : > { %v4756_v7 = vpop.eup %3338  ;;  %3344 = vtanh.f32 %v1229_v63  ;;  %vm4822_vm6 = vcmp.eq.f32.partialorder %v1324_v53, 8.507059e+37  ;;  %1852 = vmatpush.bf16.msrb.mxu1 %v2984_v12  ;;  %v1379_v51 = vunpack.c.l.b16 %v1369_v6  ;;  %v2968_v60 = vor.u32 %v3253_v35, %v2967_v32  ;;  %v3249_v63 = vld [vmem:[%s5109_s1 + $0x554] sm:$0xf0] }
 0x19f   : > { %v3341_v16 = vpop.eup %3340  ;;  %v1316_v47 = vmul.f32 %v4756_v7, %v4669_v5  ;;  %v1278_v33 = vsel %vm4762_vm3, %v4667_v8, %v1274_v29  ;;  %v1304_v19 = vadd.f32 %v4684_v30, %v1303_v1  ;;  %vm1321_vm5 = vweird.f32 %v4756_v7  ;;  %1879 = vmatpush.bf16.msrb.mxu3 %v3004_v45  ;;  %1837 = vmatpush.bf16.msrb.mxu0 %v2872_v49  ;;  %v2951_v29 = vld [vmem:[%s5109_s1 + $0x548] sm:$0xf]  ;;  %v3251_v1 = vld [vmem:[%s5109_s1 + $0x56c] sm:$0xf]  ;;  %v3221_v53 = vld [vmem:[%s5109_s1 + $0x474] sm:$0xf0] }
 0x1a0   : > { %v4785_v21 = vpop.eup %3342  ;;  %v1283_v8 = vsel %vm4674_vm11, %v4663_v20, %v1278_v33  ;;  %v4790_v52 = vadd.f32 1.0, %v3341_v16  ;;  %v2873_v20 = vld [vmem:[%s5109_s1 + $0x4b8] sm:$0xf0]  ;;  %vm4852_vm7 = vmor %vm1320_vm1, %vm1321_vm5  ;;  %vm1290_vm8 = vweird.f32 %v4688_v34  ;;  %v1380_v62 = vunpack.c.l.b16 %v1370_v50  ;;  %v3245_v25 = vld [vmem:[%s5109_s1 + $0x534] sm:$0xf0] }
 0x1a1   : > { %v1317_v13 = vsub.f32 1.0, %v1316_v47  ;;  %v1286_v54 = vmul.f32 %v4785_v21, %v4688_v34  ;;  %v1347_v37 = vmul.f32 %v1283_v8, %v707_v11  ;;  %v1308_v27 = vsel %vm4796_vm4, %v4684_v30, %v1304_v19  ;;  %v3255_v30 = vld [vmem:[%s5109_s1 + $0x58c] sm:$0xf]  ;;  %v2839_v11 = vld [vmem:[%s5109_s1 + $0x468] sm:$0xf] }
 0x1a2   : > { %3346 = vrcp.f32 %v4790_v52  ;;  %v1313_v17 = vsel %vm4708_vm13, %v4698_v41, %v1308_v27  ;;  %v2855_v41 = vld [vmem:[%s5109_s1 + $0x488] sm:$0xf]  ;;  %v2876_v23 = vor.u32 %v3227_v26, %v2873_v20  ;;  %v2988_v5 = vor.u32 %v3255_v30, %v2985_v43  ;;  %1853 = vmatpush.bf16.msrb.mxu1 %v2968_v60  ;;  %v3219_v47 = vld [vmem:[%s5109_s1 + $0x46c] sm:$0xf]  ;;  %v2841_v33 = vld [vmem:[%s5109_s1 + $0x478] sm:$0xf0] }
 0x1a3   : > { %v1318_v44 = vmul.f32 %v4756_v7, %v1317_v13  ;;  %v1287_v15 = vsub.f32 1.0, %v1286_v54  ;;  %v1351_v46 = vadd.f32 %v1349_v18, %v1347_v37  ;;  %v2856_v59 = vor.u32 %v3225_v48, %v2855_v41  ;;  %v2823_v54 = vld [vmem:[%s5109_s1 + $0x448] sm:$0xf]  ;;  %v3217_v37 = vld [vmem:[%s5109_s1 + $0x454] sm:$0xf0] }
 0x1a4   : > { %v3345_v39 = vpop.eup %3344  ;;  %1865 = vmatpush.bf16.msrb.mxu2 %v2876_v23  ;;  %v2860_v3 = vor.u32 %v3223_v38, %v2857_v40  ;;  %vm1291_vm9 = vweird.f32 %v4785_v21  ;;  %v4887_v55 = vpack.c.b16 %v1380_v62, %v1379_v51  ;;  %v1294_v16 = vand.u32 2147483647, %v4688_v34  ;;  %1880 = vmatpush.bf16.msrb.mxu3 %v2988_v5  ;;  %v3247_v34 = vld [vmem:[%s5109_s1 + $0x54c] sm:$0xf]  ;;  %v2937_v41 = vld [vmem:[%s5109_s1 + $0x538] sm:$0xf0] }
 0x1a5   : > { %v1288_v57 = vmul.f32 %v4785_v21, %v1287_v15  ;;  %3348 = vtanh.f32 %v1351_v46  ;;  %1359 = vst [vmem:[#allocation3 + $0x20] sm:$0xff] %v1351_v46  ;;  %v1319_v6 = vadd.f32 %v4756_v7, %v1318_v44  ;;  %v1350_v14 = vmul.f32 %v3345_v39, %v1313_v17  ;;  %vm4891_vm10 = vmor %vm1290_vm8, %vm1291_vm9  ;;  %1838 = vmatpush.bf16.msrb.mxu0 %v2856_v59  ;;  %v3215_v17 = vld [vmem:[%s5109_s1 + $0x44c] sm:$0xf]  ;;  %v2919_v15 = vld [vmem:[%s5109_s1 + $0x508] sm:$0xf] }
 0x1a6   : > { %v1297_v22 = vor.u32 1.1754944e-38, %v1296_v61  ;;  %v1341_v8 = vand.u32 2147483648, %v4790_v52  ;;  %1829 = vmatmul.bf16.vlgmr.msra.gmra.mxu3 %v4887_v55  ;;  %1801 = vmatmul.bf16.vlgmr.msra.gmra.mxu1 %v4887_v55  ;;  %vm1295_vm11 = vcmp.eq.f32.partialorder %v1294_v16, 8.507059e+37  ;;  %v2953_v61 = vld [vmem:[%s5109_s1 + $0x558] sm:$0xf0]  ;;  %v2972_v13 = vor.u32 %v3251_v1, %v2969_v36 }
 0x1a7   : > { %v1323_v2 = vsel %vm4852_vm7, %v4756_v7, %v1319_v6  ;;  %v1289_v4 = vadd.f32 %v4785_v21, %v1288_v57  ;;  %v1339_v27 = vand.u32 2147483647, %v4790_v52  ;;  %v2840_v32 = vor.u32 %v3221_v53, %v2839_v11  ;;  %v3241_v46 = vld [vmem:[%s5109_s1 + $0x514] sm:$0xf0]  ;;  %v3243_v45 = vld [vmem:[%s5109_s1 + $0x52c] sm:$0xf] }
 0x1a8   : > { %v4882_v9 = vpop.eup %3346  ;;  %v1328_v7 = vsel %vm4822_vm6, %v4732_v56, %v1323_v2  ;;  %1866 = vmatpush.bf16.msrb.mxu2 %v2860_v3  ;;  %v2844_v35 = vor.u32 %v3219_v47, %v2841_v33  ;;  %1881 = vmatpush.bf16.msrb.mxu3 %v2972_v13  ;;  %v2936_v43 = vor.u32 %v3245_v25, %v2935_v24  ;;  %vm1335_vm13 = vweird.f32 %v4790_v52  ;;  %v2807_v50 = vld [vmem:[%s5109_s1 + $0x428] sm:$0xf]  ;;  %v3213_v51 = vld [vmem:[%s5109_s1 + $0x434] sm:$0xf0]  ;;  %v3211_v40 = vld [vmem:[%s5109_s1 + $0x42c] sm:$0xf] }
 0x1a9   : > { %v1331_v56 = vmul.f32 %v4882_v9, %v4790_v52  ;;  %v1348_v18 = vmul.f32 %v1328_v7, %v708_v31  ;;  %v1293_v19 = vsel %vm4891_vm10, %v4785_v21, %v1289_v4  ;;  %vm1336_vm12 = vweird.f32 %v4882_v9  ;;  %1839 = vmatpush.bf16.msrb.mxu0 %v2840_v32  ;;  %v3239_v60 = vld [vmem:[%s5109_s1 + $0x50c] sm:$0xf]  ;;  %v2921_v39 = vld [vmem:[%s5109_s1 + $0x518] sm:$0xf0]  ;;  %v3209_v2 = vld [vmem:[%s5109_s1 + $0x414] sm:$0xf0] }
 0x1aa   : > { %v2952_v21 = vor.u32 %v3249_v63, %v2951_v29  ;;  %v1298_v20 = vsel %vm1295_vm11, %v1297_v22, %v1293_v19  ;;  %v2956_v44 = vor.u32 %v3247_v34, %v2953_v61  ;;  %v2824_v49 = vor.u32 %v3217_v37, %v2823_v54  ;;  %vm1337_vm14 = vmor %vm1335_vm13, %vm1336_vm12  ;;  %v2791_v29 = vld [vmem:[%s5109_s1 + $0x408] sm:$0xf]  ;;  %v3207_v3 = vld [vmem:[%s5109_s1 + $0x40c] sm:$0xf] }
 0x1ab   : > { %v3349_v0 = vpop.eup %3348  ;;  %v1332_v12 = vsub.f32 1.0, %v1331_v56  ;;  %v1352_v26 = vadd.f32 %v1350_v14, %v1348_v18  ;;  %v2828_v23 = vor.u32 %v3215_v17, %v2825_v42  ;;  %v1342_v38 = vor.u32 1.1754944e-38, %v1341_v8  ;;  %v2793_v4 = vld [vmem:[%s5109_s1 + $0x418] sm:$0xf0]  ;;  %v4991_v16 = vld [vmem:[%s5110_s2 + $0x8] sm:$0xf] }
 0x1ac   : > { %v1355_v28 = vmul.f32 %v3349_v0, %v1298_v20  ;;  %1854 = vmatpush.bf16.msrb.mxu1 %v2952_v21  ;;  %1867 = vmatpush.bf16.msrb.mxu2 %v2844_v35  ;;  %v2920_v52 = vor.u32 %v3241_v46, %v2919_v15  ;;  %vm1340_vm15 = vcmp.eq.f32.partialorder %v1339_v27, 8.507059e+37  ;;  %v2940_v31 = vor.u32 %v3243_v45, %v2937_v41  ;;  %v3277_v20 = vld [vmem:[%s5111_s3 + $0x38] sm:$0xff]  ;;  %v3276_v17 = vld [vmem:[%s5111_s3 + $0x30] sm:$0xff] }
 0x1ad   : > { %v1333_v30 = vmul.f32 %v4882_v9, %v1332_v12  ;;  %3350 = vtanh.f32 %v1352_v26  ;;  %1360 = vst [vmem:[#allocation3 + $0x18] sm:$0xff] %v1352_v26  ;;  %1882 = vmatpush.bf16.msrb.mxu3 %v2956_v44  ;;  %1840 = vmatpush.bf16.msrb.mxu0 %v2824_v49  ;;  %v2808_v5 = vor.u32 %v3213_v51, %v2807_v50  ;;  %v1451_v33 = vperm.slane %v4991_v16, 0  ;;  %v3274_v51 = vld [vmem:[%s5111_s3 + $0x20] sm:$0xff] }
 0x1ae   : > { %1357 = vst [vmem:[#allocation2 + $0x8] sm:$0xff] %v1355_v28  ;;  %v2812_v59 = vor.u32 %v3211_v40, %v2809_v10  ;;  %v1361_v1 = vpack.c.bf16 %v1355_v28, %v1355_v28  ;;  %v2924_v36 = vor.u32 %v3239_v60, %v2921_v39  ;;  %v2792_v53 = vor.u32 %v3209_v2, %v2791_v29 }
 0x1af   : > { %v1334_v48 = vadd.f32 %v4882_v9, %v1333_v30  ;;  %v1452_v22 = vperm.slane %v4991_v16, 1  ;;  %v1453_v37 = vperm.slane %v4991_v16, 2  ;;  %v1454_v41 = vperm.slane %v4991_v16, 3 }
 0x1b0   : > { %1855 = vmatpush.bf16.msrb.mxu1 %v2936_v43  ;;  %1868 = vmatpush.bf16.msrb.mxu2 %v2828_v23  ;;  %v1373_v7 = vunpack.c.l.b16 %v1361_v1 }
 0x1b1   : > { %v1338_v57 = vsel %vm1337_vm14, %v4882_v9, %v1334_v48  ;;  %1883 = vmatpush.bf16.msrb.mxu3 %v2940_v31  ;;  %1841 = vmatpush.bf16.msrb.mxu0 %v2808_v5  ;;  %v2796_v9 = vor.u32 %v3207_v3, %v2793_v4  ;;  %v3275_v48 = vld [vmem:[%s5111_s3 + $0x28] sm:$0xff]  ;;  %v3273_v5 = vld [vmem:[%s5111_s3 + $0x18] sm:$0xff] }
 0x1b2   : > { %v1343_v6 = vsel %vm1340_vm15, %v1342_v38, %v1338_v57 }
 0x1b3   : > { %v3351_v62 = vpop.eup %3350 }
 0x1b4   : > { %v1356_v63 = vmul.f32 %v3351_v62, %v1343_v6  ;;  %1856 = vmatpush.bf16.msrb.mxu1 %v2920_v52  ;;  %1869 = vmatpush.bf16.msrb.mxu2 %v2812_v59 }
 0x1b5   : > { %1884 = vmatpush.bf16.msrb.mxu3 %v2924_v36  ;;  %1842 = vmatpush.bf16.msrb.mxu0 %v2792_v53 }
 0x1b6   : > { %1358 = vst [vmem:[#allocation2] sm:$0xff] %v1356_v63  ;;  %v1362_v11 = vpack.c.bf16 %v1356_v63, %v1356_v63 }
 0x1b7   : > { %1857 = vmatmul.bf16.vlgmr.msrb.gmra.mxu1 %v4887_v55 }
 0x1b8   : > { %v1374_v14 = vunpack.c.l.b16 %v1362_v11  ;;  %1870 = vmatpush.bf16.msrb.mxu2 %v2796_v9  ;;  %1885 = vmatmul.bf16.vlgmr.msrb.gmra.mxu3 %v4887_v55  ;;  %v3272_v9 = vld [vmem:[%s5111_s3 + $0x10] sm:$0xff] }
 0x1ba   : > { %v1375_v58 = vpack.c.b16 %v1374_v14, %v1373_v7 }
 0x1bc   : > { %1787 = vmatmul.bf16.vlgmr.msra.gmra.mxu0 %v1375_v58  ;;  %1815 = vmatmul.bf16.vlgmr.msra.gmra.mxu2 %v1375_v58 }
 0x1bd   : > { %2090 = vmatpush.bf16.msra.mxu0 %v3277_v20 }
 0x1c1   : > { %2091 = vmatpush.bf16.msra.mxu0 %v3276_v17 }
 0x1c5   : > { %2092 = vmatpush.bf16.msra.mxu0 %v3275_v48 }
 0x1c9   : > { %2093 = vmatpush.bf16.msra.mxu0 %v3274_v51 }
 0x1cc   : > { %1843 = vmatmul.bf16.vlgmr.msrb.gmra.mxu0 %v1375_v58  ;;  %1871 = vmatmul.bf16.vlgmr.msrb.gmra.mxu2 %v1375_v58 }
 0x1cd   : > { %2094 = vmatpush.bf16.msra.mxu0 %v3273_v5 }
 0x1d1   : > { %2095 = vmatpush.bf16.msra.mxu0 %v3272_v9 }
 0x223   : > { %v1802_v47 = vpop.f32.mrf.mxu1 }
 0x229   : > { %v1830_v25 = vpop.f32.mrf.mxu3 }
 0x22b   : > { %v1804_v8 = vpop.f32.mrf.mxu1 }
 0x231   : > { %v1832_v32 = vpop.f32.mrf.mxu3 }
 0x234   : > { %v1858_v42 = vpop.f32.mrf.mxu1 }
 0x239   : > { %v1788_v56 = vpop.f32.mrf.mxu0 }
 0x23a   : > { %v1789_v18 = vadd.f32 %v1788_v56, %v1451_v33 }
 0x23b   : > { %v1886_v57 = vpop.f32.mrf.mxu3 }
 0x23c   : > { %v1803_v19 = vadd.f32 %v1802_v47, %v1789_v18  ;;  %v1860_v59 = vpop.f32.mrf.mxu1 }
 0x23e   : > { %v3037_v24 = vmul.f32 -1.442695, %v1803_v19 }
 0x23f   : > { %v1816_v21 = vpop.f32.mrf.mxu2 }
 0x240   : > { %3352 = vpow2.f32 %v3037_v24  ;;  %v1817_v55 = vadd.f32 %v1816_v21, %v1452_v22 }
 0x241   : > { %v1790_v34 = vpop.f32.mrf.mxu0 }
 0x242   : > { %v1831_v61 = vadd.f32 %v1830_v25, %v1817_v55  ;;  %v1791_v0 = vadd.f32 %v1790_v34, %v1451_v33  ;;  %v3271_v34 = vld [vmem:[%s5111_s3 + $0x8] sm:$0xff] }
 0x243   : > { %v1888_v55 = vpop.f32.mrf.mxu3  ;;  %2096 = vmatpush.bf16.msra.mxu0 %v3271_v34 }
 0x244   : > { %v3038_v12 = vmul.f32 -1.442695, %v1831_v61  ;;  %v1805_v26 = vadd.f32 %v1804_v8, %v1791_v0 }
 0x246   : > { %v3353_v13 = vpop.eup %3352  ;;  %3354 = vpow2.f32 %v3038_v12  ;;  %v3040_v54 = vmul.f32 -1.442695, %v1805_v26 }
 0x247   : > { %v4999_v27 = vadd.f32 1.0, %v3353_v13  ;;  %v1818_v28 = vpop.f32.mrf.mxu2 }
 0x248   : > { %3356 = vpow2.f32 %v3040_v54  ;;  %v1819_v35 = vadd.f32 %v1818_v28, %v1452_v22 }
 0x249   : > { %3358 = vrcp.f32 %v4999_v27  ;;  %v1844_v30 = vpop.f32.mrf.mxu0  ;;  %vm1920_vm0 = vweird.f32 %v4999_v27  ;;  %v1924_v58 = vand.u32 2147483647, %v4999_v27  ;;  %v1926_v16 = vand.u32 2147483648, %v4999_v27 }
 0x24a   : > { %v1833_v43 = vadd.f32 %v1832_v32, %v1819_v35  ;;  %v1845_v44 = vadd.f32 %v1844_v30, %v1453_v37 }
 0x24b   : > { %vm1925_vm4 = vcmp.eq.f32.partialorder %v1924_v58, 8.507059e+37  ;;  %v1927_v61 = vor.u32 1.1754944e-38, %v1926_v16 }
 0x24c   : > { %v3355_v15 = vpop.eup %3354  ;;  %v3041_v46 = vmul.f32 -1.442695, %v1833_v43  ;;  %v1859_v45 = vadd.f32 %v1858_v42, %v1845_v44  ;;  %v3270_v43 = vld [vmem:[%s5111_s3] sm:$0xff] }
 0x24d   : > { %v5009_v49 = vadd.f32 1.0, %v3355_v15  ;;  %2097 = vmatpush.bf16.msra.mxu0 %v3270_v43 }
 0x24e   : > { %v3357_v23 = vpop.eup %3356  ;;  %3360 = vpow2.f32 %v3041_v46  ;;  %v3039_v50 = vmul.f32 -1.442695, %v1859_v45 }
 0x24f   : > { %v5014_v38 = vpop.eup %3358  ;;  %3362 = vrcp.f32 %v5009_v49  ;;  %v5017_v52 = vadd.f32 1.0, %v3357_v23  ;;  %v1872_v40 = vpop.f32.mrf.mxu2  ;;  %v1941_v56 = vand.u32 2147483648, %v5009_v49  ;;  %v1939_v22 = vand.u32 2147483647, %v5009_v49 }
 0x250   : > { %v1916_v10 = vmul.f32 %v5014_v38, %v4999_v27  ;;  %3364 = vpow2.f32 %v3039_v50  ;;  %v1873_v31 = vadd.f32 %v1872_v40, %v1454_v41  ;;  %vm1921_vm1 = vweird.f32 %v5014_v38  ;;  %v1367_v27 = vld [vmem:[#allocation3 + $0x28] sm:$0xff] }
 0x251   : > { %3366 = vrcp.f32 %v5017_v52  ;;  %v1846_v6 = vpop.f32.mrf.mxu0  ;;  %vm5050_vm2 = vmor %vm1920_vm0, %vm1921_vm1  ;;  %v1969_v12 = vand.u32 2147483647, %v5017_v52  ;;  %vm1935_vm5 = vweird.f32 %v5009_v49  ;;  %v1942_v20 = vor.u32 1.1754944e-38, %v1941_v56 }
 0x252   : > { %v1917_v60 = vsub.f32 1.0, %v1916_v10  ;;  %v1887_v39 = vadd.f32 %v1886_v57, %v1873_v31  ;;  %v1847_v62 = vadd.f32 %v1846_v6, %v1453_v37  ;;  %vm1940_vm7 = vcmp.eq.f32.partialorder %v1939_v22, 8.507059e+37 }
 0x253   : > { %vm1965_vm8 = vweird.f32 %v5017_v52  ;;  %v1971_v32 = vand.u32 2147483648, %v5017_v52  ;;  %vm5073_vm10 = vcmp.eq.f32.partialorder %v1969_v12, 8.507059e+37 }
 0x254   : > { %v3361_v29 = vpop.eup %3360  ;;  %v1918_v63 = vmul.f32 %v5014_v38, %v1917_v60  ;;  %v1861_v1 = vadd.f32 %v1860_v59, %v1847_v62  ;;  %3368 = vtanh.f32 %v1887_v39 }
 0x255   : > { %v3363_v2 = vpop.eup %3362  ;;  %v5026_v3 = vadd.f32 1.0, %v3361_v29  ;;  %v1972_v6 = vor.u32 1.1754944e-38, %v1971_v32  ;;  %v1368_v29 = vld [vmem:[#allocation3 + $0x10] sm:$0xff] }
 0x256   : > { %v3365_v4 = vpop.eup %3364  ;;  %v1931_v36 = vmul.f32 %v3363_v2, %v5009_v49  ;;  %v1919_v11 = vadd.f32 %v5014_v38, %v1918_v63  ;;  %v3042_v53 = vmul.f32 -1.442695, %v1861_v1  ;;  %vm1936_vm3 = vweird.f32 %v3363_v2 }
 0x257   : > { %v5035_v7 = vpop.eup %3366  ;;  %3370 = vrcp.f32 %v5026_v3  ;;  %v5038_v14 = vadd.f32 1.0, %v3365_v4  ;;  %v1874_v47 = vpop.f32.mrf.mxu2  ;;  %vm1937_vm6 = vmor %vm1935_vm5, %vm1936_vm3  ;;  %v1986_v50 = vand.u32 2147483648, %v5026_v3  ;;  %vm1980_vm13 = vweird.f32 %v5026_v3 }
 0x258   : > { %v1932_v33 = vsub.f32 1.0, %v1931_v36  ;;  %v1961_v18 = vmul.f32 %v5035_v7, %v5017_v52  ;;  %3372 = vpow2.f32 %v3042_v53  ;;  %v1875_v24 = vadd.f32 %v1874_v47, %v1454_v41 }
 0x259   : > { %3374 = vrcp.f32 %v5038_v14  ;;  %v1923_v21 = vsel %vm5050_vm2, %v5014_v38, %v1919_v11  ;;  %vm1966_vm9 = vweird.f32 %v5035_v7  ;;  %v1984_v38 = vand.u32 2147483647, %v5026_v3 }
 0x25a   : > { %v1933_v25 = vmul.f32 %v3363_v2, %v1932_v33  ;;  %v1962_v8 = vsub.f32 1.0, %v1961_v18  ;;  %v1889_v0 = vadd.f32 %v1888_v55, %v1875_v24  ;;  %v3369_v26 = vpop.eup %3368  ;;  %v1928_v28 = vsel %vm1925_vm4, %v1927_v61, %v1923_v21  ;;  %vm5083_vm12 = vmor %vm1965_vm8, %vm1966_vm9  ;;  %v3287_v61 = vld [vmem:[%s5112_s4] ss:$0 sm:$0xff] }
 0x25b   : > { %v2009_v23 = vmul.f32 %v3369_v26, %v1928_v28  ;;  %v1954_v60 = vand.u32 2147483647, %v5038_v14  ;;  %v1956_v52 = vand.u32 2147483648, %v5038_v14  ;;  %v1987_v59 = vor.u32 1.1754944e-38, %v1986_v50 }
 0x25c   : > { %v1934_v13 = vadd.f32 %v3363_v2, %v1933_v25  ;;  %v1963_v54 = vmul.f32 %v5035_v7, %v1962_v8  ;;  %3376 = vtanh.f32 %v1889_v0  ;;  %vm1985_vm0 = vcmp.eq.f32.partialorder %v1984_v38, 8.507059e+37 }
 0x25d   : > { %v3371_v37 = vpop.eup %3370  ;;  %vm1950_vm1 = vweird.f32 %v5038_v14  ;;  %vm1955_vm3 = vcmp.eq.f32.partialorder %v1954_v60, 8.507059e+37  ;;  %v1957_v36 = vor.u32 1.1754944e-38, %v1956_v52 }
 0x25e   : > { %v3373_v35 = vpop.eup %3372  ;;  %v1976_v17 = vmul.f32 %v3371_v37, %v5026_v3  ;;  %v1938_v42 = vsel %vm1937_vm6, %v3363_v2, %v1934_v13  ;;  %v1964_v30 = vadd.f32 %v5035_v7, %v1963_v54  ;;  %vm1981_vm11 = vweird.f32 %v3371_v37 }
 0x25f   : > { %v3375_v44 = vpop.eup %3374  ;;  %v1943_v15 = vsel %vm1940_vm7, %v1942_v20, %v1938_v42  ;;  %v1914_v46 = vadd.f32 1.0, %v3373_v35  ;;  %vm1982_vm15 = vmor %vm1980_vm13, %vm1981_vm11 }
 0x260   : > { %v1977_v41 = vsub.f32 1.0, %v1976_v17  ;;  %v1946_v48 = vmul.f32 %v3375_v44, %v5038_v14  ;;  %v2007_v49 = vmul.f32 %v1943_v15, %v1367_v27  ;;  %v1968_v31 = vsel %vm5083_vm12, %v5035_v7, %v1964_v30 }
 0x261   : > { %3378 = vrcp.f32 %v1914_v46  ;;  %vm1951_vm14 = vweird.f32 %v3375_v44  ;;  %v1973_v63 = vsel %vm5073_vm10, %v1972_v6, %v1968_v31  ;;  %v2001_v56 = vand.u32 2147483648, %v1914_v46 }
 0x262   : > { %v1978_v40 = vmul.f32 %v3371_v37, %v1977_v41  ;;  %v1947_v10 = vsub.f32 1.0, %v1946_v48  ;;  %v2011_v57 = vadd.f32 %v2009_v23, %v2007_v49  ;;  %v3377_v5 = vpop.eup %3376  ;;  %vm1952_vm2 = vmor %vm1950_vm1, %vm1951_vm14  ;;  %v1999_v14 = vand.u32 2147483647, %v1914_v46 }
 0x263   : > { %v2010_v9 = vmul.f32 %v3377_v5, %v1973_v63  ;;  %vm1995_vm5 = vweird.f32 %v1914_v46  ;;  %v2002_v24 = vor.u32 1.1754944e-38, %v2001_v56 }
 0x264   : > { %3380 = vtanh.f32 %v2011_v57  ;;  %2019 = vst [vmem:[#allocation3 + $0x28] sm:$0xff] %v2011_v57  ;;  %v1979_v39 = vadd.f32 %v3371_v37, %v1978_v40  ;;  %v1948_v62 = vmul.f32 %v3375_v44, %v1947_v10  ;;  %vm2000_vm7 = vcmp.eq.f32.partialorder %v1999_v14, 8.507059e+37 }
 0x266   : > { %v1983_v1 = vsel %vm1982_vm15, %v3371_v37, %v1979_v39  ;;  %v1949_v2 = vadd.f32 %v3375_v44, %v1948_v62 }
 0x267   : > { %v3379_v3 = vpop.eup %3378  ;;  %v1988_v4 = vsel %vm1985_vm0, %v1987_v59, %v1983_v1 }
 0x268   : > { %v1991_v11 = vmul.f32 %v3379_v3, %v1914_v46  ;;  %v2008_v53 = vmul.f32 %v1988_v4, %v1368_v29  ;;  %v1953_v7 = vsel %vm1952_vm2, %v3375_v44, %v1949_v2  ;;  %vm1996_vm4 = vweird.f32 %v3379_v3 }
 0x269   : > { %v1958_v58 = vsel %vm1955_vm3, %v1957_v36, %v1953_v7  ;;  %vm1997_vm6 = vmor %vm1995_vm5, %vm1996_vm4 }
 0x26a   : > { %v3381_v16 = vpop.eup %3380  ;;  %v1992_v47 = vsub.f32 1.0, %v1991_v11  ;;  %v2012_v33 = vadd.f32 %v2010_v9, %v2008_v53 }
 0x26b   : > { %v2015_v18 = vmul.f32 %v3381_v16, %v1958_v58 }
 0x26c   : > { %3382 = vtanh.f32 %v2012_v33  ;;  %2020 = vst [vmem:[#allocation3 + $0x10] sm:$0xff] %v2012_v33  ;;  %v1993_v19 = vmul.f32 %v3379_v3, %v1992_v47 }
 0x26d   : > { %2017 = vst [vmem:[#allocation2 + $0x18] sm:$0xff] %v2015_v18 }
 0x26e   : > { %v1994_v22 = vadd.f32 %v3379_v3, %v1993_v19 }
 0x270   : > { %v1998_v25 = vsel %vm1997_vm6, %v3379_v3, %v1994_v22 }
 0x271   : > { %v2003_v8 = vsel %vm2000_vm7, %v2002_v24, %v1998_v25 }
 0x272   : > { %v3383_v21 = vpop.eup %3382 }
 0x273   : > { %v2016_v55 = vmul.f32 %v3383_v21, %v2003_v8 }
 0x275   : > { %2018 = vst [vmem:[#allocation2 + $0x20] sm:$0xff] %v2016_v55  ;;  %v2021_v34 = vpack.c.bf16 %v2016_v55, %v2015_v18 }
 0x277   : > { %2098 = vmatmul.bf16.vlgmr.msra.gmra.mxu0 %v2021_v34 }
 0x2f4   : > { %v2099_v0 = vpop.f32.mrf.mxu0 }
 0x2f5   : > { %v2100_v12 = vadd.f32 %v3287_v61, %v2099_v0 }
 0x2f7   : > { %2106 = vst [vmem:[%s2105_s26] sm:$0xff] %v2100_v12 }
 0x2fb   :  { %40 = sbr.rel (!%p38_p0) target bundleno = 13 (0xd), region = 61 }
 0x2fc   : > { %v2101_v26 = vpop.f32.mrf.mxu0 }
 0x2fd   : > { %v2102_v20 = vadd.f32 %v3287_v61, %v2101_v26 }
 0x2ff   : > { %2107 = vst [vmem:[%s2105_s26 + $0x8] sm:$0xff] %v2102_v20 }

</bundles_post_ra>
